<compile_context>
chip_gen: v7x
topology: tpu7x:2x2x1
jax: 0.10.0
libtpu: 0.0.40
codegen_flags: <defaults>
</compile_context>

<pallas_src>
import jax
import jax.numpy as jnp
from jax import lax
from jax.experimental import pallas as pl
from jax.experimental.pallas import tpu as pltpu


# bf16 GEMM operands + f32 accumulation and f32 bias/ReLU epilogue.
# Set to jnp.float32 for bit-tight numerics vs. the reference.
COMPUTE_DTYPE = jnp.bfloat16


# ----------------------------------------------------------------------------
# Bilinear (align_corners=True) interpolation matrix, same math as nn.Upsample.
# ----------------------------------------------------------------------------
def bilinear_matrix(n_in: int, n_out: int) -> jnp.ndarray:
    if n_in == 1:
        return jnp.ones((n_out, 1), jnp.float32)
    src = jnp.arange(n_out, dtype=jnp.float32) * (n_in - 1) / (n_out - 1)
    i0 = jnp.clip(jnp.floor(src).astype(jnp.int32), 0, n_in - 1)
    i1 = jnp.clip(i0 + 1, 0, n_in - 1)
    frac = src - i0.astype(jnp.float32)
    rows = jnp.arange(n_out)
    m = jnp.zeros((n_out, n_in), jnp.float32)
    m = m.at[rows, i0].add(1.0 - frac)
    m = m.at[rows, i1].add(frac)
    return m


def _vmem_limit_bytes():
    """Per-generation VMEM cap: <= 3/4 of physical, never above 100 MiB.
    (v5e/v6e: 128 MiB physical -> 96 MiB; v7x: 64 MiB physical -> 48 MiB.)"""
    try:
        cap = int(pltpu.get_tpu_info().vmem_capacity_bytes)
    except Exception:
        return None
    return min(100 * 1024 * 1024, (cap * 3) // 4)


def prepare_params(params):
    """Hoisted weight prep (call once, outside the jitted forward).

    OIHW (Cout, Cin, 3, 3) -> (Cout, 9*Cin) bf16 with K ordered (dy, dx, ci),
    matching the in-kernel im2col patch row order; bias -> (Cout, 1) f32.
    """
    prepped = []
    for (w, b) in params:
        co, ci = int(w.shape[0]), int(w.shape[1])
        w2 = jnp.transpose(w, (0, 2, 3, 1)).reshape(co, 9 * ci).astype(COMPUTE_DTYPE)
        b2 = b.reshape(co, 1).astype(jnp.float32)
        prepped.append((jnp.asarray(w2), jnp.asarray(b2)))
    return prepped


# ----------------------------------------------------------------------------
# Fully fused DecoderBlock2 forward:
#   upsample(x) -> cat([up, old_x], C) -> count_conv x (3x3 conv pad=1 + ReLU)
# One pallas_call, grid over batch, NCHW in / NCHW out.
# ----------------------------------------------------------------------------
def decoder_block2_forward(x, old_x, prepped):
    N, Cin, H, W = x.shape
    OH, OW = 2 * H, 2 * W
    Hp, Wp = OH + 2, OW + 2
    assert old_x.shape == (N, Cin, OH, OW)

    n_layers = len(prepped)
    assert n_layers >= 2, "DecoderBlock2 requires count_conv >= 2"
    c_ins = [int(w.shape[1]) // 9 for (w, _) in prepped]
    c_outs = [int(w.shape[0]) for (w, _) in prepped]
    assert c_ins[0] == 2 * Cin
    for li in range(1, n_layers):
        assert c_ins[li] == c_outs[li - 1]
    c_mid = max(c_outs[:-1])
    Cout = c_outs[-1]
    cdt = COMPUTE_DTYPE

    # Shape-only interpolation constants (constant-folded at compile time).
    mwt = bilinear_matrix(W, OW).T                                    # (W, OW)
    mh_bd = jnp.kron(jnp.eye(Cin, dtype=jnp.float32),
                     bilinear_matrix(H, OH))                          # (Cin*OH, Cin*H)

    def kernel(mhbd_ref, mwt_ref, x_ref, old_ref, *rest):
        wb = rest[:2 * n_layers]
        o_ref = rest[2 * n_layers]
        cat_pad = rest[2 * n_layers + 1]   # (2*Cin, Hp, Wp): fused-concat conv-1 input
        mid_pad = rest[2 * n_layers + 2]   # (c_mid, Hp, Wp): intermediate activations

        # Fresh zero halos each grid step (scratch is uninitialized and, under
        # megacore "parallel" splitting, per-core).  A few KiB of VMEM stores;
        # no padded tensor ever goes to HBM.
        cat_pad[...] = jnp.zeros_like(cat_pad)
        mid_pad[...] = jnp.zeros_like(mid_pad)

        # ---- bilinear x2 upsample (align_corners=True): two 2-D MXU GEMMs ----
        # column interp over all Cin*H rows, then row interp with the
        # block-diagonal matrix (no broadcast_to / batched dot_general).
        t = jnp.dot(x_ref[0].reshape(Cin * H, W), mwt_ref[...],
                    preferred_element_type=jnp.float32)               # (Cin*H, OW)
        up = jnp.dot(mhbd_ref[...], t,
                     preferred_element_type=jnp.float32)              # (Cin*OH, OW)
        up = up.reshape(Cin, OH, OW)

        # ---- fused channel concat: interiors of [up ; old_x] into cat_pad ----
        cat_pad[0:Cin, 1:1 + OH, 1:1 + OW] = up.astype(cdt)
        cat_pad[Cin:2 * Cin, 1:1 + OH, 1:1 + OW] = old_ref[0].astype(cdt)

        # ---- conv chain: one K = 9*Cin GEMM per layer, VMEM-resident ----
        src = cat_pad
        for li in range(n_layers):
            w_ref, b_ref = wb[2 * li], wb[2 * li + 1]
            ci, co = c_ins[li], c_outs[li]
            taps = []
            for dy in range(3):
                for dx in range(3):
                    taps.append(
                        src[0:ci, dy:dy + OH, dx:dx + OW].reshape(ci, OH * OW))
            patch = jnp.concatenate(taps, axis=0)                     # (9*ci, OH*OW) bf16
            acc = jnp.dot(w_ref[...], patch,
                          preferred_element_type=jnp.float32)         # (co, OH*OW) f32
            res = jnp.maximum(acc + b_ref[...], 0.0)                  # f32 bias + ReLU
            if li == n_layers - 1:
                # Lane-dense NCHW store: last dim OH*OW is a multiple of 128.
                o_ref[0] = res.astype(o_ref.dtype)
            else:
                mid_pad[0:co, 1:1 + OH, 1:1 + OW] = (
                    res.reshape(co, OH, OW).astype(cdt))
                src = mid_pad

    in_specs = [
        pl.BlockSpec((Cin * OH, Cin * H), lambda n: (0, 0)),
        pl.BlockSpec((W, OW), lambda n: (0, 0)),
        pl.BlockSpec((1, Cin, H, W), lambda n: (n, 0, 0, 0)),
        pl.BlockSpec((1, Cin, OH, OW), lambda n: (n, 0, 0, 0)),
    ]
    flat_wb = []
    for (w2, b2) in prepped:
        in_specs.append(pl.BlockSpec(w2.shape, lambda n: (0, 0)))
        in_specs.append(pl.BlockSpec(b2.shape, lambda n: (0, 0)))
        flat_wb += [w2, b2]

    flops = N * (2 * Cin * H * W * OW + 2 * (Cin * OH) * (Cin * H) * OW
                 + sum(2 * OH * OW * 9 * ci * co
                       for ci, co in zip(c_ins, c_outs)))
    bytes_accessed = (
        x.size * x.dtype.itemsize + old_x.size * old_x.dtype.itemsize
        + mh_bd.size * 4 + mwt.size * 4
        + sum(w.size * w.dtype.itemsize + b.size * 4 for w, b in prepped)
        + N * Cout * OH * OW * 4)

    cp_kwargs = dict(dimension_semantics=("parallel",))
    limit = _vmem_limit_bytes()
    if limit is not None:
        cp_kwargs["vmem_limit_bytes"] = limit

    out_flat = pl.pallas_call(
        kernel,
        out_shape=jax.ShapeDtypeStruct((N, Cout, OH * OW), jnp.float32),
        grid=(N,),
        in_specs=in_specs,
        out_specs=pl.BlockSpec((1, Cout, OH * OW), lambda n: (n, 0, 0)),
        scratch_shapes=[
            pltpu.VMEM((2 * Cin, Hp, Wp), cdt),
            pltpu.VMEM((c_mid, Hp, Wp), cdt),
        ],
        compiler_params=pltpu.CompilerParams(**cp_kwargs),
        cost_estimate=pl.CostEstimate(flops=int(flops), transcendentals=0,
                                      bytes_accessed=int(bytes_accessed)),
    )(mh_bd, mwt, x, old_x, *flat_wb)

    # Free row-major reshape back to the module's NCHW output (no transpose).
    return out_flat.reshape(N, Cout, OH, OW)


# ----------------------------------------------------------------------------
# Pure-JAX float32 reference (correctness check only).
# ----------------------------------------------------------------------------
def reference_forward(x, old_x, params):
    N, C, H, W = x.shape
    mh = bilinear_matrix(H, 2 * H)
    mw = bilinear_matrix(W, 2 * W)
    up = jnp.einsum('ab,ncbw->ncaw', mh, x)
    up = jnp.einsum('ab,nchb->ncha', mw, up)
    out = jnp.concatenate([up, old_x], axis=1)
    for w, b in params:
        out = lax.conv_general_dilated(
            out, w, window_strides=(1, 1), padding=((1, 1), (1, 1)),
            dimension_numbers=('NCHW', 'OIHW', 'NCHW'))
        out = jnp.maximum(out + b.reshape(1, -1, 1, 1), 0.0)
    return out


def init_params(key, in_channels, out_channels, count_conv):
    # Mirrors DecoderBlock2.__init__ layer shapes (OIHW weights, per-channel bias).
    chans = [(2 * in_channels, in_channels)]
    chans += [(in_channels, in_channels)] * (count_conv - 2)
    chans += [(in_channels, out_channels)]
    params = []
    for (ci, co) in chans:
        key, kw, kb = jax.random.split(key, 3)
        w = jax.random.normal(kw, (co, ci, 3, 3), jnp.float32) * 0.1
        b = jax.random.normal(kb, (co,), jnp.float32) * 0.01
        params.append((w, b))
    return params


if __name__ == "__main__":
    in_channels, out_channels, count_conv = 4, 8, 3
    N, H, W = 2, 8, 8

    key = jax.random.PRNGKey(0)
    kx, ko, kp = jax.random.split(key, 3)
    x = jax.random.normal(kx, (N, in_channels, H, W), jnp.float32)
    old_x = jax.random.normal(ko, (N, in_channels, 2 * H, 2 * W), jnp.float32)
    params = init_params(kp, in_channels, out_channels, count_conv)

    # Hoisted, one-time weight prep (outside the jitted forward).
    prepped = prepare_params(params)

    fwd = jax.jit(decoder_block2_forward)
    out = jax.block_until_ready(fwd(x, old_x, prepped))

    assert out.shape == (N, out_channels, 2 * H, 2 * W), out.shape
    assert out.dtype == jnp.float32, out.dtype

    ref = reference_forward(x, old_x, params)
    err = float(jnp.max(jnp.abs(out - ref)))
    # bf16 GEMM operands (f32 accumulation) + bf16 intermediate activations ->
    # ~0.4% relative rounding per layer over 3 layers; f32 mode keeps 1e-3.
    tol = 1e-3 if COMPUTE_DTYPE == jnp.float32 else 5e-2
    if err > tol:
        raise SystemExit(f"mismatch vs reference, max abs err = {err} > {tol}")
    print("KERNEL_OK")
</pallas_src>

<mosaic_0001>
module attributes {stable_mosaic.version = 11 : i64} {
  func.func private @main(%arg0: i32) attributes {dimension_semantics = [#tpu.dimension_semantics<core_parallel>], iteration_bounds = array<i64: 2>, tpu.core_type = #tpu.core_type<sc_scalar_subcore>, window_params = []} {
    return
  }
}

module attributes {stable_mosaic.version = 11 : i64} {
  func.func private @main(%arg0: i32) attributes {dimension_semantics = [#tpu.dimension_semantics<core_parallel>], iteration_bounds = array<i64: 2>, tpu.core_type = #tpu.core_type<sc_scalar_subcore>, window_params = []} {
    return
  }
}

module attributes {stable_mosaic.version = 11 : i64} {
  func.func @kernel(%arg0: i32, %arg1: memref<64x32xf32, #tpu.memory_space<vmem>>, %arg2: memref<8x16xf32, #tpu.memory_space<vmem>>, %arg3: memref<1x4x8x8xf32, #tpu.memory_space<vmem>>, %arg4: memref<1x4x16x16xf32, #tpu.memory_space<vmem>>, %arg5: memref<4x72xbf16, #tpu.memory_space<vmem>>, %arg6: memref<4x1xf32, #tpu.memory_space<vmem>>, %arg7: memref<4x36xbf16, #tpu.memory_space<vmem>>, %arg8: memref<4x1xf32, #tpu.memory_space<vmem>>, %arg9: memref<8x36xbf16, #tpu.memory_space<vmem>>, %arg10: memref<8x1xf32, #tpu.memory_space<vmem>>, %arg11: memref<1x8x256xf32, #tpu.memory_space<vmem>>, %arg12: memref<8x18x18xbf16, #tpu.memory_space<vmem>>, %arg13: memref<4x18x18xbf16, #tpu.memory_space<vmem>>) attributes {dimension_semantics = [#tpu.dimension_semantics<parallel>], iteration_bounds = array<i64: 2>, scalar_prefetch = 0 : i64, scratch_operands = 2 : i64, tpu.core_type = #tpu.core_type<tc>, window_params = [{pipeline_mode = #tpu.pipeline_mode<synchronous>, transform_indices = @transform_0, window_bounds = array<i64: 64, 32>}, {pipeline_mode = #tpu.pipeline_mode<synchronous>, transform_indices = @transform_1, window_bounds = array<i64: 8, 16>}, {transform_indices = @transform_2, window_bounds = array<i64: 1, 4, 8, 8>}, {transform_indices = @transform_3, window_bounds = array<i64: 1, 4, 16, 16>}, {pipeline_mode = #tpu.pipeline_mode<synchronous>, transform_indices = @transform_4, window_bounds = array<i64: 4, 72>}, {pipeline_mode = #tpu.pipeline_mode<synchronous>, transform_indices = @transform_5, window_bounds = array<i64: 4, 1>}, {pipeline_mode = #tpu.pipeline_mode<synchronous>, transform_indices = @transform_6, window_bounds = array<i64: 4, 36>}, {pipeline_mode = #tpu.pipeline_mode<synchronous>, transform_indices = @transform_7, window_bounds = array<i64: 4, 1>}, {pipeline_mode = #tpu.pipeline_mode<synchronous>, transform_indices = @transform_8, window_bounds = array<i64: 8, 36>}, {pipeline_mode = #tpu.pipeline_mode<synchronous>, transform_indices = @transform_9, window_bounds = array<i64: 8, 1>}, {transform_indices = @transform_10, window_bounds = array<i64: 1, 8, 256>}]} {
    %cst = arith.constant 0.000000e+00 : bf16
    %0 = vector.broadcast %cst : bf16 to vector<8x18x18xbf16>
    %c0 = arith.constant 0 : index
    %c0_0 = arith.constant 0 : index
    %c0_1 = arith.constant 0 : index
    %1 = vector.load %arg12[%c0, %c0_0, %c0_1] : memref<8x18x18xbf16, #tpu.memory_space<vmem>>, vector<8x18x18xbf16>
    tpu.vector_store %arg12[%c0, %c0_0, %c0_1], %0 {strides = array<i32>} : memref<8x18x18xbf16, #tpu.memory_space<vmem>>, vector<8x18x18xbf16>,
    %cst_2 = arith.constant 0.000000e+00 : bf16
    %2 = vector.broadcast %cst_2 : bf16 to vector<4x18x18xbf16>
    %c0_3 = arith.constant 0 : index
    %c0_4 = arith.constant 0 : index
    %c0_5 = arith.constant 0 : index
    %3 = vector.load %arg13[%c0_3, %c0_4, %c0_5] : memref<4x18x18xbf16, #tpu.memory_space<vmem>>, vector<4x18x18xbf16>
    tpu.vector_store %arg13[%c0_3, %c0_4, %c0_5], %2 {strides = array<i32>} : memref<4x18x18xbf16, #tpu.memory_space<vmem>>, vector<4x18x18xbf16>,
    %c0_6 = arith.constant 0 : index
    %c0_7 = arith.constant 0 : index
    %c0_8 = arith.constant 0 : index
    %c0_9 = arith.constant 0 : index
    %4 = vector.load %arg3[%c0_6, %c0_7, %c0_8, %c0_9] : memref<1x4x8x8xf32, #tpu.memory_space<vmem>>, vector<1x4x8x8xf32>
    %5 = vector.shape_cast %4 : vector<1x4x8x8xf32> to vector<4x8x8xf32>
    %6 = vector.shape_cast %5 : vector<4x8x8xf32> to vector<32x8xf32>
    %c0_10 = arith.constant 0 : index
    %c0_11 = arith.constant 0 : index
    %7 = vector.load %arg2[%c0_10, %c0_11] : memref<8x16xf32, #tpu.memory_space<vmem>>, vector<8x16xf32>
    %cst_12 = arith.constant dense<0.000000e+00> : vector<32x16xf32>
    %8 = tpu.matmul %6, %7, %cst_12 {dimension_numbers = #tpu.dot_dimension_numbers<[1], [0], [0], [1], [0, 0, 1, 1], [], []>} : vector<32x8xf32>, vector<8x16xf32>, vector<32x16xf32> -> vector<32x16xf32>
    %c0_13 = arith.constant 0 : index
    %c0_14 = arith.constant 0 : index
    %9 = vector.load %arg1[%c0_13, %c0_14] : memref<64x32xf32, #tpu.memory_space<vmem>>, vector<64x32xf32>
    %cst_15 = arith.constant dense<0.000000e+00> : vector<64x16xf32>
    %10 = tpu.matmul %9, %8, %cst_15 {dimension_numbers = #tpu.dot_dimension_numbers<[1], [0], [0], [1], [0, 0, 1, 1], [], []>} : vector<64x32xf32>, vector<32x16xf32>, vector<64x16xf32> -> vector<64x16xf32>
    %11 = vector.shape_cast %10 : vector<64x16xf32> to vector<4x16x16xf32>
    %12 = arith.truncf %11 : vector<4x16x16xf32> to vector<4x16x16xbf16>
    %c0_16 = arith.constant 0 : index
    %c1 = arith.constant 1 : index
    %c1_17 = arith.constant 1 : index
    %13 = vector.load %arg12[%c0_16, %c1, %c1_17] : memref<8x18x18xbf16, #tpu.memory_space<vmem>>, vector<4x16x16xbf16>
    tpu.vector_store %arg12[%c0_16, %c1, %c1_17], %12 {strides = array<i32>} : memref<8x18x18xbf16, #tpu.memory_space<vmem>>, vector<4x16x16xbf16>,
    %c0_18 = arith.constant 0 : index
    %c0_19 = arith.constant 0 : index
    %c0_20 = arith.constant 0 : index
    %c0_21 = arith.constant 0 : index
    %14 = vector.load %arg4[%c0_18, %c0_19, %c0_20, %c0_21] : memref<1x4x16x16xf32, #tpu.memory_space<vmem>>, vector<1x4x16x16xf32>
    %15 = vector.shape_cast %14 : vector<1x4x16x16xf32> to vector<4x16x16xf32>
    %16 = arith.truncf %15 : vector<4x16x16xf32> to vector<4x16x16xbf16>
    %c4 = arith.constant 4 : index
    %c1_22 = arith.constant 1 : index
    %c1_23 = arith.constant 1 : index
    %17 = vector.load %arg12[%c4, %c1_22, %c1_23] : memref<8x18x18xbf16, #tpu.memory_space<vmem>>, vector<4x16x16xbf16>
    tpu.vector_store %arg12[%c4, %c1_22, %c1_23], %16 {strides = array<i32>} : memref<8x18x18xbf16, #tpu.memory_space<vmem>>, vector<4x16x16xbf16>,
    %c0_24 = arith.constant 0 : index
    %c0_25 = arith.constant 0 : index
    %c0_26 = arith.constant 0 : index
    %18 = vector.load %arg12[%c0_24, %c0_25, %c0_26] : memref<8x18x18xbf16, #tpu.memory_space<vmem>>, vector<8x16x16xbf16>
    %19 = vector.shape_cast %18 : vector<8x16x16xbf16> to vector<8x256xbf16>
    %c0_27 = arith.constant 0 : index
    %c0_28 = arith.constant 0 : index
    %c1_29 = arith.constant 1 : index
    %20 = vector.load %arg12[%c0_27, %c0_28, %c1_29] : memref<8x18x18xbf16, #tpu.memory_space<vmem>>, vector<8x16x16xbf16>
    %21 = vector.shape_cast %20 : vector<8x16x16xbf16> to vector<8x256xbf16>
    %c0_30 = arith.constant 0 : index
    %c0_31 = arith.constant 0 : index
    %c2 = arith.constant 2 : index
    %22 = vector.load %arg12[%c0_30, %c0_31, %c2] : memref<8x18x18xbf16, #tpu.memory_space<vmem>>, vector<8x16x16xbf16>
    %23 = vector.shape_cast %22 : vector<8x16x16xbf16> to vector<8x256xbf16>
    %c0_32 = arith.constant 0 : index
    %c1_33 = arith.constant 1 : index
    %c0_34 = arith.constant 0 : index
    %24 = vector.load %arg12[%c0_32, %c1_33, %c0_34] : memref<8x18x18xbf16, #tpu.memory_space<vmem>>, vector<8x16x16xbf16>
    %25 = vector.shape_cast %24 : vector<8x16x16xbf16> to vector<8x256xbf16>
    %c0_35 = arith.constant 0 : index
    %c1_36 = arith.constant 1 : index
    %c1_37 = arith.constant 1 : index
    %26 = vector.load %arg12[%c0_35, %c1_36, %c1_37] : memref<8x18x18xbf16, #tpu.memory_space<vmem>>, vector<8x16x16xbf16>
    %27 = vector.shape_cast %26 : vector<8x16x16xbf16> to vector<8x256xbf16>
    %c0_38 = arith.constant 0 : index
    %c1_39 = arith.constant 1 : index
    %c2_40 = arith.constant 2 : index
    %28 = vector.load %arg12[%c0_38, %c1_39, %c2_40] : memref<8x18x18xbf16, #tpu.memory_space<vmem>>, vector<8x16x16xbf16>
    %29 = vector.shape_cast %28 : vector<8x16x16xbf16> to vector<8x256xbf16>
    %c0_41 = arith.constant 0 : index
    %c2_42 = arith.constant 2 : index
    %c0_43 = arith.constant 0 : index
    %30 = vector.load %arg12[%c0_41, %c2_42, %c0_43] : memref<8x18x18xbf16, #tpu.memory_space<vmem>>, vector<8x16x16xbf16>
    %31 = vector.shape_cast %30 : vector<8x16x16xbf16> to vector<8x256xbf16>
    %c0_44 = arith.constant 0 : index
    %c2_45 = arith.constant 2 : index
    %c1_46 = arith.constant 1 : index
    %32 = vector.load %arg12[%c0_44, %c2_45, %c1_46] : memref<8x18x18xbf16, #tpu.memory_space<vmem>>, vector<8x16x16xbf16>
    %33 = vector.shape_cast %32 : vector<8x16x16xbf16> to vector<8x256xbf16>
    %c0_47 = arith.constant 0 : index
    %c2_48 = arith.constant 2 : index
    %c2_49 = arith.constant 2 : index
    %34 = vector.load %arg12[%c0_47, %c2_48, %c2_49] : memref<8x18x18xbf16, #tpu.memory_space<vmem>>, vector<8x16x16xbf16>
    %35 = vector.shape_cast %34 : vector<8x16x16xbf16> to vector<8x256xbf16>
    %36 = tpu.concatenate %19, %21, %23, %25, %27, %29, %31, %33, %35 in 0 : vector<8x256xbf16>, vector<8x256xbf16>, vector<8x256xbf16>, vector<8x256xbf16>, vector<8x256xbf16>, vector<8x256xbf16>, vector<8x256xbf16>, vector<8x256xbf16>, vector<8x256xbf16> -> vector<72x256xbf16>
    %c0_50 = arith.constant 0 : index
    %c0_51 = arith.constant 0 : index
    %37 = vector.load %arg5[%c0_50, %c0_51] : memref<4x72xbf16, #tpu.memory_space<vmem>>, vector<4x72xbf16>
    %cst_52 = arith.constant dense<0.000000e+00> : vector<4x256xf32>
    %38 = tpu.matmul %37, %36, %cst_52 {dimension_numbers = #tpu.dot_dimension_numbers<[1], [0], [0], [1], [0, 0, 1, 1], [], []>} : vector<4x72xbf16>, vector<72x256xbf16>, vector<4x256xf32> -> vector<4x256xf32>
    %c0_53 = arith.constant 0 : index
    %c0_54 = arith.constant 0 : index
    %39 = vector.load %arg6[%c0_53, %c0_54] : memref<4x1xf32, #tpu.memory_space<vmem>>, vector<4x1xf32>
    %40 = vector.broadcast %39 : vector<4x1xf32> to vector<4x256xf32>
    %41 = arith.addf %38, %40 : vector<4x256xf32>
    %cst_55 = arith.constant 0.000000e+00 : f32
    %42 = vector.broadcast %cst_55 : f32 to vector<4x256xf32>
    %43 = arith.maximumf %41, %42 : vector<4x256xf32>
    %44 = vector.shape_cast %43 : vector<4x256xf32> to vector<4x16x16xf32>
    %45 = arith.truncf %44 : vector<4x16x16xf32> to vector<4x16x16xbf16>
    %c0_56 = arith.constant 0 : index
    %c1_57 = arith.constant 1 : index
    %c1_58 = arith.constant 1 : index
    %46 = vector.load %arg13[%c0_56, %c1_57, %c1_58] : memref<4x18x18xbf16, #tpu.memory_space<vmem>>, vector<4x16x16xbf16>
    tpu.vector_store %arg13[%c0_56, %c1_57, %c1_58], %45 {strides = array<i32>} : memref<4x18x18xbf16, #tpu.memory_space<vmem>>, vector<4x16x16xbf16>,
    %c0_59 = arith.constant 0 : index
    %c0_60 = arith.constant 0 : index
    %c0_61 = arith.constant 0 : index
    %47 = vector.load %arg13[%c0_59, %c0_60, %c0_61] : memref<4x18x18xbf16, #tpu.memory_space<vmem>>, vector<4x16x16xbf16>
    %48 = vector.shape_cast %47 : vector<4x16x16xbf16> to vector<4x256xbf16>
    %c0_62 = arith.constant 0 : index
    %c0_63 = arith.constant 0 : index
    %c1_64 = arith.constant 1 : index
    %49 = vector.load %arg13[%c0_62, %c0_63, %c1_64] : memref<4x18x18xbf16, #tpu.memory_space<vmem>>, vector<4x16x16xbf16>
    %50 = vector.shape_cast %49 : vector<4x16x16xbf16> to vector<4x256xbf16>
    %c0_65 = arith.constant 0 : index
    %c0_66 = arith.constant 0 : index
    %c2_67 = arith.constant 2 : index
    %51 = vector.load %arg13[%c0_65, %c0_66, %c2_67] : memref<4x18x18xbf16, #tpu.memory_space<vmem>>, vector<4x16x16xbf16>
    %52 = vector.shape_cast %51 : vector<4x16x16xbf16> to vector<4x256xbf16>
    %c0_68 = arith.constant 0 : index
    %c1_69 = arith.constant 1 : index
    %c0_70 = arith.constant 0 : index
    %53 = vector.load %arg13[%c0_68, %c1_69, %c0_70] : memref<4x18x18xbf16, #tpu.memory_space<vmem>>, vector<4x16x16xbf16>
    %54 = vector.shape_cast %53 : vector<4x16x16xbf16> to vector<4x256xbf16>
    %c0_71 = arith.constant 0 : index
    %c1_72 = arith.constant 1 : index
    %c1_73 = arith.constant 1 : index
    %55 = vector.load %arg13[%c0_71, %c1_72, %c1_73] : memref<4x18x18xbf16, #tpu.memory_space<vmem>>, vector<4x16x16xbf16>
    %56 = vector.shape_cast %55 : vector<4x16x16xbf16> to vector<4x256xbf16>
    %c0_74 = arith.constant 0 : index
    %c1_75 = arith.constant 1 : index
    %c2_76 = arith.constant 2 : index
    %57 = vector.load %arg13[%c0_74, %c1_75, %c2_76] : memref<4x18x18xbf16, #tpu.memory_space<vmem>>, vector<4x16x16xbf16>
    %58 = vector.shape_cast %57 : vector<4x16x16xbf16> to vector<4x256xbf16>
    %c0_77 = arith.constant 0 : index
    %c2_78 = arith.constant 2 : index
    %c0_79 = arith.constant 0 : index
    %59 = vector.load %arg13[%c0_77, %c2_78, %c0_79] : memref<4x18x18xbf16, #tpu.memory_space<vmem>>, vector<4x16x16xbf16>
    %60 = vector.shape_cast %59 : vector<4x16x16xbf16> to vector<4x256xbf16>
    %c0_80 = arith.constant 0 : index
    %c2_81 = arith.constant 2 : index
    %c1_82 = arith.constant 1 : index
    %61 = vector.load %arg13[%c0_80, %c2_81, %c1_82] : memref<4x18x18xbf16, #tpu.memory_space<vmem>>, vector<4x16x16xbf16>
    %62 = vector.shape_cast %61 : vector<4x16x16xbf16> to vector<4x256xbf16>
    %c0_83 = arith.constant 0 : index
    %c2_84 = arith.constant 2 : index
    %c2_85 = arith.constant 2 : index
    %63 = vector.load %arg13[%c0_83, %c2_84, %c2_85] : memref<4x18x18xbf16, #tpu.memory_space<vmem>>, vector<4x16x16xbf16>
    %64 = vector.shape_cast %63 : vector<4x16x16xbf16> to vector<4x256xbf16>
    %65 = tpu.concatenate %48, %50, %52, %54, %56, %58, %60, %62, %64 in 0 : vector<4x256xbf16>, vector<4x256xbf16>, vector<4x256xbf16>, vector<4x256xbf16>, vector<4x256xbf16>, vector<4x256xbf16>, vector<4x256xbf16>, vector<4x256xbf16>, vector<4x256xbf16> -> vector<36x256xbf16>
    %c0_86 = arith.constant 0 : index
    %c0_87 = arith.constant 0 : index
    %66 = vector.load %arg7[%c0_86, %c0_87] : memref<4x36xbf16, #tpu.memory_space<vmem>>, vector<4x36xbf16>
    %cst_88 = arith.constant dense<0.000000e+00> : vector<4x256xf32>
    %67 = tpu.matmul %66, %65, %cst_88 {dimension_numbers = #tpu.dot_dimension_numbers<[1], [0], [0], [1], [0, 0, 1, 1], [], []>} : vector<4x36xbf16>, vector<36x256xbf16>, vector<4x256xf32> -> vector<4x256xf32>
    %c0_89 = arith.constant 0 : index
    %c0_90 = arith.constant 0 : index
    %68 = vector.load %arg8[%c0_89, %c0_90] : memref<4x1xf32, #tpu.memory_space<vmem>>, vector<4x1xf32>
    %69 = vector.broadcast %68 : vector<4x1xf32> to vector<4x256xf32>
    %70 = arith.addf %67, %69 : vector<4x256xf32>
    %cst_91 = arith.constant 0.000000e+00 : f32
    %71 = vector.broadcast %cst_91 : f32 to vector<4x256xf32>
    %72 = arith.maximumf %70, %71 : vector<4x256xf32>
    %73 = vector.shape_cast %72 : vector<4x256xf32> to vector<4x16x16xf32>
    %74 = arith.truncf %73 : vector<4x16x16xf32> to vector<4x16x16xbf16>
    %c0_92 = arith.constant 0 : index
    %c1_93 = arith.constant 1 : index
    %c1_94 = arith.constant 1 : index
    %75 = vector.load %arg13[%c0_92, %c1_93, %c1_94] : memref<4x18x18xbf16, #tpu.memory_space<vmem>>, vector<4x16x16xbf16>
    tpu.vector_store %arg13[%c0_92, %c1_93, %c1_94], %74 {strides = array<i32>} : memref<4x18x18xbf16, #tpu.memory_space<vmem>>, vector<4x16x16xbf16>,
    %c0_95 = arith.constant 0 : index
    %c0_96 = arith.constant 0 : index
    %c0_97 = arith.constant 0 : index
    %76 = vector.load %arg13[%c0_95, %c0_96, %c0_97] : memref<4x18x18xbf16, #tpu.memory_space<vmem>>, vector<4x16x16xbf16>
    %77 = vector.shape_cast %76 : vector<4x16x16xbf16> to vector<4x256xbf16>
    %c0_98 = arith.constant 0 : index
    %c0_99 = arith.constant 0 : index
    %c1_100 = arith.constant 1 : index
    %78 = vector.load %arg13[%c0_98, %c0_99, %c1_100] : memref<4x18x18xbf16, #tpu.memory_space<vmem>>, vector<4x16x16xbf16>
    %79 = vector.shape_cast %78 : vector<4x16x16xbf16> to vector<4x256xbf16>
    %c0_101 = arith.constant 0 : index
    %c0_102 = arith.constant 0 : index
    %c2_103 = arith.constant 2 : index
    %80 = vector.load %arg13[%c0_101, %c0_102, %c2_103] : memref<4x18x18xbf16, #tpu.memory_space<vmem>>, vector<4x16x16xbf16>
    %81 = vector.shape_cast %80 : vector<4x16x16xbf16> to vector<4x256xbf16>
    %c0_104 = arith.constant 0 : index
    %c1_105 = arith.constant 1 : index
    %c0_106 = arith.constant 0 : index
    %82 = vector.load %arg13[%c0_104, %c1_105, %c0_106] : memref<4x18x18xbf16, #tpu.memory_space<vmem>>, vector<4x16x16xbf16>
    %83 = vector.shape_cast %82 : vector<4x16x16xbf16> to vector<4x256xbf16>
    %c0_107 = arith.constant 0 : index
    %c1_108 = arith.constant 1 : index
    %c1_109 = arith.constant 1 : index
    %84 = vector.load %arg13[%c0_107, %c1_108, %c1_109] : memref<4x18x18xbf16, #tpu.memory_space<vmem>>, vector<4x16x16xbf16>
    %85 = vector.shape_cast %84 : vector<4x16x16xbf16> to vector<4x256xbf16>
    %c0_110 = arith.constant 0 : index
    %c1_111 = arith.constant 1 : index
    %c2_112 = arith.constant 2 : index
    %86 = vector.load %arg13[%c0_110, %c1_111, %c2_112] : memref<4x18x18xbf16, #tpu.memory_space<vmem>>, vector<4x16x16xbf16>
    %87 = vector.shape_cast %86 : vector<4x16x16xbf16> to vector<4x256xbf16>
    %c0_113 = arith.constant 0 : index
    %c2_114 = arith.constant 2 : index
    %c0_115 = arith.constant 0 : index
    %88 = vector.load %arg13[%c0_113, %c2_114, %c0_115] : memref<4x18x18xbf16, #tpu.memory_space<vmem>>, vector<4x16x16xbf16>
    %89 = vector.shape_cast %88 : vector<4x16x16xbf16> to vector<4x256xbf16>
    %c0_116 = arith.constant 0 : index
    %c2_117 = arith.constant 2 : index
    %c1_118 = arith.constant 1 : index
    %90 = vector.load %arg13[%c0_116, %c2_117, %c1_118] : memref<4x18x18xbf16, #tpu.memory_space<vmem>>, vector<4x16x16xbf16>
    %91 = vector.shape_cast %90 : vector<4x16x16xbf16> to vector<4x256xbf16>
    %c0_119 = arith.constant 0 : index
    %c2_120 = arith.constant 2 : index
    %c2_121 = arith.constant 2 : index
    %92 = vector.load %arg13[%c0_119, %c2_120, %c2_121] : memref<4x18x18xbf16, #tpu.memory_space<vmem>>, vector<4x16x16xbf16>
    %93 = vector.shape_cast %92 : vector<4x16x16xbf16> to vector<4x256xbf16>
    %94 = tpu.concatenate %77, %79, %81, %83, %85, %87, %89, %91, %93 in 0 : vector<4x256xbf16>, vector<4x256xbf16>, vector<4x256xbf16>, vector<4x256xbf16>, vector<4x256xbf16>, vector<4x256xbf16>, vector<4x256xbf16>, vector<4x256xbf16>, vector<4x256xbf16> -> vector<36x256xbf16>
    %c0_122 = arith.constant 0 : index
    %c0_123 = arith.constant 0 : index
    %95 = vector.load %arg9[%c0_122, %c0_123] : memref<8x36xbf16, #tpu.memory_space<vmem>>, vector<8x36xbf16>
    %cst_124 = arith.constant dense<0.000000e+00> : vector<8x256xf32>
    %96 = tpu.matmul %95, %94, %cst_124 {dimension_numbers = #tpu.dot_dimension_numbers<[1], [0], [0], [1], [0, 0, 1, 1], [], []>} : vector<8x36xbf16>, vector<36x256xbf16>, vector<8x256xf32> -> vector<8x256xf32>
    %c0_125 = arith.constant 0 : index
    %c0_126 = arith.constant 0 : index
    %97 = vector.load %arg10[%c0_125, %c0_126] : memref<8x1xf32, #tpu.memory_space<vmem>>, vector<8x1xf32>
    %98 = vector.broadcast %97 : vector<8x1xf32> to vector<8x256xf32>
    %99 = arith.addf %96, %98 : vector<8x256xf32>
    %cst_127 = arith.constant 0.000000e+00 : f32
    %100 = vector.broadcast %cst_127 : f32 to vector<8x256xf32>
    %101 = arith.maximumf %99, %100 : vector<8x256xf32>
    %c0_128 = arith.constant 0 : index
    %c0_129 = arith.constant 0 : index
    %c0_130 = arith.constant 0 : index
    %102 = vector.load %arg11[%c0_128, %c0_129, %c0_130] : memref<1x8x256xf32, #tpu.memory_space<vmem>>, vector<1x8x256xf32>
    %103 = vector.shape_cast %102 : vector<1x8x256xf32> to vector<8x256xf32>
    %104 = vector.shape_cast %101 : vector<8x256xf32> to vector<1x8x256xf32>
    tpu.vector_store %arg11[%c0_128, %c0_129, %c0_130], %104 {strides = array<i32>} : memref<1x8x256xf32, #tpu.memory_space<vmem>>, vector<1x8x256xf32>,
    return
  }
  func.func @transform_0(%arg0: i32) -> (i32, i32) {
    %c0_i32 = arith.constant 0 : i32
    %c0_i32_0 = arith.constant 0 : i32
    %c0_i32_1 = arith.constant 0 : i32
    return %c0_i32, %c0_i32_0 : i32, i32
  }
  func.func @transform_1(%arg0: i32) -> (i32, i32) {
    %c0_i32 = arith.constant 0 : i32
    %c0_i32_0 = arith.constant 0 : i32
    %c0_i32_1 = arith.constant 0 : i32
    return %c0_i32, %c0_i32_0 : i32, i32
  }
  func.func @transform_2(%arg0: i32) -> (i32, i32, i32, i32) {
    %c0_i32 = arith.constant 0 : i32
    %c0_i32_0 = arith.constant 0 : i32
    %c0_i32_1 = arith.constant 0 : i32
    %c0_i32_2 = arith.constant 0 : i32
    return %arg0, %c0_i32, %c0_i32_0, %c0_i32_1 : i32, i32, i32, i32
  }
  func.func @transform_3(%arg0: i32) -> (i32, i32, i32, i32) {
    %c0_i32 = arith.constant 0 : i32
    %c0_i32_0 = arith.constant 0 : i32
    %c0_i32_1 = arith.constant 0 : i32
    %c0_i32_2 = arith.constant 0 : i32
    return %arg0, %c0_i32, %c0_i32_0, %c0_i32_1 : i32, i32, i32, i32
  }
  func.func @transform_4(%arg0: i32) -> (i32, i32) {
    %c0_i32 = arith.constant 0 : i32
    %c0_i32_0 = arith.constant 0 : i32
    %c0_i32_1 = arith.constant 0 : i32
    return %c0_i32, %c0_i32_0 : i32, i32
  }
  func.func @transform_5(%arg0: i32) -> (i32, i32) {
    %c0_i32 = arith.constant 0 : i32
    %c0_i32_0 = arith.constant 0 : i32
    %c0_i32_1 = arith.constant 0 : i32
    return %c0_i32, %c0_i32_0 : i32, i32
  }
  func.func @transform_6(%arg0: i32) -> (i32, i32) {
    %c0_i32 = arith.constant 0 : i32
    %c0_i32_0 = arith.constant 0 : i32
    %c0_i32_1 = arith.constant 0 : i32
    return %c0_i32, %c0_i32_0 : i32, i32
  }
  func.func @transform_7(%arg0: i32) -> (i32, i32) {
    %c0_i32 = arith.constant 0 : i32
    %c0_i32_0 = arith.constant 0 : i32
    %c0_i32_1 = arith.constant 0 : i32
    return %c0_i32, %c0_i32_0 : i32, i32
  }
  func.func @transform_8(%arg0: i32) -> (i32, i32) {
    %c0_i32 = arith.constant 0 : i32
    %c0_i32_0 = arith.constant 0 : i32
    %c0_i32_1 = arith.constant 0 : i32
    return %c0_i32, %c0_i32_0 : i32, i32
  }
  func.func @transform_9(%arg0: i32) -> (i32, i32) {
    %c0_i32 = arith.constant 0 : i32
    %c0_i32_0 = arith.constant 0 : i32
    %c0_i32_1 = arith.constant 0 : i32
    return %c0_i32, %c0_i32_0 : i32, i32
  }
  func.func @transform_10(%arg0: i32) -> (i32, i32, i32) {
    %c0_i32 = arith.constant 0 : i32
    %c0_i32_0 = arith.constant 0 : i32
    %c0_i32_1 = arith.constant 0 : i32
    return %arg0, %c0_i32, %c0_i32_0 : i32, i32, i32
  }
}

</mosaic_0001>

<bundles_post_ra>
// kernel: decoder_block2_forward.1
= control target key start
LH: loop header
LB: loop body
LE: loop exit
PB: predicated region body
PF: predicated region fallthrough
CT: control target
= control target key end

     0   :  { %s11065_s13 = smov 0   ;;  %s16563_s0 = inlined_call_operand.vmem [shape: f32[64,32], index: 0, kind: input, shape index: {}]   ;;  %s16564_s1 = inlined_call_operand.vmem [shape: f32[8,16], index: 1, kind: input, shape index: {}]   ;;  %s16565_s2 = inlined_call_operand.vmem [shape: f32[2,4,8,8], index: 2, kind: input, shape index: {}]   ;;  %s16566_s3 = inlined_call_operand.vmem [shape: f32[2,4,16,16], index: 3, kind: input, shape index: {}]   ;;  %s16567_s4 = inlined_call_operand.vmem [shape: bf16[4,72], index: 4, kind: input, shape index: {}]   ;;  %s16568_s5 = inlined_call_operand.vmem [shape: f32[4,1], index: 5, kind: input, shape index: {}]   ;;  %s16569_s6 = inlined_call_operand.vmem [shape: bf16[4,36], index: 6, kind: input, shape index: {}]   ;;  %s16570_s7 = inlined_call_operand.vmem [shape: f32[4,1], index: 7, kind: input, shape index: {}]   ;;  %s16571_s8 = inlined_call_operand.vmem [shape: bf16[8,36], index: 8, kind: input, shape index: {}]   ;;  %s16572_s9 = inlined_call_operand.vmem [shape: f32[8,1], index: 9, kind: input, shape index: {}]   ;;  %s16573_s10 = inlined_call_operand.vmem [shape: f32[2,8,256], index: 10, kind: output, shape index: {}]  }
   0x1 LB: > { %s10277_s14 = sadd.s32 4294967295, %s10995_s13   ;;  %p10281_p0 = scmp.ge.s32.totalorder %s10995_s13, 1  ;;  %s10995_s13 = sphi %s11065_s13, %s20_s13  }
   0x2   : > { %p322_p1 = scmp.lt.s32.totalorder %s10995_s13, 3 }
   0x4   : > { %p323_p2 = pnand %p10281_p0, %p322_p1 }
   0x6   : > { %326 = sbr.rel (%p323_p2) target bundleno = 3204 (0xc84), region = 60 }
   0xd   : > { %v423_v0 = vld [vmem:[%s16564_s1] sm:$0xff]  ;;  %p365_p3 = scmp.lt.s32.totalorder %s10277_s14, 1  ;;  %vm424_vm0 = vcmask 64512   ;;  %vm684_vm1 = vsmask.f32 256  ;;  %v16664_v28 = vmov 0 }
   0xe   : > { %10930 = vmatprep.subr.mxu1 %v423_v0  ;;  %vm685_vm2 = vsmask.f32 4368  ;;  %s10997_s25 = smov 1   ;;  %vm530_vm4 = vcmask 261120   ;;  %vm381_vm5 = vcmask 142336   ;;  %vm384_vm6 = vcmask 139264  }
   0xf   : > { %10931 = vmatpush3.msra.mxu1 %v423_v0  ;;  %s17117_s14 = smov (!%p365_p3, %s10277_s14), 1  ;;  %vm11100_vm3 = vmor %vm684_vm1, %vm685_vm2  ;;  %vm792_vm7 = vsmask.f32 7938  ;;  %vm791_vm8 = vcmask 134152   ;;  %s10999_s28 = smov 127   ;;  %vm799_vm10 = vcmask 131080  }
  0x10   : > { %s10734_s17 = sshll.u32 %s17117_s14, 5  ;;  %s10735_s18 = sshll.u32 %s17117_s14, 6  ;;  %v16665_v28 = vsel %vm11100_vm3, 4294967295, %v16664_v28  ;;  %vm11194_vm9 = vmand %vm791_vm8, %vm792_vm7  ;;  %vm3083_vm12 = vcmask 1042432   ;;  %vm3084_vm13 = vcmask 1046532   ;;  %vm1246_vm2 = vcmask 130048  }
  0x11   : > { %s369_s21 = scalar_lea.vmem %s16565_s2, %s10734_s17  ;;  %s11086_s24 = scalar_lea.vmem %s16566_s3, %s10735_s18  ;;  %16666 = vst [vmem:[#allocation4_spill] sm:$0xff] %v16665_v28  ;;  %vm11219_vm11 = vmand %vm799_vm10, %vm684_vm1  ;;  %vm1942_vm15 = vsmask.f32 3328  ;;  %vm1258_vm7 = vcmask 654336   ;;  %vm1261_vm10 = vcmask 785408  }
  0x12   : > { %v419_v1 = vld [vmem:[%s369_s21] sm:$0xff]  ;;  %v420_v2 = vld [vmem:[%s369_s21 + $0x8] sm:$0xff]  ;;  %v421_v3 = vld [vmem:[%s369_s21 + $0x10] sm:$0xff]  ;;  %s11000_s29 = smov 126   ;;  %s11003_s27 = smov 64  }
  0x13   : > { %10932 = vmatprep.mubr.msk.f32.mxu1 %vm424_vm0, %v419_v1  ;;  %v825_v4 = vld [vmem:[%s11086_s24] sm:$0xff]  ;;  %v826_v5 = vld [vmem:[%s11086_s24 + $0x8] sm:$0xff]  ;;  %v827_v8 = vld [vmem:[%s11086_s24 + $0x10] sm:$0xff]  ;;  %s11004_s30 = smov 16   ;;  %s11005_s11 = smov 32  }
  0x14   : > { %10933 = vmatmul.mubr.msk.f32.vlgmr.msra.gmra.mrb[0].mxu1 %vm424_vm0, %v420_v2  ;;  %v10745_v6 = vpack.c.bf16 %v825_v4, %v825_v4  ;;  %v10746_v7 = vpack.c.bf16 %v826_v5, %v826_v5  ;;  %v828_v9 = vld [vmem:[%s11086_s24 + $0x18] sm:$0xff]  ;;  %v829_v10 = vld [vmem:[%s11086_s24 + $0x20] sm:$0xff]  ;;  %v10747_v12 = vpack.c.bf16 %v827_v8, %v827_v8  ;;  %v830_v14 = vld [vmem:[%s11086_s24 + $0x28] sm:$0xff]  ;;  %v16667_v4 = vmov 0  ;;  %s11006_s12 = smov 80   ;;  %s11007_s15 = smov 96  }
  0x15   : > { %10935 = vmatprep.mubr.msk.f32.mxu1 %vm424_vm0, %v421_v3  ;;  %v422_v11 = vld [vmem:[%s369_s21 + $0x18] sm:$0xff]  ;;  %v10748_v13 = vpack.c.bf16 %v828_v9, %v828_v9  ;;  %v10749_v15 = vpack.c.bf16 %v829_v10, %v829_v10  ;;  %v10750_v23 = vpack.c.bf16 %v830_v14, %v830_v14  ;;  %v831_v33 = vld [vmem:[%s11086_s24 + $0x30] sm:$0xff]  ;;  %v522_v2 = vld [vmem:[%s16563_s0] sm:$0xff]  ;;  %v16574_v3 = vmov 0   ;;  %s11008_s16 = smov 48   ;;  %s11009_s17 = smov 112  }
  0x16   : > { %v858_v16 = vshrl.u32 %v10745_v6, 16  ;;  %v866_v17 = vshrl.u32 %v10746_v7, 16  ;;  %v869_v18 = vshll.u32 %v10746_v7, 16  ;;  %v861_v19 = vshll.u32 %v10745_v6, 16  ;;  %v832_v34 = vld [vmem:[%s11086_s24 + $0x38] sm:$0xff]  ;;  %4152 = vmatprep.mubr.bf16.mxu0 %v16574_v3  ;;  %10987 = vset.pattern.permute.xlu0 %v16574_v3  ;;  %vm11266_vm14 = vmor %vm3083_vm12, %vm3084_vm13 }
  0x17   : > { %v875_v20 = vshrl.u32 %v10747_v12, 16  ;;  %v883_v21 = vshrl.u32 %v10748_v13, 16  ;;  %v886_v22 = vshll.u32 %v10748_v13, 16  ;;  %v892_v26 = vshrl.u32 %v10749_v15, 16  ;;  %396 = vst.msk [vmem:[#allocation2 + $0x34] sm:$0xf] %vm381_vm5, %v16574_v3  ;;  %10988 = vset.pattern.permute.xlu1 %v16574_v3 }
  0x18   : > { %10936 = vmatmul.mubr.msk.f32.gmra.mrb[2].mxu1 %vm424_vm0, %v422_v11  ;;  %v860_v24 = vrot.slane %v858_v16, 7  ;;  %v868_v25 = vrot.slane %v866_v17, 7  ;;  %v878_v27 = vshll.u32 %v10747_v12, 16  ;;  %v900_v31 = vshrl.u32 %v10750_v23, 16  ;;  %382 = vst.msk [vmem:[#allocation2] sm:$0xf] %vm381_vm5, %v16574_v3 }
  0x19   : > { %v877_v29 = vrot.slane %v875_v20, 7  ;;  %v885_v30 = vrot.slane %v883_v21, 7  ;;  %v903_v32 = vshll.u32 %v10750_v23, 16  ;;  %v894_v38 = vrot.slane %v892_v26, 7  ;;  %10946 = vmatprep.mubr.msk.f32.mxu1 %vm530_vm4, %v522_v2  ;;  %383 = vst.msk [vmem:[#allocation2 + $0x4] sm:$0xf] %vm381_vm5, %v16574_v3 }
  0x1a   : > { %v864_v35 = vrot.slane %v860_v24, 4  ;;  %v871_v36 = vor.u32 %v869_v18, %v868_v25  ;;  %v863_v37 = vor.u32 %v861_v19, %v860_v24  ;;  %v902_v41 = vrot.slane %v900_v31, 7  ;;  %386 = vst.msk [vmem:[#allocation2 + $0xc] sm:$0xf] %vm381_vm5, %v16574_v3  ;;  %387 = vst.msk [vmem:[#allocation2 + $0x10] sm:$0xf] %vm381_vm5, %v16574_v3 }
  0x1b   : > { %v881_v39 = vrot.slane %v877_v29, 4  ;;  %v888_v40 = vor.u32 %v886_v22, %v885_v30  ;;  %v880_v43 = vor.u32 %v878_v27, %v877_v29  ;;  %v10751_v44 = vpack.c.bf16 %v831_v33, %v831_v33  ;;  %389 = vst.msk [vmem:[#allocation2 + $0x18] sm:$0xf] %vm381_vm5, %v16574_v3  ;;  %390 = vst.msk [vmem:[#allocation2 + $0x1c] sm:$0xf] %vm381_vm5, %v16574_v3 }
  0x1c   : > { %v872_v42 = vsel %vm11100_vm3, %v864_v35, %v871_v36  ;;  %925 = vrot.lane.b32.xlu0 %v863_v37, %s10997_s25  ;;  %v10752_v45 = vpack.c.bf16 %v832_v34, %v832_v34  ;;  %v898_v47 = vrot.slane %v894_v38, 4  ;;  %v895_v48 = vshll.u32 %v10749_v15, 16  ;;  %392 = vst.msk [vmem:[#allocation2 + $0x24] sm:$0xf] %vm381_vm5, %v16574_v3  ;;  %393 = vst.msk [vmem:[#allocation2 + $0x28] sm:$0xf] %vm381_vm5, %v16574_v3 }
  0x1d   : > { %927 = vrot.lane.b32.xlu1 %v872_v42, %s10997_s25  ;;  %v889_v46 = vsel %vm11100_vm3, %v881_v39, %v888_v40  ;;  %v905_v49 = vor.u32 %v903_v32, %v902_v41  ;;  %v909_v50 = vshrl.u32 %v10751_v44, 16  ;;  %v912_v56 = vshll.u32 %v10751_v44, 16  ;;  %395 = vst.msk [vmem:[#allocation2 + $0x30] sm:$0xf] %vm381_vm5, %v16574_v3  ;;  %398 = vst.msk [vmem:[#allocation2 + $0x3c] sm:$0xf] %vm381_vm5, %v16574_v3 }
  0x1e   : > { %v917_v51 = vshrl.u32 %v10752_v45, 16  ;;  %v920_v52 = vshll.u32 %v10752_v45, 16  ;;  %v897_v55 = vor.u32 %v895_v48, %v894_v38  ;;  %v873_v62 = vrot.slane %v868_v25, 4  ;;  %399 = vst.msk [vmem:[#allocation2 + $0x40] sm:$0xf] %vm381_vm5, %v16574_v3 }
  0x1f   : > { %v911_v53 = vrot.slane %v909_v50, 7  ;;  %v906_v57 = vsel %vm11100_vm3, %v898_v47, %v905_v49  ;;  %v890_v63 = vrot.slane %v885_v30, 4  ;;  %v907_v0 = vrot.slane %v902_v41, 4  ;;  %401 = vst.msk [vmem:[#allocation2 + $0x48] sm:$0xf] %vm381_vm5, %v16574_v3 }
  0x20   : > { %931 = vrot.lane.b32.xlu0 %v880_v43, %s10997_s25  ;;  %v919_v54 = vrot.slane %v917_v51, 7  ;;  %402 = vst.msk [vmem:[#allocation2 + $0x4c] sm:$0xf] %vm381_vm5, %v16574_v3  ;;  %404 = vst.msk [vmem:[#allocation2 + $0x54] sm:$0xf] %vm381_vm5, %v16574_v3  ;;  %v16668_v4 = vsel %vm11194_vm9, 4294967295, %v16667_v4 }
  0x21   : > { %933 = vrot.lane.b32.xlu1 %v889_v46, %s10997_s25  ;;  %v915_v58 = vrot.slane %v911_v53, 4  ;;  %v914_v60 = vor.u32 %v912_v56, %v911_v53  ;;  %405 = vst.msk [vmem:[#allocation2 + $0x58] sm:$0xf] %vm381_vm5, %v16574_v3  ;;  %407 = vst.msk [vmem:[#allocation3] sm:$0xf] %vm381_vm5, %v16574_v3  ;;  %v16670_v24 = vmov 0 }
  0x22   : > { %v922_v59 = vor.u32 %v920_v52, %v919_v54  ;;  %v924_v1 = vrot.slane %v919_v54, 4  ;;  %408 = vst.msk [vmem:[#allocation3 + $0x4] sm:$0xf] %vm381_vm5, %v16574_v3  ;;  %410 = vst.msk [vmem:[#allocation3 + $0xc] sm:$0xf] %vm381_vm5, %v16574_v3  ;;  %v16671_v24 = vsel %vm11219_vm11, 4294967295, %v16670_v24 }
  0x23   : > { %411 = vst.msk [vmem:[#allocation3 + $0x10] sm:$0xf] %vm381_vm5, %v16574_v3  ;;  %413 = vst.msk [vmem:[#allocation3 + $0x18] sm:$0xf] %vm381_vm5, %v16574_v3  ;;  %v16673_v46 = vmov 0  ;;  %vm1264_vm12 = vcmask 916480  }
  0x24   : > { %937 = vrot.lane.b32.xlu0 %v897_v55, %s10997_s25  ;;  %v923_v61 = vsel %vm11100_vm3, %v915_v58, %v922_v59  ;;  %414 = vst.msk [vmem:[#allocation3 + $0x1c] sm:$0xf] %vm381_vm5, %v16574_v3  ;;  %416 = vst.msk [vmem:[#allocation3 + $0x24] sm:$0xf] %vm381_vm5, %v16574_v3  ;;  %v962_v5 = vld [vmem:[#allocation2 + $0x30] sm:$0xf] }
  0x25   : > { %939 = vrot.lane.b32.xlu1 %v906_v57, %s10997_s25  ;;  %417 = vst.msk [vmem:[#allocation3 + $0x28] sm:$0xf] %vm381_vm5, %v16574_v3  ;;  %16669 = vst [vmem:[#allocation5_spill] sm:$0xff] %v16668_v4  ;;  %v969_v9 = vld [vmem:[#allocation2 + $0x3c] sm:$0xf]  ;;  %v16674_v46 = vsel %vm11266_vm14, 4294967295, %v16673_v46 }
  0x26   : > { %400 = vst.msk [vmem:[#allocation2 + $0x44] sm:$0x1] %vm384_vm6, %v16574_v3  ;;  %385 = vst.msk [vmem:[#allocation2 + $0x8] sm:$0x1] %vm384_vm6, %v16574_v3  ;;  %v976_v13 = vld [vmem:[#allocation2 + $0x48] sm:$0xf] }
  0x27   : > { %388 = vst.msk [vmem:[#allocation2 + $0x14] sm:$0x1] %vm384_vm6, %v16574_v3  ;;  %391 = vst.msk [vmem:[#allocation2 + $0x20] sm:$0x1] %vm384_vm6, %v16574_v3  ;;  %v983_v18 = vld [vmem:[#allocation2 + $0x54] sm:$0xf] }
  0x28   : > { %943 = vrot.lane.b32.xlu0 %v914_v60, %s10997_s25  ;;  %394 = vst.msk [vmem:[#allocation2 + $0x2c] sm:$0x1] %vm384_vm6, %v16574_v3  ;;  %397 = vst.msk [vmem:[#allocation2 + $0x38] sm:$0x1] %vm384_vm6, %v16574_v3  ;;  %vm1943_vm0 = vsmask.f32 7440 }
  0x29   : > { %945 = vrot.lane.b32.xlu1 %v923_v61, %s10997_s25  ;;  %403 = vst.msk [vmem:[#allocation2 + $0x50] sm:$0x1] %vm384_vm6, %v16574_v3  ;;  %406 = vst.msk [vmem:[#allocation2 + $0x5c] sm:$0x1] %vm384_vm6, %v16574_v3  ;;  %vm1252_vm5 = vcmask 392192   ;;  %vm4080_vm13 = vcmask 1043456  }
  0x2a   : > { %409 = vst.msk [vmem:[#allocation3 + $0x8] sm:$0x1] %vm384_vm6, %v16574_v3  ;;  %412 = vst.msk [vmem:[#allocation3 + $0x14] sm:$0x1] %vm384_vm6, %v16574_v3 }
  0x2b   : > { %415 = vst.msk [vmem:[#allocation3 + $0x20] sm:$0x1] %vm384_vm6, %v16574_v3  ;;  %418 = vst.msk [vmem:[#allocation3 + $0x2c] sm:$0x1] %vm384_vm6, %v16574_v3  ;;  %vm1255_vm6 = vcmask 523264  }
  0x2c   : > { %929 = vrot.lane.b32.xlu0 %v873_v62, %s10997_s25  ;;  %16672 = vst [vmem:[#allocation6_spill] sm:$0xff] %v16671_v24  ;;  %16675 = vst [vmem:[#allocation7_spill] sm:$0xff] %v16674_v46 }
  0x2d   : > { %935 = vrot.lane.b32.xlu1 %v890_v63, %s10997_s25  ;;  %v973_v25 = vld [vmem:[#allocation2 + $0x44] sm:$0x1]  ;;  %vm11369_vm1 = vmor %vm1942_vm15, %vm1943_vm0  ;;  %vm4112_vm15 = vcmask 588800   ;;  %vm7099_vm0 = vcmask 1041408  }
  0x2f   : > { %v966_v23 = vld [vmem:[#allocation2 + $0x38] sm:$0x1] }
  0x30   : > { %941 = vrot.lane.b32.xlu0 %v907_v0, %s10997_s25  ;;  %v980_v32 = vld [vmem:[#allocation2 + $0x50] sm:$0x1]  ;;  %v987_v34 = vld [vmem:[#allocation2 + $0x5c] sm:$0x1] }
  0x31   : > { %947 = vrot.lane.b32.xlu1 %v924_v1, %s10997_s25 }
  0x8e   : > { %v926_v6 = vpop.permute.xlu0 %925 }
  0x8f   : > { %v928_v7 = vpop.permute.xlu1 %927  ;;  %v963_v8 = vsel %vm11194_vm9, %v926_v6, %v962_v5 }
  0x90   : > { %965 = vst.msk [vmem:[#allocation2 + $0x34] sm:$0xf] %vm791_vm8, %v928_v7  ;;  %964 = vst [vmem:[#allocation2 + $0x30] sm:$0xf] %v963_v8 }
  0x92   : > { %v932_v10 = vpop.permute.xlu0 %931 }
  0x93   : > { %v934_v11 = vpop.permute.xlu1 %933  ;;  %v970_v12 = vsel %vm11194_vm9, %v932_v10, %v969_v9 }
  0x94   : > { %972 = vst.msk [vmem:[#allocation2 + $0x40] sm:$0xf] %vm791_vm8, %v934_v11  ;;  %971 = vst [vmem:[#allocation2 + $0x3c] sm:$0xf] %v970_v12 }
  0x96   : > { %v938_v14 = vpop.permute.xlu0 %937 }
  0x97   : > { %v940_v15 = vpop.permute.xlu1 %939  ;;  %v11204_v16 = vld [vmem:[#allocation2 + $0x34] sm:$0xf]  ;;  %v977_v17 = vsel %vm11194_vm9, %v938_v14, %v976_v13  ;;  %v11231_v33 = vld [vmem:[#allocation2 + $0x30] sm:$0xf] }
  0x98   : > { %979 = vst.msk [vmem:[#allocation2 + $0x4c] sm:$0xf] %vm791_vm8, %v940_v15  ;;  %1316 = vrot.lane.b32.xlu0 %v11204_v16, %s10999_s28  ;;  %978 = vst [vmem:[#allocation2 + $0x48] sm:$0xf] %v977_v17  ;;  %v3063_v43 = vld [vmem:[#allocation2 + $0x30] sm:$0xe] }
  0x99   : > { %v10404_v44 = vrot.slane %v3063_v43, 9  ;;  %v3116_v45 = vrot.slane %v11204_v16, 5  ;;  %v2051_v6 = vshll.u32 %v11204_v16, 16  ;;  %v2055_v10 = vshrl.u32 %v11204_v16, 16 }
  0x9a   : > { %v944_v19 = vpop.permute.xlu0 %943 }
  0x9b   : > { %v946_v20 = vpop.permute.xlu1 %945  ;;  %v11211_v21 = vld [vmem:[#allocation2 + $0x40] sm:$0xf]  ;;  %v984_v22 = vsel %vm11194_vm9, %v944_v19, %v983_v18  ;;  %v11243_v40 = vld [vmem:[#allocation2 + $0x3c] sm:$0xf]  ;;  %v11276_v49 = vsel %vm11266_vm14, %v10404_v44, %v3116_v45  ;;  %v3118_v8 = vrot.slane %v3116_v45, 4  ;;  %v11337_v17 = vrot.slane %v2051_v6, 5 }
  0x9c   : > { %986 = vst.msk [vmem:[#allocation2 + $0x58] sm:$0xf] %vm791_vm8, %v946_v20  ;;  %1320 = vrot.lane.b32.xlu1 %v11211_v21, %s10999_s28  ;;  %985 = vst [vmem:[#allocation2 + $0x54] sm:$0xf] %v984_v22  ;;  %v3064_v48 = vld [vmem:[#allocation2 + $0x3c] sm:$0xe] }
  0x9d   : > { %v10405_v52 = vrot.slane %v3064_v48, 9  ;;  %v3123_v53 = vrot.slane %v11211_v21, 5  ;;  %v2075_v11 = vshll.u32 %v11211_v21, 16  ;;  %v2079_v12 = vshrl.u32 %v11211_v21, 16 }
  0x9e   : > { %v930_v26 = vpop.permute.xlu0 %929  ;;  %v2057_v18 = vrot.slane %v2055_v10, 4  ;;  %v2042_v20 = vshrl.u32 %v11231_v33, 16  ;;  %v2045_v22 = vshll.u32 %v11231_v33, 16  ;;  %v2066_v43 = vshrl.u32 %v11243_v40, 16 }
  0x9f   : > { %v11223_v27 = vld [vmem:[#allocation2 + $0x4c] sm:$0xf]  ;;  %v936_v29 = vpop.permute.xlu1 %935  ;;  %v967_v30 = vsel %vm11219_vm11, %v930_v26, %v966_v23  ;;  %v11245_v41 = vld [vmem:[#allocation2 + $0x48] sm:$0xf]  ;;  %v11290_v56 = vsel %vm11266_vm14, %v10405_v52, %v3123_v53  ;;  %v3125_v61 = vrot.slane %v3123_v53, 4  ;;  %v11341_v23 = vrot.slane %v2075_v11, 5 }
  0xa0   : > { %1324 = vrot.lane.b32.xlu0 %v11223_v27, %s10999_s28  ;;  %v974_v31 = vsel %vm11219_vm11, %v936_v29, %v973_v25  ;;  %968 = vst [vmem:[#allocation2 + $0x38] sm:$0x1] %v967_v30  ;;  %v3065_v47 = vld [vmem:[#allocation2 + $0x48] sm:$0xe]  ;;  %v3130_v51 = vrot.slane %v11223_v27, 5  ;;  %v2099_v13 = vshll.u32 %v11223_v27, 16 }
  0xa1   : > { %975 = vst [vmem:[#allocation2 + $0x44] sm:$0x1] %v974_v31  ;;  %v10406_v50 = vrot.slane %v3065_v47, 9  ;;  %v2103_v14 = vshrl.u32 %v11223_v27, 16  ;;  %v2081_v25 = vrot.slane %v2079_v12, 4  ;;  %v2069_v47 = vshll.u32 %v11243_v40, 16 }
  0xa2   : > { %v942_v35 = vpop.permute.xlu0 %941  ;;  %v11343_v26 = vrot.slane %v2099_v13, 5  ;;  %v2090_v48 = vshrl.u32 %v11245_v41, 16  ;;  %v2093_v53 = vshll.u32 %v11245_v41, 16 }
  0xa3   : > { %v11233_v36 = vld [vmem:[#allocation2 + $0x58] sm:$0xf]  ;;  %v948_v37 = vpop.permute.xlu1 %947  ;;  %v981_v38 = vsel %vm11219_vm11, %v942_v35, %v980_v32  ;;  %v11251_v42 = vld [vmem:[#allocation2 + $0x54] sm:$0xf]  ;;  %v11286_v55 = vsel %vm11266_vm14, %v10406_v50, %v3130_v51  ;;  %v2105_v29 = vrot.slane %v2103_v14, 4  ;;  %v3132_v32 = vrot.slane %v3130_v51, 4 }
  0xa4   : > { %1328 = vrot.lane.b32.xlu1 %v11233_v36, %s10999_s28  ;;  %1314 = vrot.lane.b32.xlu0 %v11231_v33, %s10999_s28  ;;  %v988_v39 = vsel %vm11219_vm11, %v948_v37, %v987_v34  ;;  %982 = vst [vmem:[#allocation2 + $0x50] sm:$0x1] %v981_v38  ;;  %v3066_v54 = vld [vmem:[#allocation2 + $0x54] sm:$0xe]  ;;  %v3137_v58 = vrot.slane %v11233_v36, 5  ;;  %v2123_v30 = vshll.u32 %v11233_v36, 16  ;;  %v2058_v35 = vor.u32 %v2057_v18, %v11337_v17 }
  0xa5   : > { %989 = vst [vmem:[#allocation2 + $0x5c] sm:$0x1] %v988_v39  ;;  %v10407_v57 = vrot.slane %v3066_v54, 9  ;;  %v2127_v31 = vshrl.u32 %v11233_v36, 16  ;;  %v2044_v38 = vrot.slane %v2042_v20, 4  ;;  %v2047_v39 = vrot.slane %v2045_v22, 5 }
  0xa6   : > { %v3139_v1 = vrot.slane %v3137_v58, 4  ;;  %v2082_v44 = vor.u32 %v2081_v25, %v11341_v23  ;;  %v2106_v45 = vor.u32 %v2105_v29, %v11343_v26  ;;  %v2125_v51 = vrot.slane %v2123_v30, 5 }
  0xa7   : > { %v11301_v60 = vsel %vm11266_vm14, %v10407_v57, %v3137_v58  ;;  %v1938_v5 = vld [vmem:[#allocation2 + $0x38] sm:$0x1]  ;;  %v2129_v52 = vrot.slane %v2127_v31, 4  ;;  %v2059_v57 = vrot.slane %v2058_v35, 4  ;;  %v2071_v6 = vrot.slane %v2069_v47, 5 }
  0xa8   : > { %1318 = vrot.lane.b32.xlu1 %v11243_v40, %s10999_s28  ;;  %1322 = vrot.lane.b32.xlu0 %v11245_v41, %s10999_s28  ;;  %v11293_v59 = vld [vmem:[#allocation2 + $0x44] sm:$0x1]  ;;  %v3119_v9 = vrot.slane %v1938_v5, 5  ;;  %v2061_v37 = vshll.u32 %v1938_v5, 16  ;;  %v2107_v5 = vrot.slane %v2106_v45, 4  ;;  %v2095_v11 = vrot.slane %v2093_v53, 5 }
  0xa9   : > { %v3126_v62 = vrot.slane %v11293_v59, 5  ;;  %v2085_v50 = vshll.u32 %v11293_v59, 16  ;;  %v2083_v59 = vrot.slane %v2082_v44, 4  ;;  %v2130_v10 = vor.u32 %v2129_v52, %v2125_v51 }
  0xaa   : > { %v11335_v15 = vsel %vm11266_vm14, %v3118_v8, %v3119_v9  ;;  %v2063_v58 = vrot.slane %v2061_v37, 5  ;;  %v2092_v8 = vrot.slane %v2090_v48, 4  ;;  %v2114_v12 = vshrl.u32 %v11251_v42, 16 }
  0xab   : > { %v11312_v0 = vsel %vm11266_vm14, %v3125_v61, %v3126_v62  ;;  %v1940_v19 = vld [vmem:[#allocation2 + $0x50] sm:$0x1]  ;;  %v16676_v62 = vmov 0  ;;  %v2087_v9 = vrot.slane %v2085_v50, 5  ;;  %v2131_v25 = vrot.slane %v2130_v10, 4 }
  0xac   : > { %1634 = vrot.lane.b32.xlu0 %v11204_v16, %s11000_s29  ;;  %1326 = vrot.lane.b32.xlu1 %v11251_v42, %s10999_s28  ;;  %v11304_v63 = vld [vmem:[#allocation2 + $0x5c] sm:$0x1]  ;;  %v3133_v34 = vrot.slane %v1940_v19, 5  ;;  %v2109_v61 = vshll.u32 %v1940_v19, 16  ;;  %v16677_v62 = vsel %vm11369_vm1, 4294967295, %v16676_v62  ;;  %v11380_v13 = vsel %vm11369_vm1, %v2059_v57, %v2063_v58  ;;  %v523_v57 = vld [vmem:[%s16563_s0 + $0x8] sm:$0xff] }
  0xad   : > { %v3140_v2 = vrot.slane %v11304_v63, 5  ;;  %16678 = vst [vmem:[#allocation8_spill] sm:$0xff] %v16677_v62  ;;  %v2133_v18 = vshll.u32 %v11304_v63, 16  ;;  %v2117_v19 = vshll.u32 %v11251_v42, 16  ;;  %v11390_v22 = vsel %vm11369_vm1, %v2083_v59, %v2087_v9  ;;  %v525_v58 = vld [vmem:[%s16563_s0 + $0x18] sm:$0xff] }
  0xae   : > { %v11365_v54 = vsel %vm11266_vm14, %v3132_v32, %v3133_v34  ;;  %v2111_v14 = vrot.slane %v2109_v61, 5  ;;  %v2096_v30 = vor.u32 %v2095_v11, %v2092_v8  ;;  %v2116_v32 = vrot.slane %v2114_v12, 4  ;;  %v526_v61 = vld [vmem:[%s16563_s0 + $0x20] sm:$0xff]  ;;  %v529_v59 = vld [vmem:[%s16563_s0 + $0x38] sm:$0xff] }
  0xaf   : > { %v11322_v7 = vsel %vm11266_vm14, %v3139_v1, %v3140_v2  ;;  %v2048_v1 = vor.u32 %v2047_v39, %v2044_v38  ;;  %v2068_v2 = vrot.slane %v2066_v43, 4  ;;  %v2135_v63 = vrot.slane %v2133_v18, 5 }
  0xb0   : > { %1642 = vrot.lane.b32.xlu0 %v11223_v27, %s11000_s29  ;;  %1638 = vrot.lane.b32.xlu1 %v11211_v21, %s11000_s29  ;;  %v11394_v31 = vsel %vm11369_vm1, %v2107_v5, %v2111_v14  ;;  %v2119_v34 = vrot.slane %v2117_v19, 5  ;;  %v2097_v39 = vrot.slane %v2096_v30, 4 }
  0xb1   : > { %v2049_v20 = vrot.slane %v2048_v1, 4  ;;  %v2072_v29 = vor.u32 %v2071_v6, %v2068_v2  ;;  %v11407_v37 = vsel %vm11369_vm1, %v2131_v25, %v2135_v63  ;;  %v527_v1 = vld [vmem:[%s16563_s0 + $0x28] sm:$0xff]  ;;  %v528_v2 = vld [vmem:[%s16563_s0 + $0x30] sm:$0xff] }
  0xb2   : > { %v2120_v43 = vor.u32 %v2119_v34, %v2116_v32 }
  0xb3   : > { %v11403_v35 = vsel %vm11369_vm1, %v2049_v20, %v11337_v17  ;;  %v2073_v38 = vrot.slane %v2072_v29, 4  ;;  %v11421_v17 = vsel %vm11369_vm1, %v2097_v39, %v11343_v26 }
  0xb4   : > { %1632 = vrot.lane.b32.xlu0 %v11231_v33, %s11000_s29  ;;  %1646 = vrot.lane.b32.xlu1 %v11233_v36, %s11000_s29  ;;  %v2121_v45 = vrot.slane %v2120_v43, 4 }
  0xb5   : > { %v11416_v44 = vsel %vm11369_vm1, %v2073_v38, %v11341_v23 }
  0xb6   : > { %v11429_v52 = vsel %vm11369_vm1, %v2121_v45, %v2125_v51  ;;  %v524_v51 = vld [vmem:[%s16563_s0 + $0x10] sm:$0xff] }
  0xb8   : > { %1640 = vrot.lane.b32.xlu0 %v11245_v41, %s11000_s29  ;;  %1636 = vrot.lane.b32.xlu1 %v11243_v40, %s11000_s29 }
  0xbc   : > { %3444 = vrot.lane.b32.xlu0 %v11276_v49, %s10999_s28  ;;  %1644 = vrot.lane.b32.xlu1 %v11251_v42, %s11000_s29 }
  0xc0   : > { %3452 = vrot.lane.b32.xlu0 %v11286_v55, %s10999_s28  ;;  %3448 = vrot.lane.b32.xlu1 %v11290_v56, %s10999_s28 }
  0xc4   : > { %3762 = vrot.lane.b32.xlu0 %v11276_v49, %s11000_s29  ;;  %3456 = vrot.lane.b32.xlu1 %v11301_v60, %s10999_s28 }
  0xc8   : > { %3766 = vrot.lane.b32.xlu0 %v11290_v56, %s11000_s29  ;;  %3450 = vrot.lane.b32.xlu1 %v11312_v0, %s10999_s28 }
  0xcc   : > { %3770 = vrot.lane.b32.xlu0 %v11286_v55, %s11000_s29  ;;  %3458 = vrot.lane.b32.xlu1 %v11322_v7, %s10999_s28 }
  0xd0   : > { %3774 = vrot.lane.b32.xlu0 %v11301_v60, %s11000_s29  ;;  %3764 = vrot.lane.b32.xlu1 %v11335_v15, %s11000_s29 }
  0xd4   : > { %3768 = vrot.lane.b32.xlu1 %v11312_v0, %s11000_s29  ;;  %3446 = vrot.lane.b32.xlu0 %v11335_v15, %s10999_s28 }
  0xd8   : > { %3772 = vrot.lane.b32.xlu1 %v11365_v54, %s11000_s29  ;;  %3454 = vrot.lane.b32.xlu0 %v11365_v54, %s10999_s28 }
  0xdc   : > { %3776 = vrot.lane.b32.xlu1 %v11322_v7, %s11000_s29  ;;  %2759 = vrot.lane.b32.xlu0 %v11380_v13, %s11000_s29 }
  0xe0   : > { %2763 = vrot.lane.b32.xlu1 %v11390_v22, %s11000_s29  ;;  %2767 = vrot.lane.b32.xlu0 %v11394_v31, %s11000_s29 }
  0xe4   : > { %2771 = vrot.lane.b32.xlu1 %v11407_v37, %s11000_s29  ;;  %2757 = vrot.lane.b32.xlu0 %v11403_v35, %s11000_s29 }
  0xe7   : > { %v10934_v47 = vpop.f32.mrb[0].mxu1 }
  0xe8   : > { %v503_v48 = vpop.f32.mrb[1].mxu1  ;;  %2761 = vrot.lane.b32.xlu1 %v11416_v44, %s11000_s29  ;;  %2765 = vrot.lane.b32.xlu0 %v11421_v17, %s11000_s29 }
  0xe9   : > { %v10958_v50 = vpack.c.bf16 %v10934_v47, %v503_v48 }
  0xeb   : > { %v10937_v23 = vpop.f32.mrb[2].mxu1  ;;  %10959 = vmatprep.subr.bf16.mxu1 %v10958_v50 }
  0xec   : > { %v513_v53 = vpop.f32.mrb[3].mxu1  ;;  %10961 = vmatpush3.bf16.msra.mxu1 %v10958_v50  ;;  %2769 = vrot.lane.b32.xlu1 %v11429_v52, %s11000_s29 }
  0xed   : > { %v10962_v26 = vpack.c.bf16 %v10937_v23, %v513_v53  ;;  %2441 = vrot.lane.b32.xlu0 %v11380_v13, %s10999_s28 }
  0xef   : > { %10963 = vmatprep.subr.bf16.mxu1 %v10962_v26 }
  0xf0   : > { %10965 = vmatpush3.bf16.msra.mxu1 %v10962_v26  ;;  %2445 = vrot.lane.b32.xlu1 %v11390_v22, %s10999_s28 }
  0xf1   : > { %2449 = vrot.lane.b32.xlu0 %v11394_v31, %s10999_s28 }
  0xf3   : > { %10947 = vmatmul.mubr.msk.f32.vlgmr.msra.gmra.mrb[4].mxu1 %vm530_vm4, %v523_v57 }
  0xf4   : > { %10949 = vmatprep.mubr.msk.f32.mxu1 %vm530_vm4, %v524_v51  ;;  %2453 = vrot.lane.b32.xlu1 %v11407_v37, %s10999_s28 }
  0xf5   : > { %2439 = vrot.lane.b32.xlu0 %v11403_v35, %s10999_s28 }
  0xf7   : > { %10950 = vmatmul.mubr.msk.f32.gmra.mrb[6].mxu1 %vm530_vm4, %v525_v58 }
  0xf8   : > { %10952 = vmatprep.mubr.msk.f32.mxu1 %vm530_vm4, %v526_v61  ;;  %2443 = vrot.lane.b32.xlu1 %v11416_v44, %s10999_s28 }
  0xf9   : > { %2447 = vrot.lane.b32.xlu0 %v11421_v17, %s10999_s28 }
  0xfb   : > { %10953 = vmatmul.mubr.msk.f32.gmra.mrb[8].mxu1 %vm530_vm4, %v527_v1 }
  0xfc   : > { %10955 = vmatprep.mubr.msk.f32.mxu1 %vm530_vm4, %v528_v2  ;;  %2451 = vrot.lane.b32.xlu1 %v11429_v52, %s10999_s28 }
  0xff   : > { %10956 = vmatmul.mubr.msk.f32.gmra.mrb[10].mxu1 %vm530_vm4, %v529_v59 }
 0x100   : > { %7176 = vmatprep.mubr.bf16.mxu1 %v16574_v3 }
 0x10a   : > { %v11478_v5 = vpop.permute.xlu0 %1316 }
 0x10b   : > { %16679 = vst [vmem:[#allocation9_spill] sm:$0xff] %v11478_v5 }
 0x10e   : > { %v11480_v6 = vpop.permute.xlu1 %1320 }
 0x10f   : > { %16680 = vst [vmem:[#allocation10_spill] sm:$0xff] %v11480_v6 }
 0x112   : > { %v11482_v8 = vpop.permute.xlu0 %1324 }
 0x113   : > { %16681 = vst [vmem:[#allocation11_spill] sm:$0xff] %v11482_v8 }
 0x116   : > { %v11484_v9 = vpop.permute.xlu1 %1328  ;;  %v11486_v10 = vpop.permute.xlu0 %1314 }
 0x117   : > { %16682 = vst [vmem:[#allocation12_spill] sm:$0xff] %v11484_v9  ;;  %16683 = vst [vmem:[#allocation13_spill] sm:$0xff] %v11486_v10 }
 0x11a   : > { %v11488_v11 = vpop.permute.xlu1 %1318  ;;  %v11490_v14 = vpop.permute.xlu0 %1322 }
 0x11b   : > { %16684 = vst [vmem:[#allocation14_spill] sm:$0xff] %v11488_v11  ;;  %16685 = vst [vmem:[#allocation15_spill] sm:$0xff] %v11490_v14 }
 0x11e   : > { %v11492_v63 = vpop.permute.xlu1 %1326  ;;  %v11494_v47 = vpop.permute.xlu0 %1634 }
 0x11f   : > { %16686 = vst [vmem:[#allocation16_spill] sm:$0xff] %v11492_v63  ;;  %16687 = vst [vmem:[#allocation17_spill] sm:$0xff] %v11494_v47 }
 0x1c6   : > { %v10948_v12 = vpop.f32.mrb[4].mxu1 }
 0x1c7   : > { %v10738_v18 = vpack.c.bf16 %v10948_v12, %v10948_v12  ;;  %v621_v19 = vpop.f32.mrb[5].mxu1 }
 0x1c8   : > { %v10737_v20 = vpack.c.bf16 %v621_v19, %v621_v19 }
 0x1c9   : > { %v696_v25 = vshrl.u32 %v10738_v18, 16  ;;  %v699_v34 = vshll.u32 %v10738_v18, 16 }
 0x1ca   : > { %v688_v29 = vshrl.u32 %v10737_v20, 16  ;;  %v10951_v30 = vpop.f32.mrb[6].mxu1  ;;  %v691_v53 = vshll.u32 %v10737_v20, 16 }
 0x1cb   : > { %v698_v32 = vrot.slane %v696_v25, 7  ;;  %v10740_v38 = vpack.c.bf16 %v10951_v30, %v10951_v30  ;;  %v631_v39 = vpop.f32.mrb[7].mxu1  ;;  %v11499_v25 = vpop.permute.xlu1 %1638 }
 0x1cc   : > { %v690_v43 = vrot.slane %v688_v29, 7  ;;  %v10739_v45 = vpack.c.bf16 %v631_v39, %v631_v39  ;;  %16688 = vst [vmem:[#allocation18_spill] sm:$0xff] %v11499_v25 }
 0x1cd   : > { %v701_v48 = vor.u32 %v699_v34, %v698_v32  ;;  %v713_v50 = vshrl.u32 %v10740_v38, 16  ;;  %v703_v23 = vrot.slane %v698_v32, 4  ;;  %v716_v61 = vshll.u32 %v10740_v38, 16  ;;  %v11501_v38 = vpop.permute.xlu0 %1642 }
 0x1ce   : > { %v694_v26 = vrot.slane %v690_v43, 4  ;;  %v705_v57 = vshrl.u32 %v10739_v45, 16  ;;  %v10954_v51 = vpop.f32.mrb[8].mxu1  ;;  %v693_v12 = vor.u32 %v691_v53, %v690_v43  ;;  %16689 = vst [vmem:[#allocation19_spill] sm:$0xff] %v11501_v38 }
 0x1cf   : > { %v715_v58 = vrot.slane %v713_v50, 7  ;;  %759 = vrot.lane.b32.xlu0 %v703_v23, %s10997_s25  ;;  %v10742_v1 = vpack.c.bf16 %v10954_v51, %v10954_v51  ;;  %v641_v2 = vpop.f32.mrb[9].mxu1  ;;  %v708_v23 = vshll.u32 %v10739_v45, 16  ;;  %v11507_v5 = vpop.permute.xlu1 %1646 }
 0x1d0   : > { %v707_v59 = vrot.slane %v705_v57, 7  ;;  %v10741_v18 = vpack.c.bf16 %v641_v2, %v641_v2  ;;  %v702_v19 = vsel %vm11100_vm3, %v694_v26, %v701_v48  ;;  %16690 = vst [vmem:[#allocation20_spill] sm:$0xff] %v11507_v5 }
 0x1d1   : > { %v718_v29 = vor.u32 %v716_v61, %v715_v58  ;;  %v730_v30 = vshrl.u32 %v10742_v1, 16  ;;  %v733_v20 = vshll.u32 %v10742_v1, 16  ;;  %v720_v32 = vrot.slane %v715_v58, 4 }
 0x1d2   : > { %v711_v34 = vrot.slane %v707_v59, 4  ;;  %v722_v39 = vshrl.u32 %v10741_v18, 16  ;;  %v10957_v50 = vpop.f32.mrb[10].mxu1  ;;  %v710_v58 = vor.u32 %v708_v23, %v707_v59  ;;  %v725_v45 = vshll.u32 %v10741_v18, 16 }
 0x1d3   : > { %v732_v51 = vrot.slane %v730_v30, 7  ;;  %755 = vrot.lane.b32.xlu0 %v693_v12, %s10997_s25  ;;  %765 = vrot.lane.b32.xlu1 %v720_v32, %s10997_s25  ;;  %v10744_v43 = vpack.c.bf16 %v10957_v50, %v10957_v50  ;;  %v651_v53 = vpop.f32.mrb[11].mxu1  ;;  %v11519_v50 = vpop.permute.xlu1 %1636 }
 0x1d4   : > { %v724_v48 = vrot.slane %v722_v39, 7  ;;  %v10743_v26 = vpack.c.bf16 %v651_v53, %v651_v53  ;;  %v719_v57 = vsel %vm11100_vm3, %v711_v34, %v718_v29  ;;  %v11513_v29 = vpop.permute.xlu0 %1632  ;;  %16692 = vst [vmem:[#allocation22_spill] sm:$0xff] %v11519_v50 }
 0x1d5   : > { %v735_v61 = vor.u32 %v733_v20, %v732_v51  ;;  %v747_v1 = vshrl.u32 %v10744_v43, 16  ;;  %v750_v2 = vshll.u32 %v10744_v43, 16  ;;  %v737_v30 = vrot.slane %v732_v51, 4  ;;  %16691 = vst [vmem:[#allocation21_spill] sm:$0xff] %v11513_v29 }
 0x1d6   : > { %v728_v3 = vrot.slane %v724_v48, 4  ;;  %v739_v47 = vshrl.u32 %v10743_v26, 16  ;;  %v742_v34 = vshll.u32 %v10743_v26, 16  ;;  %v727_v18 = vor.u32 %v725_v45, %v724_v48 }
 0x1d7   : > { %757 = vrot.lane.b32.xlu0 %v702_v19, %s10997_s25  ;;  %761 = vrot.lane.b32.xlu1 %v710_v58, %s10997_s25  ;;  %v749_v12 = vrot.slane %v747_v1, 7  ;;  %v11525_v51 = vpop.permute.xlu1 %1644 }
 0x1d8   : > { %v741_v32 = vrot.slane %v739_v47, 7  ;;  %v736_v39 = vsel %vm11100_vm3, %v728_v3, %v735_v61  ;;  %v11521_v23 = vpop.permute.xlu0 %1640  ;;  %16694 = vst [vmem:[#allocation24_spill] sm:$0xff] %v11525_v51 }
 0x1d9   : > { %v752_v59 = vor.u32 %v750_v2, %v749_v12  ;;  %16693 = vst [vmem:[#allocation23_spill] sm:$0xff] %v11521_v23  ;;  %v754_v3 = vrot.slane %v749_v12, 4 }
 0x1da   : > { %v745_v20 = vrot.slane %v741_v32, 4  ;;  %v744_v47 = vor.u32 %v742_v34, %v741_v32 }
 0x1db   : > { %763 = vrot.lane.b32.xlu1 %v719_v57, %s10997_s25  ;;  %771 = vrot.lane.b32.xlu0 %v737_v30, %s10997_s25  ;;  %v11532_v53 = vpop.permute.xlu1 %3448 }
 0x1dc   : > { %v753_v19 = vsel %vm11100_vm3, %v745_v20, %v752_v59  ;;  %v11529_v43 = vpop.permute.xlu0 %3444  ;;  %16696 = vst [vmem:[#allocation26_spill] sm:$0xff] %v11532_v53 }
 0x1dd   : > { %16695 = vst [vmem:[#allocation25_spill] sm:$0xff] %v11529_v43  ;;  %v822_v43 = vld [vmem:[#allocation2 + $0x2c] sm:$0x1] }
 0x1df   : > { %769 = vrot.lane.b32.xlu1 %v736_v39, %s10997_s25  ;;  %767 = vrot.lane.b32.xlu0 %v727_v18, %s10997_s25  ;;  %v11536_v26 = vpop.permute.xlu1 %3456 }
 0x1e0   : > { %v11534_v48 = vpop.permute.xlu0 %3452  ;;  %16698 = vst [vmem:[#allocation28_spill] sm:$0xff] %v11536_v26 }
 0x1e1   : > { %16697 = vst [vmem:[#allocation27_spill] sm:$0xff] %v11534_v48  ;;  %v818_v48 = vld [vmem:[#allocation2 + $0x24] sm:$0xf] }
 0x1e3   : > { %777 = vrot.lane.b32.xlu1 %v754_v3, %s10997_s25  ;;  %773 = vrot.lane.b32.xlu0 %v744_v47, %s10997_s25  ;;  %v11540_v61 = vpop.permute.xlu1 %3450 }
 0x1e4   : > { %v11538_v57 = vpop.permute.xlu0 %3762  ;;  %16700 = vst [vmem:[#allocation30_spill] sm:$0xff] %v11540_v61 }
 0x1e5   : > { %16699 = vst [vmem:[#allocation29_spill] sm:$0xff] %v11538_v57 }
 0x1e7   : > { %775 = vrot.lane.b32.xlu1 %v753_v19, %s10997_s25  ;;  %v11544_v1 = vpop.permute.xlu1 %3458 }
 0x1e8   : > { %v11542_v58 = vpop.permute.xlu0 %3766  ;;  %16702 = vst [vmem:[#allocation32_spill] sm:$0xff] %v11544_v1 }
 0x1e9   : > { %16701 = vst [vmem:[#allocation31_spill] sm:$0xff] %v11542_v58 }
 0x1eb   : > { %v11548_v45 = vpop.permute.xlu1 %3764 }
 0x1ec   : > { %v11546_v2 = vpop.permute.xlu0 %3770  ;;  %16704 = vst [vmem:[#allocation34_spill] sm:$0xff] %v11548_v45 }
 0x1ed   : > { %16703 = vst [vmem:[#allocation33_spill] sm:$0xff] %v11546_v2 }
 0x1ef   : > { %v11552_v30 = vpop.permute.xlu1 %3768 }
 0x1f0   : > { %v11550_v12 = vpop.permute.xlu0 %3774  ;;  %16706 = vst [vmem:[#allocation36_spill] sm:$0xff] %v11552_v30 }
 0x1f1   : > { %16705 = vst [vmem:[#allocation35_spill] sm:$0xff] %v11550_v12 }
 0x1f3   : > { %v11556_v39 = vpop.permute.xlu1 %3772 }
 0x1f4   : > { %v11554_v32 = vpop.permute.xlu0 %3446  ;;  %16708 = vst [vmem:[#allocation38_spill] sm:$0xff] %v11556_v39 }
 0x1f5   : > { %16707 = vst [vmem:[#allocation37_spill] sm:$0xff] %v11554_v32 }
 0x1f7   : > { %v11560_v20 = vpop.permute.xlu1 %3776 }
 0x1f8   : > { %v11558_v59 = vpop.permute.xlu0 %3454  ;;  %16710 = vst [vmem:[#allocation40_spill] sm:$0xff] %v11560_v20 }
 0x1f9   : > { %16709 = vst [vmem:[#allocation39_spill] sm:$0xff] %v11558_v59 }
 0x1fb   : > { %v11564_v18 = vpop.permute.xlu1 %2763 }
 0x1fc   : > { %v11562_v34 = vpop.permute.xlu0 %2759  ;;  %16712 = vst [vmem:[#allocation42_spill] sm:$0xff] %v11564_v18 }
 0x1fd   : > { %16711 = vst [vmem:[#allocation41_spill] sm:$0xff] %v11562_v34 }
 0x1ff   : > { %v11568_v3 = vpop.permute.xlu1 %2771 }
 0x200   : > { %v11566_v19 = vpop.permute.xlu0 %2767  ;;  %16714 = vst [vmem:[#allocation44_spill] sm:$0xff] %v11568_v3 }
 0x201   : > { %16713 = vst [vmem:[#allocation43_spill] sm:$0xff] %v11566_v19 }
 0x203   : > { %v11572_v28 = vpop.permute.xlu1 %2761 }
 0x204   : > { %v11570_v47 = vpop.permute.xlu0 %2757  ;;  %16716 = vst [vmem:[#allocation46_spill] sm:$0xff] %v11572_v28 }
 0x205   : > { %16715 = vst [vmem:[#allocation45_spill] sm:$0xff] %v11570_v47  ;;  %v801_v47 = vld [vmem:[#allocation2 + $0x8] sm:$0x1] }
 0x207   : > { %v11576_v61 = vpop.permute.xlu1 %2769 }
 0x208   : > { %v11574_v30 = vpop.permute.xlu0 %2765  ;;  %16718 = vst [vmem:[#allocation48_spill] sm:$0xff] %v11576_v61 }
 0x209   : > { %16717 = vst [vmem:[#allocation47_spill] sm:$0xff] %v11574_v30 }
 0x20b   : > { %v11580_v59 = vpop.permute.xlu1 %2445 }
 0x20c   : > { %v11578_v39 = vpop.permute.xlu0 %2441  ;;  %16720 = vst [vmem:[#allocation50_spill] sm:$0xff] %v11580_v59  ;;  %v808_v59 = vld [vmem:[#allocation2 + $0x14] sm:$0x1] }
 0x20d   : > { %16719 = vst [vmem:[#allocation49_spill] sm:$0xff] %v11578_v39  ;;  %v794_v39 = vld [vmem:[#allocation2] sm:$0xf] }
 0x20f   : > { %v11584_v34 = vpop.permute.xlu1 %2453 }
 0x210   : > { %v11582_v20 = vpop.permute.xlu0 %2449  ;;  %16722 = vst [vmem:[#allocation52_spill] sm:$0xff] %v11584_v34 }
 0x211   : > { %16721 = vst [vmem:[#allocation51_spill] sm:$0xff] %v11582_v20 }
 0x213   : > { %v11588_v19 = vpop.permute.xlu1 %2443 }
 0x214   : > { %v11586_v18 = vpop.permute.xlu0 %2439  ;;  %16724 = vst [vmem:[#allocation54_spill] sm:$0xff] %v11588_v19 }
 0x215   : > { %16723 = vst [vmem:[#allocation53_spill] sm:$0xff] %v11586_v18 }
 0x217   : > { %v11592_v28 = vpop.permute.xlu1 %2451 }
 0x218   : > { %v11590_v3 = vpop.permute.xlu0 %2447  ;;  %16726 = vst [vmem:[#allocation56_spill] sm:$0xff] %v11592_v28 }
 0x219   : > { %16725 = vst [vmem:[#allocation55_spill] sm:$0xff] %v11590_v3  ;;  %v804_v3 = vld [vmem:[#allocation2 + $0xc] sm:$0xf] }
 0x241   : > { %v760_v30 = vpop.permute.xlu0 %759 }
 0x242   : > { %v802_v61 = vsel %vm11219_vm11, %v760_v30, %v801_v47  ;;  %v815_v30 = vld [vmem:[#allocation2 + $0x20] sm:$0x1] }
 0x243   : > { %803 = vst [vmem:[#allocation2 + $0x8] sm:$0x1] %v802_v61 }
 0x245   : > { %v756_v32 = vpop.permute.xlu0 %755  ;;  %v766_v20 = vpop.permute.xlu1 %765 }
 0x246   : > { %v795_v34 = vsel %vm11194_vm9, %v756_v32, %v794_v39  ;;  %v809_v18 = vsel %vm11219_vm11, %v766_v20, %v808_v59  ;;  %v811_v39 = vld [vmem:[#allocation2 + $0x18] sm:$0xf] }
 0x247   : > { %796 = vst [vmem:[#allocation2] sm:$0xf] %v795_v34  ;;  %810 = vst [vmem:[#allocation2 + $0x14] sm:$0x1] %v809_v18 }
 0x249   : > { %v758_v19 = vpop.permute.xlu0 %757  ;;  %v762_v28 = vpop.permute.xlu1 %761 }
 0x24a   : > { %798 = vst.msk [vmem:[#allocation2 + $0x4] sm:$0xf] %vm791_vm8, %v758_v19  ;;  %v805_v61 = vsel %vm11194_vm9, %v762_v28, %v804_v3  ;;  %v11001_v19 = vmov 1983009808   ;;  %v1010_v28 = vlaneseq  ;;  %v11002_v3 = vmov 1934713408  }
 0x24b   : > { %806 = vst [vmem:[#allocation2 + $0xc] sm:$0xf] %v805_v61  ;;  %v1008_v45 = vunpack.c.l.s4 %v11001_v19  ;;  %v1025_v61 = vunpack.c.l.s4 %v11002_v3 }
 0x24c   : > { %v1011_v2 = vshrl.u32 %v1010_v28, 7 }
 0x24d   : > { %v764_v47 = vpop.permute.xlu1 %763  ;;  %v772_v1 = vpop.permute.xlu0 %771  ;;  %v1026_v12 = vunpack.c.0.s8 %v1025_v61 }
 0x24e   : > { %807 = vst.msk [vmem:[#allocation2 + $0x10] sm:$0xf] %vm791_vm8, %v764_v47  ;;  %v816_v32 = vsel %vm11219_vm11, %v772_v1, %v815_v30  ;;  %v11606_v59 = vld [vmem:[#allocation2] sm:$0xf]  ;;  %v1934_v1 = vld [vmem:[#allocation2 + $0x8] sm:$0x1] }
 0x24f   : > { %817 = vst [vmem:[#allocation2 + $0x20] sm:$0x1] %v816_v32  ;;  %v1946_v30 = vshrl.u32 %v11606_v59, 16  ;;  %v1949_v32 = vshll.u32 %v11606_v59, 16  ;;  %v3059_v58 = vld [vmem:[#allocation2] sm:$0xe] }
 0x250   : > { %v1965_v57 = vshll.u32 %v1934_v1, 16  ;;  %v1935_v61 = vld [vmem:[#allocation2 + $0x14] sm:$0x1]  ;;  %v10400_v51 = vrot.slane %v3059_v58, 9  ;;  %v3091_v25 = vrot.slane %v1934_v1, 5 }
 0x251   : > { %v770_v20 = vpop.permute.xlu1 %769  ;;  %v768_v34 = vpop.permute.xlu0 %767  ;;  %v11608_v18 = vld [vmem:[#allocation2 + $0x4] sm:$0xf]  ;;  %v1948_v23 = vrot.slane %v1946_v30, 4  ;;  %v1951_v50 = vrot.slane %v1949_v32, 5  ;;  %v11635_v32 = vsub.s32 %v1026_v12, %v1011_v2  ;;  %v3098_v58 = vrot.slane %v1935_v61, 5 }
 0x252   : > { %814 = vst.msk [vmem:[#allocation2 + $0x1c] sm:$0xf] %vm791_vm8, %v770_v20  ;;  %v812_v47 = vsel %vm11194_vm9, %v768_v34, %v811_v39  ;;  %1300 = vrot.lane.b32.xlu0 %v11608_v18, %s10999_s28  ;;  %v3088_v19 = vrot.slane %v11608_v18, 5  ;;  %v1955_v3 = vshll.u32 %v11608_v18, 16  ;;  %v1959_v20 = vshrl.u32 %v11608_v18, 16 }
 0x253   : > { %813 = vst [vmem:[#allocation2 + $0x18] sm:$0xf] %v812_v47  ;;  %v1009_v34 = vunpack.c.0.s8 %v1008_v45  ;;  %v3060_v24 = vld [vmem:[#allocation2 + $0xc] sm:$0xe]  ;;  %16728 = vst [vmem:[#allocation58_spill] sm:$0xff] %v11635_v32 }
 0x254   : > { %v3090_v45 = vrot.slane %v3088_v19, 4  ;;  %v992_v38 = vld [vmem:[#allocation2 + $0xc] sm:$0xf] }
 0x255   : > { %v778_v53 = vpop.permute.xlu1 %777  ;;  %v774_v26 = vpop.permute.xlu0 %773  ;;  %v11620_v39 = vld [vmem:[#allocation2 + $0x10] sm:$0xf]  ;;  %v1970_v5 = vshrl.u32 %v992_v38, 16 }
 0x256   : > { %v823_v47 = vsel %vm11219_vm11, %v778_v53, %v822_v43  ;;  %v819_v29 = vsel %vm11194_vm9, %v774_v26, %v818_v48  ;;  %1304 = vrot.lane.b32.xlu1 %v11620_v39, %s10999_s28  ;;  %1298 = vrot.lane.b32.xlu0 %v11606_v59, %s10999_s28  ;;  %v3095_v28 = vrot.slane %v11620_v39, 5  ;;  %v1957_v43 = vrot.slane %v1955_v3, 5 }
 0x257   : > { %824 = vst [vmem:[#allocation2 + $0x2c] sm:$0x1] %v823_v47  ;;  %820 = vst [vmem:[#allocation2 + $0x24] sm:$0xf] %v819_v29  ;;  %v1961_v53 = vrot.slane %v1959_v20, 4  ;;  %v1979_v48 = vshll.u32 %v11620_v39, 16  ;;  %v11632_v26 = vsub.s32 %v1009_v34, %v1011_v2  ;;  %v3089_v29 = vsel %vm11266_vm14, %v10400_v51, %v3088_v19 }
 0x258   : > { %v1983_v30 = vshrl.u32 %v11620_v39, 16  ;;  %v1967_v3 = vrot.slane %v1965_v57, 5  ;;  %v1952_v20 = vor.u32 %v1951_v50, %v1948_v23  ;;  %v11645_v1 = vsel %vm11266_vm14, %v3090_v45, %v3091_v25 }
 0x259   : > { %16727 = vst [vmem:[#allocation57_spill] sm:$0xff] %v11632_v26  ;;  %v776_v4 = vpop.permute.xlu1 %775  ;;  %v10401_v34 = vrot.slane %v3060_v24, 9  ;;  %v3097_v2 = vrot.slane %v3095_v28, 4  ;;  %v11647_v12 = vrot.slane %v1979_v48, 5  ;;  %v11651_v47 = vld [vmem:[#allocation2 + $0x1c] sm:$0xf]  ;;  %v1962_v8 = vor.u32 %v1961_v53, %v1957_v43 }
 0x25a   : > { %821 = vst.msk [vmem:[#allocation2 + $0x28] sm:$0xf] %vm791_vm8, %v776_v4  ;;  %1302 = vrot.lane.b32.xlu1 %v992_v38, %s10999_s28  ;;  %1618 = vrot.lane.b32.xlu0 %v11608_v18, %s11000_s29  ;;  %v1006_v4 = vcombine.low %v11606_v59, %v11231_v33  ;;  %v1985_v6 = vrot.slane %v1983_v30, 4  ;;  %v3061_v51 = vld [vmem:[#allocation2 + $0x18] sm:$0xe]  ;;  %v1040_v57 = vcombine.low %v992_v38, %v11243_v40  ;;  %v1989_v23 = vshll.u32 %v1935_v61, 16 }
 0x25b   : > { %v3158_v50 = vcombine.low %v3089_v29, %v11276_v49  ;;  %v1973_v25 = vshll.u32 %v992_v38, 16  ;;  %v3226_v24 = vcombine.low %v11645_v1, %v11335_v15  ;;  %v11663_v33 = vsel %vm11266_vm14, %v10401_v34, %v3095_v28  ;;  %v11676_v28 = vld [vmem:[#allocation2 + $0x18] sm:$0xf] }
 0x25c   : > { %v1953_v19 = vrot.slane %v1952_v20, 4  ;;  %v1972_v45 = vrot.slane %v1970_v5, 4  ;;  %v1986_v40 = vor.u32 %v1985_v6, %v11647_v12  ;;  %v10402_v61 = vrot.slane %v3061_v51, 9  ;;  %v1936_v51 = vld [vmem:[#allocation2 + $0x20] sm:$0x1] }
 0x25d   : > { %v1975_v49 = vrot.slane %v1973_v25, 5  ;;  %v3102_v53 = vrot.slane %v11651_v47, 5  ;;  %v11674_v15 = vsel %vm11266_vm14, %v3097_v2, %v3098_v58  ;;  %v1963_v30 = vrot.slane %v1962_v8, 4 }
 0x25e   : > { %1622 = vrot.lane.b32.xlu1 %v11620_v39, %s11000_s29  ;;  %1616 = vrot.lane.b32.xlu0 %v11606_v59, %s11000_s29  ;;  %v11670_v59 = vrot.slane %v1006_v4, %v11632_v26  ;;  %v11681_v6 = vrot.slane %v1040_v57, %v11632_v26  ;;  %v11684_v20 = vrot.slane %v3158_v50, %v11632_v26  ;;  %v11695_v2 = vld [vmem:[#allocation2 + $0x24] sm:$0xf]  ;;  %v1991_v50 = vrot.slane %v1989_v23, 5  ;;  %v11716_v10 = vld [vmem:[#allocation2 + $0x2c] sm:$0x1] }
 0x25f   : > { %v1976_v4 = vor.u32 %v1975_v49, %v1972_v45  ;;  %v11691_v58 = vrot.slane %v3226_v24, %v11632_v26  ;;  %v3192_v8 = vcombine.low %v11663_v33, %v11290_v56  ;;  %v11699_v57 = vsel %vm11369_vm1, %v1953_v19, %v1957_v43  ;;  %v3062_v25 = vld [vmem:[#allocation2 + $0x24] sm:$0xe] }
 0x260   : > { %v3260_v45 = vcombine.low %v11674_v15, %v11312_v0  ;;  %v1987_v49 = vrot.slane %v1986_v40, 4  ;;  %v11707_v24 = vsel %vm11266_vm14, %v10402_v61, %v3102_v53  ;;  %v11711_v56 = vsel %vm11369_vm1, %v1963_v30, %v1967_v3 }
 0x261   : > { %v11686_v34 = vld [vmem:[#allocation2 + $0x28] sm:$0xf]  ;;  %v3104_v5 = vrot.slane %v3102_v53, 4  ;;  %v3105_v43 = vrot.slane %v1936_v51, 5  ;;  %v1048_v19 = vcombine.low %v11695_v2, %v11251_v42  ;;  %v1977_v0 = vrot.slane %v1976_v4, 4 }
 0x262   : > { %1620 = vrot.lane.b32.xlu1 %v992_v38, %s11000_s29  ;;  %3428 = vrot.lane.b32.xlu0 %v3089_v29, %s10999_s28  ;;  %v1014_v38 = vcombine.low %v11676_v28, %v11245_v41  ;;  %v3109_v23 = vrot.slane %v11686_v34, 5  ;;  %v10403_v48 = vrot.slane %v3062_v25, 9  ;;  %v2003_v41 = vshll.u32 %v11651_v47, 16 }
 0x263   : > { %v11723_v3 = vrot.slane %v3192_v8, %v11632_v26  ;;  %v1082_v40 = vcombine.low %v11651_v47, %v11223_v27  ;;  %v3166_v42 = vcombine.low %v11707_v24, %v11286_v55  ;;  %v2007_v61 = vshrl.u32 %v11651_v47, 16 }
 0x264   : > { %v11731_v53 = vrot.slane %v1014_v38, %v11632_v26  ;;  %v2221_v30 = vcombine.low %v11711_v56, %v11380_v13  ;;  %v11739_v4 = vsel %vm11369_vm1, %v1987_v49, %v1991_v50  ;;  %v11743_v27 = vsel %vm11266_vm14, %v3104_v5, %v3105_v43 }
 0x265   : > { %v3111_v55 = vrot.slane %v3109_v23, 4  ;;  %v3112_v8 = vrot.slane %v11716_v10, 5  ;;  %v11746_v25 = vrot.slane %v2003_v41, 5  ;;  %v11749_v38 = vrot.slane %v3260_v45, %v11632_v26 }
 0x266   : > { %3748 = vrot.lane.b32.xlu1 %v11645_v1, %s11000_s29  ;;  %3746 = vrot.lane.b32.xlu0 %v3089_v29, %s11000_s29  ;;  %v2153_v29 = vcombine.low %v11699_v57, %v11403_v35  ;;  %v11752_v13 = vrot.slane %v1048_v19, %v11632_v26  ;;  %v11757_v35 = vsel %vm11369_vm1, %v1977_v0, %v11647_v12  ;;  %v2009_v49 = vrot.slane %v2007_v61, 4 }
 0x267   : > { %v11761_v5 = vsel %vm11266_vm14, %v10403_v48, %v3109_v23  ;;  %v2255_v50 = vcombine.low %v11739_v4, %v11390_v22  ;;  %v11770_v45 = vrot.slane %v3166_v42, %v11632_v26  ;;  %v2013_v43 = vshll.u32 %v1936_v51, 16 }
 0x268   : > { %v11775_v48 = vrot.slane %v2221_v30, %v11632_v26  ;;  %v11778_v23 = vrot.slane %v2153_v29, %v11632_v26  ;;  %v2187_v22 = vcombine.low %v11757_v35, %v11416_v44  ;;  %v3200_v19 = vcombine.low %v11761_v5, %v11301_v60 }
 0x269   : > { %v11788_v51 = vsel %vm11266_vm14, %v3111_v55, %v3112_v8  ;;  %v2010_v0 = vor.u32 %v2009_v49, %v11746_v25  ;;  %v1116_v41 = vcombine.low %v11686_v34, %v11233_v36  ;;  %v2015_v42 = vrot.slane %v2013_v43, 5 }
 0x26a   : > { %3432 = vrot.lane.b32.xlu1 %v11663_v33, %s10999_s28  ;;  %3430 = vrot.lane.b32.xlu0 %v11645_v1, %s10999_s28  ;;  %v3234_v1 = vcombine.low %v11743_v27, %v11365_v54  ;;  %v2027_v61 = vshll.u32 %v11686_v34, 16  ;;  %v2031_v54 = vshrl.u32 %v11686_v34, 16  ;;  %v1056_v60 = vcombine.low %v11681_v6, %v11752_v13 }
 0x26b   : > { %v11802_v44 = vrot.slane %v2255_v50, %v11632_v26  ;;  %v3174_v36 = vcombine.low %v11684_v20, %v11770_v45  ;;  %v2011_v30 = vrot.slane %v2010_v0, 4  ;;  %v3268_v55 = vcombine.low %v11788_v51, %v11322_v7 }
 0x26c   : > { %v3241_v29 = vrot.slane %v3234_v1, %v11632_v26  ;;  %v11809_v8 = vrot.slane %v2027_v61, 5  ;;  %v2033_v49 = vrot.slane %v2031_v54, 4  ;;  %v3175_v43 = vcombine.high %v11684_v20, %v11770_v45 }
 0x26d   : > { %v3207_v50 = vrot.slane %v3200_v19, %v11632_v26  ;;  %v1994_v12 = vshrl.u32 %v11676_v28, 16  ;;  %v11820_v0 = vsel %vm11369_vm1, %v2011_v30, %v2015_v42  ;;  %v1997_v1 = vshll.u32 %v11676_v28, 16 }
 0x26e   : > { %3434 = vrot.lane.b32.xlu1 %v11674_v15, %s10999_s28  ;;  %3750 = vrot.lane.b32.xlu0 %v11663_v33, %s11000_s29  ;;  %v11812_v33 = vrot.slane %v2187_v22, %v11632_v26  ;;  %v2034_v7 = vor.u32 %v2033_v49, %v11809_v8  ;;  %v16729_v22 = vcombine.low %v11608_v18, %v11204_v16  ;;  %v2037_v20 = vshll.u32 %v11716_v10, 16 }
 0x26f   : > { %v11836_v45 = vrot.slane %v1082_v40, %v11632_v26  ;;  %v16730_v19 = vcombine.low %v11620_v39, %v11211_v21  ;;  %v1123_v16 = vrot.slane %v1116_v41, %v11632_v26  ;;  %v11846_v18 = vrot.slane %v3174_v36, %v11635_v32 }
 0x270   : > { %v11828_v61 = vrot.slane %v16729_v22, %v11632_v26  ;;  %v3275_v54 = vrot.slane %v3268_v55, %v11632_v26  ;;  %v2018_v10 = vshrl.u32 %v11695_v2, 16  ;;  %v2021_v40 = vshll.u32 %v11695_v2, 16 }
 0x271   : > { %v11842_v42 = vrot.slane %v16730_v19, %v11632_v26  ;;  %16731 = vst [vmem:[#allocation59_spill] sm:$0xff] %v11846_v18  ;;  %v1057_v39 = vcombine.high %v11681_v6, %v11752_v13  ;;  %v2229_v41 = vcombine.low %v11820_v0, %v11394_v31  ;;  %v1996_v36 = vrot.slane %v1994_v12, 4 }
 0x272   : > { %3752 = vrot.lane.b32.xlu1 %v11674_v15, %s11000_s29  ;;  %1308 = vrot.lane.b32.xlu0 %v11651_v47, %s10999_s28  ;;  %v3242_v15 = vcombine.low %v11691_v58, %v3241_v29  ;;  %v1091_v30 = vcombine.high %v11828_v61, %v11836_v45  ;;  %v1999_v49 = vrot.slane %v1997_v1, 5  ;;  %v1023_v55 = vcombine.high %v11670_v59, %v11731_v53 }
 0x273   : > { %v1125_v21 = vcombine.high %v11842_v42, %v1123_v16  ;;  %v3243_v22 = vcombine.high %v11691_v58, %v3241_v29  ;;  %v3208_v19 = vcombine.low %v11723_v3, %v3207_v50  ;;  %v2035_v46 = vrot.slane %v2034_v7, 4 }
 0x274   : > { %v2039_v6 = vrot.slane %v2037_v20, 5  ;;  %v3209_v13 = vcombine.high %v11723_v3, %v3207_v50  ;;  %v3276_v31 = vcombine.low %v11749_v38, %v3275_v54  ;;  %v1105_v12 = vrot.slane %v1091_v30, %v11635_v32 }
 0x275   : > { %v1139_v1 = vrot.slane %v1125_v21, %v11635_v32  ;;  %v3277_v9 = vcombine.high %v11749_v38, %v3275_v54  ;;  %v2020_v14 = vrot.slane %v2018_v10, 4  ;;  %v2023_v11 = vrot.slane %v2021_v40, 5 }
 0x276   : > { %1312 = vrot.lane.b32.xlu1 %v11686_v34, %s10999_s28  ;;  %1306 = vrot.lane.b32.xlu0 %v11676_v28, %s10999_s28  ;;  %v1071_v63 = vrot.slane %v1057_v39, %v11635_v32  ;;  %v11874_v58 = vrot.slane %v2229_v41, %v11632_v26  ;;  %v2000_v29 = vor.u32 %v1999_v49, %v1996_v36  ;;  %v16738_v36 = vmov 0  }
 0x277   : > { %v11876_v7 = vpack.i.b16 %v1139_v1, %v1105_v12  ;;  %v1037_v3 = vrot.slane %v1023_v55, %v11635_v32  ;;  %v11885_v38 = vsel %vm11369_vm1, %v2035_v46, %v2039_v6  ;;  %v16732_v50 = vcombine.low %v11670_v59, %v11731_v53 }
 0x278   : > { %v11894_v54 = vrot.slane %v1056_v60, %v11635_v32  ;;  %v11897_v10 = vrot.slane %v3175_v43, %v11635_v32  ;;  %v11903_v40 = vrot.slane %v3243_v22, %v11635_v32  ;;  %v11908_v30 = vrot.slane %v3208_v19, %v11635_v32 }
 0x279   : > { %v11891_v20 = vrot.slane %v16732_v50, %v11635_v32  ;;  %v11905_v46 = vpack.i.b16 %v1071_v63, %v1037_v3  ;;  %v11911_v59 = vrot.slane %v3209_v13, %v11635_v32  ;;  %v11914_v53 = vrot.slane %v3276_v31, %v11635_v32 }
 0x27a   : > { %1626 = vrot.lane.b32.xlu0 %v11651_v47, %s11000_s29  ;;  %1310 = vrot.lane.b32.xlu1 %v11695_v2, %s10999_s28  ;;  %16734 = vst [vmem:[#allocation61_spill] sm:$0xff] %v11894_v54  ;;  %v11900_v47 = vrot.slane %v3242_v15, %v11635_v32  ;;  %16736 = vst [vmem:[#allocation63_spill] sm:$0xff] %v11908_v30  ;;  %v2024_v60 = vor.u32 %v2023_v11, %v2020_v14  ;;  %v2001_v21 = vrot.slane %v2000_v29, 4 }
 0x27b   : > { %16733 = vst [vmem:[#allocation60_spill] sm:$0xff] %v11891_v20  ;;  %16737 = vst [vmem:[#allocation64_spill] sm:$0xff] %v11914_v53  ;;  %v11917_v43 = vrot.slane %v3277_v9, %v11635_v32  ;;  %v2237_v15 = vcombine.low %v11775_v48, %v11874_v58  ;;  %v2263_v39 = vcombine.low %v11885_v38, %v11407_v37  ;;  %v1145_v41 = vshrl.u32 %v11891_v20, 16 }
 0x27c   : > { %16735 = vst [vmem:[#allocation62_spill] sm:$0xff] %v11900_v47  ;;  %v1146_v11 = vshrl.u32 %v11894_v54, 16  ;;  %v1090_v9 = vcombine.low %v11828_v61, %v11836_v45  ;;  %v1124_v14 = vcombine.low %v11842_v42, %v1123_v16  ;;  %v1038_v49 = vcombine.high %v11891_v20, %v16738_v36 }
 0x27d   : > { %v1072_v37 = vcombine.high %v11894_v54, %v16738_v36  ;;  %v1181_v55 = vshrl.u32 %v1105_v12, 16  ;;  %v2025_v22 = vrot.slane %v2024_v60, 4  ;;  %v1107_v42 = vcombine.high %v1105_v12, %v16738_v36 }
 0x27e   : > { %1624 = vrot.lane.b32.xlu0 %v11676_v28, %s11000_s29  ;;  %1630 = vrot.lane.b32.xlu1 %v11686_v34, %s11000_s29  ;;  %v1182_v28 = vshrl.u32 %v1139_v1, 16  ;;  %v11936_v19 = vpack.i.b16 %v1146_v11, %v1145_v41  ;;  %v11939_v34 = vrot.slane %v1090_v9, %v11635_v32  ;;  %v11942_v6 = vrot.slane %v1124_v14, %v11635_v32 }
 0x27f   : > { %v11944_v61 = vpack.i.b16 %v1072_v37, %v1038_v49  ;;  %v1141_v16 = vcombine.high %v1139_v1, %v16738_v36  ;;  %v11957_v13 = vsel %vm11369_vm1, %v2001_v21, %v11746_v25  ;;  %v2270_v1 = vrot.slane %v2263_v39, %v11632_v26 }
 0x280   : > { %16739 = vst [vmem:[#allocation65_spill] sm:$0xff] %v11939_v34  ;;  %16740 = vst [vmem:[#allocation66_spill] sm:$0xff] %v11942_v6  ;;  %v11946_v45 = vpack.i.b16 %v1182_v28, %v1181_v55  ;;  %v1169_v31 = vshrl.u32 %v11939_v34, 16  ;;  %v1170_v29 = vshrl.u32 %v11942_v6, 16  ;;  %v1106_v12 = vcombine.high %v11939_v34, %v16738_v36 }
 0x281   : > { %v1140_v50 = vcombine.high %v11942_v6, %v16738_v36  ;;  %v11966_v60 = vpack.i.b16 %v1141_v16, %v1107_v42  ;;  %v1158_v11 = vshrl.u32 %v1071_v63, 16  ;;  %v1039_v25 = vcombine.high %v1037_v3, %v16738_v36 }
 0x282   : > { %2743 = vrot.lane.b32.xlu0 %v11711_v56, %s11000_s29  ;;  %1628 = vrot.lane.b32.xlu1 %v11695_v2, %s11000_s29  ;;  %v1157_v2 = vshrl.u32 %v1037_v3, 16  ;;  %v11968_v41 = vpack.i.b16 %v1170_v29, %v1169_v31  ;;  %v1073_v21 = vcombine.high %v1071_v63, %v16738_v36  ;;  %v2161_v9 = vcombine.low %v11957_v13, %v11421_v17 }
 0x283   : > { %16741 = vst [vmem:[#allocation67_spill] sm:$0xff] %v11966_v60  ;;  %v11977_v39 = vsel %vm11369_vm1, %v2025_v22, %v11809_v8  ;;  %v11979_v14 = vpack.i.b16 %v1140_v50, %v1106_v12  ;;  %v11983_v55 = vpack.i.b16 %v11911_v59, %v11897_v10  ;;  %v1175_v3 = vshrl.u32 %v1106_v12, 16 }
 0x284   : > { %v11989_v63 = vpack.i.b16 %v1158_v11, %v1157_v2  ;;  %v11991_v17 = vpack.i.b16 %v1073_v21, %v1039_v25  ;;  %v1176_v28 = vshrl.u32 %v1140_v50, 16  ;;  %v2238_v8 = vcombine.high %v11775_v48, %v11874_v58 }
 0x285   : > { %16742 = vst [vmem:[#allocation68_spill] sm:$0xff] %v11983_v55  ;;  %v11996_v22 = vrot.slane %v2237_v15, %v11635_v32  ;;  %v1187_v31 = vshrl.u32 %v1107_v42, 16  ;;  %v1188_v29 = vshrl.u32 %v1141_v16, 16  ;;  %v2272_v62 = vcombine.high %v11802_v44, %v2270_v1 }
 0x286   : > { %2741 = vrot.lane.b32.xlu0 %v11699_v57, %s11000_s29  ;;  %2747 = vrot.lane.b32.xlu1 %v11739_v4, %s11000_s29  ;;  %16743 = vst [vmem:[#allocation69_spill] sm:$0xff] %v11991_v17  ;;  %v2195_v55 = vcombine.low %v11977_v39, %v11429_v52  ;;  %v12001_v60 = vpack.i.b16 %v1176_v28, %v1175_v3  ;;  %v1151_v2 = vshrl.u32 %v1038_v49, 16  ;;  %v1152_v12 = vshrl.u32 %v1072_v37, 16 }
 0x287   : > { %16744 = vst [vmem:[#allocation70_spill] sm:$0xff] %v11996_v22  ;;  %v12003_v11 = vpack.i.b16 %v1188_v29, %v1187_v31  ;;  %v1163_v50 = vshrl.u32 %v1039_v25, 16  ;;  %v1164_v17 = vshrl.u32 %v1073_v21, 16  ;;  %v2168_v48 = vrot.slane %v2161_v9, %v11632_v26 }
 0x288   : > { %v2271_v58 = vcombine.low %v11802_v44, %v2270_v1  ;;  %v3297_v52 = vshrl.u32 %v11846_v18, 16  ;;  %v3298_v15 = vshrl.u32 %v11908_v30, 16  ;;  %v12013_v49 = vpack.i.b16 %v1152_v12, %v1151_v2 }
 0x289   : > { %v12015_v42 = vpack.i.b16 %v1164_v17, %v1163_v50  ;;  %v3309_v37 = vshrl.u32 %v11897_v10, 16  ;;  %v3310_v16 = vshrl.u32 %v11911_v59, 16  ;;  %v3190_v44 = vcombine.high %v11846_v18, %v16738_v36 }
 0x28a   : > { %2425 = vrot.lane.b32.xlu0 %v11711_v56, %s10999_s28  ;;  %2745 = vrot.lane.b32.xlu1 %v11757_v35, %s11000_s29  ;;  %v12020_v56 = vrot.slane %v2272_v62, %v11635_v32  ;;  %v12022_v25 = vpack.i.b16 %v3298_v15, %v3297_v52  ;;  %v3224_v1 = vcombine.high %v11908_v30, %v16738_v36 }
 0x28b   : > { %v2202_v21 = vrot.slane %v2195_v55, %v11632_v26  ;;  %v12029_v9 = vpack.i.b16 %v3310_v16, %v3309_v37  ;;  %v3258_v17 = vcombine.high %v11900_v47, %v16738_v36  ;;  %v3292_v3 = vcombine.high %v11914_v53, %v16738_v36 }
 0x28c   : > { %v12040_v62 = vrot.slane %v2238_v8, %v11635_v32  ;;  %v12042_v28 = vpack.i.b16 %v3224_v1, %v3190_v44  ;;  %v12046_v55 = vpack.i.b16 %v11917_v43, %v11903_v40  ;;  %v2169_v31 = vcombine.low %v11778_v23, %v2168_v48 }
 0x28d   : > { %v12049_v29 = vpack.i.b16 %v3292_v3, %v3258_v17  ;;  %v3303_v2 = vshrl.u32 %v3190_v44, 16  ;;  %v3304_v12 = vshrl.u32 %v3224_v1, 16  ;;  %v3225_v8 = vcombine.high %v11911_v59, %v16738_v36 }
 0x28e   : > { %2423 = vrot.lane.b32.xlu0 %v11699_v57, %s10999_s28  ;;  %2429 = vrot.lane.b32.xlu1 %v11739_v4, %s10999_s28  ;;  %v12052_v57 = vrot.slane %v2271_v58, %v11635_v32  ;;  %v3191_v4 = vcombine.high %v11897_v10, %v16738_v36  ;;  %v12060_v50 = vpack.i.b16 %v12020_v56, %v12040_v62  ;;  %v3321_v37 = vshrl.u32 %v11900_v47, 16 }
 0x28f   : > { %v2204_v52 = vcombine.high %v11812_v33, %v2202_v21  ;;  %v12063_v15 = vpack.i.b16 %v3304_v12, %v3303_v2  ;;  %v3322_v16 = vshrl.u32 %v11914_v53, 16  ;;  %v2203_v10 = vcombine.low %v11812_v33, %v2202_v21 }
 0x290   : > { %16745 = vst [vmem:[#allocation71_spill] sm:$0xff] %v12052_v57  ;;  %16746 = vst [vmem:[#allocation72_spill] sm:$0xff] %v12060_v50  ;;  %v12072_v59 = vpack.i.b16 %v3225_v8, %v3191_v4  ;;  %v3327_v58 = vshrl.u32 %v3258_v17, 16  ;;  %v3328_v44 = vshrl.u32 %v3292_v3, 16  ;;  %v2170_v1 = vcombine.high %v11778_v23, %v2168_v48 }
 0x291   : > { %16747 = vst [vmem:[#allocation73_spill] sm:$0xff] %v12063_v15  ;;  %v12075_v2 = vpack.i.b16 %v3322_v16, %v3321_v37  ;;  %v3333_v12 = vshrl.u32 %v11903_v40, 16  ;;  %v3334_v26 = vshrl.u32 %v11917_v43, 16  ;;  %v12080_v50 = vrot.slane %v2169_v31, %v11635_v32 }
 0x292   : > { %3436 = vrot.lane.b32.xlu0 %v11707_v24, %s10999_s28  ;;  %2427 = vrot.lane.b32.xlu1 %v11757_v35, %s10999_s28  ;;  %v12082_v15 = vpack.i.b16 %v3328_v44, %v3327_v58  ;;  %v3259_v35 = vcombine.high %v11903_v40, %v16738_v36  ;;  %v3293_v33 = vcombine.high %v11917_v43, %v16738_v36  ;;  %v2316_v48 = vshrl.u32 %v11996_v22, 16 }
 0x293   : > { %16748 = vst [vmem:[#allocation74_spill] sm:$0xff] %v12080_v50  ;;  %v2218_v21 = vrot.slane %v2204_v52, %v11635_v32  ;;  %v12089_v23 = vpack.i.b16 %v3334_v26, %v3333_v12  ;;  %v2317_v17 = vshrl.u32 %v12052_v57, 16  ;;  %v12098_v3 = vrot.slane %v2203_v10, %v11635_v32 }
 0x294   : > { %v3339_v40 = vshrl.u32 %v3259_v35, 16  ;;  %v3340_v31 = vshrl.u32 %v3293_v33, 16  ;;  %v12100_v43 = vpack.i.b16 %v3293_v33, %v3259_v35  ;;  %v2184_v26 = vrot.slane %v2170_v1, %v11635_v32 }
 0x295   : > { %16749 = vst [vmem:[#allocation75_spill] sm:$0xff] %v12098_v3  ;;  %v12103_v52 = vpack.i.b16 %v2317_v17, %v2316_v48  ;;  %v3315_v37 = vshrl.u32 %v3191_v4, 16  ;;  %v3316_v16 = vshrl.u32 %v3225_v8, 16  ;;  %v2287_v44 = vcombine.high %v12052_v57, %v16738_v36 }
 0x296   : > { %3754 = vrot.lane.b32.xlu0 %v11707_v24, %s11000_s29  ;;  %3756 = vrot.lane.b32.xlu1 %v11743_v27, %s11000_s29  ;;  %v12105_v58 = vpack.i.b16 %v3340_v31, %v3339_v40  ;;  %v2253_v24 = vcombine.high %v11996_v22, %v16738_v36  ;;  %v12113_v12 = vpack.i.b16 %v2218_v21, %v2184_v26  ;;  %v2292_v35 = vshrl.u32 %v12080_v50, 16 }
 0x297   : > { %16750 = vst [vmem:[#allocation76_spill] sm:$0xff] %v12103_v52  ;;  %v12111_v10 = vpack.i.b16 %v3316_v16, %v3315_v37  ;;  %v2185_v8 = vcombine.high %v12080_v50, %v16738_v36  ;;  %v2219_v1 = vcombine.high %v12098_v3, %v16738_v36  ;;  %v2293_v33 = vshrl.u32 %v12098_v3, 16 }
 0x298   : > { %16752 = vst [vmem:[#allocation78_spill] sm:$0xff] %v12113_v12  ;;  %v12119_v4 = vpack.i.b16 %v2287_v44, %v2253_v24  ;;  %v2328_v17 = vshrl.u32 %v12040_v62, 16  ;;  %v2304_v40 = vshrl.u32 %v2184_v26, 16  ;;  %v2305_v37 = vshrl.u32 %v2218_v21, 16 }
 0x299   : > { %16751 = vst [vmem:[#allocation77_spill] sm:$0xff] %v12111_v10  ;;  %v12127_v48 = vpack.i.b16 %v2219_v1, %v2185_v8  ;;  %v12131_v31 = vpack.i.b16 %v2293_v33, %v2292_v35  ;;  %v2254_v16 = vcombine.high %v12040_v62, %v16738_v36  ;;  %v2288_v32 = vcombine.high %v12020_v56, %v16738_v36 }
 0x29a   : > { %3438 = vrot.lane.b32.xlu0 %v11743_v27, %s10999_s28  ;;  %3440 = vrot.lane.b32.xlu1 %v11761_v5, %s10999_s28  ;;  %16753 = vst [vmem:[#allocation79_spill] sm:$0xff] %v12119_v4  ;;  %v2329_v27 = vshrl.u32 %v12020_v56, 16  ;;  %v2186_v12 = vcombine.high %v2184_v26, %v16738_v36  ;;  %v12144_v4 = vpack.i.b16 %v2305_v37, %v2304_v40  ;;  %v2322_v10 = vshrl.u32 %v2253_v24, 16  ;;  %v16773_v37 = vld [vmem:[#allocation20_spill] sm:$0xff] }
 0x29b   : > { %16754 = vst [vmem:[#allocation80_spill] sm:$0xff] %v12127_v48  ;;  %16755 = vst [vmem:[#allocation81_spill] sm:$0xff] %v12131_v31  ;;  %v12146_v35 = vpack.i.b16 %v2288_v32, %v2254_v16  ;;  %v2220_v33 = vcombine.high %v2218_v21, %v16738_v36  ;;  %v2334_v62 = vshrl.u32 %v2254_v16, 16  ;;  %v2335_v31 = vshrl.u32 %v2288_v32, 16  ;;  %v16758_v16 = vld [vmem:[#allocation68_spill] sm:$0xff] }
 0x29c   : > { %v12141_v48 = vpack.i.b16 %v2329_v27, %v2328_v17  ;;  %v2323_v56 = vshrl.u32 %v2287_v44, 16  ;;  %v2310_v17 = vshrl.u32 %v2186_v12, 16  ;;  %v2298_v40 = vshrl.u32 %v2185_v8, 16 }
 0x29d   : > { %v12149_v52 = vpack.i.b16 %v2220_v33, %v2186_v12  ;;  %v2311_v27 = vshrl.u32 %v2220_v33, 16  ;;  %v2299_v21 = vshrl.u32 %v2219_v1, 16  ;;  %v10326_v1 = vcombine.low %v11876_v7, %v11876_v7 }
 0x29e   : > { %3758 = vrot.lane.b32.xlu0 %v11761_v5, %s11000_s29  ;;  %3442 = vrot.lane.b32.xlu1 %v11788_v51, %s10999_s28  ;;  %v12155_v5 = vpack.i.b16 %v2335_v31, %v2334_v62  ;;  %v12157_v26 = vpack.i.b16 %v2323_v56, %v2322_v10  ;;  %v10316_v31 = vcombine.low %v11936_v19, %v11936_v19  ;;  %v16772_v10 = vld [vmem:[#allocation57_spill] sm:$0xff] }
 0x29f   : > { %v12163_v44 = vpack.i.b16 %v2311_v27, %v2310_v17  ;;  %v10323_v7 = vcombine.low %v11968_v41, %v11968_v41  ;;  %v10327_v19 = vcombine.low %v11946_v45, %v11946_v45  ;;  %v10411_v33 = vcombine.low %v16758_v16, %v16758_v16 }
 0x2a0   : > { %v10325_v56 = vcombine.low %v12001_v60, %v12001_v60  ;;  %v10329_v17 = vcombine.low %v12003_v11, %v12003_v11  ;;  %v10415_v16 = vcombine.low %v12075_v2, %v12075_v2 }
 0x2a2   : > { %2751 = vrot.lane.b32.xlu0 %v11820_v0, %s11000_s29  ;;  %3760 = vrot.lane.b32.xlu1 %v11788_v51, %s11000_s29  ;;  %v12167_v51 = vpack.i.b16 %v2299_v21, %v2298_v40  ;;  %v10318_v21 = vcombine.low %v12013_v49, %v12013_v49 }
 0x2a6   : > { %2749 = vrot.lane.b32.xlu0 %v11957_v13, %s11000_s29  ;;  %2755 = vrot.lane.b32.xlu1 %v11885_v38, %s11000_s29 }
 0x2aa   : > { %2433 = vrot.lane.b32.xlu0 %v11820_v0, %s10999_s28  ;;  %2753 = vrot.lane.b32.xlu1 %v11977_v39, %s11000_s29  ;;  %v10319_v0 = vcombine.low %v11905_v46, %v11905_v46  ;;  %v10324_v46 = vcombine.low %v11979_v14, %v11979_v14  ;;  %v16757_v14 = vld [vmem:[#allocation69_spill] sm:$0xff] }
 0x2ab   : > { %v10321_v45 = vcombine.low %v16757_v14, %v16757_v14 }
 0x2ae   : > { %2431 = vrot.lane.b32.xlu0 %v11957_v13, %s10999_s28  ;;  %2437 = vrot.lane.b32.xlu1 %v11885_v38, %s10999_s28  ;;  %v10317_v38 = vcombine.low %v11944_v61, %v11944_v61  ;;  %v16756_v13 = vld [vmem:[#allocation67_spill] sm:$0xff]  ;;  %v10320_v61 = vcombine.low %v11989_v63, %v11989_v63 }
 0x2af   : > { %v10328_v41 = vcombine.low %v16756_v13, %v16756_v13 }
 0x2b2   : > { %1232 = vrot.lane.b32.xlu0 %v10326_v1, %s11003_s27  ;;  %2435 = vrot.lane.b32.xlu1 %v11977_v39, %s10999_s28  ;;  %v10322_v1 = vcombine.low %v12015_v42, %v12015_v42 }
 0x2b6   : > { %1204 = vrot.lane.b32.xlu1 %v10319_v0, %s11003_s27  ;;  %1192 = vrot.lane.b32.xlu0 %v10316_v31, %s11004_s30  ;;  %v10408_v0 = vcombine.low %v12022_v25, %v12022_v25  ;;  %v10412_v31 = vcombine.low %v12029_v9, %v12029_v9 }
 0x2ba   : > { %1220 = vrot.lane.b32.xlu1 %v10323_v7, %s11004_s30  ;;  %1196 = vrot.lane.b32.xlu0 %v10317_v38, %s11005_s11  ;;  %v10409_v7 = vcombine.low %v12042_v28, %v12042_v28  ;;  %v10416_v38 = vcombine.low %v12049_v29, %v12049_v29 }
 0x2be   : > { %1224 = vrot.lane.b32.xlu1 %v10324_v46, %s11005_s11  ;;  %1236 = vrot.lane.b32.xlu0 %v10327_v19, %s11006_s12  ;;  %v10418_v46 = vcombine.low %v12046_v55, %v12046_v55  ;;  %v16759_v19 = vld [vmem:[#allocation73_spill] sm:$0xff] }
 0x2bf   : > { %v10410_v13 = vcombine.low %v16759_v19, %v16759_v19 }
 0x2c2   : > { %1240 = vrot.lane.b32.xlu1 %v10328_v41, %s11007_s15  ;;  %1208 = vrot.lane.b32.xlu0 %v10320_v61, %s11006_s12  ;;  %v10413_v41 = vcombine.low %v12072_v59, %v12072_v59  ;;  %v16760_v61 = vld [vmem:[#allocation72_spill] sm:$0xff] }
 0x2c3   : > { %v10368_v14 = vcombine.low %v16760_v61, %v16760_v61 }
 0x2c4   : > { %v12216_v39 = vpop.permute.xlu0 %1300 }
 0x2c6   : > { %1212 = vrot.lane.b32.xlu1 %v10321_v45, %s11007_s15  ;;  %3356 = vrot.lane.b32.xlu0 %v10411_v33, %s11003_s27  ;;  %v10417_v33 = vcombine.low %v12082_v15, %v12082_v15  ;;  %v10420_v15 = vcombine.low %v12100_v43, %v12100_v43 }
 0x2c8   : > { %v12224_v62 = vpop.permute.xlu1 %1304  ;;  %v12226_v63 = vpop.permute.xlu0 %1298 }
 0x2ca   : > { %1228 = vrot.lane.b32.xlu1 %v10325_v56, %s11008_s16  ;;  %1244 = vrot.lane.b32.xlu0 %v10329_v17, %s11009_s17  ;;  %v10419_v17 = vcombine.low %v12089_v23, %v12089_v23 }
 0x2cc   : > { %v12234_v27 = vpop.permute.xlu1 %1302  ;;  %v12236_v40 = vpop.permute.xlu0 %1618 }
 0x2ce   : > { %1200 = vrot.lane.b32.xlu1 %v10318_v21, %s11008_s16  ;;  %1216 = vrot.lane.b32.xlu0 %v10322_v1, %s11009_s17  ;;  %v10421_v21 = vcombine.low %v12105_v58, %v12105_v58 }
 0x2d0   : > { %v12244_v60 = vpop.permute.xlu1 %1622  ;;  %v12246_v11 = vpop.permute.xlu0 %1616 }
 0x2d2   : > { %3344 = vrot.lane.b32.xlu1 %v10408_v0, %s11004_s30  ;;  %3360 = vrot.lane.b32.xlu0 %v10412_v31, %s11006_s12  ;;  %v16761_v0 = vld [vmem:[#allocation76_spill] sm:$0xff] }
 0x2d3   : > { %v10365_v31 = vcombine.low %v16761_v0, %v16761_v0  ;;  %v16768_v0 = vld [vmem:[#allocation15_spill] sm:$0xff] }
 0x2d4   : > { %v12254_v49 = vpop.permute.xlu1 %1620  ;;  %v12256_v42 = vpop.permute.xlu0 %3428 }
 0x2d6   : > { %3348 = vrot.lane.b32.xlu1 %v10409_v7, %s11005_s11  ;;  %3376 = vrot.lane.b32.xlu0 %v10416_v38, %s11005_s11  ;;  %v16762_v38 = vld [vmem:[#allocation77_spill] sm:$0xff] }
 0x2d7   : > { %v10414_v58 = vcombine.low %v16762_v38, %v16762_v38  ;;  %v16769_v38 = vld [vmem:[#allocation12_spill] sm:$0xff] }
 0x2d8   : > { %v12264_v25 = vpop.permute.xlu1 %3748  ;;  %v12266_v9 = vpop.permute.xlu0 %3746 }
 0x2da   : > { %3384 = vrot.lane.b32.xlu1 %v10418_v46, %s11003_s27  ;;  %3352 = vrot.lane.b32.xlu0 %v10410_v13, %s11008_s16  ;;  %v16763_v46 = vld [vmem:[#allocation79_spill] sm:$0xff] }
 0x2db   : > { %v10366_v19 = vcombine.low %v16763_v46, %v16763_v46 }
 0x2dc   : > { %v12274_v28 = vpop.permute.xlu1 %3432  ;;  %v12276_v29 = vpop.permute.xlu0 %3430 }
 0x2de   : > { %3364 = vrot.lane.b32.xlu1 %v10413_v41, %s11007_s15  ;;  %2379 = vrot.lane.b32.xlu0 %v10368_v14, %s11003_s27  ;;  %v16764_v41 = vld [vmem:[#allocation78_spill] sm:$0xff]  ;;  %v16765_v14 = vld [vmem:[#allocation16_spill] sm:$0xff] }
 0x2df   : > { %v10361_v61 = vcombine.low %v16764_v41, %v16764_v41  ;;  %v16770_v41 = vld [vmem:[#allocation81_spill] sm:$0xff] }
 0x2e0   : > { %v12284_v55 = vpop.permute.xlu1 %3434  ;;  %v12286_v45 = vpop.permute.xlu0 %3750 }
 0x2e2   : > { %3372 = vrot.lane.b32.xlu1 %v10415_v16, %s11004_s30  ;;  %3380 = vrot.lane.b32.xlu0 %v10417_v33, %s11008_s16  ;;  %v16766_v33 = vld [vmem:[#allocation80_spill] sm:$0xff] }
 0x2e4   : > { %v12294_v59 = vpop.permute.xlu1 %3752  ;;  %v1309_v56 = vpop.permute.xlu0 %1308 }
 0x2e6   : > { %3388 = vrot.lane.b32.xlu1 %v10419_v17, %s11006_s12  ;;  %3396 = vrot.lane.b32.xlu0 %v10421_v21, %s11009_s17  ;;  %v10359_v17 = vcombine.low %v16766_v33, %v16766_v33  ;;  %v16767_v21 = vld [vmem:[#allocation14_spill] sm:$0xff] }
 0x2e8   : > { %v1313_v2 = vpop.permute.xlu1 %1312  ;;  %v1307_v1 = vpop.permute.xlu0 %1306 }
 0x2ea   : > { %3392 = vrot.lane.b32.xlu1 %v10420_v15, %s11007_s15  ;;  %2367 = vrot.lane.b32.xlu0 %v10365_v31, %s11004_s30  ;;  %v1380_v15 = vcombine.low %v12234_v27, %v16767_v21  ;;  %v1354_v31 = vcombine.low %v1307_v1, %v16768_v0  ;;  %v10369_v1 = vcombine.low %v12141_v48, %v12141_v48  ;;  %v16775_v21 = vld [vmem:[#allocation11_spill] sm:$0xff] }
 0x2eb   : > { %v1422_v0 = vcombine.low %v1309_v56, %v16775_v21  ;;  %v16778_v56 = vld [vmem:[#allocation9_spill] sm:$0xff] }
 0x2ec   : > { %v1311_v23 = vpop.permute.xlu1 %1310  ;;  %v1627_v7 = vpop.permute.xlu0 %1626  ;;  %v12349_v48 = vrot.slane %v1354_v31, %v16772_v10  ;;  %v16780_v21 = vld [vmem:[#allocation17_spill] sm:$0xff] }
 0x2ed   : > { %v1388_v16 = vcombine.low %v1311_v23, %v16765_v14  ;;  %v10358_v23 = vcombine.low %v16770_v41, %v16770_v41  ;;  %v16771_v14 = vld [vmem:[#allocation13_spill] sm:$0xff]  ;;  %v16776_v41 = vld [vmem:[#allocation18_spill] sm:$0xff] }
 0x2ee   : > { %3368 = vrot.lane.b32.xlu1 %v10414_v58, %s11009_s17  ;;  %2371 = vrot.lane.b32.xlu0 %v10366_v19, %s11005_s11  ;;  %v1456_v58 = vcombine.low %v1313_v2, %v16769_v38  ;;  %v1346_v33 = vcombine.low %v12226_v63, %v16771_v14  ;;  %v10362_v38 = vcombine.low %v12144_v4, %v12144_v4  ;;  %v16779_v14 = vld [vmem:[#allocation24_spill] sm:$0xff] }
 0x2ef   : > { %v10370_v63 = vcombine.low %v12146_v35, %v12146_v35 }
 0x2f0   : > { %v1631_v43 = vpop.permute.xlu1 %1630  ;;  %v1625_v13 = vpop.permute.xlu0 %1624  ;;  %v1463_v4 = vrot.slane %v1456_v58, %v16772_v10  ;;  %v1353_v31 = vrot.slane %v1346_v33, %v16772_v10 }
 0x2f1   : > { %v1774_v27 = vcombine.low %v1631_v43, %v16773_v37  ;;  %v1766_v37 = vcombine.low %v12244_v60, %v16776_v41  ;;  %v16777_v43 = vld [vmem:[#allocation19_spill] sm:$0xff]  ;;  %v10363_v60 = vcombine.low %v12149_v52, %v12149_v52 }
 0x2f2   : > { %2351 = vrot.lane.b32.xlu1 %v10361_v61, %s11003_s27  ;;  %2343 = vrot.lane.b32.xlu0 %v10359_v17, %s11005_s11  ;;  %v12332_v61 = vrot.slane %v1388_v16, %v16772_v10  ;;  %v16774_v17 = vld [vmem:[#allocation10_spill] sm:$0xff]  ;;  %v1387_v16 = vrot.slane %v1380_v15, %v16772_v10 }
 0x2f3   : > { %v1448_v2 = vcombine.low %v12224_v62, %v16774_v17  ;;  %v1740_v62 = vcombine.low %v1627_v7, %v16777_v43  ;;  %v1732_v7 = vcombine.low %v12236_v40, %v16780_v21  ;;  %v1429_v43 = vrot.slane %v1422_v0, %v16772_v10 }
 0x2f4   : > { %v1629_v46 = vpop.permute.xlu1 %1628  ;;  %v12325_v19 = vpop.permute.xlu0 %2743  ;;  %v12377_v52 = vrot.slane %v1766_v37, %v16772_v10  ;;  %v1363_v40 = vcombine.high %v1353_v31, %v12349_v48 }
 0x2f5   : > { %v1706_v17 = vcombine.low %v1629_v46, %v16779_v14  ;;  %v1455_v58 = vrot.slane %v1448_v2, %v16772_v10  ;;  %v16781_v46 = vld [vmem:[#allocation22_spill] sm:$0xff]  ;;  %v12381_v33 = vrot.slane %v1740_v62, %v16772_v10  ;;  %v16783_v2 = vld [vmem:[#allocation21_spill] sm:$0xff]  ;;  %v12397_v62 = vrot.slane %v1732_v7, %v16772_v10 }
 0x2f6   : > { %2339 = vrot.lane.b32.xlu1 %v10358_v23, %s11004_s30  ;;  %2383 = vrot.lane.b32.xlu0 %v10369_v1, %s11006_s12  ;;  %v1414_v23 = vcombine.low %v12216_v39, %v16778_v56  ;;  %v1397_v1 = vcombine.high %v1387_v16, %v12332_v61  ;;  %v12368_v39 = vrot.slane %v1774_v27, %v16772_v10  ;;  %v16782_v56 = vld [vmem:[#allocation23_spill] sm:$0xff] }
 0x2f7   : > { %v1698_v41 = vcombine.low %v12254_v49, %v16781_v46  ;;  %v1672_v14 = vcombine.low %v1625_v13, %v16782_v56  ;;  %v10371_v27 = vcombine.low %v12155_v5, %v12155_v5  ;;  %v1664_v13 = vcombine.low %v12246_v11, %v16783_v2  ;;  %v16784_v46 = vld [vmem:[#allocation58_spill] sm:$0xff] }
 0x2f8   : > { %v12357_v35 = vpop.permute.xlu1 %2747  ;;  %v12359_v15 = vpop.permute.xlu0 %2741  ;;  %v1421_v49 = vrot.slane %v1414_v23, %v16772_v10  ;;  %v1465_v0 = vcombine.high %v1455_v58, %v1463_v4  ;;  %v12400_v56 = vrot.slane %v1397_v1, %v16784_v46  ;;  %v1783_v5 = vcombine.high %v12377_v52, %v12368_v39 }
 0x2f9   : > { %v12405_v11 = vrot.slane %v1698_v41, %v16772_v10  ;;  %v12412_v7 = vrot.slane %v1363_v40, %v16784_v46  ;;  %v10367_v1 = vcombine.low %v12157_v26, %v12157_v26  ;;  %v1782_v30 = vcombine.low %v12377_v52, %v12368_v39 }
 0x2fa   : > { %2355 = vrot.lane.b32.xlu1 %v10362_v38, %s11006_s12  ;;  %2387 = vrot.lane.b32.xlu0 %v10370_v63, %s11007_s15  ;;  %v12390_v38 = vrot.slane %v1706_v17, %v16772_v10  ;;  %v1464_v63 = vcombine.low %v1455_v58, %v1463_v4  ;;  %v1431_v23 = vcombine.high %v1421_v49, %v1429_v43  ;;  %v1498_v50 = vshrl.u32 %v12400_v56, 16 }
 0x2fb   : > { %v12408_v17 = vrot.slane %v1672_v14, %v16772_v10  ;;  %v1430_v2 = vcombine.low %v1421_v49, %v1429_v43  ;;  %v1749_v4 = vcombine.high %v12397_v62, %v12381_v33  ;;  %v12420_v58 = vrot.slane %v1664_v13, %v16772_v10 }
 0x2fc   : > { %v12392_v37 = vpop.permute.xlu1 %2745  ;;  %v12394_v21 = vpop.permute.xlu0 %2425  ;;  %v12423_v41 = vrot.slane %v1465_v0, %v16784_v46  ;;  %v1715_v43 = vcombine.high %v12405_v11, %v12390_v38  ;;  %v12436_v26 = vrot.slane %v1783_v5, %v16784_v46  ;;  %v10364_v49 = vcombine.low %v12163_v44, %v12163_v44 }
 0x2fd   : > { %v1496_v13 = vpack.i.b16 %v12400_v56, %v12412_v7  ;;  %v1681_v0 = vcombine.high %v12420_v58, %v12408_v17  ;;  %v12451_v5 = vrot.slane %v1749_v4, %v16784_v46  ;;  %v12522_v3 = vrot.slane %v1782_v30, %v16784_v46 }
 0x2fe   : > { %2359 = vrot.lane.b32.xlu1 %v10363_v60, %s11007_s15  ;;  %2391 = vrot.lane.b32.xlu0 %v10371_v27, %s11009_s17  ;;  %v1396_v60 = vcombine.low %v1387_v16, %v12332_v61  ;;  %v12433_v27 = vrot.slane %v1464_v63, %v16784_v46  ;;  %v1445_v61 = vrot.slane %v1431_v23, %v16784_v46 }
 0x2ff   : > { %v1362_v16 = vcombine.low %v1353_v31, %v12349_v48  ;;  %v12448_v63 = vrot.slane %v1430_v2, %v16784_v46  ;;  %v12458_v23 = vrot.slane %v1715_v43, %v16784_v46  ;;  %v10333_v8 = vcombine.low %v1496_v13, %v1496_v13  ;;  %16791 = vst [vmem:[#allocation77_spill] sm:$0xff] %v12522_v3 }
 0x300   : > { %v12428_v14 = vpop.permute.xlu1 %2429  ;;  %v12430_v40 = vpop.permute.xlu0 %2423  ;;  %16787 = vst [vmem:[#allocation68_spill] sm:$0xff] %v12433_v27  ;;  %v12455_v44 = vrot.slane %v1396_v60, %v16784_v46  ;;  %v1520_v2 = vpack.i.b16 %v12423_v41, %v1445_v61  ;;  %v1838_v4 = vpack.i.b16 %v12436_v26, %v12451_v5  ;;  %v12474_v43 = vrot.slane %v1681_v0, %v16784_v46 }
 0x301   : > { %16785 = vst [vmem:[#allocation67_spill] sm:$0xff] %v12428_v14  ;;  %16786 = vst [vmem:[#allocation69_spill] sm:$0xff] %v12430_v40  ;;  %v12471_v60 = vrot.slane %v1362_v16, %v16784_v46  ;;  %v12488_v0 = vcombine.high %v12433_v27, %v16738_v36  ;;  %v12537_v30 = vcombine.high %v1445_v61, %v16738_v36  ;;  %v16804_v14 = vld [vmem:[#allocation27_spill] sm:$0xff] }
 0x302   : > { %2375 = vrot.lane.b32.xlu1 %v10367_v1, %s11008_s16  ;;  %16788 = vst [vmem:[#allocation73_spill] sm:$0xff] %v12448_v63  ;;  %2363 = vrot.lane.b32.xlu0 %v10364_v49, %s11009_s17  ;;  %16789 = vst [vmem:[#allocation72_spill] sm:$0xff] %v12455_v44  ;;  %v10360_v1 = vcombine.low %v12167_v51, %v12167_v51  ;;  %v1510_v49 = vshrl.u32 %v12433_v27, 16  ;;  %v1509_v51 = vshrl.u32 %v12448_v63, 16  ;;  %v1486_v16 = vshrl.u32 %v12455_v44, 16 }
 0x303   : > { %16790 = vst [vmem:[#allocation76_spill] sm:$0xff] %v12471_v60  ;;  %v10340_v12 = vcombine.low %v1520_v2, %v1520_v2  ;;  %v1814_v24 = vpack.i.b16 %v12458_v23, %v12474_v43  ;;  %v10354_v47 = vcombine.low %v1838_v4, %v1838_v4 }
 0x304   : > { %v12460_v48 = vpop.permute.xlu1 %2427  ;;  %v12462_v31 = vpop.permute.xlu0 %3436  ;;  %v1511_v53 = vpack.i.b16 %v1510_v49, %v1509_v51  ;;  %v1522_v51 = vshrl.u32 %v12423_v41, 16 }
 0x305   : > { %v10347_v4 = vcombine.low %v1814_v24, %v1814_v24  ;;  %v1748_v24 = vcombine.low %v12397_v62, %v12381_v33  ;;  %v12528_v62 = vcombine.high %v12423_v41, %v16738_v36 }
 0x306   : > { %2347 = vrot.lane.b32.xlu1 %v10360_v1, %s11008_s16  ;;  %1544 = vrot.lane.b32.xlu0 %v10333_v8, %s11003_s27  ;;  %v1485_v8 = vshrl.u32 %v12471_v60, 16  ;;  %v12495_v1 = vcombine.high %v12448_v63, %v16738_v36  ;;  %v1521_v63 = vshrl.u32 %v1445_v61, 16 }
 0x307   : > { %v1526_v61 = vpack.i.b16 %v12528_v62, %v12537_v30 }
 0x308   : > { %v12479_v32 = vpop.permute.xlu1 %3756  ;;  %v12481_v13 = vpop.permute.xlu0 %3754  ;;  %v1487_v49 = vpack.i.b16 %v1486_v16, %v1485_v8  ;;  %v1514_v27 = vpack.i.b16 %v12488_v0, %v12495_v1  ;;  %v12516_v16 = vcombine.high %v12471_v60, %v16738_v36  ;;  %v1523_v8 = vpack.i.b16 %v1522_v51, %v1521_v63 }
 0x30a   : > { %1572 = vrot.lane.b32.xlu1 %v10340_v12, %s11003_s27  ;;  %1890 = vrot.lane.b32.xlu0 %v10354_v47, %s11003_s27  ;;  %v10337_v12 = vcombine.low %v1511_v53, %v1511_v53  ;;  %v12508_v47 = vcombine.high %v12455_v44, %v16738_v36  ;;  %v10330_v52 = vcombine.low %v1487_v49, %v1487_v49 }
 0x30b   : > { %v12533_v49 = vrot.slane %v1748_v24, %v16784_v46  ;;  %v10341_v41 = vcombine.low %v1523_v8, %v1523_v8  ;;  %v16794_v24 = vld [vmem:[#allocation35_spill] sm:$0xff] }
 0x30c   : > { %v12497_v2 = vpop.permute.xlu1 %3440  ;;  %v12499_v18 = vpop.permute.xlu0 %3438  ;;  %v1490_v33 = vpack.i.b16 %v12508_v47, %v12516_v16 }
 0x30d   : > { %16792 = vst [vmem:[#allocation79_spill] sm:$0xff] %v12533_v49 }
 0x30e   : > { %1862 = vrot.lane.b32.xlu1 %v10347_v4, %s11003_s27  ;;  %1560 = vrot.lane.b32.xlu0 %v10337_v12, %s11004_s30  ;;  %v10338_v4 = vcombine.low %v1514_v27, %v1514_v27  ;;  %v1497_v12 = vshrl.u32 %v12412_v7, 16  ;;  %v1714_v27 = vcombine.low %v12405_v11, %v12390_v38  ;;  %v10331_v22 = vcombine.low %v1490_v33, %v1490_v33  ;;  %v16797_v33 = vld [vmem:[#allocation33_spill] sm:$0xff] }
 0x30f   : > { %v1680_v38 = vcombine.low %v12420_v58, %v12408_v17  ;;  %v12572_v17 = vcombine.high %v12533_v49, %v16738_v36 }
 0x310   : > { %v12518_v53 = vpop.permute.xlu1 %3442  ;;  %v3759_v39 = vpop.permute.xlu0 %3758  ;;  %v1499_v20 = vpack.i.b16 %v1498_v50, %v1497_v12  ;;  %v12561_v50 = vcombine.high %v12412_v7, %v16738_v36  ;;  %v3802_v12 = vcombine.low %v12481_v13, %v16797_v33  ;;  %v12575_v58 = vrot.slane %v1714_v27, %v16784_v46 }
 0x311   : > { %v3836_v54 = vcombine.low %v3759_v39, %v16794_v24  ;;  %v16796_v39 = vld [vmem:[#allocation31_spill] sm:$0xff]  ;;  %v1828_v24 = vshrl.u32 %v12522_v3, 16  ;;  %v1840_v27 = vshrl.u32 %v12436_v26, 16 }
 0x312   : > { %1532 = vrot.lane.b32.xlu1 %v10330_v52, %s11004_s30  ;;  %1564 = vrot.lane.b32.xlu0 %v10338_v4, %s11005_s11  ;;  %v12547_v52 = vcombine.high %v12400_v56, %v16738_v36  ;;  %v12554_v4 = vcombine.high %v12522_v3, %v16738_v36  ;;  %v16795_v56 = vld [vmem:[#allocation29_spill] sm:$0xff]  ;;  %v3828_v8 = vcombine.low %v12286_v45, %v16796_v39 }
 0x313   : > { %v3794_v11 = vcombine.low %v12266_v9, %v16795_v56  ;;  %16798 = vst [vmem:[#allocation16_spill] sm:$0xff] %v12575_v58  ;;  %v10334_v9 = vcombine.low %v1499_v20, %v1499_v20  ;;  %v12585_v13 = vrot.slane %v3836_v54, %v16772_v10  ;;  %v12591_v39 = vrot.slane %v1680_v38, %v16784_v46 }
 0x314   : > { %v12541_v63 = vpop.permute.xlu1 %3760  ;;  %v12543_v51 = vpop.permute.xlu0 %2751  ;;  %v1502_v45 = vpack.i.b16 %v12547_v52, %v12561_v50  ;;  %v1832_v56 = vpack.i.b16 %v12554_v4, %v12572_v17  ;;  %v1827_v20 = vshrl.u32 %v12533_v49, 16  ;;  %v12596_v33 = vrot.slane %v3828_v8, %v16772_v10 }
 0x315   : > { %16793 = vst [vmem:[#allocation78_spill] sm:$0xff] %v12543_v51  ;;  %16800 = vst [vmem:[#allocation14_spill] sm:$0xff] %v12591_v39  ;;  %v12599_v3 = vrot.slane %v3802_v12, %v16772_v10  ;;  %v1839_v54 = vshrl.u32 %v12451_v5, 16  ;;  %v1804_v49 = vshrl.u32 %v12575_v58, 16  ;;  %v16803_v51 = vld [vmem:[#allocation26_spill] sm:$0xff] }
 0x316   : > { %1576 = vrot.lane.b32.xlu1 %v10341_v41, %s11006_s12  ;;  %1536 = vrot.lane.b32.xlu0 %v10331_v22, %s11005_s11  ;;  %v10342_v22 = vcombine.low %v1526_v61, %v1526_v61  ;;  %v12604_v61 = vrot.slane %v3794_v11, %v16772_v10  ;;  %v1829_v44 = vpack.i.b16 %v1828_v24, %v1827_v20  ;;  %v1803_v11 = vshrl.u32 %v12591_v39, 16  ;;  %v16802_v24 = vld [vmem:[#allocation28_spill] sm:$0xff] }
 0x317   : > { %v3845_v8 = vcombine.high %v12596_v33, %v12585_v13  ;;  %v10352_v12 = vcombine.low %v1832_v56, %v1832_v56  ;;  %v1841_v60 = vpack.i.b16 %v1840_v27, %v1839_v54  ;;  %v3518_v20 = vcombine.low %v12497_v2, %v16802_v24 }
 0x318   : > { %v12577_v7 = vpop.permute.xlu1 %2755  ;;  %v12579_v41 = vpop.permute.xlu0 %2749  ;;  %v3811_v34 = vcombine.high %v12604_v61, %v12599_v3  ;;  %v10351_v27 = vcombine.low %v1829_v44, %v1829_v44  ;;  %v1805_v54 = vpack.i.b16 %v1804_v49, %v1803_v11  ;;  %v3510_v40 = vcombine.low %v12274_v28, %v16803_v51  ;;  %v16805_v49 = vld [vmem:[#allocation25_spill] sm:$0xff] }
 0x319   : > { %16799 = vst [vmem:[#allocation80_spill] sm:$0xff] %v12577_v7  ;;  %v10355_v7 = vcombine.low %v1841_v60, %v1841_v60  ;;  %v3484_v2 = vcombine.low %v12462_v31, %v16804_v14  ;;  %v12640_v44 = vcombine.high %v12591_v39, %v16738_v36  ;;  %v3476_v11 = vcombine.low %v12256_v42, %v16805_v49 }
 0x31a   : > { %1548 = vrot.lane.b32.xlu1 %v10334_v9, %s11006_s12  ;;  %1580 = vrot.lane.b32.xlu0 %v10342_v22, %s11007_s15  ;;  %v10335_v9 = vcombine.low %v1502_v45, %v1502_v45  ;;  %v1816_v22 = vshrl.u32 %v12458_v23, 16  ;;  %v1815_v45 = vshrl.u32 %v12474_v43, 16  ;;  %v3525_v60 = vrot.slane %v3518_v20, %v16772_v10 }
 0x31b   : > { %v10344_v14 = vcombine.low %v1805_v54, %v1805_v54  ;;  %v3491_v24 = vrot.slane %v3484_v2, %v16772_v10  ;;  %v12667_v20 = vcombine.high %v12451_v5, %v16738_v36  ;;  %v12680_v49 = vcombine.high %v12458_v23, %v16738_v36 }
 0x31c   : > { %v12606_v57 = vpop.permute.xlu1 %2753  ;;  %v12608_v38 = vpop.permute.xlu0 %2433 }
 0x31d   : > { %16801 = vst [vmem:[#allocation15_spill] sm:$0xff] %v12608_v38  ;;  %v12631_v38 = vrot.slane %v3845_v8, %v16784_v46  ;;  %v12645_v8 = vrot.slane %v3811_v34, %v16784_v46 }
 0x31e   : > { %1552 = vrot.lane.b32.xlu1 %v10335_v9, %s11007_s15  ;;  %1882 = vrot.lane.b32.xlu0 %v10352_v12, %s11005_s11  ;;  %v12628_v9 = vcombine.high %v12575_v58, %v16738_v36  ;;  %v1817_v12 = vpack.i.b16 %v1816_v22, %v1815_v45  ;;  %v12657_v22 = vcombine.high %v12436_v26, %v16738_v36  ;;  %v1491_v26 = vshrl.u32 %v12516_v16, 16 }
 0x31f   : > { %v3944_v34 = vpack.i.b16 %v12631_v38, %v12645_v8  ;;  %v3517_v45 = vrot.slane %v3510_v40, %v16772_v10  ;;  %v12686_v16 = vcombine.high %v12474_v43, %v16738_v36  ;;  %v1504_v43 = vshrl.u32 %v12547_v52, 16 }
 0x320   : > { %v12622_v6 = vpop.permute.xlu1 %2437  ;;  %v12624_v56 = vpop.permute.xlu0 %2431  ;;  %v1808_v31 = vpack.i.b16 %v12628_v9, %v12640_v44  ;;  %v10348_v42 = vcombine.low %v1817_v12, %v1817_v12  ;;  %v1844_v2 = vpack.i.b16 %v12657_v22, %v12667_v20  ;;  %v1516_v52 = vshrl.u32 %v12488_v0, 16 }
 0x321   : > { %v3527_v54 = vcombine.high %v3517_v45, %v3525_v60  ;;  %v10439_v5 = vcombine.low %v3944_v34, %v3944_v34  ;;  %v3844_v0 = vcombine.low %v12596_v33, %v12585_v13  ;;  %v3810_v33 = vcombine.low %v12604_v61, %v12599_v3 }
 0x322   : > { %1878 = vrot.lane.b32.xlu1 %v10351_v27, %s11004_s30  ;;  %1894 = vrot.lane.b32.xlu0 %v10355_v7, %s11006_s12  ;;  %v1492_v7 = vshrl.u32 %v12508_v47, 16  ;;  %v3483_v27 = vrot.slane %v3476_v11, %v16772_v10  ;;  %v10345_v40 = vcombine.low %v1808_v31, %v1808_v31  ;;  %v1528_v11 = vshrl.u32 %v12528_v62, 16 }
 0x323   : > { %v1527_v31 = vshrl.u32 %v12537_v30, 16  ;;  %v12691_v58 = vrot.slane %v3527_v54, %v16784_v46  ;;  %v1820_v62 = vpack.i.b16 %v12680_v49, %v12686_v16  ;;  %v3526_v30 = vcombine.low %v3517_v45, %v3525_v60 }
 0x324   : > { %v12649_v28 = vpop.permute.xlu1 %2435  ;;  %v12651_v51 = vpop.permute.xlu0 %1232  ;;  %v1503_v54 = vshrl.u32 %v12561_v50, 16  ;;  %v1515_v60 = vshrl.u32 %v12495_v1, 16  ;;  %v16808_v50 = vld [vmem:[#allocation34_spill] sm:$0xff]  ;;  %v1810_v1 = vshrl.u32 %v12628_v9, 16  ;;  %v1809_v9 = vshrl.u32 %v12640_v44, 16 }
 0x325   : > { %v3862_v45 = vcombine.low %v12264_v25, %v16808_v50 }
 0x326   : > { %1850 = vrot.lane.b32.xlu1 %v10344_v14, %s11004_s30  ;;  %1866 = vrot.lane.b32.xlu0 %v10348_v42, %s11006_s12  ;;  %v1493_v14 = vpack.i.b16 %v1492_v7, %v1491_v26  ;;  %v3493_v42 = vcombine.high %v3483_v27, %v3491_v24  ;;  %v10356_v7 = vcombine.low %v1844_v2, %v1844_v2 }
 0x328   : > { %v12672_v12 = vpop.permute.xlu1 %1204  ;;  %v12674_v47 = vpop.permute.xlu0 %1192  ;;  %v10332_v26 = vcombine.low %v1493_v14, %v1493_v14  ;;  %v12701_v39 = vrot.slane %v3493_v42, %v16784_v46  ;;  %v1505_v42 = vpack.i.b16 %v1504_v43, %v1503_v54  ;;  %v1846_v54 = vshrl.u32 %v12657_v22, 16  ;;  %v16817_v22 = vld [vmem:[#allocation40_spill] sm:$0xff] }
 0x329   : > { %16806 = vst [vmem:[#allocation12_spill] sm:$0xff] %v12672_v12  ;;  %v10349_v12 = vcombine.low %v1820_v62, %v1820_v62  ;;  %v1833_v62 = vshrl.u32 %v12572_v17, 16 }
 0x32a   : > { %1854 = vrot.lane.b32.xlu1 %v10345_v40, %s11005_s11  ;;  %3992 = vrot.lane.b32.xlu0 %v10439_v5, %s11003_s27  ;;  %v1529_v40 = vpack.i.b16 %v1528_v11, %v1527_v31  ;;  %v3626_v14 = vpack.i.b16 %v12691_v58, %v12701_v39  ;;  %v1834_v31 = vshrl.u32 %v12554_v4, 16  ;;  %v10336_v43 = vcombine.low %v1505_v42, %v1505_v42 }
 0x32c   : > { %v12693_v23 = vpop.permute.xlu1 %1220  ;;  %v12695_v34 = vpop.permute.xlu0 %1196  ;;  %v10343_v11 = vcombine.low %v1529_v40, %v1529_v40 }
 0x32e   : > { %1898 = vrot.lane.b32.xlu1 %v10356_v7, %s11007_s15  ;;  %1540 = vrot.lane.b32.xlu0 %v10332_v26, %s11008_s16  ;;  %v3492_v7 = vcombine.low %v3483_v27, %v3491_v24  ;;  %v12719_v26 = vrot.slane %v3526_v30, %v16784_v46  ;;  %v10425_v24 = vcombine.low %v3626_v14, %v3626_v14  ;;  %v16815_v14 = vld [vmem:[#allocation30_spill] sm:$0xff] }
 0x32f   : > { %v1517_v27 = vpack.i.b16 %v1516_v52, %v1515_v60  ;;  %v1835_v30 = vpack.i.b16 %v1834_v31, %v1833_v62  ;;  %v16816_v52 = vld [vmem:[#allocation39_spill] sm:$0xff]  ;;  %v3904_v31 = vcombine.low %v12541_v63, %v16817_v22  ;;  %v1811_v60 = vpack.i.b16 %v1810_v1, %v1809_v9 }
 0x330   : > { %v12706_v5 = vpop.permute.xlu1 %1224  ;;  %v12708_v2 = vpop.permute.xlu0 %1236  ;;  %16809 = vst [vmem:[#allocation13_spill] sm:$0xff] %v12719_v26  ;;  %v12736_v13 = vrot.slane %v3492_v7, %v16784_v46  ;;  %v3552_v42 = vcombine.low %v12499_v18, %v16816_v52  ;;  %v12751_v7 = vrot.slane %v3844_v0, %v16784_v46  ;;  %v1822_v63 = vshrl.u32 %v12680_v49, 16 }
 0x331   : > { %16807 = vst [vmem:[#allocation81_spill] sm:$0xff] %v12708_v2  ;;  %v10339_v44 = vcombine.low %v1517_v27, %v1517_v27  ;;  %v10353_v50 = vcombine.low %v1835_v30, %v1835_v30  ;;  %v12775_v49 = vrot.slane %v3904_v31, %v16772_v10  ;;  %v12784_v52 = vcombine.high %v12719_v26, %v16738_v36 }
 0x332   : > { %1870 = vrot.lane.b32.xlu1 %v10349_v12, %s11007_s15  ;;  %1584 = vrot.lane.b32.xlu0 %v10343_v11, %s11009_s17  ;;  %v16812_v12 = vld [vmem:[#allocation32_spill] sm:$0xff]  ;;  %v16813_v11 = vld [vmem:[#allocation37_spill] sm:$0xff]  ;;  %16814 = vst [vmem:[#allocation11_spill] sm:$0xff] %v12736_v13  ;;  %16818 = vst [vmem:[#allocation18_spill] sm:$0xff] %v12751_v7  ;;  %v3615_v27 = vshrl.u32 %v12736_v13, 16  ;;  %v3559_v30 = vrot.slane %v3552_v42, %v16772_v10  ;;  %v3934_v9 = vshrl.u32 %v12751_v7, 16 }
 0x333   : > { %v3586_v25 = vcombine.low %v12518_v53, %v16812_v12  ;;  %v3544_v17 = vcombine.low %v12276_v29, %v16813_v11  ;;  %v3578_v53 = vcombine.low %v12284_v55, %v16815_v14  ;;  %v1845_v29 = vshrl.u32 %v12667_v20, 16  ;;  %v16822_v12 = vld [vmem:[#allocation38_spill] sm:$0xff] }
 0x334   : > { %v12725_v40 = vpop.permute.xlu1 %1240  ;;  %v12727_v4 = vpop.permute.xlu0 %1208  ;;  %v3616_v55 = vshrl.u32 %v12719_v26, 16  ;;  %v3870_v0 = vcombine.low %v12479_v32, %v16822_v12  ;;  %v10346_v11 = vcombine.low %v1811_v60, %v1811_v60  ;;  %v12795_v31 = vrot.slane %v3862_v45, %v16772_v10 }
 0x335   : > { %16810 = vst [vmem:[#allocation20_spill] sm:$0xff] %v12725_v40  ;;  %16811 = vst [vmem:[#allocation10_spill] sm:$0xff] %v12727_v4  ;;  %v3593_v18 = vrot.slane %v3586_v25, %v16772_v10  ;;  %v1847_v62 = vpack.i.b16 %v1846_v54, %v1845_v29  ;;  %v3551_v1 = vrot.slane %v3544_v17, %v16772_v10 }
 0x336   : > { %3674 = vrot.lane.b32.xlu1 %v10425_v24, %s11003_s27  ;;  %1556 = vrot.lane.b32.xlu0 %v10336_v43, %s11009_s17  ;;  %v16821_v24 = vld [vmem:[#allocation36_spill] sm:$0xff]  ;;  %v12765_v43 = vrot.slane %v3810_v33, %v16784_v46  ;;  %v3585_v25 = vrot.slane %v3578_v53, %v16772_v10  ;;  %v3617_v33 = vpack.i.b16 %v3616_v55, %v3615_v27 }
 0x337   : > { %v3896_v20 = vcombine.low %v12294_v59, %v16821_v24  ;;  %v1821_v59 = vshrl.u32 %v12686_v16, 16  ;;  %v10357_v14 = vcombine.low %v1847_v62, %v1847_v62  ;;  %v12790_v42 = vrot.slane %v3870_v0, %v16772_v10 }
 0x338   : > { %v12753_v3 = vpop.permute.xlu1 %1212  ;;  %v12755_v61 = vpop.permute.xlu0 %3356  ;;  %16823 = vst [vmem:[#allocation24_spill] sm:$0xff] %v12765_v43  ;;  %v3595_v17 = vcombine.high %v3585_v25, %v3593_v18  ;;  %v3933_v22 = vshrl.u32 %v12765_v43, 16  ;;  %v3561_v29 = vcombine.high %v3551_v1, %v3559_v30  ;;  %v12800_v60 = vcombine.high %v12736_v13, %v16738_v36 }
 0x339   : > { %16819 = vst [vmem:[#allocation19_spill] sm:$0xff] %v12753_v3  ;;  %16820 = vst [vmem:[#allocation9_spill] sm:$0xff] %v12755_v61  ;;  %v1823_v53 = vpack.i.b16 %v1822_v63, %v1821_v59  ;;  %v12787_v16 = vrot.slane %v3896_v20, %v16772_v10  ;;  %v10422_v63 = vcombine.low %v3617_v33, %v3617_v33  ;;  %v16826_v59 = vld [vmem:[#allocation41_spill] sm:$0xff]  ;;  %v16827_v33 = vld [vmem:[#allocation42_spill] sm:$0xff] }
 0x33a   : > { %1568 = vrot.lane.b32.xlu1 %v10339_v44, %s11008_s16  ;;  %1886 = vrot.lane.b32.xlu0 %v10353_v50, %s11008_s16  ;;  %v3594_v44 = vcombine.low %v3585_v25, %v3593_v18  ;;  %v3935_v24 = vpack.i.b16 %v3934_v9, %v3933_v22  ;;  %v12810_v45 = vcombine.high %v12751_v7, %v16738_v36 }
 0x33b   : > { %v3913_v55 = vcombine.high %v12787_v16, %v12775_v49  ;;  %v12813_v18 = vrot.slane %v3595_v17, %v16784_v46  ;;  %v10350_v20 = vcombine.low %v1823_v53, %v1823_v53  ;;  %v3620_v12 = vpack.i.b16 %v12784_v52, %v12800_v60 }
 0x33c   : > { %v12777_v32 = vpop.permute.xlu1 %1228  ;;  %v12779_v54 = vpop.permute.xlu0 %1244  ;;  %v3879_v0 = vcombine.high %v12795_v31, %v12790_v42  ;;  %v3560_v27 = vcombine.low %v3551_v1, %v3559_v30  ;;  %v12822_v25 = vcombine.high %v12765_v43, %v16738_v36  ;;  %v2891_v9 = vcombine.low %v12357_v35, %v16827_v33  ;;  %v16831_v35 = vld [vmem:[#allocation45_spill] sm:$0xff] }
 0x33d   : > { %16824 = vst [vmem:[#allocation17_spill] sm:$0xff] %v12779_v54  ;;  %v12829_v17 = vrot.slane %v3561_v29, %v16784_v46  ;;  %v12836_v1 = vrot.slane %v3913_v55, %v16784_v46  ;;  %v10436_v22 = vcombine.low %v3935_v24, %v3935_v24  ;;  %v2789_v29 = vcombine.low %v12359_v15, %v16831_v35  ;;  %v16834_v15 = vld [vmem:[#allocation49_spill] sm:$0xff]  ;;  %v16835_v35 = vld [vmem:[#allocation48_spill] sm:$0xff] }
 0x33e   : > { %1858 = vrot.lane.b32.xlu1 %v10346_v11, %s11008_s16  ;;  %1902 = vrot.lane.b32.xlu0 %v10357_v14, %s11009_s17  ;;  %v2857_v11 = vcombine.low %v12325_v19, %v16826_v59  ;;  %v12833_v14 = vrot.slane %v3594_v44, %v16784_v46  ;;  %v3938_v19 = vpack.i.b16 %v12810_v45, %v12822_v25  ;;  %v3628_v44 = vshrl.u32 %v12691_v58, 16  ;;  %v16832_v59 = vld [vmem:[#allocation46_spill] sm:$0xff]  ;;  %v16845_v54 = vld [vmem:[#allocation53_spill] sm:$0xff] }
 0x33f   : > { %v2823_v55 = vcombine.low %v12392_v37, %v16832_v59  ;;  %v12852_v33 = vrot.slane %v3879_v0, %v16784_v46  ;;  %v12855_v24 = vrot.slane %v3560_v27, %v16784_v46  ;;  %v2831_v61 = vcombine.low %v12606_v57, %v16835_v35 }
 0x340   : > { %v12804_v50 = vpop.permute.xlu1 %1200  ;;  %v12806_v62 = vpop.permute.xlu0 %1216  ;;  %16828 = vst [vmem:[#allocation23_spill] sm:$0xff] %v12833_v14  ;;  %v3627_v37 = vshrl.u32 %v12701_v39, 16  ;;  %v12868_v0 = vrot.slane %v2891_v9, %v16772_v10  ;;  %v12882_v35 = vcombine.high %v12691_v58, %v16738_v36  ;;  %v3622_v58 = vshrl.u32 %v12784_v52, 16 }
 0x341   : > { %16825 = vst [vmem:[#allocation22_spill] sm:$0xff] %v12806_v62  ;;  %16833 = vst [vmem:[#allocation29_spill] sm:$0xff] %v12855_v24  ;;  %v12885_v9 = vrot.slane %v2823_v55, %v16772_v10  ;;  %v12899_v62 = vrot.slane %v2831_v61, %v16772_v10  ;;  %v16846_v61 = vld [vmem:[#allocation69_spill] sm:$0xff] }
 0x342   : > { %3662 = vrot.lane.b32.xlu1 %v10422_v63, %s11004_s30  ;;  %1874 = vrot.lane.b32.xlu0 %v10350_v20, %s11009_s17  ;;  %v10423_v63 = vcombine.low %v3620_v12, %v3620_v12  ;;  %v3650_v20 = vpack.i.b16 %v12813_v18, %v12829_v17  ;;  %v2539_v12 = vcombine.low %v12394_v21, %v16834_v15  ;;  %v3640_v21 = vshrl.u32 %v12833_v14, 16 }
 0x343   : > { %v12878_v15 = vrot.slane %v2789_v29, %v16772_v10  ;;  %v3639_v29 = vshrl.u32 %v12855_v24, 16  ;;  %v2471_v3 = vcombine.low %v16846_v61, %v16845_v54  ;;  %v3621_v54 = vshrl.u32 %v12800_v60, 16  ;;  %v16850_v61 = vld [vmem:[#allocation44_spill] sm:$0xff] }
 0x344   : > { %v12838_v30 = vpop.permute.xlu1 %3344  ;;  %v12840_v53 = vpop.permute.xlu0 %3360  ;;  %v10432_v57 = vcombine.low %v3650_v20, %v3650_v20  ;;  %v12894_v20 = vrot.slane %v2539_v12, %v16772_v10 }
 0x345   : > { %16829 = vst [vmem:[#allocation21_spill] sm:$0xff] %v12838_v30  ;;  %16830 = vst [vmem:[#allocation35_spill] sm:$0xff] %v12840_v53  ;;  %v12859_v53 = vrot.slane %v2857_v11, %v16772_v10  ;;  %v3968_v11 = vpack.i.b16 %v12836_v1, %v12852_v33 }
 0x346   : > { %3980 = vrot.lane.b32.xlu1 %v10436_v22, %s11004_s30  ;;  %3666 = vrot.lane.b32.xlu0 %v10423_v63, %s11005_s11  ;;  %v10437_v22 = vcombine.low %v3938_v19, %v3938_v19  ;;  %v3629_v63 = vpack.i.b16 %v3628_v44, %v3627_v37  ;;  %v16840_v44 = vld [vmem:[#allocation50_spill] sm:$0xff]  ;;  %v16841_v37 = vld [vmem:[#allocation67_spill] sm:$0xff] }
 0x347   : > { %v10446_v12 = vcombine.low %v3968_v11, %v3968_v11  ;;  %v16847_v11 = vld [vmem:[#allocation55_spill] sm:$0xff] }
 0x348   : > { %v12870_v27 = vpop.permute.xlu1 %3348  ;;  %v12872_v59 = vpop.permute.xlu0 %3376  ;;  %v10426_v4 = vcombine.low %v3629_v63, %v3629_v63  ;;  %v2479_v52 = vcombine.low %v12624_v56, %v16847_v11  ;;  %v16849_v63 = vld [vmem:[#allocation78_spill] sm:$0xff] }
 0x349   : > { %16836 = vst [vmem:[#allocation31_spill] sm:$0xff] %v12870_v27  ;;  %16837 = vst [vmem:[#allocation33_spill] sm:$0xff] %v12872_v59  ;;  %v16838_v27 = vld [vmem:[#allocation54_spill] sm:$0xff]  ;;  %v16839_v59 = vld [vmem:[#allocation47_spill] sm:$0xff] }
 0x34a   : > { %v2505_v19 = vcombine.low %v12460_v48, %v16838_v27  ;;  %v2797_v30 = vcombine.low %v12579_v41, %v16839_v59  ;;  %3984 = vrot.lane.b32.xlu1 %v10437_v22, %s11005_s11  ;;  %3702 = vrot.lane.b32.xlu0 %v10432_v57, %s11003_s27  ;;  %v12904_v48 = vcombine.high %v12701_v39, %v16738_v36  ;;  %v16842_v41 = vld [vmem:[#allocation56_spill] sm:$0xff] }
 0x34b   : > { %v2513_v55 = vcombine.low %v12649_v28, %v16842_v41  ;;  %v3641_v22 = vpack.i.b16 %v3640_v21, %v3639_v29  ;;  %v12919_v39 = vcombine.high %v12833_v14, %v16738_v36  ;;  %v16848_v21 = vld [vmem:[#allocation43_spill] sm:$0xff] }
 0x34c   : > { %v12908_v27 = vpop.permute.xlu1 %3384  ;;  %v12910_v59 = vpop.permute.xlu0 %3352  ;;  %v3632_v57 = vpack.i.b16 %v12882_v35, %v12904_v48  ;;  %v12922_v28 = vrot.slane %v2505_v19, %v16772_v10  ;;  %v12925_v41 = vrot.slane %v2797_v30, %v16772_v10  ;;  %v2865_v29 = vcombine.low %v16849_v63, %v16848_v21 }
 0x34d   : > { %16843 = vst [vmem:[#allocation28_spill] sm:$0xff] %v12908_v27  ;;  %16844 = vst [vmem:[#allocation26_spill] sm:$0xff] %v12910_v59  ;;  %v16851_v27 = vld [vmem:[#allocation80_spill] sm:$0xff]  ;;  %v2840_v19 = vcombine.high %v12885_v9, %v12899_v62  ;;  %v12940_v30 = vcombine.high %v12855_v24, %v16738_v36  ;;  %v12943_v56 = vrot.slane %v2513_v55, %v16772_v10  ;;  %v3652_v55 = vshrl.u32 %v12813_v18, 16 }
 0x34e   : > { %4020 = vrot.lane.b32.xlu1 %v10446_v12, %s11003_s27  ;;  %v2899_v59 = vcombine.low %v16851_v27, %v16850_v61  ;;  %3678 = vrot.lane.b32.xlu0 %v10426_v4, %s11006_s12  ;;  %v10429_v11 = vcombine.low %v3641_v22, %v3641_v22  ;;  %v3623_v21 = vpack.i.b16 %v3622_v58, %v3621_v54 }
 0x34f   : > { %v12951_v27 = vcombine.high %v12813_v18, %v16738_v36  ;;  %v3912_v4 = vcombine.low %v12787_v16, %v12775_v49  ;;  %v10427_v63 = vcombine.low %v3632_v57, %v3632_v57  ;;  %v3644_v61 = vpack.i.b16 %v12919_v39, %v12940_v30 }
 0x350   : > { %v12945_v12 = vpop.permute.xlu1 %3364  ;;  %v12947_v60 = vpop.permute.xlu0 %2379  ;;  %v2806_v22 = vcombine.high %v12878_v15, %v12925_v41  ;;  %v12963_v58 = vrot.slane %v2479_v52, %v16772_v10  ;;  %v12968_v49 = vcombine.high %v12829_v17, %v16738_v36  ;;  %v12971_v16 = vrot.slane %v2471_v3, %v16772_v10 }
 0x351   : > { %16852 = vst [vmem:[#allocation27_spill] sm:$0xff] %v12945_v12  ;;  %16853 = vst [vmem:[#allocation25_spill] sm:$0xff] %v12947_v60  ;;  %v3878_v12 = vcombine.low %v12795_v31, %v12790_v42  ;;  %v2872_v18 = vrot.slane %v2865_v29, %v16772_v10  ;;  %v2906_v57 = vrot.slane %v2899_v59, %v16772_v10  ;;  %v3651_v42 = vshrl.u32 %v12829_v17, 16  ;;  %v16859_v60 = vld [vmem:[#allocation15_spill] sm:$0xff] }
 0x352   : > { %3690 = vrot.lane.b32.xlu1 %v10429_v11, %s11004_s30  ;;  %3682 = vrot.lane.b32.xlu0 %v10427_v63, %s11007_s15  ;;  %v12978_v31 = vrot.slane %v2840_v19, %v16784_v46  ;;  %v2522_v52 = vcombine.high %v12922_v28, %v12943_v56  ;;  %v10424_v3 = vcombine.low %v3623_v21, %v3623_v21  ;;  %v3634_v17 = vshrl.u32 %v12882_v35, 16 }
 0x353   : > { %v3656_v29 = vpack.i.b16 %v12951_v27, %v12968_v49  ;;  %v12989_v59 = vrot.slane %v3912_v4, %v16784_v46  ;;  %v10430_v63 = vcombine.low %v3644_v61, %v3644_v61  ;;  %v3653_v40 = vpack.i.b16 %v3652_v55, %v3651_v42  ;;  %v16860_v55 = vld [vmem:[#allocation52_spill] sm:$0xff] }
 0x354   : > { %v12982_v54 = vpop.permute.xlu1 %3372  ;;  %v12984_v11 = vpop.permute.xlu0 %3380  ;;  %v12993_v19 = vrot.slane %v3878_v12, %v16784_v46  ;;  %v12996_v2 = vrot.slane %v2806_v22, %v16784_v46  ;;  %v2488_v21 = vcombine.high %v12971_v16, %v12963_v58  ;;  %v2873_v4 = vcombine.low %v12859_v53, %v2872_v18 }
 0x355   : > { %16854 = vst [vmem:[#allocation34_spill] sm:$0xff] %v12982_v54  ;;  %16855 = vst [vmem:[#allocation32_spill] sm:$0xff] %v12984_v11  ;;  %v16858_v54 = vld [vmem:[#allocation51_spill] sm:$0xff]  ;;  %v2874_v61 = vcombine.high %v12859_v53, %v2872_v18  ;;  %v2581_v35 = vcombine.low %v12622_v6, %v16860_v55  ;;  %v3633_v12 = vshrl.u32 %v12904_v48, 16  ;;  %v2907_v22 = vcombine.low %v12868_v0, %v2906_v57 }
 0x356   : > { %16856 = vst [vmem:[#allocation37_spill] sm:$0xff] %v12989_v59  ;;  %16857 = vst [vmem:[#allocation30_spill] sm:$0xff] %v12993_v19  ;;  %v2547_v11 = vcombine.low %v16859_v60, %v16858_v54  ;;  %3670 = vrot.lane.b32.xlu1 %v10424_v3, %s11008_s16  ;;  %3694 = vrot.lane.b32.xlu0 %v10430_v63, %s11005_s11  ;;  %v13011_v60 = vrot.slane %v2522_v52, %v16784_v46  ;;  %v3958_v55 = vshrl.u32 %v12989_v59, 16 }
 0x357   : > { %v10434_v3 = vcombine.low %v3656_v29, %v3656_v29  ;;  %v2939_v53 = vpack.i.b16 %v12978_v31, %v12996_v2  ;;  %v16863_v6 = vcombine.low %v16841_v37, %v16840_v44  ;;  %v10433_v63 = vcombine.low %v3653_v40, %v3653_v40 }
 0x358   : > { %v13013_v42 = vpop.permute.xlu1 %3388  ;;  %v13015_v54 = vpop.permute.xlu0 %3396  ;;  %v3635_v48 = vpack.i.b16 %v3634_v17, %v3633_v12  ;;  %v2908_v52 = vcombine.high %v12868_v0, %v2906_v57  ;;  %v13031_v29 = vrot.slane %v2488_v21, %v16784_v46  ;;  %v13035_v44 = vrot.slane %v2873_v4, %v16784_v46 }
 0x359   : > { %16861 = vst [vmem:[#allocation39_spill] sm:$0xff] %v13013_v42  ;;  %16862 = vst [vmem:[#allocation40_spill] sm:$0xff] %v13015_v54  ;;  %v2580_v18 = vrot.slane %v16863_v6, %v16772_v10  ;;  %v2805_v42 = vcombine.low %v12878_v15, %v12925_v41  ;;  %v13028_v54 = vrot.slane %v2547_v11, %v16772_v10  ;;  %v3957_v0 = vshrl.u32 %v12993_v19, 16 }
 0x35a   : > { %3710 = vrot.lane.b32.xlu1 %v10434_v3, %s11007_s15  ;;  %16864 = vst [vmem:[#allocation36_spill] sm:$0xff] %v13035_v44  ;;  %v2588_v40 = vrot.slane %v2581_v35, %v16772_v10  ;;  %3706 = vrot.lane.b32.xlu0 %v10433_v63, %s11006_s12  ;;  %v3646_v37 = vshrl.u32 %v12919_v39, 16  ;;  %v13042_v15 = vrot.slane %v2874_v61, %v16784_v46  ;;  %v3645_v39 = vshrl.u32 %v12940_v30, 16 }
 0x35b   : > { %v13045_v41 = vrot.slane %v2907_v22, %v16784_v46  ;;  %v10389_v17 = vcombine.low %v2939_v53, %v2939_v53  ;;  %v2621_v21 = vpack.i.b16 %v13011_v60, %v13031_v29  ;;  %v10428_v4 = vcombine.low %v3635_v48, %v3635_v48 }
 0x35c   : > { %v13047_v57 = vpop.permute.xlu1 %3392  ;;  %v13049_v11 = vpop.permute.xlu0 %2367  ;;  %v3959_v35 = vpack.i.b16 %v3958_v55, %v3957_v0  ;;  %v3928_v12 = vcombine.high %v12989_v59, %v16738_v36  ;;  %v13057_v61 = vrot.slane %v2908_v52, %v16784_v46  ;;  %v13060_v22 = vrot.slane %v2805_v42, %v16784_v46 }
 0x35d   : > { %16865 = vst [vmem:[#allocation38_spill] sm:$0xff] %v13045_v41  ;;  %16866 = vst [vmem:[#allocation41_spill] sm:$0xff] %v13047_v57  ;;  %v2839_v3 = vcombine.low %v12885_v9, %v12899_v62  ;;  %v2555_v53 = vcombine.low %v12894_v20, %v13028_v54  ;;  %v2556_v6 = vcombine.high %v12894_v20, %v13028_v54  ;;  %v3658_v9 = vshrl.u32 %v12951_v27, 16 }
 0x35e   : > { %16867 = vst [vmem:[#allocation42_spill] sm:$0xff] %v13060_v22  ;;  %2987 = vrot.lane.b32.xlu1 %v10389_v17, %s11003_s27  ;;  %v2589_v63 = vcombine.low %v2580_v18, %v2588_v40  ;;  %3686 = vrot.lane.b32.xlu0 %v10428_v4, %s11009_s17  ;;  %v3894_v30 = vcombine.high %v12993_v19, %v16738_v36  ;;  %v3969_v52 = vshrl.u32 %v12852_v33, 16  ;;  %v3970_v0 = vshrl.u32 %v12836_v1, 16 }
 0x35f   : > { %v3647_v48 = vpack.i.b16 %v3646_v37, %v3645_v39  ;;  %v10375_v62 = vcombine.low %v2621_v21, %v2621_v21  ;;  %v2590_v17 = vcombine.high %v2580_v18, %v2588_v40  ;;  %v10443_v20 = vcombine.low %v3959_v35, %v3959_v35 }
 0x360   : > { %v13072_v42 = vpop.permute.xlu1 %3368  ;;  %v13074_v55 = vpop.permute.xlu0 %2371  ;;  %v3962_v54 = vpack.i.b16 %v3928_v12, %v3894_v30  ;;  %v3940_v4 = vshrl.u32 %v12810_v45, 16  ;;  %v13081_v10 = vrot.slane %v2839_v3, %v16784_v46  ;;  %v13084_v37 = vrot.slane %v2555_v53, %v16784_v46 }
 0x361   : > { %16868 = vst [vmem:[#allocation45_spill] sm:$0xff] %v13072_v42  ;;  %v3657_v21 = vshrl.u32 %v12968_v49, 16  ;;  %v13088_v27 = vpack.i.b16 %v3970_v0, %v3969_v52  ;;  %v2487_v39 = vcombine.low %v12971_v16, %v12963_v58  ;;  %v2521_v18 = vcombine.low %v12922_v28, %v12943_v56 }
 0x362   : > { %16869 = vst [vmem:[#allocation46_spill] sm:$0xff] %v13081_v10  ;;  %16870 = vst [vmem:[#allocation49_spill] sm:$0xff] %v13084_v37  ;;  %2669 = vrot.lane.b32.xlu1 %v10375_v62, %s11003_s27  ;;  %4008 = vrot.lane.b32.xlu0 %v10443_v20, %s11004_s30  ;;  %v10431_v45 = vcombine.low %v3647_v48, %v3647_v48  ;;  %v3939_v40 = vshrl.u32 %v12822_v25, 16  ;;  %v3964_v53 = vshrl.u32 %v3928_v12, 16  ;;  %v3963_v48 = vshrl.u32 %v3894_v30, 16 }
 0x363   : > { %v3659_v3 = vpack.i.b16 %v3658_v9, %v3657_v21  ;;  %v3895_v49 = vcombine.high %v12852_v33, %v16738_v36  ;;  %v3929_v62 = vcombine.high %v12836_v1, %v16738_v36  ;;  %v13103_v58 = vrot.slane %v2589_v63, %v16784_v46 }
 0x364   : > { %v13096_v35 = vpop.permute.xlu1 %2351  ;;  %v13106_v28 = vrot.slane %v2590_v17, %v16784_v46  ;;  %v13108_v56 = vpop.permute.xlu0 %2343  ;;  %v10444_v16 = vcombine.low %v3962_v54, %v3962_v54  ;;  %v3941_v25 = vpack.i.b16 %v3940_v4, %v3939_v40  ;;  %v13114_v52 = vrot.slane %v2487_v39, %v16784_v46 }
 0x365   : > { %16871 = vst [vmem:[#allocation48_spill] sm:$0xff] %v13103_v58  ;;  %v13111_v12 = vpack.i.b16 %v3929_v62, %v3895_v49  ;;  %v3975_v9 = vshrl.u32 %v3895_v49, 16  ;;  %v3976_v33 = vshrl.u32 %v3929_v62, 16  ;;  %v13117_v1 = vrot.slane %v2521_v18, %v16784_v46 }
 0x366   : > { %3698 = vrot.lane.b32.xlu1 %v10431_v45, %s11008_s16  ;;  %16872 = vst [vmem:[#allocation54_spill] sm:$0xff] %v13114_v52  ;;  %4012 = vrot.lane.b32.xlu0 %v10444_v16, %s11005_s11  ;;  %v2953_v63 = vshrl.u32 %v13045_v41, 16  ;;  %v10435_v30 = vcombine.low %v3659_v3, %v3659_v3  ;;  %v3965_v20 = vpack.i.b16 %v3964_v53, %v3963_v48  ;;  %v2952_v3 = vshrl.u32 %v13035_v44, 16 }
 0x367   : > { %16873 = vst [vmem:[#allocation47_spill] sm:$0xff] %v13117_v1  ;;  %v13125_v54 = vpack.i.b16 %v3976_v33, %v3975_v9  ;;  %v10438_v39 = vcombine.low %v3941_v25, %v3941_v25  ;;  %v2963_v18 = vpack.i.b16 %v13057_v61, %v13042_v15  ;;  %v13144_v62 = vrot.slane %v2556_v6, %v16784_v46 }
 0x368   : > { %v13123_v17 = vpop.permute.xlu1 %2339  ;;  %v13129_v21 = vpop.permute.xlu0 %2383  ;;  %v10445_v9 = vcombine.low %v3965_v20, %v3965_v20  ;;  %v2954_v33 = vpack.i.b16 %v2953_v63, %v2952_v3  ;;  %v2928_v25 = vshrl.u32 %v13060_v22, 16  ;;  %v13167_v63 = vcombine.high %v13035_v44, %v16738_v36 }
 0x369   : > { %v10396_v4 = vcombine.low %v2963_v18, %v2963_v18  ;;  %v2645_v6 = vpack.i.b16 %v13106_v28, %v13144_v62  ;;  %v2635_v49 = vshrl.u32 %v13103_v58, 16  ;;  %v13178_v45 = vcombine.high %v13081_v10, %v16738_v36 }
 0x36a   : > { %3714 = vrot.lane.b32.xlu1 %v10435_v30, %s11009_s17  ;;  %3988 = vrot.lane.b32.xlu0 %v10438_v39, %s11008_s16  ;;  %v2929_v30 = vshrl.u32 %v13081_v10, 16  ;;  %v13160_v39 = vcombine.high %v13045_v41, %v16738_v36  ;;  %v10393_v18 = vcombine.low %v2954_v33, %v2954_v33  ;;  %v2611_v0 = vshrl.u32 %v13117_v1, 16 }
 0x36b   : > { %v10382_v16 = vcombine.low %v2645_v6, %v2645_v6  ;;  %v13196_v59 = vcombine.high %v13103_v58, %v16738_v36  ;;  %v13209_v43 = vcombine.high %v13117_v1, %v16738_v36  ;;  %v13219_v10 = vcombine.high %v13114_v52, %v16738_v36 }
 0x36c   : > { %v13151_v48 = vpop.permute.xlu1 %2355  ;;  %v13154_v40 = vpop.permute.xlu0 %2387  ;;  %v2930_v3 = vpack.i.b16 %v2929_v30, %v2928_v25  ;;  %v13185_v25 = vcombine.high %v13060_v22, %v16738_v36  ;;  %v2941_v1 = vshrl.u32 %v12978_v31, 16  ;;  %v2623_v14 = vshrl.u32 %v13011_v60, 16 }
 0x36d   : > { %v2641_v13 = vshrl.u32 %v13196_v59, 16 }
 0x36e   : > { %4016 = vrot.lane.b32.xlu1 %v10445_v9, %s11008_s16  ;;  %3015 = vrot.lane.b32.xlu0 %v10396_v4, %s11003_s27  ;;  %v2957_v9 = vpack.i.b16 %v13160_v39, %v13167_v63  ;;  %v2634_v4 = vshrl.u32 %v13084_v37, 16  ;;  %v10386_v30 = vcombine.low %v2930_v3, %v2930_v3 }
 0x370   : > { %v13169_v20 = vpop.permute.xlu1 %2359  ;;  %v13172_v53 = vpop.permute.xlu0 %2391  ;;  %v2636_v6 = vpack.i.b16 %v2635_v49, %v2634_v4  ;;  %v10394_v19 = vcombine.low %v2957_v9, %v2957_v9  ;;  %v13203_v49 = vcombine.high %v13084_v37, %v16738_v36 }
 0x371   : > { %16874 = vst [vmem:[#allocation50_spill] sm:$0xff] %v13169_v20 }
 0x372   : > { %3003 = vrot.lane.b32.xlu1 %v10393_v18, %s11004_s30  ;;  %2697 = vrot.lane.b32.xlu0 %v10382_v16, %s11003_s27  ;;  %v2933_v18 = vpack.i.b16 %v13178_v45, %v13185_v25  ;;  %v2610_v16 = vshrl.u32 %v13114_v52, 16  ;;  %v10379_v9 = vcombine.low %v2636_v6, %v2636_v6  ;;  %v2924_v52 = vcombine.high %v13057_v61, %v16738_v36 }
 0x374   : > { %v13187_v33 = vpop.permute.xlu1 %2375  ;;  %v13190_v46 = vpop.permute.xlu0 %2363  ;;  %v2612_v4 = vpack.i.b16 %v2611_v0, %v2610_v16  ;;  %v10387_v22 = vcombine.low %v2933_v18, %v2933_v18  ;;  %v2964_v0 = vshrl.u32 %v13042_v15, 16  ;;  %v2615_v18 = vpack.i.b16 %v13209_v43, %v13219_v10 }
 0x375   : > { %16875 = vst [vmem:[#allocation67_spill] sm:$0xff] %v13190_v46 }
 0x376   : > { %2975 = vrot.lane.b32.xlu1 %v10386_v30, %s11004_s30  ;;  %3007 = vrot.lane.b32.xlu0 %v10394_v19, %s11005_s11  ;;  %v2639_v30 = vpack.i.b16 %v13196_v59, %v13203_v49  ;;  %v2965_v19 = vshrl.u32 %v13057_v61, 16  ;;  %v10372_v16 = vcombine.low %v2612_v4, %v2612_v4  ;;  %v2890_v4 = vcombine.high %v13042_v15, %v16738_v36 }
 0x377   : > { %v10373_v58 = vcombine.low %v2615_v18, %v2615_v18  ;;  %v2646_v15 = vshrl.u32 %v13144_v62, 16 }
 0x378   : > { %v13205_v3 = vpop.permute.xlu1 %2347  ;;  %v13211_v7 = vpop.permute.xlu0 %1544  ;;  %v10380_v41 = vcombine.low %v2639_v30, %v2639_v30  ;;  %v13241_v30 = vcombine.high %v12978_v31, %v16738_v36 }
 0x37a   : > { %2685 = vrot.lane.b32.xlu1 %v10379_v9, %s11004_s30  ;;  %2979 = vrot.lane.b32.xlu0 %v10387_v22, %s11005_s11  ;;  %v2966_v9 = vpack.i.b16 %v2965_v19, %v2964_v0  ;;  %v2940_v22 = vshrl.u32 %v12996_v2, 16  ;;  %v2969_v0 = vpack.i.b16 %v2924_v52, %v2890_v4 }
 0x37c   : > { %v13223_v6 = vpop.permute.xlu1 %1572  ;;  %v13228_v44 = vpop.permute.xlu0 %1890  ;;  %v2942_v57 = vpack.i.b16 %v2941_v1, %v2940_v22  ;;  %v10397_v61 = vcombine.low %v2966_v9, %v2966_v9  ;;  %v13256_v9 = vcombine.high %v13106_v28, %v16738_v36  ;;  %v10398_v24 = vcombine.low %v2969_v0, %v2969_v0 }
 0x37d   : > { %v13271_v0 = vcombine.high %v13011_v60, %v16738_v36 }
 0x37e   : > { %2657 = vrot.lane.b32.xlu1 %v10372_v16, %s11004_s30  ;;  %2689 = vrot.lane.b32.xlu0 %v10380_v41, %s11005_s11  ;;  %v2647_v16 = vshrl.u32 %v13106_v28, 16  ;;  %v2822_v41 = vcombine.high %v12996_v2, %v16738_v36  ;;  %v10390_v18 = vcombine.low %v2942_v57, %v2942_v57  ;;  %v2572_v2 = vcombine.high %v13144_v62, %v16738_v36 }
 0x37f   : > { %v2622_v57 = vshrl.u32 %v13031_v29, 16  ;;  %v2640_v62 = vshrl.u32 %v13203_v49, 16  ;;  %v2970_v49 = vshrl.u32 %v2890_v4, 16 }
 0x380   : > { %v13237_v37 = vpop.permute.xlu1 %1862  ;;  %v13243_v19 = vpop.permute.xlu0 %1560  ;;  %v2945_v31 = vpack.i.b16 %v13241_v30, %v2822_v41  ;;  %v2651_v28 = vpack.i.b16 %v13256_v9, %v2572_v2 }
 0x381   : > { %16876 = vst [vmem:[#allocation56_spill] sm:$0xff] %v13237_v37  ;;  %v2935_v37 = vshrl.u32 %v13178_v45, 16 }
 0x382   : > { %2661 = vrot.lane.b32.xlu1 %v10373_v58, %s11005_s11  ;;  %3019 = vrot.lane.b32.xlu0 %v10397_v61, %s11006_s12  ;;  %v2648_v58 = vpack.i.b16 %v2647_v16, %v2646_v15  ;;  %v10391_v42 = vcombine.low %v2945_v31, %v2945_v31  ;;  %v10384_v60 = vcombine.low %v2651_v28, %v2651_v28 }
 0x384   : > { %v13251_v1 = vpop.permute.xlu1 %1532  ;;  %v13258_v22 = vpop.permute.xlu0 %1564  ;;  %v10383_v15 = vcombine.low %v2648_v58, %v2648_v58 }
 0x386   : > { %2991 = vrot.lane.b32.xlu1 %v10390_v18, %s11006_s12  ;;  %3023 = vrot.lane.b32.xlu0 %v10398_v24, %s11007_s15  ;;  %v2624_v18 = vpack.i.b16 %v2623_v14, %v2622_v57  ;;  %v13279_v24 = vcombine.high %v13031_v29, %v16738_v36  ;;  %v2959_v14 = vshrl.u32 %v13160_v39, 16  ;;  %v2971_v57 = vshrl.u32 %v2924_v52, 16 }
 0x387   : > { %v2958_v29 = vshrl.u32 %v13167_v63, 16  ;;  %v2934_v52 = vshrl.u32 %v13185_v25, 16  ;;  %v2946_v63 = vshrl.u32 %v2822_v41, 16  ;;  %v2652_v25 = vshrl.u32 %v2572_v2, 16 }
 0x388   : > { %v13266_v61 = vpop.permute.xlu1 %1576  ;;  %v13273_v16 = vpop.permute.xlu0 %1536  ;;  %v2627_v26 = vpack.i.b16 %v13271_v0, %v13279_v24  ;;  %v10376_v59 = vcombine.low %v2624_v18, %v2624_v18  ;;  %v2629_v2 = vshrl.u32 %v13271_v0, 16  ;;  %v3827_v0 = vcombine.high %v12645_v8, %v16738_v36 }
 0x389   : > { %v2960_v46 = vpack.i.b16 %v2959_v14, %v2958_v29 }
 0x38a   : > { %2995 = vrot.lane.b32.xlu1 %v10391_v42, %s11007_s15  ;;  %2701 = vrot.lane.b32.xlu0 %v10383_v15, %s11006_s12  ;;  %v2642_v42 = vpack.i.b16 %v2641_v13, %v2640_v62  ;;  %v10377_v28 = vcombine.low %v2627_v26, %v2627_v26  ;;  %v2947_v13 = vshrl.u32 %v13241_v30, 16  ;;  %v2936_v26 = vpack.i.b16 %v2935_v37, %v2934_v52 }
 0x38b   : > { %v10395_v18 = vcombine.low %v2960_v46, %v2960_v46  ;;  %v2617_v62 = vshrl.u32 %v13209_v43, 16  ;;  %v2616_v30 = vshrl.u32 %v13219_v10, 16  ;;  %v2628_v52 = vshrl.u32 %v13279_v24, 16 }
 0x38c   : > { %v13283_v31 = vpop.permute.xlu1 %1548  ;;  %v13288_v58 = vpop.permute.xlu0 %1580  ;;  %v10381_v39 = vcombine.low %v2642_v42, %v2642_v42  ;;  %v2948_v14 = vpack.i.b16 %v2947_v13, %v2946_v63  ;;  %v10388_v42 = vcombine.low %v2936_v26, %v2936_v26  ;;  %v3861_v13 = vcombine.high %v12631_v38, %v16738_v36  ;;  %v16878_v63 = vld [vmem:[#allocation66_spill] sm:$0xff] }
 0x38d   : > { %16877 = vst [vmem:[#allocation53_spill] sm:$0xff] %v13288_v58  ;;  %v2972_v58 = vpack.i.b16 %v2971_v57, %v2970_v49  ;;  %v2618_v46 = vpack.i.b16 %v2617_v62, %v2616_v30  ;;  %v10447_v30 = vcombine.low %v13088_v27, %v13088_v27 }
 0x38e   : > { %2705 = vrot.lane.b32.xlu1 %v10384_v60, %s11007_s15  ;;  %2673 = vrot.lane.b32.xlu0 %v10376_v59, %s11006_s12  ;;  %v2653_v59 = vshrl.u32 %v13256_v9, 16  ;;  %v10392_v43 = vcombine.low %v2948_v14, %v2948_v14  ;;  %v3945_v9 = vshrl.u32 %v12645_v8, 16  ;;  %v16882_v14 = vld [vmem:[#allocation72_spill] sm:$0xff] }
 0x38f   : > { %v10399_v60 = vcombine.low %v2972_v58, %v2972_v58  ;;  %v3946_v58 = vshrl.u32 %v12631_v38, 16  ;;  %v10374_v29 = vcombine.low %v2618_v46, %v2618_v46 }
 0x390   : > { %v13293_v15 = vpop.permute.xlu1 %1552  ;;  %v13296_v20 = vpop.permute.xlu0 %1882  ;;  %v2654_v57 = vpack.i.b16 %v2653_v59, %v2652_v25  ;;  %v2630_v25 = vpack.i.b16 %v2629_v2, %v2628_v52 }
 0x392   : > { %2677 = vrot.lane.b32.xlu1 %v10377_v28, %s11007_s15  ;;  %2693 = vrot.lane.b32.xlu0 %v10381_v39, %s11008_s16  ;;  %v10385_v28 = vcombine.low %v2654_v57, %v2654_v57  ;;  %v3947_v39 = vpack.i.b16 %v3946_v58, %v3945_v9  ;;  %v3950_v58 = vpack.i.b16 %v3861_v13, %v3827_v0  ;;  %v3952_v9 = vshrl.u32 %v3861_v13, 16 }
 0x394   : > { %v13302_v4 = vpop.permute.xlu1 %1878  ;;  %v13305_v45 = vpop.permute.xlu0 %1894  ;;  %v10440_v8 = vcombine.low %v3947_v39, %v3947_v39  ;;  %v16890_v39 = vld [vmem:[#allocation74_spill] sm:$0xff] }
 0x396   : > { %3011 = vrot.lane.b32.xlu1 %v10395_v18, %s11008_s16  ;;  %3027 = vrot.lane.b32.xlu0 %v10399_v60, %s11009_s17  ;;  %v16879_v18 = vld [vmem:[#allocation65_spill] sm:$0xff]  ;;  %v16881_v60 = vld [vmem:[#allocation76_spill] sm:$0xff] }
 0x397   : > { %v16880_v26 = vpack.i.b16 %v16878_v63, %v16879_v18  ;;  %v1484_v59 = vpack.i.b16 %v16882_v14, %v16881_v60 }
 0x398   : > { %v13311_v41 = vpop.permute.xlu1 %1850  ;;  %v13313_v37 = vpop.permute.xlu0 %1866 }
 0x399   : > { %v1269_v62 = vsel %vm1246_vm2, %v16880_v26, %v12693_v23  ;;  %v16883_v23 = vld [vmem:[#allocation71_spill] sm:$0xff]  ;;  %v1588_v52 = vsel %vm1246_vm2, %v1484_v59, %v13251_v1  ;;  %v16892_v59 = vld [vmem:[#allocation25_spill] sm:$0xff] }
 0x39a   : > { %2983 = vrot.lane.b32.xlu1 %v10388_v42, %s11008_s16  ;;  %2999 = vrot.lane.b32.xlu0 %v10392_v43, %s11009_s17  ;;  %v1271_v38 = vsel %vm530_vm4, %v1269_v62, %v12706_v5  ;;  %v16884_v42 = vld [vmem:[#allocation70_spill] sm:$0xff]  ;;  %v16886_v5 = vld [vmem:[#allocation61_spill] sm:$0xff] }
 0x39b   : > { %v16885_v46 = vpack.i.b16 %v16883_v23, %v16884_v42  ;;  %v1273_v27 = vsel %vm1252_vm5, %v1271_v38, %v12777_v32  ;;  %v1590_v32 = vsel %vm530_vm4, %v1588_v52, %v13273_v16  ;;  %v10378_v38 = vcombine.low %v2630_v25, %v2630_v25  ;;  %v16894_v23 = vld [vmem:[#allocation12_spill] sm:$0xff] }
 0x39c   : > { %v13319_v10 = vpop.permute.xlu1 %1854  ;;  %v13322_v49 = vpop.permute.xlu0 %3992  ;;  %v10441_v16 = vcombine.low %v3950_v58, %v3950_v58  ;;  %v16898_v58 = vld [vmem:[#allocation68_spill] sm:$0xff] }
 0x39d   : > { %v2410_v43 = vsel %vm1246_vm2, %v16885_v46, %v13049_v11  ;;  %v16889_v11 = vld [vmem:[#allocation75_spill] sm:$0xff] }
 0x39e   : > { %2665 = vrot.lane.b32.xlu1 %v10374_v29, %s11008_s16  ;;  %2709 = vrot.lane.b32.xlu0 %v10385_v28, %s11009_s17  ;;  %v16887_v29 = vld [vmem:[#allocation60_spill] sm:$0xff]  ;;  %v2412_v2 = vsel %vm530_vm4, %v2410_v43, %v13074_v55  ;;  %v16891_v13 = vpack.i.b16 %v16889_v11, %v16890_v39  ;;  %v3951_v55 = vshrl.u32 %v3827_v0, 16  ;;  %v16895_v46 = vld [vmem:[#allocation79_spill] sm:$0xff]  ;;  %v16896_v43 = vld [vmem:[#allocation77_spill] sm:$0xff] }
 0x39f   : > { %v16888_v28 = vpack.i.b16 %v16886_v5, %v16887_v29  ;;  %v16902_v39 = vld [vmem:[#allocation16_spill] sm:$0xff] }
 0x3a0   : > { %v13340_v24 = vpop.permute.xlu1 %1898  ;;  %v1541_v57 = vpop.permute.xlu0 %1540  ;;  %v2395_v18 = vsel %vm1246_vm2, %v16891_v13, %v13123_v17  ;;  %v1275_v17 = vsel %vm1255_vm6, %v1273_v27, %v12651_v51  ;;  %v3953_v14 = vpack.i.b16 %v3952_v9, %v3951_v55 }
 0x3a1   : > { %v1249_v63 = vsel %vm1246_vm2, %v16888_v28, %v12674_v47  ;;  %v2414_v47 = vsel %vm1252_vm5, %v2412_v2, %v13187_v33  ;;  %v1592_v26 = vsel %vm1252_vm5, %v1590_v32, %v1541_v57  ;;  %v16900_v2 = vld [vmem:[#allocation10_spill] sm:$0xff] }
 0x3a2   : > { %4024 = vrot.lane.b32.xlu1 %v10447_v30, %s11006_s12  ;;  %3996 = vrot.lane.b32.xlu0 %v10440_v8, %s11006_s12  ;;  %v1251_v1 = vsel %vm530_vm4, %v1249_v63, %v12695_v34  ;;  %v2416_v0 = vsel %vm1255_vm6, %v2414_v47, %v16892_v59  ;;  %v2397_v34 = vsel %vm530_vm4, %v2395_v18, %v13108_v56  ;;  %v4106_v32 = vld [vmem:[%s16568_s5] sm:$0xf] }
 0x3a3   : > { %v1254_v33 = vsel %vm1252_vm5, %v1251_v1, %v12804_v50  ;;  %v2399_v30 = vsel %vm1252_vm5, %v2397_v34, %v13205_v3  ;;  %v1594_v51 = vsel %vm1255_vm6, %v1592_v26, %v13211_v7  ;;  %v16893_v50 = vld [vmem:[#allocation81_spill] sm:$0xff]  ;;  %v1826_v56 = vpack.i.b16 %v16896_v43, %v16895_v46  ;;  %v16903_v26 = vld [vmem:[#allocation19_spill] sm:$0xff]  ;;  %v16908_v46 = vld [vmem:[#allocation22_spill] sm:$0xff] }
 0x3a4   : > { %v13374_v62 = vpop.permute.xlu1 %1870  ;;  %v1585_v60 = vpop.permute.xlu0 %1584  ;;  %v1277_v25 = vsel %vm1258_vm7, %v1275_v17, %v16893_v50  ;;  %v1257_v42 = vsel %vm1255_vm6, %v1254_v33, %v16894_v23  ;;  %v10448_v8 = vcombine.low %v13111_v12, %v13111_v12  ;;  %v2418_v3 = vsel %vm1258_vm7, %v2416_v0, %v13129_v21  ;;  %v16897_v7 = vld [vmem:[#allocation73_spill] sm:$0xff]  ;;  %v16899_v12 = vld [vmem:[#allocation20_spill] sm:$0xff] }
 0x3a5   : > { %v1508_v9 = vpack.i.b16 %v16898_v58, %v16897_v7  ;;  %v10442_v29 = vcombine.low %v3953_v14, %v3953_v14  ;;  %v2401_v28 = vsel %vm1255_vm6, %v2399_v30, %v13096_v35  ;;  %v1921_v63 = vsel %vm1246_vm2, %v1826_v56, %v13302_v4  ;;  %v16901_v4 = vld [vmem:[#allocation14_spill] sm:$0xff]  ;;  %v16905_v34 = vld [vmem:[#allocation53_spill] sm:$0xff]  ;;  %v16909_v58 = vld [vmem:[#allocation67_spill] sm:$0xff] }
 0x3a6   : > { %2681 = vrot.lane.b32.xlu1 %v10378_v38, %s11009_s17  ;;  %4000 = vrot.lane.b32.xlu0 %v10441_v16, %s11007_s15  ;;  %v1596_v27 = vsel %vm1258_vm7, %v1594_v51, %v13283_v31  ;;  %v1279_v21 = vsel %vm1261_vm10, %v1277_v25, %v16899_v12  ;;  %v1260_v52 = vsel %vm1258_vm7, %v1257_v42, %v16900_v2  ;;  %v16904_v14 = vld [vmem:[#allocation50_spill] sm:$0xff]  ;;  %v16906_v25 = vld [vmem:[#allocation56_spill] sm:$0xff]  ;;  %v16907_v42 = vld [vmem:[#allocation17_spill] sm:$0xff] }
 0x3a7   : > { %v1603_v11 = vsel %vm1246_vm2, %v1508_v9, %v13243_v19  ;;  %v2420_v35 = vsel %vm1261_vm10, %v2418_v3, %v13154_v40  ;;  %v1802_v13 = vpack.i.b16 %v16902_v39, %v16901_v4  ;;  %v10449_v47 = vcombine.low %v13125_v54, %v13125_v54  ;;  %v16910_v4 = vld [vmem:[#allocation13_spill] sm:$0xff]  ;;  %v16911_v39 = vld [vmem:[#allocation11_spill] sm:$0xff] }
 0x3a8   : > { %v13396_v57 = vpop.permute.xlu1 %3674  ;;  %v1557_v5 = vpop.permute.xlu0 %1556  ;;  %v1605_v31 = vsel %vm530_vm4, %v1603_v11, %v13258_v22  ;;  %v2403_v19 = vsel %vm1258_vm7, %v2401_v28, %v13151_v48  ;;  %v1598_v40 = vsel %vm1261_vm10, %v1596_v27, %v13293_v15  ;;  %v1923_v22 = vsel %vm530_vm4, %v1921_v63, %v13296_v20 }
 0x3a9   : > { %v1263_v38 = vsel %vm1261_vm10, %v1260_v52, %v16903_v26  ;;  %v1600_v54 = vsel %vm1264_vm12, %v1598_v40, %v1557_v5  ;;  %v1906_v48 = vsel %vm1246_vm2, %v1802_v13, %v13311_v41  ;;  %v2422_v16 = vsel %vm1264_vm12, %v2420_v35, %v13172_v53  ;;  %v16917_v26 = vld [vmem:[#allocation31_spill] sm:$0xff] }
 0x3aa   : > { %4028 = vrot.lane.b32.xlu1 %v10448_v8, %s11007_s15  ;;  %4004 = vrot.lane.b32.xlu0 %v10442_v29, %s11009_s17  ;;  %v1908_v59 = vsel %vm530_vm4, %v1906_v48, %v13319_v10  ;;  %v4066_v30 = vrot.slane %v1600_v54, 4  ;;  %v1266_v43 = vsel %vm1264_vm12, %v1263_v38, %v16908_v46  ;;  %v4071_v7 = vrot.slane %v2422_v16, 4  ;;  %v16919_v16 = vld [vmem:[#allocation9_spill] sm:$0xff] }
 0x3ab   : > { %v16912_v13 = vpack.i.b16 %v16910_v4, %v16911_v39  ;;  %v16933_v4 = vld [vmem:[#allocation39_spill] sm:$0xff] }
 0x3ac   : > { %v1569_v18 = vpop.permute.xlu1 %1568  ;;  %v1887_v1 = vpop.permute.xlu0 %1886  ;;  %v4082_v29 = vsel %vm4080_vm13, %v1266_v43, %v4066_v30  ;;  %v16927_v43 = vld [vmem:[#allocation45_spill] sm:$0xff] }
 0x3ad   : > { %v1607_v55 = vsel %vm1252_vm5, %v1605_v31, %v1569_v18  ;;  %v1925_v33 = vsel %vm1252_vm5, %v1923_v22, %v1887_v1 }
 0x3ae   : > { %v1609_v17 = vsel %vm1255_vm6, %v1607_v55, %v13223_v6  ;;  %4032 = vrot.lane.b32.xlu1 %v10449_v47, %s11009_s17  ;;  %v1927_v20 = vsel %vm1255_vm6, %v1925_v33, %v13228_v44  ;;  %4109 = vperm.xlu0 %10987, %v4106_v32   ;;  %v2405_v6 = vsel %vm1261_vm10, %v2403_v19, %v16904_v14  ;;  %v16913_v47 = vld [vmem:[#allocation21_spill] sm:$0xff]  ;;  %v16914_v32 = vld [vmem:[#allocation63_spill] sm:$0xff]  ;;  %v16918_v33 = vld [vmem:[#allocation26_spill] sm:$0xff] }
 0x3af   : > { %v1611_v15 = vsel %vm1258_vm7, %v1609_v17, %v13266_v61  ;;  %v1929_v41 = vsel %vm1258_vm7, %v1927_v20, %v13305_v45  ;;  %v1281_v45 = vsel %vm1264_vm12, %v1279_v21, %v16907_v42  ;;  %v2407_v9 = vsel %vm1264_vm12, %v2405_v6, %v16909_v58  ;;  %v16915_v19 = vld [vmem:[#allocation59_spill] sm:$0xff] }
 0x3b0   : > { %v1859_v0 = vpop.permute.xlu1 %1858  ;;  %v1613_v61 = vsel %vm1261_vm10, %v1611_v15, %v16905_v34  ;;  %v1931_v53 = vsel %vm1261_vm10, %v1929_v41, %v13340_v24  ;;  %v1903_v51 = vpop.permute.xlu0 %1902  ;;  %v16916_v40 = vpack.i.b16 %v16914_v32, %v16915_v19  ;;  %v16921_v41 = vld [vmem:[#allocation64_spill] sm:$0xff]  ;;  %v16922_v34 = vld [vmem:[#allocation62_spill] sm:$0xff]  ;;  %v16926_v42 = vld [vmem:[#allocation27_spill] sm:$0xff] }
 0x3b1   : > { %v1910_v44 = vsel %vm1252_vm5, %v1908_v59, %v1859_v0  ;;  %v1615_v50 = vsel %vm1264_vm12, %v1613_v61, %v1585_v60  ;;  %v1933_v56 = vsel %vm1264_vm12, %v1931_v53, %v1903_v51  ;;  %v16920_v0 = vld [vmem:[#allocation34_spill] sm:$0xff]  ;;  %v16923_v61 = vpack.i.b16 %v16921_v41, %v16922_v34  ;;  %v16929_v58 = vld [vmem:[#allocation23_spill] sm:$0xff] }
 0x3b2   : > { %v1912_v23 = vsel %vm1255_vm6, %v1910_v44, %v16906_v25  ;;  %v4067_v10 = vrot.slane %v1615_v50, 4  ;;  %v4091_v63 = vsel %vm4080_vm13, %v1933_v56, %v4071_v7  ;;  %v3400_v55 = vsel %vm1246_vm2, %v16916_v40, %v16913_v47  ;;  %v16924_v44 = vld [vmem:[#allocation35_spill] sm:$0xff]  ;;  %v16925_v25 = vld [vmem:[#allocation33_spill] sm:$0xff] }
 0x3b3   : > { %v1914_v8 = vsel %vm1258_vm7, %v1912_v23, %v13313_v37  ;;  %v4070_v37 = vrot.slane %v2407_v9, 4  ;;  %v3402_v38 = vsel %vm530_vm4, %v3400_v55, %v16917_v26  ;;  %v3415_v30 = vsel %vm1246_vm2, %v16923_v61, %v16920_v0  ;;  %v16930_v9 = vld [vmem:[#allocation29_spill] sm:$0xff] }
 0x3b4   : > { %v3663_v24 = vpop.permute.xlu1 %3662  ;;  %v1916_v60 = vsel %vm1261_vm10, %v1914_v8, %v13374_v62  ;;  %v4085_v3 = vsel %vm4080_vm13, %v1281_v45, %v4067_v10  ;;  %v1875_v5 = vpop.permute.xlu0 %1874  ;;  %v3404_v48 = vsel %vm1252_vm5, %v3402_v38, %v16918_v33  ;;  %v3417_v23 = vsel %vm530_vm4, %v3415_v30, %v16925_v25  ;;  %v16937_v25 = vld [vmem:[#allocation49_spill] sm:$0xff] }
 0x3b5   : > { %4120 = vmatprep.subr.bf16.mxu0 %v4085_v3  ;;  %v1918_v28 = vsel %vm1264_vm12, %v1916_v60, %v1875_v5  ;;  %v3718_v18 = vsel %vm1246_vm2, %v16912_v13, %v3663_v24  ;;  %v3406_v14 = vsel %vm1255_vm6, %v3404_v48, %v16919_v16  ;;  %v16928_v24 = vld [vmem:[#allocation32_spill] sm:$0xff]  ;;  %v16931_v5 = vpack.i.b16 %v16929_v58, %v16930_v9 }
 0x3b6   : > { %4121 = vmatpush1.bf16.msra.mxu0 %v4082_v29  ;;  %v4088_v12 = vsel %vm4080_vm13, %v1918_v28, %v4070_v37  ;;  %v3408_v53 = vsel %vm1258_vm7, %v3406_v14, %v16924_v44  ;;  %v3419_v60 = vsel %vm1252_vm5, %v3417_v23, %v16928_v24  ;;  %v16932_v28 = vld [vmem:[#allocation28_spill] sm:$0xff] }
 0x3b7   : > { %4122 = vmatprep.subr.bf16.mxu0 %v4091_v63  ;;  %v3410_v45 = vsel %vm1261_vm10, %v3408_v53, %v16926_v42  ;;  %v3421_v63 = vsel %vm1255_vm6, %v3419_v60, %v16932_v28  ;;  %v16939_v42 = vld [vmem:[#allocation38_spill] sm:$0xff] }
 0x3b8   : > { %v13480_v27 = vpop.permute.xlu1 %3980  ;;  %v3667_v62 = vpop.permute.xlu0 %3666  ;;  %v3412_v56 = vsel %vm1264_vm12, %v3410_v45, %v16927_v43  ;;  %v3423_v39 = vsel %vm1258_vm7, %v3421_v63, %v16933_v4  ;;  %v16940_v45 = vld [vmem:[#allocation36_spill] sm:$0xff]  ;;  %v16942_v28 = vld [vmem:[#allocation46_spill] sm:$0xff] }
 0x3b9   : > { %v3720_v22 = vsel %vm530_vm4, %v3718_v18, %v3667_v62  ;;  %v16934_v18 = vld [vmem:[#allocation41_spill] sm:$0xff]  ;;  %v16943_v63 = vld [vmem:[#allocation42_spill] sm:$0xff] }
 0x3ba   : > { %4123 = vmatpush1.bf16.msra.mxu0 %v4088_v12 }
 0x3bc   : > { %v13483_v21 = vpop.permute.xlu1 %3984  ;;  %v3703_v2 = vpop.permute.xlu0 %3702 }
 0x3c0   : > { %v13485_v52 = vpop.permute.xlu1 %4020  ;;  %v3679_v11 = vpop.permute.xlu0 %3678 }
 0x3c4   : > { %v3691_v35 = vpop.permute.xlu1 %3690  ;;  %v3683_v31 = vpop.permute.xlu0 %3682 }
 0x3c5   : > { %v3733_v29 = vsel %vm1246_vm2, %v16931_v5, %v3691_v35  ;;  %v3425_v35 = vsel %vm1261_vm10, %v3423_v39, %v16934_v18 }
 0x3c8   : > { %v3671_v1 = vpop.permute.xlu1 %3670  ;;  %v3695_v17 = vpop.permute.xlu0 %3694 }
 0x3c9   : > { %v3722_v54 = vsel %vm1252_vm5, %v3720_v22, %v3671_v1  ;;  %v3735_v37 = vsel %vm530_vm4, %v3733_v29, %v3695_v17  ;;  %v16935_v22 = vld [vmem:[#allocation40_spill] sm:$0xff] }
 0x3ca   : > { %v3724_v15 = vsel %vm1255_vm6, %v3722_v54, %v13396_v57  ;;  %v3427_v1 = vsel %vm1264_vm12, %v3425_v35, %v16935_v22  ;;  %v16946_v22 = vld [vmem:[#allocation54_spill] sm:$0xff] }
 0x3cb   : > { %v3726_v59 = vsel %vm1258_vm7, %v3724_v15, %v3679_v11 }
 0x3cc   : > { %v3711_v20 = vpop.permute.xlu1 %3710  ;;  %v3707_v6 = vpop.permute.xlu0 %3706  ;;  %v3728_v57 = vsel %vm1261_vm10, %v3726_v59, %v3683_v31 }
 0x3d0   : > { %v13514_v51 = vpop.permute.xlu1 %2987  ;;  %v3687_v50 = vpop.permute.xlu0 %3686 }
 0x3d1   : > { %v3730_v10 = vsel %vm1264_vm12, %v3728_v57, %v3687_v50  ;;  %v16936_v50 = vld [vmem:[#allocation48_spill] sm:$0xff] }
 0x3d2   : > { %v4078_v46 = vrot.slane %v3730_v10, 4  ;;  %v16938_v23 = vpack.i.b16 %v16936_v50, %v16937_v25  ;;  %v16948_v50 = vld [vmem:[#allocation18_spill] sm:$0xff] }
 0x3d4   : > { %v13524_v8 = vpop.permute.xlu1 %2669  ;;  %v13528_v3 = vpop.permute.xlu0 %4008  ;;  %v13531_v7 = vsel %vm4080_vm13, %v3412_v56, %v4078_v46  ;;  %v16941_v46 = vpack.i.b16 %v16939_v42, %v16940_v45  ;;  %v16951_v45 = vld [vmem:[#allocation37_spill] sm:$0xff] }
 0x3d8   : > { %v3699_v62 = vpop.permute.xlu1 %3698  ;;  %v13541_v11 = vpop.permute.xlu0 %4012 }
 0x3d9   : > { %v3737_v12 = vsel %vm1252_vm5, %v3735_v37, %v3699_v62  ;;  %v16944_v37 = vpack.i.b16 %v16942_v28, %v16943_v63 }
 0x3da   : > { %v3739_v31 = vsel %vm1255_vm6, %v3737_v12, %v3703_v2 }
 0x3db   : > { %v3741_v13 = vsel %vm1258_vm7, %v3739_v31, %v3707_v6 }
 0x3dc   : > { %v3715_v47 = vpop.permute.xlu1 %3714  ;;  %v3743_v32 = vsel %vm1261_vm10, %v3741_v13, %v3711_v20  ;;  %v13551_v40 = vpop.permute.xlu0 %3988 }
 0x3dd   : > { %v3745_v19 = vsel %vm1264_vm12, %v3743_v32, %v3715_v47 }
 0x3de   : > { %v4079_v55 = vrot.slane %v3745_v19, 4 }
 0x3e0   : > { %v13555_v2 = vpop.permute.xlu1 %4016  ;;  %v13558_v26 = vsel %vm4080_vm13, %v3427_v1, %v4079_v55  ;;  %v3016_v38 = vpop.permute.xlu0 %3015  ;;  %v16945_v55 = vld [vmem:[#allocation47_spill] sm:$0xff] }
 0x3e1   : > { %v16947_v1 = vpack.i.b16 %v16945_v55, %v16946_v22 }
 0x3e4   : > { %v3004_v54 = vpop.permute.xlu1 %3003  ;;  %v2698_v17 = vpop.permute.xlu0 %2697 }
 0x3e5   : > { %v3046_v43 = vsel %vm1246_vm2, %v16941_v46, %v3004_v54  ;;  %v16952_v46 = vld [vmem:[#allocation30_spill] sm:$0xff] }
 0x3e8   : > { %v2976_v33 = vpop.permute.xlu1 %2975  ;;  %v3008_v48 = vpop.permute.xlu0 %3007 }
 0x3e9   : > { %v3048_v24 = vsel %vm530_vm4, %v3046_v43, %v3008_v48  ;;  %v3031_v62 = vsel %vm1246_vm2, %v16944_v37, %v2976_v33  ;;  %v16953_v43 = vpack.i.b16 %v16951_v45, %v16952_v46 }
 0x3ec   : > { %v2686_v15 = vpop.permute.xlu1 %2685  ;;  %v2980_v20 = vpop.permute.xlu0 %2979 }
 0x3ed   : > { %v2728_v10 = vsel %vm1246_vm2, %v16938_v23, %v2686_v15  ;;  %v3033_v4 = vsel %vm530_vm4, %v3031_v62, %v2980_v20 }
 0x3f0   : > { %v2658_v16 = vpop.permute.xlu1 %2657  ;;  %v2690_v14 = vpop.permute.xlu0 %2689 }
 0x3f1   : > { %v2730_v56 = vsel %vm530_vm4, %v2728_v10, %v2690_v14 }
 0x3f4   : > { %v2662_v6 = vpop.permute.xlu1 %2661  ;;  %v3020_v59 = vpop.permute.xlu0 %3019 }
 0x3f8   : > { %v2992_v0 = vpop.permute.xlu1 %2991  ;;  %v3024_v41 = vpop.permute.xlu0 %3023 }
 0x3fc   : > { %v2996_v34 = vpop.permute.xlu1 %2995  ;;  %v2702_v61 = vpop.permute.xlu0 %2701 }
 0x400   : > { %v2706_v30 = vpop.permute.xlu1 %2705  ;;  %v2674_v44 = vpop.permute.xlu0 %2673 }
 0x404   : > { %v2678_v53 = vpop.permute.xlu1 %2677  ;;  %v2694_v57 = vpop.permute.xlu0 %2693 }
 0x405   : > { %v2732_v60 = vsel %vm1252_vm5, %v2730_v56, %v2694_v57  ;;  %v4051_v56 = vsel %vm1246_vm2, %v16953_v43, %v13528_v3 }
 0x406   : > { %v2734_v12 = vsel %vm1255_vm6, %v2732_v60, %v2698_v17 }
 0x407   : > { %v2736_v19 = vsel %vm1258_vm7, %v2734_v12, %v2702_v61 }
 0x408   : > { %v3012_v58 = vpop.permute.xlu1 %3011  ;;  %v3028_v5 = vpop.permute.xlu0 %3027  ;;  %v2738_v20 = vsel %vm1261_vm10, %v2736_v19, %v2706_v30  ;;  %v16949_v30 = vld [vmem:[#allocation24_spill] sm:$0xff] }
 0x409   : > { %v3050_v9 = vsel %vm1252_vm5, %v3048_v24, %v3012_v58  ;;  %v16950_v25 = vpack.i.b16 %v16948_v50, %v16949_v30 }
 0x40a   : > { %v3052_v29 = vsel %vm1255_vm6, %v3050_v9, %v3016_v38  ;;  %v2713_v38 = vsel %vm1246_vm2, %v16947_v1, %v2658_v16 }
 0x40b   : > { %v3054_v31 = vsel %vm1258_vm7, %v3052_v29, %v3020_v59  ;;  %v2715_v17 = vsel %vm530_vm4, %v2713_v38, %v2662_v6  ;;  %v16954_v38 = vld [vmem:[#allocation57_spill] sm:$0xff] }
 0x40c   : > { %v3056_v39 = vsel %vm1261_vm10, %v3054_v31, %v3024_v41  ;;  %v2984_v13 = vpop.permute.xlu1 %2983  ;;  %v3000_v35 = vpop.permute.xlu0 %2999 }
 0x40d   : > { %v3035_v18 = vsel %vm1252_vm5, %v3033_v4, %v2984_v13  ;;  %v3058_v47 = vsel %vm1264_vm12, %v3056_v39, %v3028_v5 }
 0x40e   : > { %v3037_v32 = vsel %vm1255_vm6, %v3035_v18, %v13514_v51  ;;  %v4075_v48 = vrot.slane %v3058_v47, 4 }
 0x40f   : > { %v3039_v54 = vsel %vm1258_vm7, %v3037_v32, %v2992_v0 }
 0x410   : > { %v2666_v33 = vpop.permute.xlu1 %2665  ;;  %v2710_v14 = vpop.permute.xlu0 %2709  ;;  %v3041_v51 = vsel %vm1261_vm10, %v3039_v54, %v2996_v34  ;;  %v4036_v34 = vsel %vm1246_vm2, %v16950_v25, %v13480_v27  ;;  %v4053_v27 = vsel %vm530_vm4, %v4051_v56, %v13541_v11 }
 0x411   : > { %v2717_v15 = vsel %vm1252_vm5, %v2715_v17, %v2666_v33  ;;  %v2740_v41 = vsel %vm1264_vm12, %v2738_v20, %v2710_v14  ;;  %v3043_v6 = vsel %vm1264_vm12, %v3041_v51, %v3000_v35 }
 0x412   : > { %v2719_v59 = vsel %vm1255_vm6, %v2717_v15, %v13524_v8  ;;  %v4097_v16 = vsel %vm4080_vm13, %v2740_v41, %v4075_v48  ;;  %v4038_v8 = vsel %vm530_vm4, %v4036_v34, %v13483_v21  ;;  %v4074_v23 = vrot.slane %v3043_v6, 4 }
 0x413   : > { %4124 = vmatprep.subr.bf16.mxu0 %v4097_v16  ;;  %v2721_v57 = vsel %vm1258_vm7, %v2719_v59, %v2674_v44  ;;  %v4040_v44 = vsel %vm1252_vm5, %v4038_v8, %v13551_v40 }
 0x414   : > { %v4025_v0 = vpop.permute.xlu1 %4024  ;;  %v3997_v61 = vpop.permute.xlu0 %3996  ;;  %v2723_v42 = vsel %vm1261_vm10, %v2721_v57, %v2678_v53  ;;  %v4055_v53 = vsel %vm1252_vm5, %v4053_v27, %v13555_v2  ;;  %v4042_v58 = vsel %vm1255_vm6, %v4040_v44, %v13322_v49  ;;  %v16955_v57 = vld [vmem:[#allocation58_spill] sm:$0xff] }
 0x415   : > { %v4044_v3 = vsel %vm1258_vm7, %v4042_v58, %v3997_v61  ;;  %v4057_v5 = vsel %vm1255_vm6, %v4055_v53, %v13485_v52  ;;  %v4105_v52 = vld [vmem:[%s16567_s4] sm:$0x3] }
 0x416   : > { %v4059_v29 = vsel %vm1258_vm7, %v4057_v5, %v4025_v0 }
 0x418   : > { %v2682_v10 = vpop.permute.xlu1 %2681  ;;  %v4001_v60 = vpop.permute.xlu0 %4000 }
 0x419   : > { %v2725_v24 = vsel %vm1264_vm12, %v2723_v42, %v2682_v10  ;;  %v4046_v11 = vsel %vm1261_vm10, %v4044_v3, %v4001_v60 }
 0x41a   : > { %v4094_v21 = vsel %vm4080_vm13, %v2725_v24, %v4074_v23 }
 0x41b   : > { %4125 = vmatpush1.bf16.msra.mxu0 %v4094_v21 }
 0x41c   : > { %v4029_v9 = vpop.permute.xlu1 %4028  ;;  %4126 = vmatprep.subr.bf16.mxu0 %v13558_v26  ;;  %v4005_v40 = vpop.permute.xlu0 %4004 }
 0x41d   : > { %v4048_v28 = vsel %vm1264_vm12, %v4046_v11, %v4005_v40  ;;  %v4061_v2 = vsel %vm1261_vm10, %v4059_v29, %v4029_v9 }
 0x41e   : > { %v4116_v26 = vsel %vm4080_vm13, %v4048_v28, 0 }
 0x41f   : > { %4127 = vmatpush1.bf16.msra.mxu0 %v13531_v7 }
 0x420   : > { %v4033_v49 = vpop.permute.xlu1 %4032 }
 0x421   : > { %v4063_v63 = vsel %vm1264_vm12, %v4061_v2, %v4033_v49 }
 0x422   : > { %10450 = vmatprep.subr.msk.bf16.mxu0 %vm4080_vm13, %v4063_v63 }
 0x423   : > { %4129 = vmatpush1.bf16.msra.mxu0 %v4116_v26 }
 0x426   : > { %10451 = vmatmul.mubr.msk.bf16.vlgmr.msra.gmra.mrb[0].mxu0 %vm4112_vm15, %v4105_v52  ;;  %vm16651_vm15 = vcmask 1045504  }
 0x427   : > { %10197 = vmatprep.mubr.bf16.mxu0 %v16738_v36 }
 0x42d   : > { %v4110_v37 = vpop.permute.xlu0 %4109 }
 0x4f9   : > { %v4154_v7 = vpop.f32.mrb[0].mxu0 }
 0x4fa   : > { %v4155_v62 = vadd.f32 %v4154_v7, %v4110_v37  ;;  %v4156_v12 = vpop.f32.mrb[1].mxu0 }
 0x4fb   : > { %v4158_v31 = vpop.f32.mrb[2].mxu0  ;;  %v4157_v13 = vadd.f32 %v4156_v12, %v4110_v37 }
 0x4fc   : > { %v4161_v4 = vmax.f32 %v4155_v62, 0.0  ;;  %v4159_v39 = vpop.f32.mrb[3].mxu0 }
 0x4fd   : > { %v4162_v36 = vmax.f32 %v4157_v13, 0.0 }
 0x4fe   : > { %4170 = vrot.lane.b32.xlu0 %v4161_v4, %s11006_s12  ;;  %4164 = vrot.lane.b32.xlu1 %v4161_v4, %s11009_s17 }
 0x502   : > { %4176 = vrot.lane.b32.xlu0 %v4161_v4, %s11008_s16  ;;  %4167 = vrot.lane.b32.xlu1 %v4161_v4, %s11007_s15 }
 0x506   : > { %4182 = vrot.lane.b32.xlu0 %v4161_v4, %s11004_s30  ;;  %4173 = vrot.lane.b32.xlu1 %v4161_v4, %s11003_s27 }
 0x50a   : > { %4189 = vrot.lane.b32.xlu0 %v4162_v36, %s11007_s15  ;;  %4179 = vrot.lane.b32.xlu1 %v4161_v4, %s11005_s11 }
 0x50e   : > { %4195 = vrot.lane.b32.xlu0 %v4162_v36, %s11003_s27  ;;  %4186 = vrot.lane.b32.xlu1 %v4162_v36, %s11009_s17 }
 0x512   : > { %4201 = vrot.lane.b32.xlu0 %v4162_v36, %s11005_s11  ;;  %4192 = vrot.lane.b32.xlu1 %v4162_v36, %s11006_s12 }
 0x516   : > { %4198 = vrot.lane.b32.xlu1 %v4162_v36, %s11008_s16 }
 0x51a   : > { %4204 = vrot.lane.b32.xlu1 %v4162_v36, %s11004_s30 }
 0x570   : > { %v4171_v18 = vpop.permute.xlu0 %4170  ;;  %v4165_v35 = vpop.permute.xlu1 %4164 }
 0x571   : > { %v4215_v1 = vcombine.low %v4165_v35, %v4171_v18 }
 0x573   : > { %v4222_v15 = vrot.slane %v4215_v1, %v16954_v38 }
 0x574   : > { %v4177_v47 = vpop.permute.xlu0 %4176  ;;  %v4168_v32 = vpop.permute.xlu1 %4167 }
 0x575   : > { %v4207_v19 = vcombine.low %v4161_v4, %v4168_v32 }
 0x577   : > { %v4214_v54 = vrot.slane %v4207_v19, %v16954_v38 }
 0x578   : > { %v4183_v55 = vpop.permute.xlu0 %4182  ;;  %v4174_v22 = vpop.permute.xlu1 %4173 }
 0x579   : > { %v4231_v17 = vcombine.low %v4177_v47, %v4183_v55  ;;  %v4239_v14 = vcombine.low %v4214_v54, %v4222_v15  ;;  %v4240_v51 = vcombine.high %v4214_v54, %v4222_v15 }
 0x57b   : > { %v4238_v59 = vrot.slane %v4231_v17, %v16954_v38  ;;  %v4247_v50 = vrot.slane %v4239_v14, %v16955_v57  ;;  %v4254_v30 = vrot.slane %v4240_v51, %v16955_v57 }
 0x57c   : > { %v4190_v33 = vpop.permute.xlu0 %4189  ;;  %v4180_v48 = vpop.permute.xlu1 %4179 }
 0x57d   : > { %v4223_v20 = vcombine.low %v4174_v22, %v4180_v48  ;;  %v4275_v27 = vcombine.low %v4162_v36, %v4190_v33 }
 0x57f   : > { %v4230_v41 = vrot.slane %v4223_v20, %v16954_v38  ;;  %v4282_v28 = vrot.slane %v4275_v27, %v16954_v38 }
 0x580   : > { %v4187_v16 = vpop.permute.xlu1 %4186  ;;  %v4196_v61 = vpop.permute.xlu0 %4195 }
 0x581   : > { %v4255_v0 = vcombine.low %v4230_v41, %v4238_v59  ;;  %v4256_v6 = vcombine.high %v4230_v41, %v4238_v59 }
 0x583   : > { %v4263_v25 = vrot.slane %v4255_v0, %v16955_v57  ;;  %v4270_v34 = vrot.slane %v4256_v6, %v16955_v57 }
 0x584   : > { %v4193_v8 = vpop.permute.xlu1 %4192  ;;  %v4202_v43 = vpop.permute.xlu0 %4201 }
 0x585   : > { %v4271_v23 = vcombine.low %v4247_v50, %v4263_v25  ;;  %v4272_v10 = vcombine.high %v4247_v50, %v4263_v25  ;;  %v4273_v42 = vcombine.low %v4254_v30, %v4270_v34  ;;  %v4283_v56 = vcombine.low %v4187_v16, %v4193_v8 }
 0x586   : > { %v4274_v44 = vcombine.high %v4254_v30, %v4270_v34  ;;  %v4291_v58 = vcombine.low %v4196_v61, %v4202_v43 }
 0x587   : > { %v10753_v45 = vpack.c.bf16 %v4271_v23, %v4271_v23  ;;  %v10755_v46 = vpack.c.bf16 %v4272_v10, %v4272_v10  ;;  %v10757_v24 = vpack.c.bf16 %v4273_v42, %v4273_v42  ;;  %v4290_v9 = vrot.slane %v4283_v56, %v16954_v38 }
 0x588   : > { %v4199_v60 = vpop.permute.xlu1 %4198  ;;  %v10759_v5 = vpack.c.bf16 %v4274_v44, %v4274_v44  ;;  %v4298_v26 = vrot.slane %v4291_v58, %v16954_v38 }
 0x589   : > { %v4368_v21 = vshrl.u32 %v10753_v45, 16  ;;  %v4385_v53 = vshrl.u32 %v10755_v46, 16  ;;  %v4371_v40 = vshll.u32 %v10753_v45, 16  ;;  %v4402_v29 = vshrl.u32 %v10757_v24, 16 }
 0x58a   : > { %v4307_v52 = vcombine.low %v4282_v28, %v4290_v9  ;;  %v4308_v37 = vcombine.high %v4282_v28, %v4290_v9  ;;  %v4388_v62 = vshll.u32 %v10755_v46, 16  ;;  %v4419_v31 = vshrl.u32 %v10759_v5, 16 }
 0x58b   : > { %v4370_v3 = vrot.slane %v4368_v21, 7  ;;  %v4387_v63 = vrot.slane %v4385_v53, 7  ;;  %v4404_v12 = vrot.slane %v4402_v29, 7  ;;  %v4405_v36 = vshll.u32 %v10757_v24, 16 }
 0x58c   : > { %v4205_v11 = vpop.permute.xlu1 %4204  ;;  %v4315_v18 = vrot.slane %v4307_v52, %v16955_v57  ;;  %v4322_v35 = vrot.slane %v4308_v37, %v16955_v57  ;;  %v4421_v55 = vrot.slane %v4419_v31, 7  ;;  %v4422_v33 = vshll.u32 %v10759_v5, 16  ;;  %v4485_v52 = vld [vmem:[#allocation3 + $0x18] sm:$0xf] }
 0x58d   : > { %v4299_v2 = vcombine.low %v4199_v60, %v4205_v11  ;;  %v4373_v49 = vor.u32 %v4371_v40, %v4370_v3  ;;  %v4390_v13 = vor.u32 %v4388_v62, %v4387_v63  ;;  %v4407_v19 = vor.u32 %v4405_v36, %v4404_v12  ;;  %v4471_v11 = vld [vmem:[#allocation3] sm:$0xf]  ;;  %v4475_v36 = vld [vmem:[#allocation3 + $0x8] sm:$0x1] }
 0x58e   : > { %v4424_v51 = vor.u32 %v4422_v33, %v4421_v55  ;;  %v4374_v45 = vrot.slane %v4370_v3, 4  ;;  %v4391_v24 = vrot.slane %v4387_v63, 4  ;;  %v4408_v53 = vrot.slane %v4404_v12, 4  ;;  %v4492_v12 = vld [vmem:[#allocation3 + $0x24] sm:$0xf] }
 0x58f   : > { %v4306_v7 = vrot.slane %v4299_v2, %v16954_v38  ;;  %4435 = vrot.lane.b32.xlu0 %v4373_v49, %s10997_s25  ;;  %v4425_v40 = vrot.slane %v4421_v55, 4  ;;  %v4478_v49 = vld [vmem:[#allocation3 + $0xc] sm:$0xf] }
 0x591   : > { %v4323_v4 = vcombine.low %v4298_v26, %v4306_v7  ;;  %v4324_v39 = vcombine.high %v4298_v26, %v4306_v7 }
 0x593   : > { %v4331_v47 = vrot.slane %v4323_v4, %v16955_v57  ;;  %v4338_v32 = vrot.slane %v4324_v39, %v16955_v57  ;;  %4441 = vrot.lane.b32.xlu0 %v4390_v13, %s10997_s25  ;;  %v4482_v13 = vld [vmem:[#allocation3 + $0x14] sm:$0x1] }
 0x595   : > { %v4339_v22 = vcombine.low %v4315_v18, %v4331_v47  ;;  %v4340_v1 = vcombine.high %v4315_v18, %v4331_v47  ;;  %v4341_v54 = vcombine.low %v4322_v35, %v4338_v32  ;;  %v4342_v17 = vcombine.high %v4322_v35, %v4338_v32 }
 0x597   : > { %v10754_v48 = vpack.c.bf16 %v4339_v22, %v4339_v22  ;;  %v10756_v15 = vpack.c.bf16 %v4340_v1, %v4340_v1  ;;  %v10758_v20 = vpack.c.bf16 %v4341_v54, %v4341_v54  ;;  %v10760_v14 = vpack.c.bf16 %v4342_v17, %v4342_v17  ;;  %4447 = vrot.lane.b32.xlu0 %v4407_v19, %s10997_s25  ;;  %v4496_v22 = vld [vmem:[#allocation3 + $0x2c] sm:$0x1]  ;;  %v4489_v1 = vld [vmem:[#allocation3 + $0x20] sm:$0x1] }
 0x599   : > { %v4393_v59 = vshrl.u32 %v10756_v15, 16  ;;  %v4376_v41 = vshrl.u32 %v10754_v48, 16  ;;  %v4427_v16 = vshrl.u32 %v10760_v14, 16  ;;  %v4410_v0 = vshrl.u32 %v10758_v20, 16 }
 0x59a   : > { %v4379_v8 = vshll.u32 %v10754_v48, 16  ;;  %v4396_v46 = vshll.u32 %v10756_v15, 16  ;;  %v4413_v60 = vshll.u32 %v10758_v20, 16  ;;  %v4430_v58 = vshll.u32 %v10760_v14, 16 }
 0x59b   : > { %4453 = vrot.lane.b32.xlu0 %v4424_v51, %s10997_s25  ;;  %v4395_v6 = vrot.slane %v4393_v59, 7  ;;  %v4378_v61 = vrot.slane %v4376_v41, 7  ;;  %v4429_v25 = vrot.slane %v4427_v16, 7  ;;  %v4412_v34 = vrot.slane %v4410_v0, 7 }
 0x59d   : > { %v4400_v50 = vrot.slane %v4395_v6, 4  ;;  %v4383_v30 = vrot.slane %v4378_v61, 4  ;;  %v4434_v23 = vrot.slane %v4429_v25, 4  ;;  %v4417_v10 = vrot.slane %v4412_v34, 4 }
 0x59e   : > { %v4381_v42 = vor.u32 %v4379_v8, %v4378_v61  ;;  %v4398_v44 = vor.u32 %v4396_v46, %v4395_v6  ;;  %v4415_v21 = vor.u32 %v4413_v60, %v4412_v34  ;;  %v4432_v3 = vor.u32 %v4430_v58, %v4429_v25 }
 0x59f   : > { %4445 = vrot.lane.b32.xlu1 %v4400_v50, %s10997_s25  ;;  %4439 = vrot.lane.b32.xlu0 %v4383_v30, %s10997_s25 }
 0x5a0   : > { %v4382_v56 = vsel %vm11100_vm3, %v4374_v45, %v4381_v42  ;;  %v4399_v27 = vsel %vm11100_vm3, %v4391_v24, %v4398_v44  ;;  %v4416_v9 = vsel %vm11100_vm3, %v4408_v53, %v4415_v21  ;;  %v4433_v5 = vsel %vm11100_vm3, %v4425_v40, %v4432_v3 }
 0x5a3   : > { %4457 = vrot.lane.b32.xlu1 %v4434_v23, %s10997_s25  ;;  %4451 = vrot.lane.b32.xlu0 %v4417_v10, %s10997_s25 }
 0x5a7   : > { %4437 = vrot.lane.b32.xlu1 %v4382_v56, %s10997_s25 }
 0x5ab   : > { %4443 = vrot.lane.b32.xlu1 %v4399_v27, %s10997_s25 }
 0x5af   : > { %4449 = vrot.lane.b32.xlu1 %v4416_v9, %s10997_s25 }
 0x5b3   : > { %4455 = vrot.lane.b32.xlu1 %v4433_v5, %s10997_s25 }
 0x601   : > { %v4436_v29 = vpop.permute.xlu0 %4435 }
 0x602   : > { %v4472_v2 = vsel %vm11194_vm9, %v4436_v29, %v4471_v11 }
 0x603   : > { %4473 = vst [vmem:[#allocation3] sm:$0xf] %v4472_v2 }
 0x605   : > { %v4442_v63 = vpop.permute.xlu0 %4441 }
 0x606   : > { %v4479_v26 = vsel %vm11194_vm9, %v4442_v63, %v4478_v49 }
 0x607   : > { %4480 = vst [vmem:[#allocation3 + $0xc] sm:$0xf] %v4479_v26 }
 0x609   : > { %v4448_v37 = vpop.permute.xlu0 %4447 }
 0x60a   : > { %v4486_v7 = vsel %vm11194_vm9, %v4448_v37, %v4485_v52  ;;  %v13696_v62 = vld [vmem:[#allocation3] sm:$0xf] }
 0x60b   : > { %4487 = vst [vmem:[#allocation3 + $0x18] sm:$0xf] %v4486_v7  ;;  %4775 = vrot.lane.b32.xlu0 %v13696_v62, %s10999_s28  ;;  %v4510_v20 = vshrl.u32 %v13696_v62, 16  ;;  %v5333_v14 = vshll.u32 %v13696_v62, 16  ;;  %v6223_v42 = vld [vmem:[#allocation3] sm:$0xe] }
 0x60c   : > { %v10544_v9 = vrot.slane %v6223_v42, 9 }
 0x60d   : > { %v4454_v31 = vpop.permute.xlu0 %4453  ;;  %v5332_v6 = vrot.slane %v4510_v20, 4  ;;  %v5335_v61 = vrot.slane %v5333_v14, 5 }
 0x60e   : > { %v4493_v4 = vsel %vm11194_vm9, %v4454_v31, %v4492_v12  ;;  %v13702_v39 = vld [vmem:[#allocation3 + $0xc] sm:$0xf] }
 0x60f   : > { %4494 = vst [vmem:[#allocation3 + $0x24] sm:$0xf] %v4493_v4  ;;  %4779 = vrot.lane.b32.xlu1 %v13702_v39, %s10999_s28  ;;  %v16633_v16 = vshrl.u32 %v13702_v39, 16  ;;  %v5353_v0 = vshll.u32 %v13702_v39, 16  ;;  %v5336_v45 = vor.u32 %v5335_v61, %v5332_v6  ;;  %v6224_v24 = vld [vmem:[#allocation3 + $0xc] sm:$0xe] }
 0x610   : > { %v10545_v2 = vrot.slane %v6224_v24, 9 }
 0x611   : > { %v4446_v18 = vpop.permute.xlu1 %4445  ;;  %v4440_v35 = vpop.permute.xlu0 %4439  ;;  %v5352_v34 = vrot.slane %v16633_v16, 4  ;;  %v5355_v8 = vrot.slane %v5353_v0, 5  ;;  %v5337_v26 = vrot.slane %v5336_v45, 4 }
 0x612   : > { %v4483_v32 = vsel %vm11219_vm11, %v4446_v18, %v4482_v13  ;;  %v4476_v19 = vsel %vm11219_vm11, %v4440_v35, %v4475_v36  ;;  %v13710_v55 = vld [vmem:[#allocation3 + $0x18] sm:$0xf] }
 0x613   : > { %4484 = vst [vmem:[#allocation3 + $0x14] sm:$0x1] %v4483_v32  ;;  %4477 = vst [vmem:[#allocation3 + $0x8] sm:$0x1] %v4476_v19  ;;  %4783 = vrot.lane.b32.xlu0 %v13710_v55, %s10999_s28  ;;  %v4516_v59 = vshrl.u32 %v13710_v55, 16  ;;  %v5373_v41 = vshll.u32 %v13710_v55, 16  ;;  %v5356_v27 = vor.u32 %v5355_v8, %v5352_v34 }
 0x614   : > { %v13748_v44 = vld [vmem:[#allocation3 + $0x18] sm:$0xe] }
 0x615   : > { %v4458_v54 = vpop.permute.xlu1 %4457  ;;  %v4452_v17 = vpop.permute.xlu0 %4451  ;;  %v5372_v30 = vrot.slane %v4516_v59, 4  ;;  %v5375_v25 = vrot.slane %v5373_v41, 5  ;;  %v10546_v29 = vrot.slane %v13748_v44, 9  ;;  %v5357_v4 = vrot.slane %v5356_v27, 4 }
 0x616   : > { %v4497_v33 = vsel %vm11219_vm11, %v4458_v54, %v4496_v22  ;;  %v4490_v48 = vsel %vm11219_vm11, %v4452_v17, %v4489_v1  ;;  %v13718_v15 = vld [vmem:[#allocation3 + $0x24] sm:$0xf] }
 0x617   : > { %4498 = vst [vmem:[#allocation3 + $0x2c] sm:$0x1] %v4497_v33  ;;  %4491 = vst [vmem:[#allocation3 + $0x20] sm:$0x1] %v4490_v48  ;;  %5051 = vrot.lane.b32.xlu0 %v13696_v62, %s11000_s29  ;;  %4787 = vrot.lane.b32.xlu1 %v13718_v15, %s10999_s28  ;;  %v4517_v23 = vshrl.u32 %v13718_v15, 16  ;;  %v5393_v10 = vshll.u32 %v13718_v15, 16  ;;  %v5376_v60 = vor.u32 %v5375_v25, %v5372_v30 }
 0x618   : > { %v13754_v53 = vld [vmem:[#allocation3 + $0x24] sm:$0xe] }
 0x619   : > { %v4438_v51 = vpop.permute.xlu1 %4437  ;;  %v5392_v40 = vrot.slane %v4517_v23, 4  ;;  %v5395_v5 = vrot.slane %v5393_v10, 5  ;;  %v10547_v7 = vrot.slane %v13754_v53, 9  ;;  %v13768_v31 = vrot.slane %v5376_v60, 4 }
 0x61a   : > { %4474 = vst.msk [vmem:[#allocation3 + $0x4] sm:$0xf] %vm791_vm8, %v4438_v51  ;;  %v5327_v3 = vld [vmem:[#allocation3 + $0x8] sm:$0x1]  ;;  %v13761_v49 = vld [vmem:[#allocation3 + $0x14] sm:$0x1] }
 0x61b   : > { %5059 = vrot.lane.b32.xlu0 %v13710_v55, %s11000_s29  ;;  %5055 = vrot.lane.b32.xlu1 %v13702_v39, %s11000_s29  ;;  %v6240_v35 = vrot.slane %v5327_v3, 5  ;;  %v6247_v19 = vrot.slane %v13761_v49, 5  ;;  %v5396_v22 = vor.u32 %v5395_v5, %v5392_v40  ;;  %v5347_v54 = vshll.u32 %v5327_v3, 16 }
 0x61c   : > { %v5367_v53 = vshll.u32 %v13761_v49, 16 }
 0x61d   : > { %v4444_v50 = vpop.permute.xlu1 %4443  ;;  %v5349_v5 = vrot.slane %v5347_v54, 5 }
 0x61e   : > { %4481 = vst.msk [vmem:[#allocation3 + $0x10] sm:$0xf] %vm791_vm8, %v4444_v50  ;;  %v5329_v34 = vld [vmem:[#allocation3 + $0x20] sm:$0x1]  ;;  %v5330_v24 = vld [vmem:[#allocation3 + $0x2c] sm:$0x1] }
 0x61f   : > { %5063 = vrot.lane.b32.xlu1 %v13718_v15, %s11000_s29  ;;  %v6254_v3 = vrot.slane %v5329_v34, 5 }
 0x621   : > { %v4450_v46 = vpop.permute.xlu1 %4449  ;;  %v13746_v56 = vld [vmem:[#allocation3 + $0x4] sm:$0xf] }
 0x622   : > { %4488 = vst.msk [vmem:[#allocation3 + $0x1c] sm:$0xf] %vm791_vm8, %v4450_v46  ;;  %4777 = vrot.lane.b32.xlu0 %v13746_v56, %s10999_s28  ;;  %v6237_v21 = vrot.slane %v13746_v56, 5  ;;  %v5338_v58 = vshll.u32 %v13746_v56, 16  ;;  %v16631_v11 = vshrl.u32 %v13746_v56, 16 }
 0x624   : > { %v6239_v63 = vrot.slane %v6237_v21, 4  ;;  %v13766_v12 = vrot.slane %v5338_v58, 5  ;;  %v13775_v36 = vsel %vm11266_vm14, %v10544_v9, %v6237_v21  ;;  %v5343_v1 = vrot.slane %v16631_v11, 4 }
 0x625   : > { %v4456_v52 = vpop.permute.xlu1 %4455  ;;  %v13763_v37 = vld [vmem:[#allocation3 + $0x10] sm:$0xf]  ;;  %v6266_v41 = vshrl.u32 %v13775_v36, 16  ;;  %v5397_v21 = vrot.slane %v5396_v22, 4 }
 0x626   : > { %4495 = vst.msk [vmem:[#allocation3 + $0x28] sm:$0xf] %vm791_vm8, %v4456_v52  ;;  %4781 = vrot.lane.b32.xlu1 %v13763_v37, %s10999_s28  ;;  %v6244_v18 = vrot.slane %v13763_v37, 5  ;;  %v5358_v32 = vshll.u32 %v13763_v37, 16  ;;  %v13788_v48 = vsel %vm11266_vm14, %v6239_v63, %v6240_v35  ;;  %v13801_v50 = vsel %vm11369_vm1, %v5337_v26, %v13766_v12 }
 0x627   : > { %v6278_v44 = vshrl.u32 %v13788_v48, 16  ;;  %v5414_v40 = vshrl.u32 %v13801_v50, 16  ;;  %v6261_v52 = vrot.slane %v5330_v24, 5  ;;  %v16630_v35 = vshrl.u32 %v13763_v37, 16 }
 0x628   : > { %v13784_v17 = vsel %vm11266_vm14, %v10545_v2, %v6244_v18  ;;  %v6246_v33 = vrot.slane %v6244_v18, 4  ;;  %v13790_v14 = vrot.slane %v5358_v32, 5  ;;  %v5344_v18 = vor.u32 %v5343_v1, %v13766_v12 }
 0x629   : > { %v13792_v51 = vld [vmem:[#allocation3 + $0x1c] sm:$0xf]  ;;  %v6265_v0 = vpack.i.b16 %v13784_v17, %v13775_v36  ;;  %v6267_v6 = vshrl.u32 %v13784_v17, 16 }
 0x62a   : > { %4785 = vrot.lane.b32.xlu0 %v13792_v51, %s10999_s28  ;;  %v6251_v30 = vrot.slane %v13792_v51, 5  ;;  %v13808_v25 = vsel %vm11266_vm14, %v6246_v33, %v6247_v19  ;;  %v5378_v8 = vshll.u32 %v13792_v51, 16  ;;  %v13814_v10 = vsel %vm11369_vm1, %v5357_v4, %v13790_v14 }
 0x62b   : > { %v13816_v42 = vpack.i.b16 %v6267_v6, %v6266_v41  ;;  %v6279_v45 = vshrl.u32 %v13808_v25, 16  ;;  %v6277_v46 = vpack.i.b16 %v13808_v25, %v13788_v48  ;;  %v5413_v27 = vpack.i.b16 %v13814_v10, %v13801_v50 }
 0x62c   : > { %v6253_v60 = vrot.slane %v6251_v30, 4  ;;  %v13836_v2 = vsel %vm11266_vm14, %v10546_v29, %v6251_v30  ;;  %v5380_v63 = vrot.slane %v5378_v8, 5  ;;  %v5415_v26 = vshrl.u32 %v13814_v10, 16 }
 0x62d   : > { %v13825_v58 = vld [vmem:[#allocation3 + $0x28] sm:$0xf]  ;;  %v13827_v9 = vpack.i.b16 %v6279_v45, %v6278_v44  ;;  %v6272_v54 = vshrl.u32 %v13836_v2, 16  ;;  %v16632_v12 = vshrl.u32 %v13792_v51, 16  ;;  %v5387_v30 = vshll.u32 %v5329_v34, 16 }
 0x62e   : > { %5053 = vrot.lane.b32.xlu0 %v13746_v56, %s11000_s29  ;;  %4789 = vrot.lane.b32.xlu1 %v13825_v58, %s10999_s28  ;;  %v6258_v49 = vrot.slane %v13825_v58, 5  ;;  %v13842_v4 = vsel %vm11266_vm14, %v6253_v60, %v6254_v3  ;;  %v13850_v19 = vpack.i.b16 %v5415_v26, %v5414_v40  ;;  %v5398_v22 = vshll.u32 %v13825_v58, 16 }
 0x62f   : > { %v13869_v1 = vsel %vm11369_vm1, %v13768_v31, %v5380_v63  ;;  %v6284_v44 = vshrl.u32 %v13842_v4, 16  ;;  %v5345_v60 = vrot.slane %v5344_v18, 4  ;;  %v5383_v40 = vrot.slane %v16632_v12, 4 }
 0x630   : > { %v13848_v32 = vsel %vm11266_vm14, %v10547_v7, %v6258_v49  ;;  %v6260_v29 = vrot.slane %v6258_v49, 4  ;;  %v5400_v6 = vrot.slane %v5398_v22, 5  ;;  %v5363_v49 = vrot.slane %v16630_v35, 4 }
 0x631   : > { %v6271_v33 = vpack.i.b16 %v13848_v32, %v13836_v2  ;;  %v6273_v41 = vshrl.u32 %v13848_v32, 16  ;;  %v4529_v31 = vshrl.u32 %v13825_v58, 16  ;;  %v5420_v34 = vshrl.u32 %v13869_v1, 16 }
 0x632   : > { %5061 = vrot.lane.b32.xlu0 %v13792_v51, %s11000_s29  ;;  %5057 = vrot.lane.b32.xlu1 %v13763_v37, %s11000_s29  ;;  %v13864_v7 = vsel %vm11266_vm14, %v6260_v29, %v6261_v52  ;;  %v13875_v3 = vsel %vm11369_vm1, %v5397_v21, %v5400_v6  ;;  %v5407_v29 = vshll.u32 %v5330_v24, 16  ;;  %v5384_v18 = vor.u32 %v5383_v40, %v5380_v63 }
 0x633   : > { %v6274_v8 = vpack.i.b16 %v6273_v41, %v6272_v54  ;;  %v6285_v45 = vshrl.u32 %v13864_v7, 16  ;;  %v5419_v52 = vpack.i.b16 %v13875_v3, %v13869_v1  ;;  %v5421_v21 = vshrl.u32 %v13875_v3, 16 }
 0x634   : > { %v5364_v22 = vor.u32 %v5363_v49, %v13790_v14  ;;  %v5403_v54 = vrot.slane %v4529_v31, 4  ;;  %v13895_v41 = vsel %vm11369_vm1, %v5345_v60, %v5349_v5  ;;  %v5369_v24 = vrot.slane %v5367_v53, 5 }
 0x635   : > { %v6286_v26 = vpack.i.b16 %v6285_v45, %v6284_v44  ;;  %v5389_v45 = vrot.slane %v5387_v30, 5  ;;  %v5422_v44 = vpack.i.b16 %v5421_v21, %v5420_v34  ;;  %v5385_v35 = vrot.slane %v5384_v18, 4 }
 0x636   : > { %6523 = vrot.lane.b32.xlu0 %v13775_v36, %s10999_s28  ;;  %5065 = vrot.lane.b32.xlu1 %v13825_v58, %s11000_s29  ;;  %v5365_v11 = vrot.slane %v5364_v22, 4  ;;  %v5404_v12 = vor.u32 %v5403_v54, %v5400_v6  ;;  %v5409_v16 = vrot.slane %v5407_v29, 5  ;;  %v6283_v14 = vpack.i.b16 %v13864_v7, %v13842_v4 }
 0x637   : > { %v13905_v5 = vsel %vm11369_vm1, %v5385_v35, %v5389_v45  ;;  %v5426_v6 = vshrl.u32 %v13895_v41, 16  ;;  %v13939_v21 = vrot.slane %v6265_v0, %v16954_v38  ;;  %v13976_v54 = vrot.slane %v5419_v52, %v16954_v38 }
 0x638   : > { %v13909_v53 = vsel %vm11369_vm1, %v5365_v11, %v5369_v24  ;;  %v5405_v63 = vrot.slane %v5404_v12, 4  ;;  %v5432_v40 = vshrl.u32 %v13905_v5, 16  ;;  %v13924_v11 = vrot.slane %v6271_v33, %v16954_v38 }
 0x639   : > { %v5427_v30 = vshrl.u32 %v13909_v53, 16  ;;  %v13927_v35 = vrot.slane %v6283_v14, %v16954_v38  ;;  %v13933_v12 = vrot.slane %v6286_v26, %v16954_v38  ;;  %v13945_v33 = vrot.slane %v6277_v46, %v16954_v38 }
 0x63a   : > { %6531 = vrot.lane.b32.xlu0 %v13836_v2, %s10999_s28  ;;  %6527 = vrot.lane.b32.xlu1 %v13784_v17, %s10999_s28  ;;  %v13915_v60 = vsel %vm11369_vm1, %v5405_v63, %v5409_v16  ;;  %v13930_v16 = vrot.slane %v6274_v8, %v16954_v38  ;;  %v13949_v8 = vrot.slane %v13816_v42, %v16954_v38 }
 0x63b   : > { %v5428_v49 = vpack.i.b16 %v5427_v30, %v5426_v6  ;;  %v5433_v34 = vshrl.u32 %v13915_v60, 16  ;;  %v13953_v26 = vrot.slane %v13827_v9, %v16954_v38  ;;  %v6304_v0 = vcombine.high %v13939_v21, %v13924_v11 }
 0x63c   : > { %v6371_v42 = vcombine.low %v13945_v33, %v13927_v35  ;;  %v6337_v46 = vcombine.low %v13949_v8, %v13930_v16  ;;  %v6372_v9 = vcombine.high %v13945_v33, %v13927_v35  ;;  %v13983_v45 = vrot.slane %v5422_v44, %v16954_v38 }
 0x63d   : > { %v5434_v29 = vpack.i.b16 %v5433_v34, %v5432_v40  ;;  %v6405_v18 = vcombine.low %v13953_v26, %v13933_v12  ;;  %v6406_v22 = vcombine.high %v13953_v26, %v13933_v12  ;;  %v13989_v24 = vrot.slane %v5413_v27, %v16954_v38 }
 0x63e   : > { %6799 = vrot.lane.b32.xlu0 %v13775_v36, %s11000_s29  ;;  %6535 = vrot.lane.b32.xlu1 %v13848_v32, %s10999_s28  ;;  %v6303_v36 = vcombine.low %v13939_v21, %v13924_v11  ;;  %v13993_v14 = vrot.slane %v13850_v19, %v16954_v38  ;;  %v14009_v19 = vrot.slane %v5428_v49, %v16954_v38  ;;  %v16961_v34 = vshrl.u32 %v13702_v39, 16 }
 0x63f   : > { %v13996_v52 = vrot.slane %v5434_v29, %v16954_v38  ;;  %v5452_v44 = vcombine.high %v13989_v24, %v13976_v54  ;;  %v6345_v11 = vrot.slane %v6337_v46, %v16955_v57  ;;  %v5431_v35 = vpack.i.b16 %v13915_v60, %v13905_v5 }
 0x640   : > { %v5485_v27 = vcombine.low %v13993_v14, %v13983_v45  ;;  %v5486_v63 = vcombine.high %v13993_v14, %v13983_v45  ;;  %v4512_v29 = vpack.i.b16 %v16961_v34, %v4510_v20 }
 0x641   : > { %v5553_v6 = vcombine.low %v14009_v19, %v13996_v52 }
 0x642   : > { %6803 = vrot.lane.b32.xlu0 %v13784_v17, %s11000_s29  ;;  %6529 = vrot.lane.b32.xlu1 %v13808_v25, %s10999_s28  ;;  %v6338_v17 = vcombine.high %v13949_v8, %v13930_v16  ;;  %v5425_v16 = vpack.i.b16 %v13909_v53, %v13895_v41 }
 0x646   : > { %6807 = vrot.lane.b32.xlu0 %v13836_v2, %s11000_s29  ;;  %6537 = vrot.lane.b32.xlu1 %v13864_v7, %s10999_s28  ;;  %v5451_v2 = vcombine.low %v13989_v24, %v13976_v54  ;;  %v5493_v54 = vrot.slane %v5485_v27, %v16955_v57  ;;  %v5500_v27 = vrot.slane %v5486_v63, %v16955_v57 }
 0x648   : > { %v10506_v45 = vcombine.low %v5500_v27, %v5500_v27 }
 0x64a   : > { %6811 = vrot.lane.b32.xlu0 %v13848_v32, %s11000_s29  ;;  %6801 = vrot.lane.b32.xlu1 %v13788_v48, %s11000_s29  ;;  %v5554_v32 = vcombine.high %v14009_v19, %v13996_v52 }
 0x64e   : > { %6525 = vrot.lane.b32.xlu0 %v13788_v48, %s10999_s28  ;;  %6805 = vrot.lane.b32.xlu1 %v13808_v25, %s11000_s29  ;;  %v4515_v48 = vpack.i.b16 %v13718_v15, %v13710_v55 }
 0x650   : > { %v4546_v25 = vrot.slane %v4515_v48, %v16954_v38 }
 0x652   : > { %6533 = vrot.lane.b32.xlu0 %v13842_v4, %s10999_s28  ;;  %6809 = vrot.lane.b32.xlu1 %v13842_v4, %s11000_s29 }
 0x656   : > { %5947 = vrot.lane.b32.xlu0 %v13801_v50, %s11000_s29  ;;  %6813 = vrot.lane.b32.xlu1 %v13864_v7, %s11000_s29  ;;  %v4527_v7 = vpack.i.b16 %v13825_v58, %v13792_v51 }
 0x658   : > { %v4614_v49 = vrot.slane %v4527_v7, %v16954_v38 }
 0x65a   : > { %5955 = vrot.lane.b32.xlu0 %v13869_v1, %s11000_s29  ;;  %5951 = vrot.lane.b32.xlu1 %v13814_v10, %s11000_s29 }
 0x65e   : > { %5671 = vrot.lane.b32.xlu0 %v13801_v50, %s10999_s28  ;;  %5959 = vrot.lane.b32.xlu1 %v13875_v3, %s11000_s29  ;;  %v4509_v50 = vpack.i.b16 %v13702_v39, %v13696_v62  ;;  %v4572_v39 = vrot.slane %v4512_v29, %v16954_v38 }
 0x662   : > { %5679 = vrot.lane.b32.xlu0 %v13869_v1, %s10999_s28  ;;  %5675 = vrot.lane.b32.xlu1 %v13814_v10, %s10999_s28  ;;  %v4538_v10 = vrot.slane %v4509_v50, %v16954_v38  ;;  %v4521_v1 = vpack.i.b16 %v13763_v37, %v13746_v56 }
 0x664   : > { %v4547_v4 = vcombine.low %v4538_v10, %v4546_v25  ;;  %v4548_v30 = vcombine.high %v4538_v10, %v4546_v25  ;;  %v4606_v55 = vrot.slane %v4521_v1, %v16954_v38  ;;  %v16962_v25 = vshrl.u32 %v13792_v51, 16 }
 0x666   : > { %5949 = vrot.lane.b32.xlu0 %v13895_v41, %s11000_s29  ;;  %5683 = vrot.lane.b32.xlu1 %v13875_v3, %s10999_s28  ;;  %v4518_v3 = vpack.i.b16 %v4517_v23, %v4516_v59  ;;  %v14068_v40 = vrot.slane %v4547_v4, %v16955_v57  ;;  %v4562_v15 = vrot.slane %v4548_v30, %v16955_v57  ;;  %v16964_v30 = vshrl.u32 %v13763_v37, 16 }
 0x667   : > { %v4616_v48 = vcombine.high %v4606_v55, %v4614_v49  ;;  %v4615_v62 = vcombine.low %v4606_v55, %v4614_v49  ;;  %v4530_v10 = vpack.i.b16 %v4529_v31, %v16962_v25 }
 0x668   : > { %v4580_v59 = vrot.slane %v4518_v3, %v16954_v38  ;;  %v10761_v23 = vcombine.high %v14068_v40, %v14068_v40  ;;  %v10463_v20 = vcombine.low %v4562_v15, %v4562_v15  ;;  %v10763_v4 = vcombine.high %v4562_v15, %v4562_v15 }
 0x669   : > { %v4630_v7 = vrot.slane %v4616_v48, %v16955_v57  ;;  %v14094_v1 = vrot.slane %v4615_v62, %v16955_v57  ;;  %v16963_v3 = vshrl.u32 %v13746_v56, 16  ;;  %v4648_v29 = vrot.slane %v4530_v10, %v16954_v38 }
 0x66a   : > { %5957 = vrot.lane.b32.xlu0 %v13905_v5, %s11000_s29  ;;  %5953 = vrot.lane.b32.xlu1 %v13909_v53, %s11000_s29  ;;  %v4581_v50 = vcombine.low %v4572_v39, %v4580_v59  ;;  %v4582_v31 = vcombine.high %v4572_v39, %v4580_v59 }
 0x66b   : > { %v4524_v49 = vpack.i.b16 %v16964_v30, %v16963_v3  ;;  %v10470_v34 = vcombine.low %v4630_v7, %v4630_v7  ;;  %v10765_v58 = vcombine.high %v14094_v1, %v14094_v1  ;;  %v10767_v55 = vcombine.high %v4630_v7, %v4630_v7 }
 0x66c   : > { %v4589_v51 = vrot.slane %v4581_v50, %v16955_v57  ;;  %v4596_v15 = vrot.slane %v4582_v31, %v16955_v57 }
 0x66d   : > { %v4640_v56 = vrot.slane %v4524_v49, %v16954_v38 }
 0x66e   : > { %5673 = vrot.lane.b32.xlu0 %v13895_v41, %s10999_s28  ;;  %5961 = vrot.lane.b32.xlu1 %v13915_v60, %s11000_s29  ;;  %v10460_v37 = vcombine.low %v4589_v51, %v4589_v51  ;;  %v10464_v59 = vcombine.low %v4596_v15, %v4596_v15  ;;  %v10762_v62 = vcombine.high %v4589_v51, %v4589_v51 }
 0x66f   : > { %v10764_v10 = vcombine.high %v4596_v15, %v4596_v15  ;;  %v14130_v51 = vrot.slane %v6303_v36, %v16955_v57  ;;  %v14152_v15 = vrot.slane %v6371_v42, %v16955_v57  ;;  %v6386_v42 = vrot.slane %v6372_v9, %v16955_v57 }
 0x671   : > { %16965 = vst [vmem:[#allocation69_spill] sm:$0xff] %v14130_v51  ;;  %v10809_v31 = vcombine.high %v14130_v51, %v14130_v51  ;;  %16966 = vst [vmem:[#allocation55_spill] sm:$0xff] %v14152_v15 }
 0x672   : > { %5681 = vrot.lane.b32.xlu0 %v13905_v5, %s10999_s28  ;;  %5677 = vrot.lane.b32.xlu1 %v13909_v53, %s10999_s28  ;;  %v5518_v5 = vrot.slane %v5431_v35, %v16954_v38 }
 0x676   : > { %4675 = vrot.lane.b32.xlu0 %v10761_v23, %s11005_s11  ;;  %5685 = vrot.lane.b32.xlu1 %v13915_v60, %s10999_s28  ;;  %v4649_v23 = vcombine.low %v4640_v56, %v4648_v29 }
 0x678   : > { %v4657_v39 = vrot.slane %v4649_v23, %v16955_v57  ;;  %v10813_v23 = vcombine.high %v14152_v15, %v14152_v15 }
 0x67a   : > { %4685 = vrot.lane.b32.xlu0 %v10463_v20, %s11003_s27  ;;  %4695 = vrot.lane.b32.xlu1 %v10763_v4, %s11007_s15  ;;  %v4650_v20 = vcombine.high %v4640_v56, %v4648_v29  ;;  %v10766_v4 = vcombine.high %v4657_v39, %v4657_v39  ;;  %v10467_v30 = vcombine.low %v4657_v39, %v4657_v39 }
 0x67b   : > { %v6318_v29 = vrot.slane %v6304_v0, %v16955_v57  ;;  %v10810_v39 = vcombine.high %v6345_v11, %v6345_v11 }
 0x67c   : > { %v4664_v7 = vrot.slane %v4650_v20, %v16955_v57  ;;  %v10558_v20 = vcombine.low %v6386_v42, %v6386_v42 }
 0x67d   : > { %v14112_v48 = vpop.permute.xlu0 %4775 }
 0x67e   : > { %4720 = vrot.lane.b32.xlu0 %v10470_v34, %s11003_s27  ;;  %4710 = vrot.lane.b32.xlu1 %v10765_v58, %s11005_s11  ;;  %v10471_v49 = vcombine.low %v4664_v7, %v4664_v7  ;;  %v10768_v58 = vcombine.high %v4664_v7, %v4664_v7  ;;  %v10815_v7 = vcombine.high %v6386_v42, %v6386_v42 }
 0x681   : > { %v14117_v50 = vpop.permute.xlu1 %4779 }
 0x682   : > { %4670 = vrot.lane.b32.xlu0 %v10460_v37, %s11004_s30  ;;  %4730 = vrot.lane.b32.xlu1 %v10767_v55, %s11007_s15  ;;  %v10551_v37 = vcombine.low %v6318_v29, %v6318_v29  ;;  %v10811_v55 = vcombine.high %v6318_v29, %v6318_v29  ;;  %v4793_v63 = vpack.i.b16 %v14117_v50, %v14112_v48  ;;  %v4795_v28 = vshrl.u32 %v14117_v50, 16 }
 0x685   : > { %v14119_v25 = vpop.permute.xlu0 %4783 }
 0x686   : > { %4690 = vrot.lane.b32.xlu0 %v10464_v59, %s11006_s12  ;;  %4680 = vrot.lane.b32.xlu1 %v10762_v62, %s11008_s16  ;;  %v10548_v59 = vcombine.low %v6345_v11, %v6345_v11  ;;  %v4800_v43 = vshrl.u32 %v14119_v25, 16 }
 0x689   : > { %v14124_v3 = vpop.permute.xlu1 %4787  ;;  %v14132_v34 = vpop.permute.xlu0 %5051 }
 0x68a   : > { %4700 = vrot.lane.b32.xlu0 %v10764_v10, %s11009_s17  ;;  %4715 = vrot.lane.b32.xlu1 %v10766_v4, %s11008_s16  ;;  %v6352_v10 = vrot.slane %v6338_v17, %v16955_v57  ;;  %v4801_v19 = vshrl.u32 %v14124_v3, 16 }
 0x68c   : > { %v10552_v4 = vcombine.low %v6352_v10, %v6352_v10 }
 0x68d   : > { %v14142_v56 = vpop.permute.xlu1 %5055  ;;  %v14146_v36 = vpop.permute.xlu0 %5059 }
 0x68e   : > { %4705 = vrot.lane.b32.xlu0 %v10467_v30, %s11004_s30  ;;  %4725 = vrot.lane.b32.xlu1 %v10471_v49, %s11006_s12  ;;  %v6413_v30 = vrot.slane %v6405_v18, %v16955_v57  ;;  %v10812_v49 = vcombine.high %v6352_v10, %v6352_v10  ;;  %v6420_v18 = vrot.slane %v6406_v22, %v16955_v57 }
 0x690   : > { %v10814_v17 = vcombine.high %v6413_v30, %v6413_v30  ;;  %v10555_v29 = vcombine.low %v6413_v30, %v6413_v30  ;;  %v10559_v11 = vcombine.low %v6420_v18, %v6420_v18  ;;  %v10786_v30 = vcombine.high %v5493_v54, %v5493_v54 }
 0x691   : > { %v14160_v21 = vpop.permute.xlu1 %5063 }
 0x692   : > { %4735 = vrot.lane.b32.xlu0 %v10768_v58, %s11009_s17  ;;  %6431 = vrot.lane.b32.xlu1 %v10809_v31, %s11005_s11  ;;  %v5510_v58 = vrot.slane %v5425_v16, %v16954_v38  ;;  %v10816_v31 = vcombine.high %v6420_v18, %v6420_v18  ;;  %v5069_v16 = vpack.i.b16 %v14142_v56, %v14132_v34 }
 0x694   : > { %v14162_v0 = vpop.permute.xlu0 %4777  ;;  %v5519_v12 = vcombine.low %v5510_v58, %v5518_v5 }
 0x696   : > { %6441 = vrot.lane.b32.xlu0 %v10551_v37, %s11003_s27  ;;  %6451 = vrot.lane.b32.xlu1 %v10811_v55, %s11007_s15  ;;  %v14216_v37 = vrot.slane %v5451_v2, %v16955_v57  ;;  %v14231_v2 = vrot.slane %v5519_v12, %v16955_v57 }
 0x698   : > { %v14172_v46 = vpop.permute.xlu1 %4781  ;;  %v10785_v55 = vcombine.high %v14216_v37, %v14216_v37  ;;  %v10789_v10 = vcombine.high %v14231_v2, %v14231_v2 }
 0x69a   : > { %6466 = vrot.lane.b32.xlu0 %v10813_v23, %s11005_s11  ;;  %6426 = vrot.lane.b32.xlu1 %v10548_v59, %s11004_s30  ;;  %v5466_v23 = vrot.slane %v5452_v44, %v16955_v57  ;;  %v5520_v59 = vcombine.high %v5510_v58, %v5518_v5  ;;  %v5075_v44 = vpack.i.b16 %v14160_v21, %v14146_v36 }
 0x69b   : > { %v4799_v5 = vpack.i.b16 %v14124_v3, %v14119_v25 }
 0x69c   : > { %v14174_v62 = vpop.permute.xlu0 %4785  ;;  %v5534_v24 = vrot.slane %v5520_v59, %v16955_v57 }
 0x69e   : > { %6436 = vrot.lane.b32.xlu0 %v10810_v39, %s11008_s16  ;;  %6476 = vrot.lane.b32.xlu1 %v10558_v20, %s11003_s27  ;;  %v10505_v20 = vcombine.low %v5466_v23, %v5466_v23  ;;  %v10512_v58 = vcombine.low %v5534_v24, %v5534_v24  ;;  %v10791_v12 = vcombine.high %v5534_v24, %v5534_v24 }
 0x6a0   : > { %v14184_v33 = vpop.permute.xlu0 %5053  ;;  %v14186_v9 = vpop.permute.xlu1 %4789 }
 0x6a2   : > { %6446 = vrot.lane.b32.xlu0 %v10552_v4, %s11006_s12  ;;  %6486 = vrot.lane.b32.xlu1 %v10815_v7, %s11007_s15  ;;  %v10787_v7 = vcombine.high %v5466_v23, %v5466_v23 }
 0x6a4   : > { %v14197_v60 = vpop.permute.xlu0 %5061  ;;  %v14199_v8 = vpop.permute.xlu1 %5057 }
 0x6a5   : > { %v5081_v52 = vpack.i.b16 %v14199_v8, %v14184_v33 }
 0x6a6   : > { %6471 = vrot.lane.b32.xlu0 %v10814_v17, %s11008_s16  ;;  %6456 = vrot.lane.b32.xlu1 %v10812_v49, %s11009_s17  ;;  %v14265_v17 = vrot.slane %v5075_v44, %v16954_v38 }
 0x6a8   : > { %v14208_v41 = vpop.permute.xlu0 %6523  ;;  %v14210_v53 = vpop.permute.xlu1 %5065 }
 0x6aa   : > { %6491 = vrot.lane.b32.xlu0 %v10816_v31, %s11009_s17  ;;  %6461 = vrot.lane.b32.xlu1 %v10555_v29, %s11004_s30  ;;  %v14275_v31 = vrot.slane %v5069_v16, %v16954_v38 }
 0x6ac   : > { %v14220_v26 = vpop.permute.xlu0 %6531  ;;  %v14222_v22 = vpop.permute.xlu1 %6527  ;;  %v5108_v50 = vcombine.high %v14275_v31, %v14265_v17 }
 0x6ae   : > { %5579 = vrot.lane.b32.xlu0 %v10785_v55, %s11005_s11  ;;  %6481 = vrot.lane.b32.xlu1 %v10559_v11, %s11006_s12  ;;  %v4830_v55 = vrot.slane %v4799_v5, %v16954_v38  ;;  %v5107_v11 = vcombine.low %v14275_v31, %v14265_v17  ;;  %v10502_v5 = vcombine.low %v5493_v54, %v5493_v54  ;;  %v5070_v17 = vshrl.u32 %v14132_v34, 16 }
 0x6af   : > { %v4805_v54 = vpack.i.b16 %v14172_v46, %v14162_v0 }
 0x6b0   : > { %v14235_v42 = vpop.permute.xlu0 %6799  ;;  %v14237_v39 = vpop.permute.xlu1 %6535 }
 0x6b1   : > { %v6818_v29 = vshrl.u32 %v14235_v42, 16 }
 0x6b2   : > { %5589 = vrot.lane.b32.xlu0 %v10505_v20, %s11003_s27  ;;  %5614 = vrot.lane.b32.xlu1 %v10789_v10, %s11005_s11  ;;  %v10788_v20 = vcombine.high %v5500_v27, %v5500_v27  ;;  %v5561_v10 = vrot.slane %v5553_v6, %v16955_v57  ;;  %v4811_v27 = vpack.i.b16 %v14186_v9, %v14174_v62 }
 0x6b4   : > { %v14250_v35 = vpop.permute.xlu0 %6803  ;;  %v14252_v4 = vpop.permute.xlu1 %6529 }
 0x6b5   : > { %v6819_v14 = vshrl.u32 %v14250_v35, 16 }
 0x6b6   : > { %5599 = vrot.lane.b32.xlu0 %v10787_v7, %s11007_s15  ;;  %5584 = vrot.lane.b32.xlu1 %v10786_v30, %s11008_s16  ;;  %v4822_v30 = vrot.slane %v4793_v63, %v16954_v38 }
 0x6b7   : > { %v6820_v44 = vpack.i.b16 %v6819_v14, %v6818_v29  ;;  %v10509_v14 = vcombine.low %v5561_v10, %v5561_v10  ;;  %v14303_v29 = vrot.slane %v5107_v11, %v16955_v57  ;;  %v5568_v11 = vrot.slane %v5554_v32, %v16955_v57 }
 0x6b8   : > { %v14267_v49 = vpop.permute.xlu0 %6807  ;;  %v14269_v18 = vpop.permute.xlu1 %6537  ;;  %v4831_v32 = vcombine.low %v4822_v30, %v4830_v55 }
 0x6b9   : > { %v6824_v7 = vshrl.u32 %v14267_v49, 16  ;;  %v14306_v63 = vrot.slane %v6820_v44, %v16954_v38  ;;  %v4898_v44 = vrot.slane %v4811_v27, %v16954_v38  ;;  %v10792_v3 = vcombine.high %v5568_v11, %v5568_v11 }
 0x6ba   : > { %5624 = vrot.lane.b32.xlu0 %v10512_v58, %s11003_s27  ;;  %5594 = vrot.lane.b32.xlu1 %v10506_v45, %s11006_s12  ;;  %v4832_v58 = vcombine.high %v4822_v30, %v4830_v55  ;;  %v4794_v55 = vshrl.u32 %v14112_v48, 16  ;;  %v4802_v30 = vpack.i.b16 %v4801_v19, %v4800_v43  ;;  %v5076_v48 = vshrl.u32 %v14146_v36, 16 }
 0x6bb   : > { %v5122_v36 = vrot.slane %v5108_v50, %v16955_v57 }
 0x6bc   : > { %v14283_v23 = vpop.permute.xlu0 %6811  ;;  %v14285_v59 = vpop.permute.xlu1 %6801  ;;  %v4796_v43 = vpack.i.b16 %v4795_v28, %v4794_v55  ;;  %v4864_v31 = vrot.slane %v4802_v30, %v16954_v38 }
 0x6bd   : > { %v6825_v24 = vshrl.u32 %v14283_v23, 16  ;;  %v10779_v51 = vcombine.high %v5122_v36, %v5122_v36 }
 0x6be   : > { %5634 = vrot.lane.b32.xlu0 %v10791_v12, %s11007_s15  ;;  %5604 = vrot.lane.b32.xlu1 %v10788_v20, %s11009_s17  ;;  %v4856_v34 = vrot.slane %v4796_v43, %v16954_v38 }
 0x6bf   : > { %v6826_v16 = vpack.i.b16 %v6825_v24, %v6824_v7  ;;  %v10790_v7 = vcombine.high %v5561_v10, %v5561_v10  ;;  %v5087_v24 = vpack.i.b16 %v14210_v53, %v14197_v60  ;;  %v4890_v10 = vrot.slane %v4805_v54, %v16954_v38 }
 0x6c0   : > { %v14298_v45 = vpop.permute.xlu0 %6525  ;;  %v14300_v6 = vpop.permute.xlu1 %6805 }
 0x6c1   : > { %v14309_v12 = vrot.slane %v6826_v16, %v16954_v38  ;;  %v4899_v27 = vcombine.low %v4890_v10, %v4898_v44  ;;  %v14338_v20 = vrot.slane %v5087_v24, %v16954_v38  ;;  %v5077_v24 = vshrl.u32 %v14160_v21, 16 }
 0x6c2   : > { %5574 = vrot.lane.b32.xlu0 %v10502_v5, %s11004_s30  ;;  %5609 = vrot.lane.b32.xlu1 %v10509_v14, %s11004_s30  ;;  %v10777_v5 = vcombine.high %v14303_v29, %v14303_v29  ;;  %v4846_v14 = vrot.slane %v4832_v58, %v16955_v57  ;;  %v10513_v58 = vcombine.low %v5568_v11, %v5568_v11  ;;  %v5071_v21 = vshrl.u32 %v14142_v56, 16 }
 0x6c3   : > { %v14365_v11 = vrot.slane %v4899_v27, %v16955_v57  ;;  %v5078_v19 = vpack.i.b16 %v5077_v24, %v5076_v48 }
 0x6c4   : > { %v14324_v16 = vpop.permute.xlu0 %6533  ;;  %v14326_v61 = vpop.permute.xlu1 %6809  ;;  %v10477_v54 = vcombine.low %v4846_v14, %v4846_v14  ;;  %v5072_v55 = vpack.i.b16 %v5071_v21, %v5070_v17  ;;  %v4813_v17 = vshrl.u32 %v14186_v9, 16  ;;  %v4806_v9 = vshrl.u32 %v14162_v0, 16 }
 0x6c5   : > { %16967 = vst [vmem:[#allocation43_spill] sm:$0xff] %v14365_v11  ;;  %v10773_v56 = vcombine.high %v14365_v11, %v14365_v11 }
 0x6c6   : > { %5619 = vrot.lane.b32.xlu1 %v10790_v7, %s11008_s16  ;;  %5235 = vrot.lane.b32.xlu0 %v10777_v5, %s11005_s11  ;;  %v14347_v7 = vrot.slane %v5081_v52, %v16954_v38  ;;  %v14354_v5 = vrot.slane %v4831_v32, %v16955_v57  ;;  %v4900_v32 = vcombine.high %v4890_v10, %v4898_v44 }
 0x6c7   : > { %v4865_v44 = vcombine.low %v4856_v34, %v4864_v31  ;;  %v5140_v10 = vrot.slane %v5078_v19, %v16954_v38  ;;  %v5132_v43 = vrot.slane %v5072_v55, %v16954_v38  ;;  %v4807_v55 = vshrl.u32 %v14172_v46, 16 }
 0x6c8   : > { %v14340_v13 = vpop.permute.xlu0 %5947  ;;  %v14342_v47 = vpop.permute.xlu1 %6813  ;;  %v5175_v25 = vcombine.low %v14347_v7, %v14338_v20  ;;  %v5176_v19 = vcombine.high %v14347_v7, %v14338_v20 }
 0x6c9   : > { %v5141_v48 = vcombine.low %v5132_v43, %v5140_v10  ;;  %v4873_v21 = vrot.slane %v4865_v44, %v16955_v57  ;;  %v5142_v44 = vcombine.high %v5132_v43, %v5140_v10  ;;  %v4808_v11 = vpack.i.b16 %v4807_v55, %v4806_v9 }
 0x6ca   : > { %5629 = vrot.lane.b32.xlu1 %v10513_v58, %s11006_s12  ;;  %4969 = vrot.lane.b32.xlu0 %v10477_v54, %s11003_s27  ;;  %v10771_v54 = vcombine.high %v4846_v14, %v4846_v14  ;;  %v10769_v14 = vcombine.high %v14354_v5, %v14354_v5  ;;  %v5089_v10 = vshrl.u32 %v14210_v53, 16 }
 0x6cb   : > { %v5149_v46 = vrot.slane %v5141_v48, %v16955_v57  ;;  %v14430_v48 = vrot.slane %v4808_v11, %v16954_v38 }
 0x6cc   : > { %v14360_v52 = vpop.permute.xlu0 %5955  ;;  %v14362_v58 = vpop.permute.xlu1 %5951 }
 0x6ce   : > { %5639 = vrot.lane.b32.xlu1 %v10792_v3, %s11009_s17  ;;  %4979 = vrot.lane.b32.xlu0 %v10771_v54, %s11007_s15  ;;  %v14383_v3 = vrot.slane %v5175_v25, %v16955_v57  ;;  %v10491_v54 = vcombine.low %v5122_v36, %v5122_v36  ;;  %v4914_v25 = vrot.slane %v4900_v32, %v16955_v57 }
 0x6cf   : > { %v5190_v36 = vrot.slane %v5176_v19, %v16955_v57  ;;  %v10778_v19 = vcombine.high %v5149_v46, %v5149_v46 }
 0x6d0   : > { %v14375_v27 = vpop.permute.xlu0 %5671  ;;  %v14377_v28 = vpop.permute.xlu1 %5959  ;;  %16968 = vst [vmem:[#allocation78_spill] sm:$0xff] %v14383_v3  ;;  %v10781_v50 = vcombine.high %v14383_v3, %v14383_v3  ;;  %v10775_v32 = vcombine.high %v4914_v25, %v4914_v25  ;;  %v10484_v3 = vcombine.low %v4914_v25, %v4914_v25 }
 0x6d2   : > { %4959 = vrot.lane.b32.xlu1 %v10769_v14, %s11005_s11  ;;  %4994 = vrot.lane.b32.xlu0 %v10773_v56, %s11005_s11 }
 0x6d4   : > { %v14389_v30 = vpop.permute.xlu0 %5679  ;;  %v14391_v24 = vpop.permute.xlu1 %5675 }
 0x6d6   : > { %5245 = vrot.lane.b32.xlu1 %v10491_v54, %s11003_s27  ;;  %5270 = vrot.lane.b32.xlu0 %v10781_v50, %s11005_s11  ;;  %v4812_v54 = vshrl.u32 %v14174_v62, 16  ;;  %v10770_v50 = vcombine.high %v4873_v21, %v4873_v21  ;;  %v5156_v62 = vrot.slane %v5142_v44, %v16955_v57 }
 0x6d8   : > { %v14403_v14 = vpop.permute.xlu0 %5949  ;;  %v14405_v56 = vpop.permute.xlu1 %5683  ;;  %v4814_v15 = vpack.i.b16 %v4813_v17, %v4812_v54  ;;  %v10498_v17 = vcombine.low %v5190_v36, %v5190_v36 }
 0x6da   : > { %5255 = vrot.lane.b32.xlu1 %v10779_v51, %s11007_s15  ;;  %5014 = vrot.lane.b32.xlu0 %v10775_v32, %s11007_s15  ;;  %v4866_v51 = vcombine.high %v4856_v34, %v4864_v31  ;;  %v14422_v0 = vrot.slane %v4814_v15, %v16954_v38  ;;  %v5083_v31 = vshrl.u32 %v14199_v8, 16  ;;  %v10492_v15 = vcombine.low %v5156_v62, %v5156_v62 }
 0x6db   : > { %v5082_v34 = vshrl.u32 %v14184_v33, 16  ;;  %v10474_v33 = vcombine.low %v4873_v21, %v4873_v21  ;;  %v6541_v21 = vpack.i.b16 %v14222_v22, %v14208_v41 }
 0x6dc   : > { %v14412_v20 = vpop.permute.xlu0 %5957  ;;  %v14414_v7 = vpop.permute.xlu1 %5953  ;;  %v4880_v53 = vrot.slane %v4866_v51, %v16955_v57  ;;  %v4933_v32 = vcombine.low %v14430_v48, %v14422_v0 }
 0x6dd   : > { %v5084_v44 = vpack.i.b16 %v5083_v31, %v5082_v34 }
 0x6de   : > { %5004 = vrot.lane.b32.xlu1 %v10484_v3, %s11003_s27  ;;  %4964 = vrot.lane.b32.xlu0 %v10770_v50, %s11008_s16  ;;  %v5088_v3 = vshrl.u32 %v14197_v60, 16  ;;  %v10783_v60 = vcombine.high %v5190_v36, %v5190_v36  ;;  %v10772_v51 = vcombine.high %v4880_v53, %v4880_v53 }
 0x6e0   : > { %v14425_v43 = vpop.permute.xlu0 %5673  ;;  %v14427_v25 = vpop.permute.xlu1 %5961  ;;  %v5090_v55 = vpack.i.b16 %v5089_v10, %v5088_v3  ;;  %v4941_v10 = vrot.slane %v4933_v32, %v16955_v57  ;;  %v10478_v32 = vcombine.low %v4880_v53, %v4880_v53 }
 0x6e2   : > { %5280 = vrot.lane.b32.xlu1 %v10498_v17, %s11003_s27  ;;  %5240 = vrot.lane.b32.xlu0 %v10778_v19, %s11008_s16  ;;  %v5208_v8 = vrot.slane %v5090_v55, %v16954_v38  ;;  %v5200_v17 = vrot.slane %v5084_v44, %v16954_v38  ;;  %v6547_v19 = vpack.i.b16 %v14237_v39, %v14220_v26 }
 0x6e3   : > { %v10481_v34 = vcombine.low %v4941_v10, %v4941_v10 }
 0x6e4   : > { %v14440_v54 = vpop.permute.xlu0 %5681  ;;  %v14442_v11 = vpop.permute.xlu1 %5677  ;;  %v5210_v36 = vcombine.high %v5200_v17, %v5208_v8  ;;  %v5209_v55 = vcombine.low %v5200_v17, %v5208_v8  ;;  %v10780_v17 = vcombine.high %v5156_v62, %v5156_v62  ;;  %v6823_v62 = vpack.i.b16 %v14283_v23, %v14267_v49 }
 0x6e6   : > { %5290 = vrot.lane.b32.xlu1 %v10783_v60, %s11007_s15  ;;  %5250 = vrot.lane.b32.xlu0 %v10492_v15, %s11006_s12  ;;  %v10488_v15 = vcombine.low %v5149_v46, %v5149_v46  ;;  %v6578_v60 = vrot.slane %v6547_v19, %v16954_v38  ;;  %v6570_v46 = vrot.slane %v6541_v21, %v16954_v38  ;;  %v6542_v21 = vshrl.u32 %v14208_v41, 16 }
 0x6e8   : > { %v14447_v9 = vpop.permute.xlu0 %4675  ;;  %v14449_v50 = vpop.permute.xlu1 %5685 }
 0x6ea   : > { %4954 = vrot.lane.b32.xlu1 %v10474_v33, %s11004_s30  ;;  %4984 = vrot.lane.b32.xlu0 %v10772_v51, %s11009_s17  ;;  %v10774_v51 = vcombine.high %v4941_v10, %v4941_v10  ;;  %v6548_v10 = vshrl.u32 %v14220_v26, 16 }
 0x6ec   : > { %v14457_v3 = vpop.permute.xlu0 %4685  ;;  %v14459_v31 = vpop.permute.xlu1 %4695 }
 0x6ed   : > { %16969 = vst [vmem:[#allocation44_spill] sm:$0xff] %v14459_v31  ;;  %v5224_v31 = vrot.slane %v5210_v36, %v16955_v57  ;;  %v6543_v36 = vshrl.u32 %v14222_v22, 16 }
 0x6ee   : > { %5230 = vrot.lane.b32.xlu1 %v10488_v15, %s11004_s30  ;;  %4989 = vrot.lane.b32.xlu0 %v10481_v34, %s11004_s30  ;;  %v6549_v15 = vshrl.u32 %v14237_v39, 16  ;;  %v6579_v34 = vcombine.low %v6570_v46, %v6578_v60  ;;  %v4934_v39 = vcombine.high %v14430_v48, %v14422_v0  ;;  %v6817_v0 = vpack.i.b16 %v14250_v35, %v14235_v42 }
 0x6ef   : > { %v10499_v19 = vcombine.low %v5224_v31, %v5224_v31  ;;  %v10784_v22 = vcombine.high %v5224_v31, %v5224_v31  ;;  %v6854_v48 = vrot.slane %v6823_v62, %v16954_v38  ;;  %v6559_v31 = vpack.i.b16 %v14269_v18, %v14324_v16 }
 0x6f0   : > { %v14466_v44 = vpop.permute.xlu0 %4720  ;;  %v14468_v33 = vpop.permute.xlu1 %4710  ;;  %v4948_v23 = vrot.slane %v4934_v39, %v16955_v57 }
 0x6f1   : > { %16970 = vst [vmem:[#allocation80_spill] sm:$0xff] %v14466_v44  ;;  %v5217_v44 = vrot.slane %v5209_v55, %v16955_v57  ;;  %v6646_v39 = vrot.slane %v6559_v31, %v16954_v38 }
 0x6f2   : > { %4974 = vrot.lane.b32.xlu1 %v10478_v32, %s11006_s12  ;;  %4999 = vrot.lane.b32.xlu0 %v10774_v51, %s11008_s16  ;;  %v6550_v32 = vpack.i.b16 %v6549_v15, %v6548_v10  ;;  %v6580_v51 = vcombine.high %v6570_v46, %v6578_v60  ;;  %v10485_v62 = vcombine.low %v4948_v23, %v4948_v23 }
 0x6f3   : > { %v10495_v26 = vcombine.low %v5217_v44, %v5217_v44  ;;  %v10782_v49 = vcombine.high %v5217_v44, %v5217_v44  ;;  %v6846_v44 = vrot.slane %v6817_v0, %v16954_v38 }
 0x6f4   : > { %v14475_v53 = vpop.permute.xlu0 %4670  ;;  %v14477_v8 = vpop.permute.xlu1 %4730  ;;  %v6612_v41 = vrot.slane %v6550_v32, %v16954_v38  ;;  %v6594_v35 = vrot.slane %v6580_v51, %v16955_v57 }
 0x6f5   : > { %16971 = vst [vmem:[#allocation51_spill] sm:$0xff] %v14477_v8 }
 0x6f6   : > { %5260 = vrot.lane.b32.xlu1 %v10780_v17, %s11009_s17  ;;  %5285 = vrot.lane.b32.xlu0 %v10499_v19, %s11006_s12  ;;  %v14494_v17 = vrot.slane %v6579_v34, %v16955_v57  ;;  %v6544_v19 = vpack.i.b16 %v6543_v36, %v6542_v21  ;;  %v6553_v34 = vpack.i.b16 %v14252_v4, %v14298_v45 }
 0x6f7   : > { %v6855_v36 = vcombine.low %v6846_v44, %v6854_v48  ;;  %v10565_v51 = vcombine.low %v6594_v35, %v6594_v35  ;;  %v10819_v31 = vcombine.high %v6594_v35, %v6594_v35 }
 0x6f8   : > { %v14489_v8 = vpop.permute.xlu0 %4690  ;;  %v14491_v55 = vpop.permute.xlu1 %4680  ;;  %16972 = vst [vmem:[#allocation15_spill] sm:$0xff] %v14494_v17  ;;  %v10817_v42 = vcombine.high %v14494_v17, %v14494_v17  ;;  %v6604_v15 = vrot.slane %v6544_v19, %v16954_v38  ;;  %v10776_v17 = vcombine.high %v4948_v23, %v4948_v23 }
 0x6fa   : > { %5265 = vrot.lane.b32.xlu1 %v10495_v26, %s11004_s30  ;;  %5295 = vrot.lane.b32.xlu0 %v10784_v22, %s11009_s17  ;;  %v6613_v10 = vcombine.low %v6604_v15, %v6612_v41  ;;  %v6638_v26 = vrot.slane %v6553_v34, %v16954_v38  ;;  %v6856_v22 = vcombine.high %v6846_v44, %v6854_v48 }
 0x6fb   : > { %v6614_v34 = vcombine.high %v6604_v15, %v6612_v41  ;;  %v6560_v41 = vshrl.u32 %v14324_v16, 16 }
 0x6fc   : > { %v14505_v60 = vpop.permute.xlu0 %4700  ;;  %v14507_v46 = vpop.permute.xlu1 %4715  ;;  %v6621_v19 = vrot.slane %v6613_v10, %v16955_v57  ;;  %v6648_v0 = vcombine.high %v6638_v26, %v6646_v39  ;;  %v14537_v48 = vrot.slane %v6856_v22, %v16955_v57  ;;  %v6647_v44 = vcombine.low %v6638_v26, %v6646_v39 }
 0x6fd   : > { %16973 = vst [vmem:[#allocation52_spill] sm:$0xff] %v14505_v60  ;;  %v14532_v60 = vrot.slane %v6855_v36, %v16955_v57  ;;  %v6835_v10 = vpack.i.b16 %v14342_v47, %v14326_v61  ;;  %v6628_v15 = vrot.slane %v6614_v34, %v16955_v57  ;;  %v6555_v34 = vshrl.u32 %v14252_v4, 16 }
 0x6fe   : > { %5275 = vrot.lane.b32.xlu1 %v10782_v49, %s11008_s16  ;;  %6707 = vrot.lane.b32.xlu0 %v10817_v42, %s11005_s11  ;;  %v6662_v36 = vrot.slane %v6648_v0, %v16955_v57  ;;  %v10579_v0 = vcombine.low %v14537_v48, %v14537_v48 }
 0x6ff   : > { %16977 = vst [vmem:[#allocation72_spill] sm:$0xff] %v14532_v60  ;;  %v10825_v23 = vcombine.high %v14532_v60, %v14532_v60  ;;  %v6922_v39 = vrot.slane %v6835_v10, %v16954_v38  ;;  %v14562_v60 = vrot.slane %v6647_v44, %v16955_v57 }
 0x700   : > { %v14519_v21 = vpop.permute.xlu0 %4705  ;;  %v14521_v32 = vpop.permute.xlu1 %4725 }
 0x701   : > { %16974 = vst [vmem:[#allocation66_spill] sm:$0xff] %v14521_v32  ;;  %16982 = vst [vmem:[#allocation75_spill] sm:$0xff] %v14562_v60  ;;  %v10821_v44 = vcombine.high %v14562_v60, %v14562_v60 }
 0x702   : > { %6717 = vrot.lane.b32.xlu0 %v10565_v51, %s11003_s27  ;;  %5009 = vrot.lane.b32.xlu1 %v10485_v62, %s11006_s12  ;;  %v10562_v51 = vcombine.low %v6621_v19, %v6621_v19 }
 0x704   : > { %v14527_v49 = vpop.permute.xlu0 %4735  ;;  %v14529_v42 = vpop.permute.xlu1 %6431 }
 0x705   : > { %16975 = vst [vmem:[#allocation65_spill] sm:$0xff] %v14527_v49  ;;  %16976 = vst [vmem:[#allocation76_spill] sm:$0xff] %v14529_v42 }
 0x706   : > { %6727 = vrot.lane.b32.xlu0 %v10819_v31, %s11007_s15  ;;  %5019 = vrot.lane.b32.xlu1 %v10776_v17, %s11009_s17  ;;  %v6829_v17 = vpack.i.b16 %v14300_v6, %v14285_v59  ;;  %v10572_v31 = vcombine.low %v6662_v36, %v6662_v36 }
 0x708   : > { %v14541_v62 = vpop.permute.xlu0 %6441  ;;  %v14543_v35 = vpop.permute.xlu1 %6451  ;;  %v6914_v16 = vrot.slane %v6829_v17, %v16954_v38  ;;  %v10818_v17 = vcombine.high %v6621_v19, %v6621_v19 }
 0x709   : > { %16978 = vst [vmem:[#allocation71_spill] sm:$0xff] %v14541_v62  ;;  %16979 = vst [vmem:[#allocation70_spill] sm:$0xff] %v14543_v35 }
 0x70a   : > { %6983 = vrot.lane.b32.xlu0 %v10825_v23, %s11005_s11  ;;  %6702 = vrot.lane.b32.xlu1 %v10562_v51, %s11004_s30  ;;  %v6561_v23 = vshrl.u32 %v14269_v18, 16  ;;  %v6554_v51 = vshrl.u32 %v14298_v45, 16  ;;  %v6923_v35 = vcombine.low %v6914_v16, %v6922_v39  ;;  %v10566_v18 = vcombine.low %v6628_v15, %v6628_v15 }
 0x70b   : > { %v6889_v45 = vcombine.low %v14306_v63, %v14309_v12 }
 0x70c   : > { %v14555_v26 = vpop.permute.xlu0 %6466  ;;  %v14557_v22 = vpop.permute.xlu1 %6426  ;;  %v6562_v10 = vpack.i.b16 %v6561_v23, %v6560_v41  ;;  %v6924_v41 = vcombine.high %v6914_v16, %v6922_v39  ;;  %v10823_v39 = vcombine.high %v6662_v36, %v6662_v36 }
 0x70d   : > { %16980 = vst [vmem:[#allocation61_spill] sm:$0xff] %v14555_v26  ;;  %16981 = vst [vmem:[#allocation60_spill] sm:$0xff] %v14557_v22  ;;  %v6556_v22 = vpack.i.b16 %v6555_v34, %v6554_v51  ;;  %v14588_v51 = vrot.slane %v6923_v35, %v16955_v57  ;;  %v6897_v16 = vrot.slane %v6889_v45, %v16955_v57  ;;  %v6837_v45 = vshrl.u32 %v14342_v47, 16 }
 0x70e   : > { %6993 = vrot.lane.b32.xlu0 %v10579_v0, %s11003_s27  ;;  %6752 = vrot.lane.b32.xlu1 %v10572_v31, %s11003_s27  ;;  %v6680_v4 = vrot.slane %v6562_v10, %v16954_v38  ;;  %v5695_v0 = vpack.i.b16 %v14405_v56, %v14389_v30  ;;  %v5971_v10 = vpack.i.b16 %v14377_v28, %v14360_v52 }
 0x70f   : > { %16987 = vst [vmem:[#allocation79_spill] sm:$0xff] %v14588_v51  ;;  %v6672_v34 = vrot.slane %v6556_v22, %v16954_v38  ;;  %v10829_v22 = vcombine.high %v14588_v51, %v14588_v51 }
 0x710   : > { %v14570_v62 = vpop.permute.xlu0 %6436  ;;  %v14572_v42 = vpop.permute.xlu1 %6476 }
 0x711   : > { %16983 = vst [vmem:[#allocation74_spill] sm:$0xff] %v14570_v62  ;;  %16984 = vst [vmem:[#allocation25_spill] sm:$0xff] %v14572_v42  ;;  %v10820_v62 = vcombine.high %v6628_v15, %v6628_v15  ;;  %v6681_v19 = vcombine.low %v6672_v34, %v6680_v4  ;;  %v5726_v15 = vrot.slane %v5695_v0, %v16954_v38 }
 0x712   : > { %6742 = vrot.lane.b32.xlu0 %v10821_v44, %s11005_s11  ;;  %6722 = vrot.lane.b32.xlu1 %v10566_v18, %s11006_s12  ;;  %v5689_v44 = vpack.i.b16 %v14391_v24, %v14375_v27  ;;  %v10576_v0 = vcombine.low %v6897_v16, %v6897_v16 }
 0x714   : > { %v14583_v31 = vpop.permute.xlu0 %6446  ;;  %v14585_v23 = vpop.permute.xlu1 %6486  ;;  %v5718_v36 = vrot.slane %v5689_v44, %v16954_v38  ;;  %v6689_v44 = vrot.slane %v6681_v19, %v16955_v57 }
 0x715   : > { %16985 = vst [vmem:[#allocation81_spill] sm:$0xff] %v14583_v31  ;;  %16986 = vst [vmem:[#allocation12_spill] sm:$0xff] %v14585_v23 }
 0x716   : > { %6712 = vrot.lane.b32.xlu0 %v10818_v17, %s11008_s16  ;;  %6732 = vrot.lane.b32.xlu1 %v10820_v62, %s11009_s17  ;;  %v14606_v17 = vrot.slane %v6924_v41, %v16955_v57  ;;  %v5965_v62 = vpack.i.b16 %v14362_v58, %v14340_v13  ;;  %v5727_v23 = vcombine.low %v5718_v36, %v5726_v15 }
 0x718   : > { %v14599_v35 = vpop.permute.xlu0 %6471  ;;  %v14601_v18 = vpop.permute.xlu1 %6456  ;;  %v10586_v31 = vcombine.low %v14606_v17, %v14606_v17  ;;  %v14627_v47 = vrot.slane %v5965_v62, %v16954_v38  ;;  %v14639_v62 = vrot.slane %v5727_v23, %v16955_v57 }
 0x719   : > { %16988 = vst [vmem:[#allocation77_spill] sm:$0xff] %v14599_v35  ;;  %16989 = vst [vmem:[#allocation73_spill] sm:$0xff] %v14601_v18  ;;  %v14615_v18 = vrot.slane %v5971_v10, %v16954_v38  ;;  %v6830_v10 = vshrl.u32 %v14285_v59, 16 }
 0x71a   : > { %6762 = vrot.lane.b32.xlu0 %v10823_v39, %s11007_s15  ;;  %7018 = vrot.lane.b32.xlu1 %v10829_v22, %s11005_s11  ;;  %v6831_v39 = vshrl.u32 %v14300_v6, 16  ;;  %v6836_v22 = vshrl.u32 %v14326_v61, 16  ;;  %v10826_v6 = vcombine.high %v6897_v16, %v6897_v16  ;;  %v10569_v61 = vcombine.low %v6689_v44, %v6689_v44  ;;  %16993 = vst [vmem:[#allocation14_spill] sm:$0xff] %v14639_v62 }
 0x71b   : > { %v6004_v60 = vcombine.high %v14627_v47, %v14615_v18  ;;  %v10793_v23 = vcombine.high %v14639_v62, %v14639_v62 }
 0x71c   : > { %v14617_v51 = vpop.permute.xlu0 %6491  ;;  %v14619_v41 = vpop.permute.xlu1 %6461  ;;  %v6838_v42 = vpack.i.b16 %v6837_v45, %v6836_v22  ;;  %v6832_v26 = vpack.i.b16 %v6831_v39, %v6830_v10  ;;  %v5983_v45 = vpack.i.b16 %v14427_v25, %v14412_v20 }
 0x71d   : > { %16990 = vst [vmem:[#allocation68_spill] sm:$0xff] %v14617_v51  ;;  %16991 = vst [vmem:[#allocation20_spill] sm:$0xff] %v14619_v41  ;;  %v6682_v51 = vcombine.high %v6672_v34, %v6680_v4  ;;  %v10822_v4 = vcombine.high %v6689_v44, %v6689_v44  ;;  %v5728_v34 = vcombine.high %v5718_v36, %v5726_v15 }
 0x71e   : > { %6978 = vrot.lane.b32.xlu0 %v10576_v0, %s11004_s30  ;;  %7028 = vrot.lane.b32.xlu1 %v10586_v31, %s11003_s27  ;;  %v14644_v59 = vrot.slane %v6838_v42, %v16954_v38  ;;  %v6018_v39 = vrot.slane %v6004_v60, %v16955_v57  ;;  %v14657_v22 = vrot.slane %v6832_v26, %v16954_v38 }
 0x71f   : > { %v6696_v31 = vrot.slane %v6682_v51, %v16955_v57  ;;  %v5977_v42 = vpack.i.b16 %v14414_v7, %v14403_v14  ;;  %v6070_v36 = vrot.slane %v5983_v45, %v16954_v38  ;;  %v5707_v44 = vpack.i.b16 %v14449_v50, %v14440_v54 }
 0x720   : > { %v14634_v35 = vpop.permute.xlu0 %5579  ;;  %v14636_v19 = vpop.permute.xlu1 %6481  ;;  %v6957_v51 = vcombine.low %v14657_v22, %v14644_v59  ;;  %v10533_v10 = vcombine.low %v6018_v39, %v6018_v39 }
 0x721   : > { %16992 = vst [vmem:[#allocation10_spill] sm:$0xff] %v14636_v19  ;;  %v10573_v15 = vcombine.low %v6696_v31, %v6696_v31  ;;  %v10824_v45 = vcombine.high %v6696_v31, %v6696_v31  ;;  %v5697_v19 = vshrl.u32 %v14405_v56, 16  ;;  %v5794_v41 = vrot.slane %v5707_v44, %v16954_v38 }
 0x722   : > { %6988 = vrot.lane.b32.xlu0 %v10826_v6, %s11008_s16  ;;  %6737 = vrot.lane.b32.xlu1 %v10569_v61, %s11004_s30  ;;  %v14673_v6 = vrot.slane %v5728_v34, %v16955_v57  ;;  %v6062_v61 = vrot.slane %v5977_v42, %v16954_v38  ;;  %v5690_v56 = vshrl.u32 %v14375_v27, 16  ;;  %v5967_v27 = vshrl.u32 %v14362_v58, 16 }
 0x724   : > { %v14649_v16 = vpop.permute.xlu0 %5589  ;;  %v14651_v0 = vpop.permute.xlu1 %5614  ;;  %v6071_v62 = vcombine.low %v6062_v61, %v6070_v36  ;;  %v10519_v42 = vcombine.low %v14673_v6, %v14673_v6 }
 0x726   : > { %6747 = vrot.lane.b32.xlu1 %v10822_v4, %s11008_s16  ;;  %5855 = vrot.lane.b32.xlu0 %v10793_v23, %s11005_s11  ;;  %v5701_v4 = vpack.i.b16 %v14442_v11, %v14425_v43  ;;  %v6965_v23 = vrot.slane %v6957_v51, %v16955_v57  ;;  %v5973_v51 = vshrl.u32 %v14377_v28, 16  ;;  %v5966_v28 = vshrl.u32 %v14340_v13, 16 }
 0x728   : > { %v14668_v60 = vpop.permute.xlu0 %5599  ;;  %v14670_v26 = vpop.permute.xlu1 %5584  ;;  %v5786_v31 = vrot.slane %v5701_v4, %v16954_v38  ;;  %v10583_v44 = vcombine.low %v6965_v23, %v6965_v23  ;;  %v14703_v4 = vrot.slane %v6071_v62, %v16955_v57  ;;  %v6072_v62 = vcombine.high %v6062_v61, %v6070_v36 }
 0x729   : > { %16994 = vst [vmem:[#allocation16_spill] sm:$0xff] %v14668_v60  ;;  %v5696_v60 = vshrl.u32 %v14389_v30, 16 }
 0x72a   : > { %6141 = vrot.lane.b32.xlu0 %v10533_v10, %s11003_s27  ;;  %6757 = vrot.lane.b32.xlu1 %v10573_v15, %s11006_s12  ;;  %v5691_v10 = vshrl.u32 %v14391_v24, 16  ;;  %v6003_v15 = vcombine.low %v14627_v47, %v14615_v18  ;;  %v10803_v24 = vcombine.high %v6018_v39, %v6018_v39  ;;  %16997 = vst [vmem:[#allocation53_spill] sm:$0xff] %v14703_v4 }
 0x72b   : > { %v10830_v47 = vcombine.high %v6965_v23, %v6965_v23  ;;  %v10805_v58 = vcombine.high %v14703_v4, %v14703_v4 }
 0x72c   : > { %v14683_v49 = vpop.permute.xlu0 %5624  ;;  %v14685_v34 = vpop.permute.xlu1 %5594 }
 0x72d   : > { %16995 = vst [vmem:[#allocation19_spill] sm:$0xff] %v14683_v49  ;;  %16996 = vst [vmem:[#allocation50_spill] sm:$0xff] %v14685_v34  ;;  %v5698_v34 = vpack.i.b16 %v5697_v19, %v5696_v60  ;;  %v5795_v49 = vcombine.low %v5786_v31, %v5794_v41  ;;  %v14711_v19 = vrot.slane %v6003_v15, %v16955_v57 }
 0x72e   : > { %5865 = vrot.lane.b32.xlu0 %v10519_v42, %s11003_s27  ;;  %6767 = vrot.lane.b32.xlu1 %v10824_v45, %s11009_s17  ;;  %v5972_v45 = vshrl.u32 %v14360_v52, 16  ;;  %v5692_v42 = vpack.i.b16 %v5691_v10, %v5690_v56  ;;  %v5968_v56 = vpack.i.b16 %v5967_v27, %v5966_v28 }
 0x72f   : > { %16998 = vst [vmem:[#allocation56_spill] sm:$0xff] %v14711_v19  ;;  %v5760_v39 = vrot.slane %v5698_v34, %v16954_v38  ;;  %v14721_v10 = vrot.slane %v5795_v49, %v16955_v57  ;;  %v10801_v36 = vcombine.high %v14711_v19, %v14711_v19  ;;  %v5796_v34 = vcombine.high %v5786_v31, %v5794_v41 }
 0x730   : > { %v14698_v32 = vpop.permute.xlu0 %5634  ;;  %v14700_v30 = vpop.permute.xlu1 %5604  ;;  %v5974_v18 = vpack.i.b16 %v5973_v51, %v5972_v45  ;;  %v5752_v13 = vrot.slane %v5692_v42, %v16954_v38  ;;  %v10795_v31 = vcombine.high %v14673_v6, %v14673_v6  ;;  %v5984_v6 = vshrl.u32 %v14412_v20, 16 }
 0x731   : > { %16999 = vst [vmem:[#allocation17_spill] sm:$0xff] %v14721_v10  ;;  %v10797_v49 = vcombine.high %v14721_v10, %v14721_v10 }
 0x732   : > { %6151 = vrot.lane.b32.xlu0 %v10803_v24, %s11007_s15  ;;  %7013 = vrot.lane.b32.xlu1 %v10583_v44, %s11004_s30  ;;  %v6036_v23 = vrot.slane %v5974_v18, %v16954_v38  ;;  %v5761_v61 = vcombine.low %v5752_v13, %v5760_v39  ;;  %v6086_v44 = vrot.slane %v6072_v62, %v16955_v57 }
 0x733   : > { %v6028_v24 = vrot.slane %v5968_v56, %v16954_v38  ;;  %v5810_v18 = vrot.slane %v5796_v34, %v16955_v57  ;;  %v5762_v62 = vcombine.high %v5752_v13, %v5760_v39 }
 0x734   : > { %v14714_v60 = vpop.permute.xlu0 %5574  ;;  %v14716_v52 = vpop.permute.xlu1 %5609  ;;  %v10540_v41 = vcombine.low %v6086_v44, %v6086_v44  ;;  %v5769_v28 = vrot.slane %v5761_v61, %v16955_v57  ;;  %v5979_v61 = vshrl.u32 %v14414_v7, 16  ;;  %v10807_v4 = vcombine.high %v6086_v44, %v6086_v44 }
 0x735   : > { %v6038_v45 = vcombine.high %v6028_v24, %v6036_v23  ;;  %v10526_v10 = vcombine.low %v5810_v18, %v5810_v18  ;;  %v6037_v34 = vcombine.low %v6028_v24, %v6036_v23  ;;  %v5776_v20 = vrot.slane %v5762_v62, %v16955_v57 }
 0x736   : > { %6166 = vrot.lane.b32.xlu0 %v10805_v58, %s11005_s11  ;;  %7023 = vrot.lane.b32.xlu1 %v10830_v47, %s11008_s16  ;;  %v5985_v58 = vshrl.u32 %v14427_v25, 16  ;;  %v5709_v25 = vshrl.u32 %v14449_v50, 16  ;;  %v5708_v7 = vshrl.u32 %v14440_v54, 16 }
 0x737   : > { %v6052_v47 = vrot.slane %v6038_v45, %v16955_v57  ;;  %v5978_v45 = vshrl.u32 %v14403_v14, 16  ;;  %v5702_v14 = vshrl.u32 %v14425_v43, 16  ;;  %v6045_v50 = vrot.slane %v6037_v34, %v16955_v57 }
 0x738   : > { %v14729_v51 = vpop.permute.xlu0 %5235  ;;  %v14731_v15 = vpop.permute.xlu1 %5619  ;;  %v5986_v13 = vpack.i.b16 %v5985_v58, %v5984_v6  ;;  %v5710_v23 = vpack.i.b16 %v5709_v25, %v5708_v7  ;;  %v10520_v62 = vcombine.low %v5776_v20, %v5776_v20  ;;  %v10799_v58 = vcombine.high %v5810_v18, %v5810_v18 }
 0x739   : > { %v10534_v39 = vcombine.low %v6052_v47, %v6052_v47  ;;  %v5980_v19 = vpack.i.b16 %v5979_v61, %v5978_v45  ;;  %v10804_v34 = vcombine.high %v6052_v47, %v6052_v47  ;;  %v10530_v45 = vcombine.low %v6045_v50, %v6045_v50 }
 0x73a   : > { %5890 = vrot.lane.b32.xlu0 %v10797_v49, %s11005_s11  ;;  %6131 = vrot.lane.b32.xlu1 %v10801_v36, %s11005_s11  ;;  %v10794_v49 = vcombine.high %v5769_v28, %v5769_v28  ;;  %v5828_v43 = vrot.slane %v5710_v23, %v16954_v38  ;;  %v10796_v25 = vcombine.high %v5776_v20, %v5776_v20 }
 0x73b   : > { %v6096_v54 = vrot.slane %v5980_v19, %v16954_v38  ;;  %v10516_v7 = vcombine.low %v5769_v28, %v5769_v28 }
 0x73c   : > { %v14739_v27 = vpop.permute.xlu0 %4969  ;;  %v14741_v42 = vpop.permute.xlu1 %5629 }
 0x73e   : > { %6176 = vrot.lane.b32.xlu0 %v10540_v41, %s11003_s27  ;;  %5875 = vrot.lane.b32.xlu1 %v10795_v31, %s11007_s15 }
 0x740   : > { %v14751_v56 = vpop.permute.xlu0 %4979  ;;  %v14753_v36 = vpop.permute.xlu1 %5639 }
 0x742   : > { %5860 = vrot.lane.b32.xlu0 %v10794_v49, %s11008_s16  ;;  %5900 = vrot.lane.b32.xlu1 %v10526_v10, %s11003_s27  ;;  %v5703_v49 = vshrl.u32 %v14442_v11, 16  ;;  %v6104_v10 = vrot.slane %v5986_v13, %v16954_v38 }
 0x744   : > { %v14761_v41 = vpop.permute.xlu0 %4994  ;;  %v14763_v31 = vpop.permute.xlu1 %4959  ;;  %v5704_v11 = vpack.i.b16 %v5703_v49, %v5702_v14  ;;  %v6106_v47 = vcombine.high %v6096_v54, %v6104_v10 }
 0x746   : > { %6146 = vrot.lane.b32.xlu0 %v10534_v39, %s11006_s12  ;;  %6186 = vrot.lane.b32.xlu1 %v10807_v4, %s11007_s15  ;;  %v6105_v4 = vcombine.low %v6096_v54, %v6104_v10  ;;  %v5820_v39 = vrot.slane %v5704_v11, %v16954_v38  ;;  %v6120_v10 = vrot.slane %v6106_v47, %v16955_v57 }
 0x747   : > { %v6958_v47 = vcombine.high %v14657_v22, %v14644_v59  ;;  %v4739_v59 = vsel %vm1246_vm2, %v14068_v40, %v14475_v53  ;;  %v5643_v53 = vsel %vm1246_vm2, %v14216_v37, %v14714_v60 }
 0x748   : > { %v14773_v24 = vpop.permute.xlu0 %5270  ;;  %v14775_v44 = vpop.permute.xlu1 %5245  ;;  %v5829_v19 = vcombine.low %v5820_v39, %v5828_v43  ;;  %v6113_v49 = vrot.slane %v6105_v4, %v16955_v57  ;;  %v5830_v20 = vcombine.high %v5820_v39, %v5828_v43  ;;  %v17000_v43 = vcombine.high %v14306_v63, %v14309_v12 }
 0x749   : > { %v6972_v63 = vrot.slane %v6958_v47, %v16955_v57  ;;  %v4741_v40 = vsel %vm530_vm4, %v4739_v59, %v14447_v9  ;;  %v5645_v37 = vsel %vm530_vm4, %v5643_v53, %v14634_v35  ;;  %v10831_v35 = vcombine.high %v14606_v17, %v14606_v17 }
 0x74a   : > { %5870 = vrot.lane.b32.xlu0 %v10520_v62, %s11006_s12  ;;  %5910 = vrot.lane.b32.xlu1 %v10799_v58, %s11007_s15  ;;  %v10537_v62 = vcombine.low %v6113_v49, %v6113_v49  ;;  %v10802_v58 = vcombine.high %v6045_v50, %v6045_v50  ;;  %v5837_v11 = vrot.slane %v5829_v19, %v16955_v57 }
 0x74b   : > { %v10806_v19 = vcombine.high %v6113_v49, %v6113_v49  ;;  %v6904_v39 = vrot.slane %v17000_v43, %v16955_v57 }
 0x74c   : > { %v14781_v6 = vpop.permute.xlu0 %5014  ;;  %v14783_v61 = vpop.permute.xlu1 %5255 }
 0x74d   : > { %v10828_v60 = vcombine.high %v6904_v39, %v6904_v39 }
 0x74e   : > { %6156 = vrot.lane.b32.xlu0 %v10804_v34, %s11009_s17  ;;  %6126 = vrot.lane.b32.xlu1 %v10530_v45, %s11004_s30  ;;  %v10523_v34 = vcombine.low %v5837_v11, %v5837_v11  ;;  %v10798_v45 = vcombine.high %v5837_v11, %v5837_v11  ;;  %v10580_v11 = vcombine.low %v6904_v39, %v6904_v39  ;;  %v17002_v39 = vld [vmem:[#allocation78_spill] sm:$0xff] }
 0x750   : > { %v4965_v18 = vpop.permute.xlu0 %4964  ;;  %v14788_v13 = vpop.permute.xlu1 %5004 }
 0x752   : > { %5880 = vrot.lane.b32.xlu0 %v10796_v25, %s11009_s17  ;;  %5850 = vrot.lane.b32.xlu1 %v10516_v7, %s11004_s30  ;;  %v10541_v25 = vcombine.low %v6120_v10, %v6120_v10  ;;  %v5844_v7 = vrot.slane %v5830_v20, %v16955_v57 }
 0x754   : > { %v5241_v14 = vpop.permute.xlu0 %5240  ;;  %v14793_v23 = vpop.permute.xlu1 %5280 }
 0x756   : > { %6161 = vrot.lane.b32.xlu0 %v10537_v62, %s11004_s30  ;;  %6136 = vrot.lane.b32.xlu1 %v10802_v58, %s11008_s16 }
 0x758   : > { %v14798_v28 = vpop.permute.xlu0 %5250  ;;  %v14800_v4 = vpop.permute.xlu1 %5290 }
 0x75a   : > { %5885 = vrot.lane.b32.xlu0 %v10523_v34, %s11004_s30  ;;  %5895 = vrot.lane.b32.xlu1 %v10798_v45, %s11008_s16  ;;  %v10527_v34 = vcombine.low %v5844_v7, %v5844_v7  ;;  %v10800_v45 = vcombine.high %v5844_v7, %v5844_v7 }
 0x75c   : > { %v14805_v50 = vpop.permute.xlu0 %4984  ;;  %v4955_v54 = vpop.permute.xlu1 %4954 }
 0x75d   : > { %v5023_v49 = vsel %vm1246_vm2, %v14354_v5, %v4955_v54  ;;  %v4754_v54 = vsel %vm1246_vm2, %v14094_v1, %v14519_v21  ;;  %v4743_v1 = vsel %vm1252_vm5, %v4741_v40, %v14491_v55 }
 0x75e   : > { %6171 = vrot.lane.b32.xlu0 %v10806_v19, %s11008_s16  ;;  %6181 = vrot.lane.b32.xlu1 %v10541_v25, %s11006_s12  ;;  %v10808_v19 = vcombine.high %v6120_v10, %v6120_v10  ;;  %v5025_v22 = vsel %vm530_vm4, %v5023_v49, %v14763_v31  ;;  %v10827_v10 = vcombine.high %v14537_v48, %v14537_v48 }
 0x75f   : > { %v10587_v25 = vcombine.low %v6972_v63, %v6972_v63  ;;  %v5027_v31 = vsel %vm1252_vm5, %v5025_v22, %v4965_v18  ;;  %v4756_v21 = vsel %vm530_vm4, %v4754_v54, %v14468_v33  ;;  %v5658_v33 = vsel %vm1246_vm2, %v14231_v2, %v14716_v52 }
 0x760   : > { %v4990_v62 = vpop.permute.xlu0 %4989  ;;  %v5231_v58 = vpop.permute.xlu1 %5230  ;;  %v5029_v48 = vsel %vm1255_vm6, %v5027_v31, %v14739_v27 }
 0x761   : > { %v5299_v5 = vsel %vm1246_vm2, %v14303_v29, %v5231_v58  ;;  %v17001_v58 = vld [vmem:[#allocation43_spill] sm:$0xff] }
 0x762   : > { %6998 = vrot.lane.b32.xlu0 %v10580_v11, %s11006_s12  ;;  %5905 = vrot.lane.b32.xlu1 %v10527_v34, %s11006_s12  ;;  %v5301_v29 = vsel %vm530_vm4, %v5299_v5, %v14729_v51  ;;  %v4745_v51 = vsel %vm1255_vm6, %v4743_v1, %v14457_v3  ;;  %v5038_v27 = vsel %vm1246_vm2, %v17001_v58, %v4990_v62  ;;  %v17003_v34 = vld [vmem:[#allocation80_spill] sm:$0xff]  ;;  %v17006_v5 = vld [vmem:[#allocation19_spill] sm:$0xff] }
 0x763   : > { %v5303_v9 = vsel %vm1252_vm5, %v5301_v29, %v5241_v14  ;;  %v4758_v14 = vsel %vm1252_vm5, %v4756_v21, %v14507_v46  ;;  %v5647_v11 = vsel %vm1252_vm5, %v5645_v37, %v14670_v26  ;;  %v4747_v17 = vsel %vm1258_vm7, %v4745_v51, %v14489_v8  ;;  %v7130_v26 = vld [vmem:[%s16570_s7] sm:$0xf]  ;;  %v17008_v37 = vld [vmem:[#allocation52_spill] sm:$0xff] }
 0x764   : > { %v5000_v12 = vpop.permute.xlu0 %4999  ;;  %v4975_v20 = vpop.permute.xlu1 %4974  ;;  %v5305_v2 = vsel %vm1255_vm6, %v5303_v9, %v14775_v44  ;;  %v5660_v46 = vsel %vm530_vm4, %v5658_v33, %v14651_v0  ;;  %v10832_v62 = vcombine.high %v6972_v63, %v6972_v63  ;;  %v4760_v44 = vsel %vm1255_vm6, %v4758_v14, %v17003_v34  ;;  %v17009_v9 = vld [vmem:[#allocation51_spill] sm:$0xff] }
 0x765   : > { %v5031_v55 = vsel %vm1258_vm7, %v5029_v48, %v4975_v20  ;;  %v5662_v49 = vsel %vm1252_vm5, %v5660_v46, %v14731_v15  ;;  %v5040_v8 = vsel %vm530_vm4, %v5038_v27, %v14761_v41  ;;  %v17010_v48 = vld [vmem:[#allocation16_spill] sm:$0xff]  ;;  %v17011_v27 = vld [vmem:[#allocation65_spill] sm:$0xff] }
 0x766   : > { %5915 = vrot.lane.b32.xlu0 %v10800_v45, %s11009_s17  ;;  %6191 = vrot.lane.b32.xlu1 %v10808_v19, %s11009_s17  ;;  %v5033_v52 = vsel %vm1261_vm10, %v5031_v55, %v14751_v56  ;;  %v5649_v45 = vsel %vm1255_vm6, %v5647_v11, %v14649_v16  ;;  %v5042_v63 = vsel %vm1252_vm5, %v5040_v8, %v5000_v12  ;;  %v17005_v16 = vld [vmem:[#allocation66_spill] sm:$0xff] }
 0x767   : > { %v5307_v19 = vsel %vm1258_vm7, %v5305_v2, %v14798_v28  ;;  %v5035_v15 = vsel %vm1264_vm12, %v5033_v52, %v14805_v50  ;;  %v4762_v12 = vsel %vm1258_vm7, %v4760_v44, %v17005_v16  ;;  %v5664_v28 = vsel %vm1255_vm6, %v5662_v49, %v17006_v5 }
 0x768   : > { %v5286_v43 = vpop.permute.xlu0 %5285  ;;  %v5261_v7 = vpop.permute.xlu1 %5260  ;;  %v5044_v53 = vsel %vm1255_vm6, %v5042_v63, %v14788_v13  ;;  %v7077_v31 = vrot.slane %v5035_v15, 6 }
 0x76a   : > { %7003 = vrot.lane.b32.xlu0 %v10827_v10, %s11007_s15  ;;  %7033 = vrot.lane.b32.xlu1 %v10587_v25, %s11006_s12  ;;  %v17007_v10 = vld [vmem:[#allocation50_spill] sm:$0xff]  ;;  %v5309_v25 = vsel %vm1261_vm10, %v5307_v19, %v14783_v61  ;;  %v4764_v61 = vsel %vm1261_vm10, %v4762_v12, %v17009_v9 }
 0x76b   : > { %v5651_v50 = vsel %vm1258_vm7, %v5649_v45, %v17007_v10  ;;  %v5311_v1 = vsel %vm1264_vm12, %v5309_v25, %v5261_v7 }
 0x76c   : > { %v5296_v18 = vpop.permute.xlu0 %5295  ;;  %v5266_v47 = vpop.permute.xlu1 %5265  ;;  %v7081_v51 = vrot.slane %v5311_v1, 4 }
 0x76d   : > { %v5314_v3 = vsel %vm1246_vm2, %v17002_v39, %v5266_v47  ;;  %v4766_v39 = vsel %vm1264_vm12, %v4764_v61, %v17011_v27 }
 0x76e   : > { %7008 = vrot.lane.b32.xlu0 %v10828_v60, %s11009_s17  ;;  %7038 = vrot.lane.b32.xlu1 %v10831_v35, %s11007_s15  ;;  %v5316_v0 = vsel %vm530_vm4, %v5314_v3, %v14773_v24  ;;  %v17004_v24 = vld [vmem:[#allocation44_spill] sm:$0xff]  ;;  %v5653_v60 = vsel %vm1261_vm10, %v5651_v50, %v17010_v48 }
 0x76f   : > { %v4749_v22 = vsel %vm1261_vm10, %v4747_v17, %v17004_v24 }
 0x770   : > { %v14889_v20 = vpop.permute.xlu0 %6707  ;;  %v5276_v56 = vpop.permute.xlu1 %5275 }
 0x771   : > { %v5318_v59 = vsel %vm1252_vm5, %v5316_v0, %v5276_v56 }
 0x772   : > { %v5320_v41 = vsel %vm1255_vm6, %v5318_v59, %v14793_v23  ;;  %7133 = vperm.xlu0 %10987, %v7130_v26   ;;  %7043 = vrot.lane.b32.xlu1 %v10832_v62, %s11009_s17  ;;  %v5666_v23 = vsel %vm1258_vm7, %v5664_v28, %v14741_v42  ;;  %v4751_v42 = vsel %vm1264_vm12, %v4749_v22, %v17008_v37 }
 0x773   : > { %v5322_v54 = vsel %vm1258_vm7, %v5320_v41, %v5286_v43  ;;  %v5668_v13 = vsel %vm1261_vm10, %v5666_v23, %v14698_v32  ;;  %v7101_v14 = vsel %vm7099_vm0, %v4751_v42, %v7077_v31  ;;  %v5655_v32 = vsel %vm1264_vm12, %v5653_v60, %v14700_v30  ;;  %v17012_v60 = vld [vmem:[#allocation20_spill] sm:$0xff] }
 0x774   : > { %v14917_v40 = vpop.permute.xlu0 %6717  ;;  %v5010_v29 = vpop.permute.xlu1 %5009  ;;  %v5324_v43 = vsel %vm1261_vm10, %v5322_v54, %v14800_v4  ;;  %v5670_v47 = vsel %vm1264_vm12, %v5668_v13, %v14753_v36  ;;  %v7105_v36 = vsel %vm4080_vm13, %v7101_v14, %v7081_v51  ;;  %v7085_v46 = vrot.slane %v5655_v32, 2  ;;  %v17013_v13 = vld [vmem:[#allocation55_spill] sm:$0xff] }
 0x775   : > { %v5046_v21 = vsel %vm1258_vm7, %v5044_v53, %v5010_v29  ;;  %v5326_v55 = vsel %vm1264_vm12, %v5324_v43, %v5296_v18  ;;  %v7086_v11 = vrot.slane %v5670_v47, 2  ;;  %v6510_v51 = vsel %vm1246_vm2, %v17013_v13, %v17012_v60 }
 0x776   : > { %v5048_v4 = vsel %vm1261_vm10, %v5046_v21, %v14781_v6  ;;  %v7082_v3 = vrot.slane %v5326_v55, 4  ;;  %v7110_v30 = vsel %vm16651_vm15, %v7105_v36, %v7085_v46  ;;  %v17015_v55 = vld [vmem:[#allocation14_spill] sm:$0xff]  ;;  %v17019_v46 = vld [vmem:[#allocation69_spill] sm:$0xff] }
 0x778   : > { %v14933_v7 = vpop.permute.xlu0 %6727  ;;  %v5020_v33 = vpop.permute.xlu1 %5019 }
 0x779   : > { %v5050_v35 = vsel %vm1264_vm12, %v5048_v4, %v5020_v33  ;;  %v17014_v4 = vld [vmem:[#allocation56_spill] sm:$0xff] }
 0x77a   : > { %v7078_v58 = vrot.slane %v5050_v35, 6  ;;  %v17016_v35 = vld [vmem:[#allocation61_spill] sm:$0xff] }
 0x77b   : > { %v6512_v14 = vsel %vm530_vm4, %v6510_v51, %v17016_v35  ;;  %v17021_v51 = vld [vmem:[#allocation75_spill] sm:$0xff] }
 0x77c   : > { %v14946_v6 = vpop.permute.xlu0 %6983  ;;  %v6703_v2 = vpop.permute.xlu1 %6702  ;;  %v7103_v18 = vsel %vm7099_vm0, %v4766_v39, %v7078_v58 }
 0x77d   : > { %v7107_v17 = vsel %vm4080_vm13, %v7103_v18, %v7082_v3 }
 0x77e   : > { %v7113_v52 = vsel %vm16651_vm15, %v7107_v17, %v7086_v11  ;;  %v17017_v11 = vld [vmem:[#allocation15_spill] sm:$0xff]  ;;  %v17018_v17 = vld [vmem:[#allocation60_spill] sm:$0xff] }
 0x77f   : > { %7144 = vmatprep.subr.bf16.mxu1 %v7113_v52  ;;  %v6771_v18 = vsel %vm1246_vm2, %v17017_v11, %v6703_v2  ;;  %v6495_v52 = vsel %vm1246_vm2, %v17019_v46, %v17018_v17 }
 0x780   : > { %v14953_v26 = vpop.permute.xlu0 %6993  ;;  %7145 = vmatpush1.bf16.msra.mxu1 %v7110_v30  ;;  %v14955_v62 = vpop.permute.xlu1 %6752  ;;  %v17020_v30 = vld [vmem:[#allocation77_spill] sm:$0xff]  ;;  %v6773_v13 = vsel %vm530_vm4, %v6771_v18, %v14889_v20 }
 0x784   : > { %v6743_v34 = vpop.permute.xlu0 %6742  ;;  %v14957_v44 = vpop.permute.xlu1 %6722 }
 0x788   : > { %v6713_v49 = vpop.permute.xlu0 %6712  ;;  %v14959_v8 = vpop.permute.xlu1 %6732 }
 0x78c   : > { %v14961_v0 = vpop.permute.xlu0 %6762  ;;  %v14963_v56 = vpop.permute.xlu1 %7018 }
 0x790   : > { %v14965_v45 = vpop.permute.xlu0 %6978  ;;  %v14967_v63 = vpop.permute.xlu1 %7028 }
 0x794   : > { %v14969_v19 = vpop.permute.xlu0 %6988  ;;  %v6738_v59 = vpop.permute.xlu1 %6737 }
 0x795   : > { %v6786_v2 = vsel %vm1246_vm2, %v17021_v51, %v6738_v59 }
 0x798   : > { %v5856_v15 = vpop.permute.xlu0 %5855  ;;  %v6748_v41 = vpop.permute.xlu1 %6747 }
 0x79c   : > { %v6142_v24 = vpop.permute.xlu0 %6141  ;;  %v14971_v22 = vpop.permute.xlu1 %6757 }
 0x7a0   : > { %v5866_v16 = vpop.permute.xlu0 %5865  ;;  %v14973_v12 = vpop.permute.xlu1 %6767 }
 0x7a4   : > { %v6152_v5 = vpop.permute.xlu0 %6151  ;;  %v14975_v28 = vpop.permute.xlu1 %7013 }
 0x7a8   : > { %v6167_v54 = vpop.permute.xlu0 %6166  ;;  %v14977_v10 = vpop.permute.xlu1 %7023 }
 0x7ac   : > { %v5891_v50 = vpop.permute.xlu0 %5890  ;;  %v6132_v23 = vpop.permute.xlu1 %6131 }
 0x7b0   : > { %v6177_v25 = vpop.permute.xlu0 %6176  ;;  %v5876_v53 = vpop.permute.xlu1 %5875 }
 0x7b4   : > { %v5861_v29 = vpop.permute.xlu0 %5860  ;;  %v5901_v31 = vpop.permute.xlu1 %5900 }
 0x7b8   : > { %v6147_v1 = vpop.permute.xlu0 %6146  ;;  %v14979_v43 = vpop.permute.xlu1 %6186 }
 0x7bc   : > { %v5871_v21 = vpop.permute.xlu0 %5870  ;;  %v14981_v37 = vpop.permute.xlu1 %5910 }
 0x7c0   : > { %v6157_v42 = vpop.permute.xlu0 %6156  ;;  %v6127_v9 = vpop.permute.xlu1 %6126 }
 0x7c1   : > { %v6195_v33 = vsel %vm1246_vm2, %v17014_v4, %v6127_v9  ;;  %v6514_v9 = vsel %vm1252_vm5, %v6512_v14, %v17020_v30  ;;  %v6775_v14 = vsel %vm1252_vm5, %v6773_v13, %v6713_v49  ;;  %v17029_v30 = vld [vmem:[#allocation81_spill] sm:$0xff] }
 0x7c2   : > { %v6197_v32 = vsel %vm530_vm4, %v6195_v33, %v6132_v23  ;;  %v17023_v33 = vld [vmem:[#allocation17_spill] sm:$0xff]  ;;  %v6777_v49 = vsel %vm1255_vm6, %v6775_v14, %v14917_v40  ;;  %v17034_v14 = vld [vmem:[#allocation72_spill] sm:$0xff] }
 0x7c4   : > { %v14983_v61 = vpop.permute.xlu0 %5880  ;;  %v5851_v48 = vpop.permute.xlu1 %5850 }
 0x7c5   : > { %v5919_v47 = vsel %vm1246_vm2, %v17015_v55, %v5851_v48 }
 0x7c6   : > { %v5921_v39 = vsel %vm530_vm4, %v5919_v47, %v5856_v15  ;;  %v17024_v47 = vld [vmem:[#allocation76_spill] sm:$0xff] }
 0x7c7   : > { %v5923_v48 = vsel %vm1252_vm5, %v5921_v39, %v5861_v29  ;;  %v6497_v35 = vsel %vm530_vm4, %v6495_v52, %v17024_v47  ;;  %v17025_v29 = vld [vmem:[#allocation25_spill] sm:$0xff]  ;;  %v17028_v52 = vld [vmem:[#allocation71_spill] sm:$0xff]  ;;  %v17033_v47 = vld [vmem:[#allocation68_spill] sm:$0xff] }
 0x7c8   : > { %v6162_v58 = vpop.permute.xlu0 %6161  ;;  %v6137_v27 = vpop.permute.xlu1 %6136 }
 0x7c9   : > { %v6199_v3 = vsel %vm1252_vm5, %v6197_v32, %v6137_v27  ;;  %v17026_v32 = vld [vmem:[#allocation74_spill] sm:$0xff]  ;;  %v5925_v27 = vsel %vm1255_vm6, %v5923_v48, %v5866_v16 }
 0x7ca   : > { %v6201_v36 = vsel %vm1255_vm6, %v6199_v3, %v6142_v24  ;;  %v17022_v24 = vld [vmem:[#allocation53_spill] sm:$0xff]  ;;  %v6499_v20 = vsel %vm1252_vm5, %v6497_v35, %v17026_v32 }
 0x7cb   : > { %v6203_v23 = vsel %vm1258_vm7, %v6201_v36, %v6147_v1  ;;  %v6210_v4 = vsel %vm1246_vm2, %v17022_v24, %v6162_v58  ;;  %v6516_v1 = vsel %vm1255_vm6, %v6514_v9, %v17025_v29  ;;  %v6788_v58 = vsel %vm530_vm4, %v6786_v2, %v6743_v34  ;;  %v17027_v36 = vld [vmem:[#allocation10_spill] sm:$0xff] }
 0x7cc   : > { %v5886_v60 = vpop.permute.xlu0 %5885  ;;  %v5896_v15 = vpop.permute.xlu1 %5895  ;;  %v6205_v59 = vsel %vm1261_vm10, %v6203_v23, %v6152_v5  ;;  %v6212_v3 = vsel %vm530_vm4, %v6210_v4, %v6167_v54  ;;  %v6518_v17 = vsel %vm1258_vm7, %v6516_v1, %v17027_v36  ;;  %v6790_v46 = vsel %vm1252_vm5, %v6788_v58, %v6748_v41  ;;  %v17030_v23 = vld [vmem:[#allocation12_spill] sm:$0xff] }
 0x7cd   : > { %v5934_v55 = vsel %vm1246_vm2, %v17023_v33, %v5886_v60  ;;  %v6501_v5 = vsel %vm1255_vm6, %v6499_v20, %v17028_v52  ;;  %v5927_v34 = vsel %vm1258_vm7, %v5925_v27, %v5871_v21  ;;  %v6520_v40 = vsel %vm1261_vm10, %v6518_v17, %v17030_v23  ;;  %v17032_v33 = vld [vmem:[#allocation73_spill] sm:$0xff] }
 0x7ce   : > { %v5936_v39 = vsel %vm530_vm4, %v5934_v55, %v5891_v50  ;;  %v6207_v50 = vsel %vm1264_vm12, %v6205_v59, %v6157_v42  ;;  %v6503_v9 = vsel %vm1258_vm7, %v6501_v5, %v17029_v30  ;;  %v6779_v41 = vsel %vm1258_vm7, %v6777_v49, %v14957_v44 }
 0x7cf   : > { %v5938_v48 = vsel %vm1252_vm5, %v5936_v39, %v5896_v15  ;;  %v6792_v60 = vsel %vm1255_vm6, %v6790_v46, %v14955_v62  ;;  %v5929_v2 = vsel %vm1261_vm10, %v5927_v34, %v5876_v53  ;;  %v17031_v15 = vld [vmem:[#allocation70_spill] sm:$0xff]  ;;  %v6781_v62 = vsel %vm1261_vm10, %v6779_v41, %v14933_v7  ;;  %v17035_v39 = vld [vmem:[#allocation79_spill] sm:$0xff] }
 0x7d0   : > { %v6172_v11 = vpop.permute.xlu0 %6171  ;;  %v6182_v18 = vpop.permute.xlu1 %6181  ;;  %v6794_v42 = vsel %vm1258_vm7, %v6792_v60, %v14971_v22  ;;  %v6505_v24 = vsel %vm1261_vm10, %v6503_v9, %v17031_v15  ;;  %v5940_v4 = vsel %vm1255_vm6, %v5938_v48, %v5901_v31  ;;  %v6522_v22 = vsel %vm1264_vm12, %v6520_v40, %v17033_v47  ;;  %v7129_v40 = vld [vmem:[%s16569_s6] sm:$0x3] }
 0x7d1   : > { %v6214_v16 = vsel %vm1252_vm5, %v6212_v3, %v6172_v11  ;;  %v6507_v44 = vsel %vm1264_vm12, %v6505_v24, %v17032_v33  ;;  %v6796_v35 = vsel %vm1261_vm10, %v6794_v42, %v14961_v0  ;;  %v5931_v31 = vsel %vm1264_vm12, %v5929_v2, %v14983_v61 }
 0x7d2   : > { %v6216_v54 = vsel %vm1255_vm6, %v6214_v16, %v6177_v25  ;;  %v7089_v25 = vrot.slane %v6207_v50, 6  ;;  %v7047_v7 = vsel %vm1246_vm2, %v17034_v14, %v14965_v45  ;;  %v6798_v32 = vsel %vm1264_vm12, %v6796_v35, %v14973_v12 }
 0x7d3   : > { %v6218_v51 = vsel %vm1258_vm7, %v6216_v54, %v6182_v18  ;;  %v7093_v0 = vrot.slane %v6507_v44, 4  ;;  %v6783_v59 = vsel %vm1264_vm12, %v6781_v62, %v14959_v8  ;;  %v7094_v61 = vrot.slane %v6522_v22, 4 }
 0x7d4   : > { %v6999_v13 = vpop.permute.xlu0 %6998  ;;  %v5906_v21 = vpop.permute.xlu1 %5905  ;;  %v6220_v29 = vsel %vm1261_vm10, %v6218_v51, %v14979_v43  ;;  %v7116_v27 = vsel %vm7099_vm0, %v5931_v31, %v7089_v25  ;;  %v7062_v45 = vsel %vm1246_vm2, %v17035_v39, %v14975_v28  ;;  %v7049_v12 = vsel %vm530_vm4, %v7047_v7, %v14946_v6 }
 0x7d5   : > { %v5942_v55 = vsel %vm1258_vm7, %v5940_v4, %v5906_v21  ;;  %v7098_v11 = vrot.slane %v6798_v32, 2  ;;  %v7120_v8 = vsel %vm4080_vm13, %v7116_v27, %v7093_v0  ;;  %v7097_v49 = vrot.slane %v6783_v59, 2 }
 0x7d6   : > { %v5944_v43 = vsel %vm1261_vm10, %v5942_v55, %v14981_v37  ;;  %v7051_v37 = vsel %vm1252_vm5, %v7049_v12, %v14969_v19  ;;  %v7064_v28 = vsel %vm530_vm4, %v7062_v45, %v14963_v56 }
 0x7d7   : > { %v7066_v6 = vsel %vm1252_vm5, %v7064_v28, %v14977_v10  ;;  %v7124_v52 = vsel %vm16651_vm15, %v7120_v8, %v7097_v49  ;;  %v7053_v5 = vsel %vm1255_vm6, %v7051_v37, %v14953_v26 }
 0x7d8   : > { %v5916_v53 = vpop.permute.xlu0 %5915  ;;  %v6192_v1 = vpop.permute.xlu1 %6191  ;;  %v7055_v19 = vsel %vm1258_vm7, %v7053_v5, %v6999_v13  ;;  %v7068_v56 = vsel %vm1255_vm6, %v7066_v6, %v14967_v63 }
 0x7d9   : > { %v6222_v20 = vsel %vm1264_vm12, %v6220_v29, %v6192_v1  ;;  %v5946_v3 = vsel %vm1264_vm12, %v5944_v43, %v5916_v53 }
 0x7da   : > { %v7090_v58 = vrot.slane %v6222_v20, 6 }
 0x7dc   : > { %v7004_v18 = vpop.permute.xlu0 %7003  ;;  %v7034_v36 = vpop.permute.xlu1 %7033  ;;  %v7118_v17 = vsel %vm7099_vm0, %v5946_v3, %v7090_v58 }
 0x7dd   : > { %v7122_v46 = vsel %vm4080_vm13, %v7118_v17, %v7094_v61  ;;  %v7057_v54 = vsel %vm1261_vm10, %v7055_v19, %v7004_v18  ;;  %v7070_v30 = vsel %vm1258_vm7, %v7068_v56, %v7034_v36 }
 0x7de   : > { %v7127_v16 = vsel %vm16651_vm15, %v7122_v46, %v7098_v11  ;;  %vm7136_vm15 = vcmask 293888  }
 0x7df   : > { %7146 = vmatprep.subr.bf16.mxu1 %v7127_v16 }
 0x7e0   : > { %v7009_v34 = vpop.permute.xlu0 %7008  ;;  %7147 = vmatpush1.bf16.msra.mxu1 %v7124_v52  ;;  %v7039_v50 = vpop.permute.xlu1 %7038 }
 0x7e1   : > { %v7059_v10 = vsel %vm1264_vm12, %v7057_v54, %v7009_v34  ;;  %v7072_v9 = vsel %vm1261_vm10, %v7070_v30, %v7039_v50 }
 0x7e2   : > { %v7140_v26 = vsel %vm7099_vm0, %v7059_v10, 0 }
 0x7e4   : > { %v7044_v48 = vpop.permute.xlu1 %7043 }
 0x7e5   : > { %v7074_v23 = vsel %vm1264_vm12, %v7072_v9, %v7044_v48 }
 0x7e6   : > { %10590 = vmatprep.subr.msk.bf16.mxu1 %vm7099_vm0, %v7074_v23 }
 0x7e7   : > { %7149 = vmatpush1.bf16.msra.mxu1 %v7140_v26 }
 0x7ea   : > { %10591 = vmatmul.mubr.msk.bf16.vlgmr.msra.gmra.mrb[12].mxu1 %vm7136_vm15, %v7129_v40 }
 0x7f1   : > { %v7134_v63 = vpop.permute.xlu0 %7133 }
 0x8bd   : > { %v7178_v41 = vpop.f32.mrb[12].mxu1 }
 0x8be   : > { %v7179_v60 = vadd.f32 %v7178_v41, %v7134_v63  ;;  %v7180_v13 = vpop.f32.mrb[13].mxu1 }
 0x8bf   : > { %v7182_v21 = vpop.f32.mrb[14].mxu1  ;;  %v7181_v51 = vadd.f32 %v7180_v13, %v7134_v63 }
 0x8c0   : > { %v7185_v42 = vmax.f32 %v7179_v60, 0.0  ;;  %v7183_v25 = vpop.f32.mrb[15].mxu1 }
 0x8c1   : > { %v7186_v2 = vmax.f32 %v7181_v51, 0.0 }
 0x8c2   : > { %7191 = vrot.lane.b32.xlu0 %v7185_v42, %s11007_s15  ;;  %7188 = vrot.lane.b32.xlu1 %v7185_v42, %s11009_s17 }
 0x8c6   : > { %7197 = vrot.lane.b32.xlu0 %v7185_v42, %s11003_s27  ;;  %7194 = vrot.lane.b32.xlu1 %v7185_v42, %s11006_s12 }
 0x8ca   : > { %7203 = vrot.lane.b32.xlu0 %v7185_v42, %s11005_s11  ;;  %7200 = vrot.lane.b32.xlu1 %v7185_v42, %s11008_s16 }
 0x8ce   : > { %7210 = vrot.lane.b32.xlu0 %v7186_v2, %s11009_s17  ;;  %7206 = vrot.lane.b32.xlu1 %v7185_v42, %s11004_s30 }
 0x8d2   : > { %7216 = vrot.lane.b32.xlu0 %v7186_v2, %s11006_s12  ;;  %7213 = vrot.lane.b32.xlu1 %v7186_v2, %s11007_s15 }
 0x8d6   : > { %7222 = vrot.lane.b32.xlu0 %v7186_v2, %s11008_s16  ;;  %7219 = vrot.lane.b32.xlu1 %v7186_v2, %s11003_s27 }
 0x8da   : > { %7228 = vrot.lane.b32.xlu0 %v7186_v2, %s11004_s30  ;;  %7225 = vrot.lane.b32.xlu1 %v7186_v2, %s11005_s11 }
 0x934   : > { %v7192_v15 = vpop.permute.xlu0 %7191  ;;  %v7189_v24 = vpop.permute.xlu1 %7188 }
 0x935   : > { %v7231_v47 = vcombine.low %v7185_v42, %v7192_v15 }
 0x937   : > { %v7238_v1 = vrot.slane %v7231_v47, %v16954_v38 }
 0x938   : > { %v7198_v4 = vpop.permute.xlu0 %7197  ;;  %v7195_v33 = vpop.permute.xlu1 %7194 }
 0x939   : > { %v7239_v44 = vcombine.low %v7189_v24, %v7195_v33 }
 0x93b   : > { %v7246_v22 = vrot.slane %v7239_v44, %v16954_v38 }
 0x93c   : > { %v7204_v62 = vpop.permute.xlu0 %7203  ;;  %v7201_v55 = vpop.permute.xlu1 %7200 }
 0x93d   : > { %v7247_v35 = vcombine.low %v7198_v4, %v7204_v62  ;;  %v7263_v14 = vcombine.low %v7238_v1, %v7246_v22  ;;  %v7264_v7 = vcombine.high %v7238_v1, %v7246_v22 }
 0x93f   : > { %v7254_v32 = vrot.slane %v7247_v35, %v16954_v38  ;;  %v7271_v39 = vrot.slane %v7263_v14, %v16955_v57  ;;  %v7278_v45 = vrot.slane %v7264_v7, %v16955_v57 }
 0x940   : > { %v7211_v53 = vpop.permute.xlu0 %7210  ;;  %v7207_v29 = vpop.permute.xlu1 %7206 }
 0x941   : > { %v7255_v31 = vcombine.low %v7201_v55, %v7207_v29 }
 0x943   : > { %v7262_v20 = vrot.slane %v7255_v31, %v16954_v38 }
 0x944   : > { %v7217_v27 = vpop.permute.xlu0 %7216  ;;  %v7214_v0 = vpop.permute.xlu1 %7213 }
 0x945   : > { %v7279_v59 = vcombine.low %v7254_v32, %v7262_v20  ;;  %v7280_v43 = vcombine.high %v7254_v32, %v7262_v20  ;;  %v7307_v58 = vcombine.low %v7211_v53, %v7217_v27  ;;  %v7299_v61 = vcombine.low %v7186_v2, %v7214_v0 }
 0x947   : > { %v7287_v3 = vrot.slane %v7279_v59, %v16955_v57  ;;  %v7294_v12 = vrot.slane %v7280_v43, %v16955_v57  ;;  %v7314_v49 = vrot.slane %v7307_v58, %v16954_v38  ;;  %v7306_v37 = vrot.slane %v7299_v61, %v16954_v38 }
 0x948   : > { %v7223_v11 = vpop.permute.xlu0 %7222  ;;  %v7220_v18 = vpop.permute.xlu1 %7219 }
 0x949   : > { %v7295_v36 = vcombine.low %v7271_v39, %v7287_v3  ;;  %v7296_v17 = vcombine.high %v7271_v39, %v7287_v3  ;;  %v7297_v8 = vcombine.low %v7278_v45, %v7294_v12  ;;  %v7298_v16 = vcombine.high %v7278_v45, %v7294_v12 }
 0x94a   : > { %v7331_v54 = vcombine.low %v7306_v37, %v7314_v49  ;;  %v7332_v56 = vcombine.high %v7306_v37, %v7314_v49 }
 0x94b   : > { %v10833_v46 = vpack.c.bf16 %v7295_v36, %v7295_v36  ;;  %v10835_v28 = vpack.c.bf16 %v7296_v17, %v7296_v17  ;;  %v10837_v6 = vpack.c.bf16 %v7297_v8, %v7297_v8  ;;  %v10839_v26 = vpack.c.bf16 %v7298_v16, %v7298_v16 }
 0x94c   : > { %v7229_v52 = vpop.permute.xlu0 %7228  ;;  %v7226_v5 = vpop.permute.xlu1 %7225  ;;  %v7339_v42 = vrot.slane %v7331_v54, %v16955_v57  ;;  %v7346_v25 = vrot.slane %v7332_v56, %v16955_v57  ;;  %v7495_v56 = vld [vmem:[#allocation3] sm:$0xf] }
 0x94d   : > { %v7323_v34 = vcombine.low %v7223_v11, %v7229_v52  ;;  %v7315_v50 = vcombine.low %v7220_v18, %v7226_v5  ;;  %v7392_v19 = vshrl.u32 %v10833_v46, 16  ;;  %v7409_v30 = vshrl.u32 %v10835_v28, 16 }
 0x94e   : > { %v7395_v23 = vshll.u32 %v10833_v46, 16  ;;  %v7426_v63 = vshrl.u32 %v10837_v6, 16  ;;  %v7412_v21 = vshll.u32 %v10835_v28, 16  ;;  %v7443_v4 = vshrl.u32 %v10839_v26, 16 }
 0x94f   : > { %v7330_v10 = vrot.slane %v7323_v34, %v16954_v38  ;;  %v7322_v9 = vrot.slane %v7315_v50, %v16954_v38  ;;  %v7394_v48 = vrot.slane %v7392_v19, 7  ;;  %v7411_v40 = vrot.slane %v7409_v30, 7 }
 0x950   : > { %v7428_v24 = vrot.slane %v7426_v63, 7  ;;  %v7429_v47 = vshll.u32 %v10837_v6, 16  ;;  %v7445_v1 = vrot.slane %v7443_v4, 7  ;;  %v7446_v20 = vshll.u32 %v10839_v26, 16 }
 0x951   : > { %v7347_v41 = vcombine.low %v7322_v9, %v7330_v10  ;;  %v7348_v60 = vcombine.high %v7322_v9, %v7330_v10  ;;  %v7397_v13 = vor.u32 %v7395_v23, %v7394_v48  ;;  %v7414_v15 = vor.u32 %v7412_v21, %v7411_v40 }
 0x952   : > { %v7431_v29 = vor.u32 %v7429_v47, %v7428_v24  ;;  %v7448_v0 = vor.u32 %v7446_v20, %v7445_v1  ;;  %v7398_v18 = vrot.slane %v7394_v48, 4  ;;  %v7415_v46 = vrot.slane %v7411_v40, 4  ;;  %v7502_v48 = vld [vmem:[#allocation3 + $0xc] sm:$0xf]  ;;  %v7509_v40 = vld [vmem:[#allocation3 + $0x18] sm:$0xf] }
 0x953   : > { %v7355_v51 = vrot.slane %v7347_v41, %v16955_v57  ;;  %v7362_v2 = vrot.slane %v7348_v60, %v16955_v57  ;;  %7459 = vrot.lane.b32.xlu1 %v7397_v13, %s10997_s25  ;;  %v7432_v52 = vrot.slane %v7428_v24, 4  ;;  %v7449_v19 = vrot.slane %v7445_v1, 4  ;;  %v7506_v13 = vld [vmem:[#allocation3 + $0x14] sm:$0x1] }
 0x955   : > { %v7363_v33 = vcombine.low %v7339_v42, %v7355_v51  ;;  %v7364_v44 = vcombine.high %v7339_v42, %v7355_v51  ;;  %v7365_v62 = vcombine.low %v7346_v25, %v7362_v2  ;;  %v7366_v55 = vcombine.high %v7346_v25, %v7362_v2  ;;  %v7516_v42 = vld [vmem:[#allocation3 + $0x24] sm:$0xf] }
 0x957   : > { %v10834_v22 = vpack.c.bf16 %v7363_v33, %v7363_v33  ;;  %v10836_v35 = vpack.c.bf16 %v7364_v44, %v7364_v44  ;;  %v10840_v53 = vpack.c.bf16 %v7366_v55, %v7366_v55  ;;  %7465 = vrot.lane.b32.xlu1 %v7414_v15, %s10997_s25  ;;  %v10838_v31 = vpack.c.bf16 %v7365_v62, %v7365_v62  ;;  %v7520_v33 = vld [vmem:[#allocation3 + $0x2c] sm:$0x1]  ;;  %v7499_v62 = vld [vmem:[#allocation3 + $0x8] sm:$0x1] }
 0x959   : > { %v7417_v14 = vshrl.u32 %v10836_v35, 16  ;;  %v7451_v7 = vshrl.u32 %v10840_v53, 16  ;;  %v7400_v32 = vshrl.u32 %v10834_v22, 16  ;;  %v7434_v61 = vshrl.u32 %v10838_v31, 16 }
 0x95a   : > { %v7403_v39 = vshll.u32 %v10834_v22, 16  ;;  %v7420_v36 = vshll.u32 %v10836_v35, 16  ;;  %v7437_v28 = vshll.u32 %v10838_v31, 16  ;;  %v7454_v5 = vshll.u32 %v10840_v53, 16 }
 0x95b   : > { %7471 = vrot.lane.b32.xlu1 %v7431_v29, %s10997_s25  ;;  %v7419_v27 = vrot.slane %v7417_v14, 7  ;;  %v7453_v43 = vrot.slane %v7451_v7, 7  ;;  %v7402_v58 = vrot.slane %v7400_v32, 7  ;;  %v7436_v12 = vrot.slane %v7434_v61, 7  ;;  %v7513_v14 = vld [vmem:[#allocation3 + $0x20] sm:$0x1] }
 0x95d   : > { %v7424_v59 = vrot.slane %v7419_v27, 4  ;;  %v7458_v45 = vrot.slane %v7453_v43, 4  ;;  %v7407_v3 = vrot.slane %v7402_v58, 4  ;;  %v7405_v11 = vor.u32 %v7403_v39, %v7402_v58 }
 0x95e   : > { %v7441_v17 = vrot.slane %v7436_v12, 4  ;;  %v7422_v37 = vor.u32 %v7420_v36, %v7419_v27  ;;  %v7439_v6 = vor.u32 %v7437_v28, %v7436_v12  ;;  %v7456_v50 = vor.u32 %v7454_v5, %v7453_v43 }
 0x95f   : > { %7477 = vrot.lane.b32.xlu1 %v7448_v0, %s10997_s25  ;;  %7469 = vrot.lane.b32.xlu0 %v7424_v59, %s10997_s25  ;;  %v7406_v49 = vsel %vm11100_vm3, %v7398_v18, %v7405_v11 }
 0x960   : > { %v7423_v16 = vsel %vm11100_vm3, %v7415_v46, %v7422_v37  ;;  %v7440_v34 = vsel %vm11100_vm3, %v7432_v52, %v7439_v6  ;;  %v7457_v54 = vsel %vm11100_vm3, %v7449_v19, %v7456_v50  ;;  %vm17092_vm3 = vcmask 1045504  }
 0x963   : > { %7481 = vrot.lane.b32.xlu0 %v7458_v45, %s10997_s25  ;;  %7463 = vrot.lane.b32.xlu1 %v7407_v3, %s10997_s25 }
 0x967   : > { %7475 = vrot.lane.b32.xlu1 %v7441_v17, %s10997_s25  ;;  %7461 = vrot.lane.b32.xlu0 %v7406_v49, %s10997_s25 }
 0x96b   : > { %7467 = vrot.lane.b32.xlu0 %v7423_v16, %s10997_s25 }
 0x96f   : > { %7473 = vrot.lane.b32.xlu0 %v7440_v34, %s10997_s25 }
 0x973   : > { %7479 = vrot.lane.b32.xlu0 %v7457_v54, %s10997_s25 }
 0x9c5   : > { %v7460_v30 = vpop.permute.xlu1 %7459 }
 0x9c6   : > { %v7496_v9 = vsel %vm11194_vm9, %v7460_v30, %v7495_v56 }
 0x9c7   : > { %7497 = vst [vmem:[#allocation3] sm:$0xf] %v7496_v9 }
 0x9c9   : > { %v7466_v23 = vpop.permute.xlu1 %7465 }
 0x9ca   : > { %v7503_v26 = vsel %vm11194_vm9, %v7466_v23, %v7502_v48 }
 0x9cb   : > { %7504 = vst [vmem:[#allocation3 + $0xc] sm:$0xf] %v7503_v26 }
 0x9cd   : > { %v7472_v63 = vpop.permute.xlu1 %7471 }
 0x9ce   : > { %v7510_v41 = vsel %vm11194_vm9, %v7472_v63, %v7509_v40  ;;  %v15167_v60 = vld [vmem:[#allocation3] sm:$0xf] }
 0x9cf   : > { %7511 = vst [vmem:[#allocation3 + $0x18] sm:$0xf] %v7510_v41  ;;  %7799 = vrot.lane.b32.xlu1 %v15167_v60, %s10999_s28  ;;  %v7534_v47 = vshrl.u32 %v15167_v60, 16  ;;  %v8357_v29 = vshll.u32 %v15167_v60, 16  ;;  %v9247_v11 = vld [vmem:[#allocation3] sm:$0xe] }
 0x9d0   : > { %v10684_v34 = vrot.slane %v9247_v11, 9 }
 0x9d1   : > { %v7470_v21 = vpop.permute.xlu0 %7469  ;;  %v7478_v25 = vpop.permute.xlu1 %7477  ;;  %v8356_v0 = vrot.slane %v7534_v47, 4  ;;  %v8359_v59 = vrot.slane %v8357_v29, 5 }
 0x9d2   : > { %v7507_v2 = vsel %vm11219_vm11, %v7470_v21, %v7506_v13  ;;  %v7517_v15 = vsel %vm11194_vm9, %v7478_v25, %v7516_v42  ;;  %v15175_v24 = vld [vmem:[#allocation3 + $0xc] sm:$0xf]  ;;  %vm17115_vm9 = vmmov %vm17092_vm3 }
 0x9d3   : > { %7508 = vst [vmem:[#allocation3 + $0x14] sm:$0x1] %v7507_v2  ;;  %7518 = vst [vmem:[#allocation3 + $0x24] sm:$0xf] %v7517_v15  ;;  %7803 = vrot.lane.b32.xlu0 %v15175_v24, %s10999_s28  ;;  %v7533_v4 = vpack.i.b16 %v15175_v24, %v15167_v60  ;;  %v7535_v1 = vshrl.u32 %v15175_v24, 16  ;;  %v8377_v32 = vshll.u32 %v15175_v24, 16  ;;  %v8360_v18 = vor.u32 %v8359_v59, %v8356_v0 }
 0x9d4   : > { %v9248_v17 = vld [vmem:[#allocation3 + $0xc] sm:$0xe] }
 0x9d5   : > { %v7482_v44 = vpop.permute.xlu0 %7481  ;;  %v7464_v55 = vpop.permute.xlu1 %7463  ;;  %v8376_v45 = vrot.slane %v7535_v1, 4  ;;  %v8379_v3 = vrot.slane %v8377_v32, 5  ;;  %v15215_v36 = vrot.slane %v7533_v4, %v16954_v38  ;;  %v10685_v56 = vrot.slane %v9248_v17, 9 }
 0x9d6   : > { %v7521_v22 = vsel %vm11219_vm11, %v7482_v44, %v7520_v33  ;;  %v7500_v35 = vsel %vm11219_vm11, %v7464_v55, %v7499_v62  ;;  %v15186_v53 = vld [vmem:[#allocation3 + $0x18] sm:$0xf]  ;;  %v8361_v10 = vrot.slane %v8360_v18, 4 }
 0x9d7   : > { %7522 = vst [vmem:[#allocation3 + $0x2c] sm:$0x1] %v7521_v22  ;;  %7501 = vst [vmem:[#allocation3 + $0x8] sm:$0x1] %v7500_v35  ;;  %7807 = vrot.lane.b32.xlu1 %v15186_v53, %s10999_s28  ;;  %v7540_v43 = vshrl.u32 %v15186_v53, 16  ;;  %v8397_v61 = vshll.u32 %v15186_v53, 16  ;;  %v8380_v19 = vor.u32 %v8379_v3, %v8376_v45 }
 0x9d8   : > { %v15223_v37 = vld [vmem:[#allocation3 + $0x18] sm:$0xe] }
 0x9d9   : > { %v7462_v31 = vpop.permute.xlu0 %7461  ;;  %v7476_v7 = vpop.permute.xlu1 %7475  ;;  %v8396_v8 = vrot.slane %v7540_v43, 4  ;;  %v8399_v49 = vrot.slane %v8397_v61, 5  ;;  %v10686_v48 = vrot.slane %v15223_v37, 9  ;;  %v8381_v15 = vrot.slane %v8380_v19, 4 }
 0x9da   : > { %7498 = vst.msk [vmem:[#allocation3 + $0x4] sm:$0xf] %vm791_vm8, %v7462_v31  ;;  %v7514_v20 = vsel %vm11219_vm11, %v7476_v7, %v7513_v14  ;;  %v15196_v27 = vld [vmem:[#allocation3 + $0x24] sm:$0xf]  ;;  %v15238_v30 = vld [vmem:[#allocation3 + $0x14] sm:$0x1] }
 0x9db   : > { %7515 = vst [vmem:[#allocation3 + $0x20] sm:$0x1] %v7514_v20  ;;  %8075 = vrot.lane.b32.xlu1 %v15167_v60, %s11000_s29  ;;  %7811 = vrot.lane.b32.xlu0 %v15196_v27, %s10999_s28  ;;  %v7539_v58 = vpack.i.b16 %v15196_v27, %v15186_v53  ;;  %v15225_v46 = vld [vmem:[#allocation3 + $0x24] sm:$0xe]  ;;  %v7541_v6 = vshrl.u32 %v15196_v27, 16  ;;  %v8400_v26 = vor.u32 %v8399_v49, %v8396_v8  ;;  %v8417_v40 = vshll.u32 %v15196_v27, 16 }
 0x9dc   : > { %v10687_v23 = vrot.slane %v15225_v46, 9  ;;  %v9271_v2 = vrot.slane %v15238_v30, 5  ;;  %v8391_v33 = vshll.u32 %v15238_v30, 16 }
 0x9dd   : > { %v7468_v39 = vpop.permute.xlu0 %7467  ;;  %v15211_v12 = vrot.slane %v7539_v58, %v16954_v38  ;;  %v8416_v4 = vrot.slane %v7541_v6, 4  ;;  %v8401_v7 = vrot.slane %v8400_v26, 4  ;;  %v8419_v32 = vrot.slane %v8417_v40, 5 }
 0x9de   : > { %7505 = vst.msk [vmem:[#allocation3 + $0x10] sm:$0xf] %vm791_vm8, %v7468_v39  ;;  %v15234_v50 = vld [vmem:[#allocation3 + $0x8] sm:$0x1]  ;;  %v15248_v63 = vld [vmem:[#allocation3 + $0x2c] sm:$0x1] }
 0x9df   : > { %8083 = vrot.lane.b32.xlu1 %v15186_v53, %s11000_s29  ;;  %8079 = vrot.lane.b32.xlu0 %v15175_v24, %s11000_s29  ;;  %v7571_v28 = vcombine.low %v15215_v36, %v15211_v12  ;;  %v7572_v16 = vcombine.high %v15215_v36, %v15211_v12  ;;  %v9264_v13 = vrot.slane %v15234_v50, 5  ;;  %v9285_v29 = vrot.slane %v15248_v63, 5 }
 0x9e1   : > { %v7474_v52 = vpop.permute.xlu0 %7473  ;;  %v15232_v5 = vld [vmem:[#allocation3 + $0x4] sm:$0xf]  ;;  %v7586_v53 = vrot.slane %v7572_v16, %v16955_v57 }
 0x9e2   : > { %7512 = vst.msk [vmem:[#allocation3 + $0x1c] sm:$0xf] %vm791_vm8, %v7474_v52  ;;  %v9261_v54 = vrot.slane %v15232_v5, 5  ;;  %v8362_v9 = vshll.u32 %v15232_v5, 16  ;;  %v16653_v42 = vshrl.u32 %v15232_v5, 16  ;;  %v17041_v16 = vshrl.u32 %v15232_v5, 16 }
 0x9e3   : > { %7801 = vrot.lane.b32.xlu1 %v15232_v5, %s10999_s28  ;;  %8087 = vrot.lane.b32.xlu0 %v15196_v27, %s11000_s29  ;;  %v15298_v8 = vld [vmem:[#allocation3 + $0x20] sm:$0x1]  ;;  %v10843_v24 = vcombine.high %v7586_v53, %v7586_v53  ;;  %v10603_v12 = vcombine.low %v7586_v53, %v7586_v53 }
 0x9e4   : > { %v9263_v41 = vrot.slane %v9261_v54, 4  ;;  %v8364_v21 = vrot.slane %v8362_v9, 5  ;;  %v15261_v62 = vsel %vm11266_vm14, %v10684_v34, %v9261_v54  ;;  %v8367_v58 = vrot.slane %v16653_v42, 4 }
 0x9e5   : > { %v7480_v25 = vpop.permute.xlu0 %7479  ;;  %v15252_v51 = vld [vmem:[#allocation3 + $0x10] sm:$0xf]  ;;  %v9290_v39 = vshrl.u32 %v15261_v62, 16 }
 0x9e6   : > { %7519 = vst.msk [vmem:[#allocation3 + $0x28] sm:$0xf] %vm791_vm8, %v7480_v25  ;;  %v9268_v55 = vrot.slane %v15252_v51, 5  ;;  %v15266_v22 = vsel %vm11266_vm14, %v9263_v41, %v9264_v13  ;;  %v8382_v35 = vshll.u32 %v15252_v51, 16  ;;  %v15274_v14 = vsel %vm11369_vm1, %v8361_v10, %v8364_v21  ;;  %vm17093_vm8 = vmmov %vm17092_vm3 }
 0x9e7   : > { %7805 = vrot.lane.b32.xlu0 %v15252_v51, %s10999_s28  ;;  %v9302_v11 = vshrl.u32 %v15266_v22, 16  ;;  %v8438_v49 = vshrl.u32 %v15274_v14, 16  ;;  %v8368_v9 = vor.u32 %v8367_v58, %v8364_v21  ;;  %v9278_v41 = vrot.slane %v15298_v8, 5 }
 0x9e8   : > { %v15278_v20 = vsel %vm11266_vm14, %v10685_v56, %v9268_v55  ;;  %v9270_v0 = vrot.slane %v9268_v55, 4  ;;  %v15280_v59 = vrot.slane %v8382_v35, 5  ;;  %v8420_v13 = vor.u32 %v8419_v32, %v8416_v4 }
 0x9e9   : > { %v15284_v61 = vld [vmem:[#allocation3 + $0x1c] sm:$0xf]  ;;  %v9289_v45 = vpack.i.b16 %v15278_v20, %v15261_v62  ;;  %v9291_v3 = vshrl.u32 %v15278_v20, 16  ;;  %v8371_v25 = vshll.u32 %v15234_v50, 16  ;;  %v16652_v55 = vshrl.u32 %v15252_v51, 16 }
 0x9ea   : > { %7809 = vrot.lane.b32.xlu1 %v15284_v61, %s10999_s28  ;;  %v9275_v18 = vrot.slane %v15284_v61, 5  ;;  %v15296_v17 = vsel %vm11266_vm14, %v9270_v0, %v9271_v2  ;;  %v15304_v37 = vsel %vm11369_vm1, %v8381_v15, %v15280_v59  ;;  %v8402_v54 = vshll.u32 %v15284_v61, 16 }
 0x9eb   : > { %v15306_v52 = vpack.i.b16 %v9291_v3, %v9290_v39  ;;  %v9303_v34 = vshrl.u32 %v15296_v17, 16  ;;  %v9301_v19 = vpack.i.b16 %v15296_v17, %v15266_v22  ;;  %v8437_v30 = vpack.i.b16 %v15304_v37, %v15274_v14 }
 0x9ec   : > { %v9277_v56 = vrot.slane %v9275_v18, 4  ;;  %v8439_v10 = vshrl.u32 %v15304_v37, 16  ;;  %v15327_v2 = vsel %vm11266_vm14, %v10686_v48, %v9275_v18  ;;  %v8404_v35 = vrot.slane %v8402_v54, 5 }
 0x9ed   : > { %v15315_v26 = vld [vmem:[#allocation3 + $0x28] sm:$0xf]  ;;  %v15317_v40 = vpack.i.b16 %v9303_v34, %v9302_v11  ;;  %v8393_v50 = vrot.slane %v8391_v33, 5  ;;  %v8431_v32 = vshll.u32 %v15248_v63, 16  ;;  %v8369_v39 = vrot.slane %v8368_v9, 4 }
 0x9ee   : > { %8077 = vrot.lane.b32.xlu1 %v15232_v5, %s11000_s29  ;;  %7813 = vrot.lane.b32.xlu0 %v15315_v26, %s10999_s28  ;;  %v9282_v21 = vrot.slane %v15315_v26, 5  ;;  %v15330_v15 = vpack.i.b16 %v8439_v10, %v8438_v49  ;;  %v8422_v4 = vshll.u32 %v15315_v26, 16  ;;  %v15343_v58 = vsel %vm11266_vm14, %v9277_v56, %v9278_v41 }
 0x9ef   : > { %v9296_v3 = vshrl.u32 %v15327_v2, 16  ;;  %v8373_v18 = vrot.slane %v8371_v25, 5  ;;  %v8387_v49 = vrot.slane %v16652_v55, 4  ;;  %v9308_v56 = vshrl.u32 %v15343_v58, 16 }
 0x9f0   : > { %v15339_v0 = vsel %vm11266_vm14, %v10687_v23, %v9282_v21  ;;  %v9284_v48 = vrot.slane %v9282_v21, 4  ;;  %v8424_v63 = vrot.slane %v8422_v4, 5  ;;  %v8421_v23 = vrot.slane %v8420_v13, 4 }
 0x9f1   : > { %v9295_v11 = vpack.i.b16 %v15339_v0, %v15327_v2  ;;  %v9297_v33 = vshrl.u32 %v15339_v0, 16  ;;  %v15363_v10 = vsel %vm11369_vm1, %v8401_v7, %v8404_v35  ;;  %v8388_v44 = vor.u32 %v8387_v49, %v15280_v59 }
 0x9f2   : > { %8085 = vrot.lane.b32.xlu1 %v15284_v61, %s11000_s29  ;;  %8081 = vrot.lane.b32.xlu0 %v15252_v51, %s11000_s29  ;;  %v15355_v46 = vsel %vm11266_vm14, %v9284_v48, %v9285_v29  ;;  %v15367_v9 = vsel %vm11369_vm1, %v8421_v23, %v8424_v63  ;;  %v7552_v29 = vshrl.u32 %v15284_v61, 16  ;;  %v7553_v41 = vshrl.u32 %v15315_v26, 16 }
 0x9f3   : > { %v9298_v34 = vpack.i.b16 %v9297_v33, %v9296_v3  ;;  %v9309_v54 = vshrl.u32 %v15355_v46, 16  ;;  %v8443_v25 = vpack.i.b16 %v15367_v9, %v15363_v10  ;;  %v15376_v21 = vsel %vm11369_vm1, %v8369_v39, %v8373_v18 }
 0x9f4   : > { %v8411_v7 = vshll.u32 %v15298_v8, 16  ;;  %v8444_v59 = vshrl.u32 %v15363_v10, 16  ;;  %v8445_v4 = vshrl.u32 %v15367_v9, 16  ;;  %v8389_v48 = vrot.slane %v8388_v44, 4 }
 0x9f5   : > { %v9310_v13 = vpack.i.b16 %v9309_v54, %v9308_v56  ;;  %v8407_v3 = vrot.slane %v7552_v29, 4  ;;  %v8427_v39 = vrot.slane %v7553_v41, 4  ;;  %v7545_v18 = vpack.i.b16 %v15252_v51, %v15232_v5 }
 0x9f6   : > { %9547 = vrot.lane.b32.xlu1 %v15261_v62, %s10999_s28  ;;  %8089 = vrot.lane.b32.xlu0 %v15315_v26, %s11000_s29  ;;  %v8446_v33 = vpack.i.b16 %v8445_v4, %v8444_v59  ;;  %v15391_v8 = vsel %vm11369_vm1, %v8389_v48, %v8393_v50  ;;  %v8450_v49 = vshrl.u32 %v15376_v21, 16  ;;  %v7551_v44 = vpack.i.b16 %v15315_v26, %v15284_v61 }
 0x9f7   : > { %v8408_v23 = vor.u32 %v8407_v3, %v8404_v35  ;;  %v8451_v54 = vshrl.u32 %v15391_v8, 16  ;;  %v8428_v56 = vor.u32 %v8427_v39, %v8424_v63  ;;  %v8413_v59 = vrot.slane %v8411_v7, 5 }
 0x9f8   : > { %v8433_v35 = vrot.slane %v8431_v32, 5  ;;  %v15404_v3 = vrot.slane %v7545_v18, %v16954_v38  ;;  %v15407_v55 = vrot.slane %v7551_v44, %v16954_v38  ;;  %v15410_v63 = vrot.slane %v9295_v11, %v16954_v38 }
 0x9f9   : > { %v8409_v50 = vrot.slane %v8408_v23, 4  ;;  %v8452_v4 = vpack.i.b16 %v8451_v54, %v8450_v49  ;;  %v8429_v48 = vrot.slane %v8428_v56, 4  ;;  %v9307_v39 = vpack.i.b16 %v15355_v46, %v15343_v58 }
 0x9fa   : > { %9555 = vrot.lane.b32.xlu1 %v15327_v2, %s10999_s28  ;;  %9551 = vrot.lane.b32.xlu0 %v15278_v20, %s10999_s28  ;;  %v7639_v7 = vcombine.low %v15404_v3, %v15407_v55  ;;  %v15428_v11 = vrot.slane %v9289_v45, %v16954_v38  ;;  %v7640_v18 = vcombine.high %v15404_v3, %v15407_v55 }
 0x9fb   : > { %v15416_v42 = vsel %vm11369_vm1, %v8409_v50, %v8413_v59  ;;  %v15420_v32 = vsel %vm11369_vm1, %v8429_v48, %v8433_v35  ;;  %v15439_v49 = vrot.slane %v9298_v34, %v16954_v38  ;;  %v15442_v54 = vrot.slane %v9307_v39, %v16954_v38 }
 0x9fc   : > { %v8456_v23 = vshrl.u32 %v15416_v42, 16  ;;  %v8457_v31 = vshrl.u32 %v15420_v32, 16  ;;  %v15448_v56 = vrot.slane %v15306_v52, %v16954_v38  ;;  %v15458_v34 = vrot.slane %v9301_v19, %v16954_v38 }
 0x9fd   : > { %v9328_v44 = vcombine.high %v15428_v11, %v15410_v63  ;;  %v15475_v19 = vrot.slane %v9310_v13, %v16954_v38  ;;  %v15478_v35 = vrot.slane %v8443_v25, %v16954_v38  ;;  %v15481_v48 = vrot.slane %v8446_v33, %v16954_v38 }
 0x9fe   : > { %9823 = vrot.lane.b32.xlu1 %v15261_v62, %s11000_s29  ;;  %9559 = vrot.lane.b32.xlu0 %v15339_v0, %s10999_s28  ;;  %v8458_v45 = vpack.i.b16 %v8457_v31, %v8456_v23  ;;  %v9327_v62 = vcombine.low %v15428_v11, %v15410_v63  ;;  %v9361_v50 = vcombine.low %v15448_v56, %v15439_v49 }
 0x9ff   : > { %v9395_v52 = vcombine.low %v15458_v34, %v15442_v54  ;;  %v9362_v59 = vcombine.high %v15448_v56, %v15439_v49  ;;  %v15485_v39 = vrot.slane %v15317_v40, %v16954_v38  ;;  %v15495_v13 = vrot.slane %v15330_v15, %v16954_v38 }
 0xa00   : > { %v15514_v23 = vrot.slane %v8458_v45, %v16954_v38  ;;  %v15521_v31 = vrot.slane %v8452_v4, %v16954_v38  ;;  %v15596_v36 = vrot.slane %v7639_v7, %v16955_v57  ;;  %v8449_v49 = vpack.i.b16 %v15391_v8, %v15376_v21 }
 0xa01   : > { %v9429_v40 = vcombine.low %v15485_v39, %v15475_v19  ;;  %v9430_v25 = vcombine.high %v15485_v39, %v15475_v19  ;;  %v15662_v63 = vrot.slane %v9395_v52, %v16955_v57 }
 0xa02   : > { %9827 = vrot.lane.b32.xlu1 %v15278_v20, %s11000_s29  ;;  %9553 = vrot.lane.b32.xlu0 %v15296_v17, %s10999_s28  ;;  %v9396_v20 = vcombine.high %v15458_v34, %v15442_v54  ;;  %v8577_v33 = vcombine.low %v15521_v31, %v15514_v23  ;;  %v8578_v15 = vcombine.high %v15521_v31, %v15514_v23 }
 0xa03   : > { %v10845_v26 = vcombine.high %v15596_v36, %v15596_v36  ;;  %17044 = vst [vmem:[#allocation67_spill] sm:$0xff] %v15662_v63  ;;  %v8455_v54 = vpack.i.b16 %v15420_v32, %v15416_v42 }
 0xa06   : > { %9831 = vrot.lane.b32.xlu1 %v15327_v2, %s11000_s29  ;;  %9561 = vrot.lane.b32.xlu0 %v15355_v46, %s10999_s28  ;;  %v15491_v2 = vrot.slane %v8437_v30, %v16954_v38 }
 0xa08   : > { %v8475_v30 = vcombine.low %v15491_v2, %v15478_v35 }
 0xa0a   : > { %9835 = vrot.lane.b32.xlu1 %v15339_v0, %s11000_s29  ;;  %9825 = vrot.lane.b32.xlu0 %v15266_v22, %s11000_s29  ;;  %v8510_v0 = vcombine.high %v15495_v13, %v15481_v48 }
 0xa0e   : > { %9829 = vrot.lane.b32.xlu0 %v15296_v17, %s11000_s29  ;;  %9549 = vrot.lane.b32.xlu1 %v15266_v22, %s10999_s28  ;;  %v7542_v22 = vpack.i.b16 %v7541_v6, %v7540_v43  ;;  %v7536_v17 = vpack.i.b16 %v7535_v1, %v7534_v47  ;;  %v7554_v1 = vpack.i.b16 %v7553_v41, %v7552_v29  ;;  %v17042_v6 = vshrl.u32 %v15252_v51, 16 }
 0xa10   : > { %v7604_v27 = vrot.slane %v7542_v22, %v16954_v38  ;;  %v7596_v60 = vrot.slane %v7536_v17, %v16954_v38  ;;  %v7548_v61 = vpack.i.b16 %v17042_v6, %v17041_v16 }
 0xa12   : > { %9833 = vrot.lane.b32.xlu0 %v15343_v58, %s11000_s29  ;;  %9557 = vrot.lane.b32.xlu1 %v15343_v58, %s10999_s28  ;;  %v7605_v47 = vcombine.low %v7596_v60, %v7604_v27  ;;  %v7664_v5 = vrot.slane %v7548_v61, %v16954_v38 }
 0xa16   : > { %9837 = vrot.lane.b32.xlu0 %v15355_v46, %s11000_s29  ;;  %8971 = vrot.lane.b32.xlu1 %v15274_v14, %s11000_s29  ;;  %v7606_v46 = vcombine.high %v7596_v60, %v7604_v27 }
 0xa1a   : > { %8975 = vrot.lane.b32.xlu0 %v15304_v37, %s11000_s29  ;;  %8979 = vrot.lane.b32.xlu1 %v15363_v10, %s11000_s29 }
 0xa1e   : > { %8983 = vrot.lane.b32.xlu0 %v15367_v9, %s11000_s29  ;;  %8695 = vrot.lane.b32.xlu1 %v15274_v14, %s10999_s28  ;;  %v15567_v14 = vrot.slane %v7571_v28, %v16955_v57  ;;  %v7654_v28 = vrot.slane %v7640_v18, %v16955_v57 }
 0xa20   : > { %v10841_v43 = vcombine.high %v15567_v14, %v15567_v14  ;;  %v10610_v58 = vcombine.low %v7654_v28, %v7654_v28  ;;  %v10847_v51 = vcombine.high %v7654_v28, %v7654_v28  ;;  %v9342_v28 = vrot.slane %v9328_v44, %v16955_v57 }
 0xa22   : > { %8699 = vrot.lane.b32.xlu0 %v15304_v37, %s10999_s28  ;;  %8703 = vrot.lane.b32.xlu1 %v15363_v10, %s10999_s28  ;;  %v7613_v37 = vrot.slane %v7605_v47, %v16955_v57  ;;  %v7672_v10 = vrot.slane %v7554_v1, %v16954_v38  ;;  %v10891_v61 = vcombine.high %v9342_v28, %v9342_v28 }
 0xa24   : > { %v10600_v55 = vcombine.low %v7613_v37, %v7613_v37  ;;  %v7673_v29 = vcombine.low %v7664_v5, %v7672_v10  ;;  %v10842_v41 = vcombine.high %v7613_v37, %v7613_v37  ;;  %v7674_v7 = vcombine.high %v7664_v5, %v7672_v10 }
 0xa25   : > { %v9369_v37 = vrot.slane %v9361_v50, %v16955_v57  ;;  %v9410_v50 = vrot.slane %v9396_v20, %v16955_v57 }
 0xa26   : > { %8707 = vrot.lane.b32.xlu0 %v15367_v9, %s10999_s28  ;;  %8973 = vrot.lane.b32.xlu1 %v15376_v21, %s11000_s29  ;;  %v7620_v9 = vrot.slane %v7606_v46, %v16955_v57  ;;  %v7681_v3 = vrot.slane %v7673_v29, %v16955_v57  ;;  %v7688_v17 = vrot.slane %v7674_v7, %v16955_v57 }
 0xa27   : > { %v10893_v46 = vcombine.high %v15662_v63, %v15662_v63  ;;  %v10698_v5 = vcombine.low %v9410_v50, %v9410_v50 }
 0xa28   : > { %v10604_v4 = vcombine.low %v7620_v9, %v7620_v9  ;;  %v10846_v45 = vcombine.high %v7681_v3, %v7681_v3  ;;  %v10844_v22 = vcombine.high %v7620_v9, %v7620_v9  ;;  %v10607_v60 = vcombine.low %v7681_v3, %v7681_v3 }
 0xa29   : > { %v10895_v9 = vcombine.high %v9410_v50, %v9410_v50  ;;  %v8534_v3 = vrot.slane %v8449_v49, %v16954_v38 }
 0xa2a   : > { %8977 = vrot.lane.b32.xlu0 %v15391_v8, %s11000_s29  ;;  %8981 = vrot.lane.b32.xlu1 %v15416_v42, %s11000_s29 }
 0xa2e   : > { %8985 = vrot.lane.b32.xlu0 %v15420_v32, %s11000_s29  ;;  %8697 = vrot.lane.b32.xlu1 %v15376_v21, %s10999_s28 }
 0xa32   : > { %8701 = vrot.lane.b32.xlu0 %v15391_v8, %s10999_s28  ;;  %8705 = vrot.lane.b32.xlu1 %v15416_v42, %s10999_s28  ;;  %v8542_v42 = vrot.slane %v8455_v54, %v16954_v38 }
 0xa34   : > { %v8544_v50 = vcombine.high %v8534_v3, %v8542_v42 }
 0xa36   : > { %8709 = vrot.lane.b32.xlu0 %v15420_v32, %s10999_s28  ;;  %7699 = vrot.lane.b32.xlu1 %v10841_v43, %s11005_s11  ;;  %v10611_v43 = vcombine.low %v7688_v17, %v7688_v17  ;;  %v8558_v54 = vrot.slane %v8544_v50, %v16955_v57 }
 0xa3a   : > { %7719 = vrot.lane.b32.xlu0 %v10843_v24, %s11007_s15  ;;  %7709 = vrot.lane.b32.xlu1 %v10603_v12, %s11003_s27  ;;  %v15634_v24 = vrot.slane %v9327_v62, %v16955_v57  ;;  %v10848_v62 = vcombine.high %v7688_v17, %v7688_v17  ;;  %v15722_v17 = vrot.slane %v8475_v30, %v16955_v57 }
 0xa3b   : > { %v17045_v30 = vcombine.high %v15491_v2, %v15478_v35 }
 0xa3c   : > { %17043 = vst [vmem:[#allocation22_spill] sm:$0xff] %v15634_v24  ;;  %v10889_v12 = vcombine.high %v15634_v24, %v15634_v24 }
 0xa3e   : > { %7734 = vrot.lane.b32.xlu0 %v10845_v26, %s11005_s11  ;;  %7744 = vrot.lane.b32.xlu1 %v10610_v58, %s11003_s27  ;;  %v10691_v26 = vcombine.low %v9342_v28, %v9342_v28  ;;  %v10688_v58 = vcombine.low %v9369_v37, %v9369_v37 }
 0xa41   : > { %v15619_v18 = vpop.permute.xlu1 %7799 }
 0xa42   : > { %7754 = vrot.lane.b32.xlu0 %v10847_v51, %s11007_s15  ;;  %7694 = vrot.lane.b32.xlu1 %v10600_v55, %s11004_s30  ;;  %v10890_v51 = vcombine.high %v9369_v37, %v9369_v37  ;;  %v9376_v55 = vrot.slane %v9362_v59, %v16955_v57  ;;  %v17046_v37 = vcombine.low %v15495_v13, %v15481_v48 }
 0xa44   : > { %v10692_v29 = vcombine.low %v9376_v55, %v9376_v55  ;;  %v10892_v59 = vcombine.high %v9376_v55, %v9376_v55 }
 0xa45   : > { %v15624_v53 = vpop.permute.xlu0 %7803 }
 0xa46   : > { %7704 = vrot.lane.b32.xlu0 %v10842_v41, %s11008_s16  ;;  %7714 = vrot.lane.b32.xlu1 %v10604_v4, %s11006_s12  ;;  %v9437_v41 = vrot.slane %v9429_v40, %v16955_v57  ;;  %v9444_v40 = vrot.slane %v9430_v25, %v16955_v57 }
 0xa48   : > { %v10894_v4 = vcombine.high %v9437_v41, %v9437_v41  ;;  %v10695_v7 = vcombine.low %v9437_v41, %v9437_v41  ;;  %v10699_v25 = vcombine.low %v9444_v40, %v9444_v40 }
 0xa49   : > { %v15626_v27 = vpop.permute.xlu1 %7807 }
 0xa4a   : > { %7739 = vrot.lane.b32.xlu0 %v10846_v45, %s11008_s16  ;;  %7724 = vrot.lane.b32.xlu1 %v10844_v22, %s11009_s17  ;;  %v8543_v45 = vcombine.low %v8534_v3, %v8542_v42  ;;  %v10896_v22 = vcombine.high %v9444_v40, %v9444_v40  ;;  %v10652_v42 = vcombine.low %v8558_v54, %v8558_v54 }
 0xa4d   : > { %v15636_v47 = vpop.permute.xlu0 %7811  ;;  %v15638_v1 = vpop.permute.xlu1 %8075 }
 0xa4e   : > { %7749 = vrot.lane.b32.xlu0 %v10611_v43, %s11006_s12  ;;  %7729 = vrot.lane.b32.xlu1 %v10607_v60, %s11004_s30  ;;  %v15731_v43 = vrot.slane %v8543_v45, %v16955_v57  ;;  %v10865_v60 = vcombine.high %v15722_v17, %v15722_v17 }
 0xa51   : > { %v15648_v16 = vpop.permute.xlu0 %8079  ;;  %v15650_v6 = vpop.permute.xlu1 %8083 }
 0xa52   : > { %9455 = vrot.lane.b32.xlu0 %v10889_v12, %s11005_s11  ;;  %7759 = vrot.lane.b32.xlu1 %v10848_v62, %s11009_s17  ;;  %v8490_v12 = vrot.slane %v17045_v30, %v16955_v57 }
 0xa54   : > { %v10867_v55 = vcombine.high %v8490_v12, %v8490_v12 }
 0xa55   : > { %v15664_v11 = vpop.permute.xlu0 %8087  ;;  %v15668_v44 = vpop.permute.xlu1 %7801 }
 0xa56   : > { %9475 = vrot.lane.b32.xlu0 %v10891_v61, %s11007_s15  ;;  %9465 = vrot.lane.b32.xlu1 %v10691_v26, %s11003_s27  ;;  %v10869_v61 = vcombine.high %v15731_v43, %v15731_v43  ;;  %v8517_v26 = vrot.slane %v17046_v37, %v16955_v57 }
 0xa59   : > { %v15678_v52 = vpop.permute.xlu0 %7805 }
 0xa5a   : > { %9450 = vrot.lane.b32.xlu0 %v10688_v58, %s11004_s30  ;;  %9490 = vrot.lane.b32.xlu1 %v10893_v46, %s11005_s11  ;;  %v10645_v58 = vcombine.low %v8490_v12, %v8490_v12  ;;  %v10866_v46 = vcombine.high %v8517_v26, %v8517_v26 }
 0xa5c   : > { %v15680_v10 = vpop.permute.xlu1 %7809 }
 0xa5e   : > { %9500 = vrot.lane.b32.xlu0 %v10698_v5, %s11003_s27  ;;  %9460 = vrot.lane.b32.xlu1 %v10890_v51, %s11008_s16  ;;  %v8524_v5 = vrot.slane %v8510_v0, %v16955_v57  ;;  %v8099_v51 = vpack.i.b16 %v15664_v11, %v15650_v6 }
 0xa60   : > { %v15690_v34 = vpop.permute.xlu0 %7813  ;;  %v15692_v20 = vpop.permute.xlu1 %8077  ;;  %v10646_v13 = vcombine.low %v8524_v5, %v8524_v5  ;;  %v15775_v0 = vrot.slane %v8099_v51, %v16954_v38 }
 0xa62   : > { %9510 = vrot.lane.b32.xlu0 %v10895_v9, %s11007_s15  ;;  %9470 = vrot.lane.b32.xlu1 %v10692_v29, %s11006_s12  ;;  %v8093_v9 = vpack.i.b16 %v15648_v16, %v15638_v1  ;;  %v7823_v29 = vpack.i.b16 %v15636_v47, %v15626_v27 }
 0xa64   : > { %v15703_v32 = vpop.permute.xlu0 %8081  ;;  %v15705_v56 = vpop.permute.xlu1 %8085  ;;  %v7854_v3 = vrot.slane %v7823_v29, %v16954_v38 }
 0xa66   : > { %9480 = vrot.lane.b32.xlu0 %v10892_v59, %s11009_s17  ;;  %9495 = vrot.lane.b32.xlu1 %v10894_v4, %s11008_s16  ;;  %v7817_v59 = vpack.i.b16 %v15624_v53, %v15619_v18  ;;  %v15782_v4 = vrot.slane %v8093_v9, %v16954_v38 }
 0xa68   : > { %v15714_v21 = vpop.permute.xlu0 %8089  ;;  %v15716_v8 = vpop.permute.xlu1 %9547  ;;  %v8131_v30 = vcombine.low %v15782_v4, %v15775_v0 }
 0xa6a   : > { %9485 = vrot.lane.b32.xlu0 %v10695_v7, %s11004_s30  ;;  %9515 = vrot.lane.b32.xlu1 %v10896_v22, %s11009_s17  ;;  %v10871_v22 = vcombine.high %v8558_v54, %v8558_v54  ;;  %v7835_v54 = vpack.i.b16 %v15690_v34, %v15680_v10 }
 0xa6c   : > { %v15726_v19 = vpop.permute.xlu0 %9551  ;;  %v15728_v39 = vpop.permute.xlu1 %9555 }
 0xa6e   : > { %9505 = vrot.lane.b32.xlu0 %v10699_v25, %s11006_s12  ;;  %8603 = vrot.lane.b32.xlu1 %v10865_v60, %s11005_s11  ;;  %v10868_v25 = vcombine.high %v8524_v5, %v8524_v5  ;;  %v8585_v60 = vrot.slane %v8577_v33, %v16955_v57  ;;  %v10642_v33 = vcombine.low %v8517_v26, %v8517_v26 }
 0xa6f   : > { %v8132_v26 = vcombine.high %v15782_v4, %v15775_v0  ;;  %v8095_v0 = vshrl.u32 %v15648_v16, 16  ;;  %v8100_v4 = vshrl.u32 %v15650_v6, 16 }
 0xa70   : > { %v15741_v28 = vpop.permute.xlu0 %9559  ;;  %v15743_v62 = vpop.permute.xlu1 %9823 }
 0xa71   : > { %v9842_v40 = vshrl.u32 %v15743_v62, 16 }
 0xa72   : > { %8638 = vrot.lane.b32.xlu0 %v10869_v61, %s11005_s11  ;;  %8613 = vrot.lane.b32.xlu1 %v10645_v58, %s11003_s27  ;;  %v7846_v58 = vrot.slane %v7817_v59, %v16954_v38 }
 0xa74   : > { %v15753_v35 = vpop.permute.xlu0 %9553  ;;  %v15755_v2 = vpop.permute.xlu1 %9827  ;;  %v7855_v23 = vcombine.low %v7846_v58, %v7854_v3 }
 0xa75   : > { %v9843_v49 = vshrl.u32 %v15755_v2, 16 }
 0xa76   : > { %8608 = vrot.lane.b32.xlu0 %v10866_v46, %s11008_s16  ;;  %8623 = vrot.lane.b32.xlu1 %v10867_v55, %s11007_s15  ;;  %v7856_v46 = vcombine.high %v7846_v58, %v7854_v3  ;;  %v10649_v55 = vcombine.low %v8585_v60, %v8585_v60  ;;  %v7818_v3 = vshrl.u32 %v15619_v18, 16 }
 0xa77   : > { %v9844_v12 = vpack.i.b16 %v9843_v49, %v9842_v40  ;;  %v7829_v49 = vpack.i.b16 %v15678_v52, %v15668_v44  ;;  %v10870_v40 = vcombine.high %v8585_v60, %v8585_v60  ;;  %v8105_v60 = vpack.i.b16 %v15703_v32, %v15692_v20 }
 0xa78   : > { %v15770_v41 = vpop.permute.xlu0 %9561  ;;  %v15772_v48 = vpop.permute.xlu1 %9831 }
 0xa79   : > { %v9848_v61 = vshrl.u32 %v15772_v48, 16  ;;  %v15809_v9 = vrot.slane %v9844_v12, %v16954_v38 }
 0xa7a   : > { %8618 = vrot.lane.b32.xlu0 %v10646_v13, %s11006_s12  ;;  %8648 = vrot.lane.b32.xlu1 %v10652_v42, %s11003_s27  ;;  %v15815_v13 = vrot.slane %v8131_v30, %v16955_v57  ;;  %v8111_v30 = vpack.i.b16 %v15714_v21, %v15705_v56 }
 0xa7c   : > { %v15787_v7 = vpop.permute.xlu0 %9825  ;;  %v15789_v45 = vpop.permute.xlu1 %9835  ;;  %v10857_v12 = vcombine.high %v15815_v13, %v15815_v13 }
 0xa7d   : > { %v9849_v37 = vshrl.u32 %v15789_v45, 16 }
 0xa7e   : > { %8628 = vrot.lane.b32.xlu0 %v10868_v25, %s11009_s17  ;;  %8658 = vrot.lane.b32.xlu1 %v10871_v22, %s11007_s15  ;;  %v8592_v22 = vrot.slane %v8578_v15, %v16955_v57  ;;  %v7922_v25 = vrot.slane %v7835_v54, %v16954_v38  ;;  %v7825_v15 = vshrl.u32 %v15636_v47, 16 }
 0xa7f   : > { %v9850_v50 = vpack.i.b16 %v9849_v37, %v9848_v61  ;;  %v7870_v61 = vrot.slane %v7856_v46, %v16955_v57  ;;  %v7914_v37 = vrot.slane %v7829_v49, %v16954_v38  ;;  %v15848_v46 = vrot.slane %v8111_v30, %v16954_v38 }
 0xa80   : > { %v15802_v5 = vpop.permute.xlu0 %9829  ;;  %v15804_v51 = vpop.permute.xlu1 %9549  ;;  %v7824_v49 = vshrl.u32 %v15626_v27, 16  ;;  %v10872_v47 = vcombine.high %v8592_v22, %v8592_v22  ;;  %v15863_v27 = vrot.slane %v7855_v23, %v16955_v57 }
 0xa81   : > { %v15812_v29 = vrot.slane %v9850_v50, %v16954_v38  ;;  %v10617_v54 = vcombine.low %v7870_v61, %v7870_v61  ;;  %v7924_v16 = vcombine.high %v7914_v37, %v7922_v25 }
 0xa82   : > { %8633 = vrot.lane.b32.xlu0 %v10649_v55, %s11004_s30  ;;  %8598 = vrot.lane.b32.xlu1 %v10642_v33, %s11004_s30  ;;  %v10653_v33 = vcombine.low %v8592_v22, %v8592_v22  ;;  %v7923_v55 = vcombine.low %v7914_v37, %v7922_v25  ;;  %v7826_v58 = vpack.i.b16 %v7825_v15, %v7824_v49 }
 0xa84   : > { %v15823_v42 = vpop.permute.xlu0 %9833  ;;  %v15825_v59 = vpop.permute.xlu1 %9557  ;;  %v15868_v22 = vrot.slane %v7923_v55, %v16955_v57  ;;  %v15875_v15 = vrot.slane %v7826_v58, %v16954_v38  ;;  %v10849_v55 = vcombine.high %v15863_v27, %v15863_v27 }
 0xa86   : > { %8643 = vrot.lane.b32.xlu0 %v10870_v40, %s11008_s16  ;;  %8259 = vrot.lane.b32.xlu1 %v10857_v12, %s11005_s11  ;;  %v7819_v40 = vshrl.u32 %v15624_v53, 16  ;;  %v8190_v12 = vrot.slane %v8105_v60, %v16954_v38  ;;  %v8101_v53 = vshrl.u32 %v15664_v11, 16  ;;  %17047 = vst [vmem:[#allocation13_spill] sm:$0xff] %v15868_v22  ;;  %v8094_v11 = vshrl.u32 %v15638_v1, 16 }
 0xa87   : > { %v10853_v6 = vcombine.high %v15868_v22, %v15868_v22 }
 0xa88   : > { %v15843_v31 = vpop.permute.xlu0 %9837  ;;  %v15845_v50 = vpop.permute.xlu1 %8971  ;;  %v8199_v60 = vcombine.low %v8190_v12, %v15848_v46  ;;  %v7820_v18 = vpack.i.b16 %v7819_v40, %v7818_v3  ;;  %v8102_v49 = vpack.i.b16 %v8101_v53, %v8100_v4 }
 0xa8a   : > { %8653 = vrot.lane.b32.xlu0 %v10653_v33, %s11006_s12  ;;  %7993 = vrot.lane.b32.xlu1 %v10617_v54, %s11003_s27  ;;  %v10851_v33 = vcombine.high %v7870_v61, %v7870_v61  ;;  %v8146_v54 = vrot.slane %v8132_v26, %v16955_v57  ;;  %v15888_v40 = vrot.slane %v8199_v60, %v16955_v57 }
 0xa8b   : > { %v7880_v1 = vrot.slane %v7820_v18, %v16954_v38  ;;  %v8164_v37 = vrot.slane %v8102_v49, %v16954_v38  ;;  %v7938_v60 = vrot.slane %v7924_v16, %v16955_v57  ;;  %v8200_v18 = vcombine.high %v8190_v12, %v15848_v46 }
 0xa8c   : > { %v15858_v30 = vpop.permute.xlu0 %8975  ;;  %v15860_v24 = vpop.permute.xlu1 %8979  ;;  %17048 = vst [vmem:[#allocation11_spill] sm:$0xff] %v15888_v40  ;;  %v10631_v26 = vcombine.low %v8146_v54, %v8146_v54  ;;  %v10861_v53 = vcombine.high %v15888_v40, %v15888_v40  ;;  %v7837_v49 = vshrl.u32 %v15690_v34, 16  ;;  %v7831_v16 = vshrl.u32 %v15678_v52, 16 }
 0xa8d   : > { %v7889_v25 = vcombine.low %v7880_v1, %v15875_v15  ;;  %v7830_v46 = vshrl.u32 %v15668_v44, 16  ;;  %v8214_v34 = vrot.slane %v8200_v18, %v16955_v57 }
 0xa8e   : > { %8663 = vrot.lane.b32.xlu0 %v10872_v47, %s11009_s17  ;;  %8003 = vrot.lane.b32.xlu1 %v10851_v33, %s11007_s15  ;;  %v8096_v47 = vpack.i.b16 %v8095_v0, %v8094_v11  ;;  %v10859_v11 = vcombine.high %v8146_v54, %v8146_v54  ;;  %v10624_v54 = vcombine.low %v7938_v60, %v7938_v60 }
 0xa8f   : > { %v7897_v63 = vrot.slane %v7889_v25, %v16955_v57  ;;  %v7832_v52 = vpack.i.b16 %v7831_v16, %v7830_v46  ;;  %v10638_v22 = vcombine.low %v8214_v34, %v8214_v34  ;;  %v10863_v16 = vcombine.high %v8214_v34, %v8214_v34 }
 0xa90   : > { %v15878_v23 = vpop.permute.xlu0 %8983  ;;  %v15880_v61 = vpop.permute.xlu1 %8695  ;;  %v8156_v33 = vrot.slane %v8096_v47, %v16954_v38  ;;  %v7836_v47 = vshrl.u32 %v15680_v10, 16  ;;  %v7890_v10 = vcombine.high %v7880_v1, %v15875_v15  ;;  %v8107_v15 = vshrl.u32 %v15703_v32, 16 }
 0xa91   : > { %v10850_v25 = vcombine.high %v7897_v63, %v7897_v63  ;;  %v8112_v1 = vshrl.u32 %v15705_v56, 16 }
 0xa92   : > { %7983 = vrot.lane.b32.xlu0 %v10849_v55, %s11005_s11  ;;  %8018 = vrot.lane.b32.xlu1 %v10853_v6, %s11005_s11  ;;  %v8165_v55 = vcombine.low %v8156_v33, %v8164_v37  ;;  %v10855_v6 = vcombine.high %v7938_v60, %v7938_v60  ;;  %v7838_v40 = vpack.i.b16 %v7837_v49, %v7836_v47 }
 0xa94   : > { %v15893_v3 = vpop.permute.xlu0 %8699  ;;  %v15895_v58 = vpop.permute.xlu1 %8703  ;;  %v15931_v60 = vrot.slane %v7838_v40, %v16954_v38 }
 0xa96   : > { %8269 = vrot.lane.b32.xlu0 %v10631_v26, %s11003_s27  ;;  %8294 = vrot.lane.b32.xlu1 %v10861_v53, %s11005_s11  ;;  %v8166_v53 = vcombine.high %v8156_v33, %v8164_v37  ;;  %v8113_v37 = vshrl.u32 %v15714_v21, 16  ;;  %v7904_v21 = vrot.slane %v7890_v10, %v16955_v57 }
 0xa98   : > { %v15906_v0 = vpop.permute.xlu0 %8707  ;;  %v15908_v4 = vpop.permute.xlu1 %8973  ;;  %v8180_v18 = vrot.slane %v8166_v53, %v16955_v57  ;;  %v8114_v46 = vpack.i.b16 %v8113_v37, %v8112_v1 }
 0xa9a   : > { %8279 = vrot.lane.b32.xlu0 %v10859_v11, %s11007_s15  ;;  %8038 = vrot.lane.b32.xlu1 %v10855_v6, %s11007_s15  ;;  %v8173_v11 = vrot.slane %v8165_v55, %v16955_v57  ;;  %v15937_v55 = vrot.slane %v7832_v52, %v16954_v38  ;;  %v8232_v34 = vrot.slane %v8114_v46, %v16954_v38 }
 0xa9b   : > { %v10852_v52 = vcombine.high %v7904_v21, %v7904_v21 }
 0xa9c   : > { %v15917_v12 = vpop.permute.xlu0 %8977  ;;  %v15919_v26 = vpop.permute.xlu1 %8981  ;;  %v10858_v33 = vcombine.high %v8173_v11, %v8173_v11  ;;  %v7957_v47 = vcombine.low %v15937_v55, %v15931_v60 }
 0xa9e   : > { %8028 = vrot.lane.b32.xlu0 %v10624_v54, %s11003_s27  ;;  %7988 = vrot.lane.b32.xlu1 %v10850_v25, %s11008_s16  ;;  %v10632_v54 = vcombine.low %v8180_v18, %v8180_v18  ;;  %v10614_v25 = vcombine.low %v7897_v63, %v7897_v63  ;;  %v7965_v10 = vrot.slane %v7957_v47, %v16955_v57 }
 0xa9f   : > { %v9571_v63 = vpack.i.b16 %v15741_v28, %v15728_v39  ;;  %v9565_v47 = vpack.i.b16 %v15726_v19, %v15716_v8 }
 0xaa0   : > { %v15926_v44 = vpop.permute.xlu0 %8985  ;;  %v15928_v6 = vpop.permute.xlu1 %8697 }
 0xaa2   : > { %8304 = vrot.lane.b32.xlu0 %v10638_v22, %s11003_s27  ;;  %8264 = vrot.lane.b32.xlu1 %v10858_v33, %s11008_s16  ;;  %v8106_v22 = vshrl.u32 %v15692_v20, 16 }
 0xaa4   : > { %v15942_v49 = vpop.permute.xlu0 %8701  ;;  %v15944_v40 = vpop.permute.xlu1 %8705  ;;  %v8108_v32 = vpack.i.b16 %v8107_v15, %v8106_v22  ;;  %v10628_v15 = vcombine.low %v8173_v11, %v8173_v11  ;;  %v9602_v11 = vrot.slane %v9571_v63, %v16954_v38 }
 0xaa6   : > { %8314 = vrot.lane.b32.xlu0 %v10863_v16, %s11007_s15  ;;  %8274 = vrot.lane.b32.xlu1 %v10632_v54, %s11006_s12  ;;  %v8224_v20 = vrot.slane %v8108_v32, %v16954_v38  ;;  %v10621_v16 = vcombine.low %v7965_v10, %v7965_v10  ;;  %v10618_v32 = vcombine.low %v7904_v21, %v7904_v21 }
 0xaa8   : > { %v15952_v56 = vpop.permute.xlu0 %8709  ;;  %v15954_v53 = vpop.permute.xlu1 %7699  ;;  %v8234_v1 = vcombine.high %v8224_v20, %v8232_v34  ;;  %v8233_v22 = vcombine.low %v8224_v20, %v8232_v34  ;;  %v10860_v20 = vcombine.high %v8180_v18, %v8180_v18 }
 0xaaa   : > { %7978 = vrot.lane.b32.xlu0 %v10614_v25, %s11004_s30  ;;  %8008 = vrot.lane.b32.xlu1 %v10852_v52, %s11009_s17  ;;  %v10854_v25 = vcombine.high %v7965_v10, %v7965_v10  ;;  %v8248_v52 = vrot.slane %v8234_v1, %v16955_v57  ;;  %v8241_v21 = vrot.slane %v8233_v22, %v16955_v57  ;;  %v9567_v10 = vshrl.u32 %v15726_v19, 16 }
 0xaab   : > { %v9572_v1 = vshrl.u32 %v15728_v39, 16  ;;  %v9847_v19 = vpack.i.b16 %v15789_v45, %v15772_v48 }
 0xaac   : > { %v15961_v37 = vpop.permute.xlu0 %7719  ;;  %v15963_v33 = vpop.permute.xlu1 %7709  ;;  %v10639_v63 = vcombine.low %v8248_v52, %v8248_v52  ;;  %v10635_v22 = vcombine.low %v8241_v21, %v8241_v21  ;;  %v10864_v39 = vcombine.high %v8248_v52, %v8248_v52  ;;  %v10862_v45 = vcombine.high %v8241_v21, %v8241_v21 }
 0xaad   : > { %17049 = vst [vmem:[#allocation21_spill] sm:$0xff] %v15961_v37  ;;  %17050 = vst [vmem:[#allocation63_spill] sm:$0xff] %v15963_v33  ;;  %v9573_v37 = vshrl.u32 %v15741_v28, 16  ;;  %v7958_v28 = vcombine.high %v15937_v55, %v15931_v60  ;;  %v9583_v55 = vpack.i.b16 %v15770_v41, %v15825_v59 }
 0xaae   : > { %8254 = vrot.lane.b32.xlu0 %v10628_v15, %s11004_s30  ;;  %8013 = vrot.lane.b32.xlu1 %v10621_v16, %s11004_s30  ;;  %v9594_v15 = vrot.slane %v9565_v47, %v16954_v38  ;;  %v9566_v47 = vshrl.u32 %v15716_v8, 16  ;;  %v9841_v8 = vpack.i.b16 %v15755_v2, %v15743_v62 }
 0xab0   : > { %v15971_v46 = vpop.permute.xlu0 %7734  ;;  %v15973_v54 = vpop.permute.xlu1 %7744 }
 0xab1   : > { %17051 = vst [vmem:[#allocation59_spill] sm:$0xff] %v15973_v54  ;;  %v9603_v54 = vcombine.low %v9594_v15, %v9602_v11 }
 0xab2   : > { %7998 = vrot.lane.b32.xlu0 %v10618_v32, %s11006_s12  ;;  %8023 = vrot.lane.b32.xlu1 %v10854_v25, %s11008_s16  ;;  %v9574_v32 = vpack.i.b16 %v9573_v37, %v9572_v1  ;;  %v9670_v1 = vrot.slane %v9583_v55, %v16954_v38 }
 0xab4   : > { %v15981_v16 = vpop.permute.xlu0 %7754  ;;  %v15983_v34 = vpop.permute.xlu1 %7694  ;;  %v9636_v60 = vrot.slane %v9574_v32, %v16954_v38 }
 0xab5   : > { %17052 = vst [vmem:[#allocation31_spill] sm:$0xff] %v15981_v16  ;;  %v9604_v16 = vcombine.high %v9594_v15, %v9602_v11  ;;  %v9878_v11 = vrot.slane %v9847_v19, %v16954_v38  ;;  %v9577_v15 = vpack.i.b16 %v15753_v35, %v15804_v51 }
 0xab6   : > { %8284 = vrot.lane.b32.xlu0 %v10860_v20, %s11009_s17  ;;  %8309 = vrot.lane.b32.xlu1 %v10639_v63, %s11006_s12  ;;  %v16000_v20 = vrot.slane %v9603_v54, %v16955_v57  ;;  %v9568_v63 = vpack.i.b16 %v9567_v10, %v9566_v47  ;;  %v7972_v54 = vrot.slane %v7958_v28, %v16955_v57 }
 0xab7   : > { %v9618_v62 = vrot.slane %v9604_v16, %v16955_v57  ;;  %v9870_v10 = vrot.slane %v9841_v8, %v16954_v38  ;;  %v9662_v19 = vrot.slane %v9577_v15, %v16954_v38 }
 0xab8   : > { %v15993_v25 = vpop.permute.xlu0 %7704  ;;  %v15995_v18 = vpop.permute.xlu1 %7714  ;;  %17054 = vst [vmem:[#allocation9_spill] sm:$0xff] %v16000_v20  ;;  %v10897_v52 = vcombine.high %v16000_v20, %v16000_v20  ;;  %v9628_v2 = vrot.slane %v9568_v63, %v16954_v38  ;;  %v10625_v32 = vcombine.low %v7972_v54, %v7972_v54  ;;  %v10856_v8 = vcombine.high %v7972_v54, %v7972_v54 }
 0xab9   : > { %17053 = vst [vmem:[#allocation26_spill] sm:$0xff] %v15995_v18  ;;  %v9879_v16 = vcombine.low %v9870_v10, %v9878_v11  ;;  %v9880_v55 = vcombine.high %v9870_v10, %v9878_v11  ;;  %v10899_v20 = vcombine.high %v9618_v62, %v9618_v62  ;;  %v9671_v11 = vcombine.low %v9662_v19, %v9670_v1 }
 0xaba   : > { %8289 = vrot.lane.b32.xlu0 %v10635_v22, %s11004_s30  ;;  %8319 = vrot.lane.b32.xlu1 %v10864_v39, %s11009_s17  ;;  %v9637_v21 = vcombine.low %v9628_v2, %v9636_v60  ;;  %v10705_v22 = vcombine.low %v9618_v62, %v9618_v62  ;;  %v9672_v39 = vcombine.high %v9662_v19, %v9670_v1 }
 0xabb   : > { %v9638_v15 = vcombine.high %v9628_v2, %v9636_v60  ;;  %v9584_v60 = vshrl.u32 %v15825_v59, 16  ;;  %v9578_v59 = vshrl.u32 %v15804_v51, 16 }
 0xabc   : > { %v16009_v37 = vpop.permute.xlu0 %7739  ;;  %v16011_v48 = vpop.permute.xlu1 %7724 }
 0xabd   : > { %17055 = vst [vmem:[#allocation34_spill] sm:$0xff] %v16009_v37  ;;  %17056 = vst [vmem:[#allocation64_spill] sm:$0xff] %v16011_v48  ;;  %v16038_v48 = vrot.slane %v9879_v16, %v16955_v57  ;;  %v16052_v16 = vrot.slane %v9880_v55, %v16955_v57 }
 0xabe   : > { %8299 = vrot.lane.b32.xlu0 %v10862_v45, %s11008_s16  ;;  %9731 = vrot.lane.b32.xlu1 %v10897_v52, %s11005_s11  ;;  %v9645_v45 = vrot.slane %v9637_v21, %v16955_v57  ;;  %v9686_v21 = vrot.slane %v9672_v39, %v16955_v57  ;;  %v9652_v39 = vrot.slane %v9638_v15, %v16955_v57  ;;  %v9579_v15 = vshrl.u32 %v15753_v35, 16 }
 0xabf   : > { %17060 = vst [vmem:[#allocation27_spill] sm:$0xff] %v16038_v48  ;;  %v10905_v62 = vcombine.high %v16038_v48, %v16038_v48  ;;  %v10719_v55 = vcombine.low %v16052_v16, %v16052_v16 }
 0xac0   : > { %v16025_v28 = vpop.permute.xlu0 %7749  ;;  %v16027_v47 = vpop.permute.xlu1 %7729  ;;  %v10702_v54 = vcombine.low %v9645_v45, %v9645_v45  ;;  %v10712_v19 = vcombine.low %v9686_v21, %v9686_v21  ;;  %v10900_v35 = vcombine.high %v9652_v39, %v9652_v39 }
 0xac1   : > { %17057 = vst [vmem:[#allocation62_spill] sm:$0xff] %v16025_v28  ;;  %v8720_v28 = vshrl.u32 %v15895_v58, 16 }
 0xac2   : > { %8033 = vrot.lane.b32.xlu0 %v10625_v32, %s11006_s12  ;;  %9741 = vrot.lane.b32.xlu1 %v10705_v22, %s11003_s27  ;;  %v9859_v32 = vpack.i.b16 %v15843_v31, %v15823_v42 }
 0xac4   : > { %v16032_v63 = vpop.permute.xlu0 %9455  ;;  %v16035_v52 = vpop.permute.xlu1 %7759  ;;  %v9946_v2 = vrot.slane %v9859_v32, %v16954_v38 }
 0xac5   : > { %17058 = vst [vmem:[#allocation35_spill] sm:$0xff] %v16032_v63  ;;  %17059 = vst [vmem:[#allocation33_spill] sm:$0xff] %v16035_v52 }
 0xac6   : > { %8043 = vrot.lane.b32.xlu0 %v10856_v8, %s11009_s17  ;;  %9751 = vrot.lane.b32.xlu1 %v10899_v20, %s11007_s15  ;;  %v9853_v20 = vpack.i.b16 %v15802_v5, %v15787_v7 }
 0xac8   : > { %v16044_v22 = vpop.permute.xlu0 %9475  ;;  %v16047_v10 = vpop.permute.xlu1 %9465 }
 0xac9   : > { %17061 = vst [vmem:[#allocation45_spill] sm:$0xff] %v16044_v22  ;;  %17062 = vst [vmem:[#allocation32_spill] sm:$0xff] %v16047_v10  ;;  %v16068_v22 = vrot.slane %v9671_v11, %v16955_v57  ;;  %v9580_v11 = vpack.i.b16 %v9579_v15, %v9578_v59 }
 0xaca   : > { %9726 = vrot.lane.b32.xlu0 %v10702_v54, %s11004_s30  ;;  %10007 = vrot.lane.b32.xlu1 %v10905_v62, %s11005_s11  ;;  %v9585_v54 = vshrl.u32 %v15770_v41, 16  ;;  %v9938_v62 = vrot.slane %v9853_v20, %v16954_v38 }
 0xacb   : > { %17065 = vst [vmem:[#allocation28_spill] sm:$0xff] %v16068_v22  ;;  %v10901_v41 = vcombine.high %v16068_v22, %v16068_v22  ;;  %v9696_v15 = vrot.slane %v9580_v11, %v16954_v38 }
 0xacc   : > { %v16060_v1 = vpop.permute.xlu0 %9450  ;;  %v16063_v8 = vpop.permute.xlu1 %9490  ;;  %v9586_v32 = vpack.i.b16 %v9585_v54, %v9584_v60  ;;  %v9947_v10 = vcombine.low %v9938_v62, %v9946_v2  ;;  %v9948_v20 = vcombine.high %v9938_v62, %v9946_v2  ;;  %v8719_v54 = vpack.i.b16 %v15906_v0, %v15895_v58 }
 0xacd   : > { %17063 = vst [vmem:[#allocation23_spill] sm:$0xff] %v16060_v1  ;;  %17064 = vst [vmem:[#allocation29_spill] sm:$0xff] %v16063_v8  ;;  %v10706_v1 = vcombine.low %v9652_v39, %v9652_v39  ;;  %v8713_v2 = vpack.i.b16 %v15893_v3, %v15880_v61 }
 0xace   : > { %9776 = vrot.lane.b32.xlu0 %v10712_v19, %s11003_s27  ;;  %10017 = vrot.lane.b32.xlu1 %v10719_v55, %s11003_s27  ;;  %v9704_v51 = vrot.slane %v9586_v32, %v16954_v38  ;;  %v16088_v60 = vrot.slane %v9947_v10, %v16955_v57  ;;  %v9913_v55 = vcombine.low %v15809_v9, %v15812_v29 }
 0xacf   : > { %v16106_v32 = vrot.slane %v9948_v20, %v16955_v57  ;;  %v9861_v20 = vshrl.u32 %v15843_v31, 16 }
 0xad0   : > { %v16076_v63 = vpop.permute.xlu0 %9500  ;;  %v16078_v8 = vpop.permute.xlu1 %9460  ;;  %17069 = vst [vmem:[#allocation48_spill] sm:$0xff] %v16088_v60  ;;  %v9705_v10 = vcombine.low %v9696_v15, %v9704_v51  ;;  %v10909_v62 = vcombine.high %v16088_v60, %v16088_v60 }
 0xad1   : > { %17066 = vst [vmem:[#allocation39_spill] sm:$0xff] %v16076_v63  ;;  %17067 = vst [vmem:[#allocation41_spill] sm:$0xff] %v16078_v8 }
 0xad2   : > { %9746 = vrot.lane.b32.xlu0 %v10706_v1, %s11006_s12  ;;  %9766 = vrot.lane.b32.xlu1 %v10901_v41, %s11005_s11  ;;  %v10898_v1 = vcombine.high %v9645_v45, %v9645_v45  ;;  %17072 = vst [vmem:[#allocation36_spill] sm:$0xff] %v16106_v32  ;;  %v8995_v45 = vpack.i.b16 %v15878_v23, %v15860_v24 }
 0xad3   : > { %v8750_v41 = vrot.slane %v8719_v54, %v16954_v38  ;;  %v10726_v54 = vcombine.low %v16106_v32, %v16106_v32 }
 0xad4   : > { %v16085_v19 = vpop.permute.xlu0 %9510  ;;  %v16094_v59 = vpop.permute.xlu1 %9470 }
 0xad5   : > { %17068 = vst [vmem:[#allocation40_spill] sm:$0xff] %v16085_v19  ;;  %17070 = vst [vmem:[#allocation49_spill] sm:$0xff] %v16094_v59  ;;  %v9921_v19 = vrot.slane %v9913_v55, %v16955_v57  ;;  %v16126_v55 = vrot.slane %v8995_v45, %v16954_v38 }
 0xad6   : > { %9756 = vrot.lane.b32.xlu0 %v10900_v35, %s11009_s17  ;;  %9736 = vrot.lane.b32.xlu1 %v10898_v1, %s11008_s16  ;;  %v10903_v35 = vcombine.high %v9686_v21, %v9686_v21  ;;  %v8989_v1 = vpack.i.b16 %v15858_v30, %v15845_v50  ;;  %v9713_v21 = vrot.slane %v9705_v10, %v16955_v57  ;;  %v9854_v10 = vshrl.u32 %v15787_v7, 16 }
 0xad7   : > { %v10716_v8 = vcombine.low %v9921_v19, %v9921_v19 }
 0xad8   : > { %v16101_v39 = vpop.permute.xlu0 %9480  ;;  %v16111_v11 = vpop.permute.xlu1 %9495  ;;  %v16134_v31 = vrot.slane %v8989_v1, %v16954_v38  ;;  %v10709_v60 = vcombine.low %v9713_v21, %v9713_v21 }
 0xad9   : > { %17071 = vst [vmem:[#allocation38_spill] sm:$0xff] %v16101_v39  ;;  %17073 = vst [vmem:[#allocation46_spill] sm:$0xff] %v16111_v11  ;;  %v8742_v39 = vrot.slane %v8713_v2, %v16954_v38  ;;  %v9855_v2 = vshrl.u32 %v15802_v5, 16  ;;  %v9706_v11 = vcombine.high %v9696_v15, %v9704_v51  ;;  %v10902_v51 = vcombine.high %v9713_v21, %v9713_v21 }
 0xada   : > { %10042 = vrot.lane.b32.xlu0 %v10909_v62, %s11005_s11  ;;  %9786 = vrot.lane.b32.xlu1 %v10903_v35, %s11007_s15  ;;  %v9860_v35 = vshrl.u32 %v15823_v42, 16  ;;  %v10906_v42 = vcombine.high %v9921_v19, %v9921_v19  ;;  %v9007_v19 = vpack.i.b16 %v15926_v44, %v15919_v26  ;;  %v9001_v21 = vpack.i.b16 %v15917_v12, %v15908_v4 }
 0xadb   : > { %v8751_v62 = vcombine.low %v8742_v39, %v8750_v41  ;;  %v9856_v1 = vpack.i.b16 %v9855_v2, %v9854_v10  ;;  %v9720_v15 = vrot.slane %v9706_v11, %v16955_v57 }
 0xadc   : > { %v16120_v59 = vpop.permute.xlu0 %9485  ;;  %v16128_v63 = vpop.permute.xlu1 %9515  ;;  %v9862_v45 = vpack.i.b16 %v9861_v20, %v9860_v35  ;;  %v8752_v20 = vcombine.high %v8742_v39, %v8750_v41  ;;  %v16172_v10 = vrot.slane %v9007_v19, %v16954_v38  ;;  %v8721_v19 = vshrl.u32 %v15906_v0, 16 }
 0xadd   : > { %17074 = vst [vmem:[#allocation42_spill] sm:$0xff] %v16120_v59  ;;  %17075 = vst [vmem:[#allocation47_spill] sm:$0xff] %v16128_v63  ;;  %v9028_v63 = vcombine.high %v16134_v31, %v16126_v55  ;;  %v16163_v2 = vrot.slane %v9856_v1, %v16954_v38  ;;  %v10713_v11 = vcombine.low %v9720_v15, %v9720_v15  ;;  %v8997_v0 = vshrl.u32 %v15878_v23, 16 }
 0xade   : > { %10052 = vrot.lane.b32.xlu0 %v10726_v54, %s11003_s27  ;;  %10002 = vrot.lane.b32.xlu1 %v10716_v8, %s11004_s30  ;;  %v16145_v54 = vrot.slane %v8751_v62, %v16955_v57  ;;  %v16150_v7 = vrot.slane %v9862_v45, %v16954_v38  ;;  %v16179_v1 = vrot.slane %v8752_v20, %v16955_v57 }
 0xae0   : > { %v16138_v59 = vpop.permute.xlu0 %9505  ;;  %v16142_v5 = vpop.permute.xlu1 %8603  ;;  %17077 = vst [vmem:[#allocation18_spill] sm:$0xff] %v16145_v54  ;;  %v10873_v62 = vcombine.high %v16145_v54, %v16145_v54  ;;  %v9981_v39 = vcombine.low %v16163_v2, %v16150_v7  ;;  %v10904_v54 = vcombine.high %v9720_v15, %v9720_v15 }
 0xae1   : > { %17076 = vst [vmem:[#allocation54_spill] sm:$0xff] %v16138_v59 }
 0xae2   : > { %9761 = vrot.lane.b32.xlu0 %v10709_v60, %s11004_s30  ;;  %10012 = vrot.lane.b32.xlu1 %v10906_v42, %s11008_s16  ;;  %v9042_v60 = vrot.slane %v9028_v63, %v16955_v57  ;;  %v8731_v63 = vpack.i.b16 %v15952_v56, %v15944_v40  ;;  %v9989_v22 = vrot.slane %v9981_v39, %v16955_v57 }
 0xae3   : > { %v9027_v39 = vcombine.low %v16134_v31, %v16126_v55 }
 0xae4   : > { %v16152_v8 = vpop.permute.xlu0 %8638  ;;  %v16157_v35 = vpop.permute.xlu1 %8613  ;;  %v10673_v42 = vcombine.low %v9042_v60, %v9042_v60  ;;  %v8818_v20 = vrot.slane %v8731_v63, %v16954_v38  ;;  %v8714_v63 = vshrl.u32 %v15880_v61, 16  ;;  %v10723_v37 = vcombine.low %v9989_v22, %v9989_v22 }
 0xae5   : > { %v10883_v32 = vcombine.high %v9042_v60, %v9042_v60  ;;  %v8990_v61 = vshrl.u32 %v15845_v50, 16  ;;  %v10910_v55 = vcombine.high %v9989_v22, %v9989_v22  ;;  %v16213_v31 = vrot.slane %v9027_v39, %v16955_v57 }
 0xae6   : > { %9771 = vrot.lane.b32.xlu0 %v10902_v51, %s11008_s16  ;;  %8879 = vrot.lane.b32.xlu1 %v10873_v62, %s11005_s11  ;;  %v9086_v51 = vrot.slane %v9001_v21, %v16954_v38  ;;  %v8725_v62 = vpack.i.b16 %v15942_v49, %v15928_v6  ;;  %v8715_v21 = vshrl.u32 %v15893_v3, 16  ;;  %v8996_v3 = vshrl.u32 %v15860_v24, 16 }
 0xae8   : > { %v8609_v41 = vpop.permute.xlu0 %8608  ;;  %v16176_v45 = vpop.permute.xlu1 %8623  ;;  %v9095_v48 = vcombine.low %v9086_v51, %v16172_v10  ;;  %v8810_v15 = vrot.slane %v8725_v62, %v16954_v38  ;;  %v8716_v23 = vpack.i.b16 %v8715_v21, %v8714_v63  ;;  %v8991_v62 = vshrl.u32 %v15858_v30, 16 }
 0xaea   : > { %9781 = vrot.lane.b32.xlu0 %v10713_v11, %s11006_s12  ;;  %9165 = vrot.lane.b32.xlu1 %v10673_v42, %s11003_s27  ;;  %v10659_v11 = vcombine.low %v16179_v1, %v16179_v1  ;;  %v8722_v42 = vpack.i.b16 %v8721_v19, %v8720_v28  ;;  %v8819_v33 = vcombine.low %v8810_v15, %v8818_v20 }
 0xaeb   : > { %v8776_v50 = vrot.slane %v8716_v23, %v16954_v38  ;;  %v8820_v21 = vcombine.high %v8810_v15, %v8818_v20 }
 0xaec   : > { %v8619_v59 = vpop.permute.xlu0 %8618  ;;  %v8649_v52 = vpop.permute.xlu1 %8648  ;;  %v16210_v28 = vrot.slane %v8722_v42, %v16954_v38 }
 0xaee   : > { %9791 = vrot.lane.b32.xlu0 %v10904_v54, %s11009_s17  ;;  %8889 = vrot.lane.b32.xlu1 %v10659_v11, %s11003_s27  ;;  %v16203_v54 = vrot.slane %v9095_v48, %v16955_v57  ;;  %v8998_v11 = vpack.i.b16 %v8997_v0, %v8996_v3  ;;  %v9096_v48 = vcombine.high %v9086_v51, %v16172_v10 }
 0xaef   : > { %v8992_v51 = vpack.i.b16 %v8991_v62, %v8990_v61  ;;  %v10875_v62 = vcombine.high %v16179_v1, %v16179_v1 }
 0xaf0   : > { %v8629_v18 = vpop.permute.xlu0 %8628  ;;  %v8659_v58 = vpop.permute.xlu1 %8658  ;;  %v10885_v30 = vcombine.high %v16203_v54, %v16203_v54  ;;  %v9110_v3 = vrot.slane %v9096_v48, %v16955_v57 }
 0xaf1   : > { %v9052_v15 = vrot.slane %v8992_v51, %v16954_v38  ;;  %v9003_v51 = vshrl.u32 %v15917_v12, 16  ;;  %v8727_v12 = vshrl.u32 %v15942_v49, 16 }
 0xaf2   : > { %10037 = vrot.lane.b32.xlu0 %v10723_v37, %s11004_s30  ;;  %9175 = vrot.lane.b32.xlu1 %v10883_v32, %s11007_s15  ;;  %v16221_v32 = vrot.slane %v8819_v33, %v16955_v57  ;;  %v8785_v33 = vcombine.low %v8776_v50, %v16210_v28 }
 0xaf4   : > { %v8634_v24 = vpop.permute.xlu0 %8633  ;;  %v8599_v60 = vpop.permute.xlu1 %8598  ;;  %v8793_v48 = vrot.slane %v8785_v33, %v16955_v57  ;;  %v8733_v33 = vshrl.u32 %v15952_v56, 16  ;;  %v8726_v56 = vshrl.u32 %v15928_v6, 16 }
 0xaf5   : > { %v8682_v37 = vsel %vm1246_vm2, %v15731_v43, %v8634_v24  ;;  %v8667_v22 = vsel %vm1246_vm2, %v15722_v17, %v8599_v60  ;;  %v9060_v43 = vrot.slane %v8998_v11, %v16954_v38  ;;  %v10881_v17 = vcombine.high %v16213_v31, %v16213_v31 }
 0xaf6   : > { %10047 = vrot.lane.b32.xlu0 %v10910_v55, %s11008_s16  ;;  %v8684_v10 = vsel %vm530_vm4, %v8682_v37, %v16152_v8  ;;  %v8669_v19 = vsel %vm530_vm4, %v8667_v22, %v16142_v5  ;;  %9190 = vrot.lane.b32.xlu1 %v10885_v30, %s11005_s11  ;;  %v10877_v5 = vcombine.high %v16221_v32, %v16221_v32  ;;  %v9009_v60 = vshrl.u32 %v15926_v44, 16 }
 0xaf7   : > { %v8671_v0 = vsel %vm1252_vm5, %v8669_v19, %v8609_v41  ;;  %v8834_v11 = vrot.slane %v8820_v21, %v16955_v57  ;;  %v10680_v55 = vcombine.low %v9110_v3, %v9110_v3  ;;  %v10874_v22 = vcombine.high %v8793_v48, %v8793_v48 }
 0xaf8   : > { %v8644_v39 = vpop.permute.xlu0 %8643  ;;  %v8673_v8 = vsel %vm1255_vm6, %v8671_v0, %v16157_v35  ;;  %v16240_v42 = vpop.permute.xlu1 %8259  ;;  %v9061_v19 = vcombine.low %v9052_v15, %v9060_v43  ;;  %v9002_v44 = vshrl.u32 %v15908_v4, 16 }
 0xaf9   : > { %v8686_v63 = vsel %vm1252_vm5, %v8684_v10, %v8644_v39  ;;  %v8675_v20 = vsel %vm1258_vm7, %v8673_v8, %v8619_v59  ;;  %v9062_v59 = vcombine.high %v9052_v15, %v9060_v43  ;;  %v10666_v37 = vcombine.low %v8834_v11, %v8834_v11 }
 0xafa   : > { %9155 = vrot.lane.b32.xlu0 %v10881_v17, %s11005_s11  ;;  %v8688_v41 = vsel %vm1255_vm6, %v8686_v63, %v8649_v52  ;;  %8914 = vrot.lane.b32.xlu1 %v10877_v5, %s11005_s11  ;;  %v8677_v35 = vsel %vm1261_vm10, %v8675_v20, %v16176_v45  ;;  %v9004_v43 = vpack.i.b16 %v9003_v51, %v9002_v44 }
 0xafb   : > { %v16256_v61 = vsel %vm1264_vm12, %v8677_v35, %v8629_v18  ;;  %v8786_v18 = vcombine.high %v8776_v50, %v16210_v28  ;;  %v9076_v10 = vrot.slane %v9062_v59, %v16955_v57  ;;  %v10887_v28 = vcombine.high %v9110_v3, %v9110_v3 }
 0xafc   : > { %v8654_v23 = vpop.permute.xlu0 %8653  ;;  %v16259_v52 = vpop.permute.xlu1 %7993  ;;  %v10879_v4 = vcombine.high %v8834_v11, %v8834_v11  ;;  %v9069_v5 = vrot.slane %v9061_v19, %v16955_v57 }
 0xafd   : > { %v8690_v24 = vsel %vm1258_vm7, %v8688_v41, %v8654_v23  ;;  %v10674_v39 = vcombine.low %v9076_v10, %v9076_v10  ;;  %v8800_v17 = vrot.slane %v8786_v18, %v16955_v57  ;;  %v8728_v41 = vpack.i.b16 %v8727_v12, %v8726_v56 }
 0xafe   : > { %8899 = vrot.lane.b32.xlu0 %v10875_v62, %s11007_s15  ;;  %v16264_v45 = vsel %vm1261_vm10, %v8690_v24, %v8659_v58  ;;  %9200 = vrot.lane.b32.xlu1 %v10680_v55, %s11003_s27  ;;  %v9008_v58 = vshrl.u32 %v15919_v26, 16  ;;  %v8732_v26 = vshrl.u32 %v15944_v40, 16  ;;  %v9120_v40 = vrot.slane %v9004_v43, %v16954_v38 }
 0xaff   : > { %v10660_v49 = vcombine.low %v8800_v17, %v8800_v17  ;;  %v10670_v35 = vcombine.low %v9069_v5, %v9069_v5  ;;  %v10884_v11 = vcombine.high %v9076_v10, %v9076_v10  ;;  %v8844_v59 = vrot.slane %v8728_v41, %v16954_v38 }
 0xb00   : > { %v16267_v1 = vpop.permute.xlu0 %8663  ;;  %v16271_v30 = vpop.permute.xlu1 %8003  ;;  %v9010_v50 = vpack.i.b16 %v9009_v60, %v9008_v58  ;;  %v8734_v8 = vpack.i.b16 %v8733_v33, %v8732_v26  ;;  %v10876_v60 = vcombine.high %v8800_v17, %v8800_v17 }
 0xb02   : > { %8924 = vrot.lane.b32.xlu0 %v10666_v37, %s11003_s27  ;;  %8884 = vrot.lane.b32.xlu1 %v10874_v22, %s11008_s16  ;;  %v9128_v3 = vrot.slane %v9010_v50, %v16954_v38  ;;  %v8852_v6 = vrot.slane %v8734_v8, %v16954_v38  ;;  %v10656_v37 = vcombine.low %v8793_v48, %v8793_v48 }
 0xb03   : > { %v10882_v38 = vcombine.high %v9069_v5, %v9069_v5 }
 0xb04   : > { %v16279_v21 = vpop.permute.xlu0 %7983  ;;  %v16282_v0 = vpop.permute.xlu1 %8018  ;;  %v9129_v23 = vcombine.low %v9120_v40, %v9128_v3  ;;  %v8853_v24 = vcombine.low %v8844_v59, %v8852_v6  ;;  %v9130_v51 = vcombine.high %v9120_v40, %v9128_v3  ;;  %v8854_v48 = vcombine.high %v8844_v59, %v8852_v6 }
 0xb05   : > { %v9982_v3 = vcombine.high %v16163_v2, %v16150_v7 }
 0xb06   : > { %9210 = vrot.lane.b32.xlu0 %v10887_v28, %s11007_s15  ;;  %9170 = vrot.lane.b32.xlu1 %v10674_v39, %s11006_s12  ;;  %v9137_v22 = vrot.slane %v9129_v23, %v16955_v57  ;;  %v8861_v58 = vrot.slane %v8853_v24, %v16955_v57  ;;  %v9144_v50 = vrot.slane %v9130_v51, %v16955_v57  ;;  %v17079_v51 = vld [vmem:[#allocation36_spill] sm:$0xff] }
 0xb07   : > { %v8868_v43 = vrot.slane %v8854_v48, %v16955_v57  ;;  %v9996_v23 = vrot.slane %v9982_v3, %v16955_v57 }
 0xb08   : > { %v16290_v63 = vpop.permute.xlu0 %8269  ;;  %v16294_v20 = vpop.permute.xlu1 %8294  ;;  %v10677_v33 = vcombine.low %v9137_v22, %v9137_v22  ;;  %v10878_v44 = vcombine.high %v8861_v58, %v8861_v58  ;;  %v10663_v17 = vcombine.low %v8861_v58, %v8861_v58  ;;  %v10681_v26 = vcombine.low %v9144_v50, %v9144_v50  ;;  %v17081_v58 = vld [vmem:[#allocation13_spill] sm:$0xff] }
 0xb09   : > { %v10886_v8 = vcombine.high %v9137_v22, %v9137_v22  ;;  %v10667_v41 = vcombine.low %v8868_v43, %v8868_v43  ;;  %v10880_v59 = vcombine.high %v8868_v43, %v8868_v43  ;;  %v10912_v3 = vcombine.high %v9996_v23, %v9996_v23 }
 0xb0a   : > { %8934 = vrot.lane.b32.xlu0 %v10879_v4, %s11007_s15  ;;  %8894 = vrot.lane.b32.xlu1 %v10660_v49, %s11006_s12  ;;  %v17078_v4 = vcombine.high %v15809_v9, %v15812_v29  ;;  %v10888_v29 = vcombine.high %v9144_v50, %v9144_v50 }
 0xb0c   : > { %v16300_v15 = vpop.permute.xlu0 %8279  ;;  %v16302_v62 = vpop.permute.xlu1 %8038  ;;  %v9928_v5 = vrot.slane %v17078_v4, %v16955_v57  ;;  %v7778_v57 = vsel %vm1246_vm2, %v15596_v36, %v16027_v47 }
 0xb0d   : > { %v7780_v36 = vsel %vm530_vm4, %v7778_v57, %v15971_v46  ;;  %v17082_v46 = vld [vmem:[#allocation11_spill] sm:$0xff] }
 0xb0e   : > { %9150 = vrot.lane.b32.xlu0 %v10670_v35, %s11004_s30  ;;  %9180 = vrot.lane.b32.xlu1 %v10884_v11, %s11009_s17  ;;  %v10720_v6 = vcombine.low %v9928_v5, %v9928_v5 }
 0xb10   : > { %v16307_v55 = vpop.permute.xlu0 %8028  ;;  %v7989_v18 = vpop.permute.xlu1 %7988 }
 0xb12   : > { %8874 = vrot.lane.b32.xlu0 %v10656_v37, %s11004_s30  ;;  %8904 = vrot.lane.b32.xlu1 %v10876_v60, %s11009_s17  ;;  %v10727_v37 = vcombine.low %v9996_v23, %v9996_v23 }
 0xb14   : > { %v16312_v10 = vpop.permute.xlu0 %8304  ;;  %v8265_v19 = vpop.permute.xlu1 %8264 }
 0xb16   : > { %9160 = vrot.lane.b32.xlu0 %v10882_v38, %s11008_s16  ;;  %9185 = vrot.lane.b32.xlu1 %v10677_v33, %s11004_s30  ;;  %v17080_v38 = vld [vmem:[#allocation63_spill] sm:$0xff] }
 0xb18   : > { %v16317_v28 = vpop.permute.xlu0 %8314  ;;  %v16320_v39 = vpop.permute.xlu1 %8274 }
 0xb1a   : > { %8919 = vrot.lane.b32.xlu0 %v10878_v44, %s11008_s16  ;;  %8909 = vrot.lane.b32.xlu1 %v10663_v17, %s11004_s30  ;;  %v10908_v44 = vcombine.high %v9928_v5, %v9928_v5  ;;  %s10736_s30 = sshll.u32 %s17117_s14, 4 }
 0xb1c   : > { %v7979_v12 = vpop.permute.xlu0 %7978  ;;  %v8009_v56 = vpop.permute.xlu1 %8008 }
 0xb1d   : > { %v8047_v35 = vsel %vm1246_vm2, %v15863_v27, %v7979_v12  ;;  %v7763_v27 = vsel %vm1246_vm2, %v15567_v14, %v15983_v34  ;;  %v10907_v14 = vcombine.high %v16052_v16, %v16052_v16  ;;  %v10911_v16 = vcombine.high %v17079_v51, %v17079_v51 }
 0xb1e   : > { %9205 = vrot.lane.b32.xlu0 %v10681_v26, %s11006_s12  ;;  %9195 = vrot.lane.b32.xlu1 %v10886_v8, %s11008_s16  ;;  %v8049_v11 = vsel %vm530_vm4, %v8047_v35, %v16279_v21  ;;  %v7765_v60 = vsel %vm530_vm4, %v7763_v27, %v15954_v53  ;;  %v17084_v26 = vld [vmem:[#allocation26_spill] sm:$0xff] }
 0xb1f   : > { %v8051_v24 = vsel %vm1252_vm5, %v8049_v11, %v7989_v18  ;;  %v7767_v34 = vsel %vm1252_vm5, %v7765_v60, %v15993_v25  ;;  %v17087_v11 = vld [vmem:[#allocation62_spill] sm:$0xff]  ;;  %v17089_v60 = vld [vmem:[#allocation31_spill] sm:$0xff] }
 0xb20   : > { %v8255_v49 = vpop.permute.xlu0 %8254  ;;  %v8014_v40 = vpop.permute.xlu1 %8013  ;;  %v7769_v25 = vsel %vm1255_vm6, %v7767_v34, %v17080_v38 }
 0xb21   : > { %v8323_v7 = vsel %vm1246_vm2, %v15815_v13, %v8255_v49  ;;  %v8062_v33 = vsel %vm1246_vm2, %v17081_v58, %v8014_v40  ;;  %v7771_v43 = vsel %vm1258_vm7, %v7769_v25, %v17084_v26  ;;  %v17085_v49 = vld [vmem:[#allocation59_spill] sm:$0xff]  ;;  %v17091_v58 = vld [vmem:[#allocation9_spill] sm:$0xff] }
 0xb22   : > { %8929 = vrot.lane.b32.xlu0 %v10667_v41, %s11006_s12  ;;  %10022 = vrot.lane.b32.xlu1 %v10720_v6, %s11006_s12  ;;  %v8325_v21 = vsel %vm530_vm4, %v8323_v7, %v16240_v42  ;;  %v8053_v42 = vsel %vm1255_vm6, %v8051_v24, %v16259_v52  ;;  %v17083_v52 = vld [vmem:[#allocation34_spill] sm:$0xff]  ;;  %v8064_v8 = vsel %vm530_vm4, %v8062_v33, %v16282_v0  ;;  %v17088_v24 = vld [vmem:[#allocation64_spill] sm:$0xff] }
 0xb23   : > { %v8327_v47 = vsel %vm1252_vm5, %v8325_v21, %v8265_v19  ;;  %v7782_v50 = vsel %vm1252_vm5, %v7780_v36, %v17083_v52 }
 0xb24   : > { %v7999_v9 = vpop.permute.xlu0 %7998  ;;  %v8024_v2 = vpop.permute.xlu1 %8023  ;;  %v8329_v17 = vsel %vm1255_vm6, %v8327_v47, %v16290_v63  ;;  %v10152_v63 = vld [vmem:[%s16572_s9] sm:$0xff] }
 0xb25   : > { %v8055_v53 = vsel %vm1258_vm7, %v8053_v42, %v7999_v9  ;;  %v8066_v41 = vsel %vm1252_vm5, %v8064_v8, %v8024_v2  ;;  %v8331_v40 = vsel %vm1258_vm7, %v8329_v17, %v16320_v39 }
 0xb26   : > { %9215 = vrot.lane.b32.xlu0 %v10888_v29, %s11009_s17  ;;  %8939 = vrot.lane.b32.xlu1 %v10880_v59, %s11009_s17  ;;  %v8057_v12 = vsel %vm1261_vm10, %v8055_v53, %v16271_v30  ;;  %v7784_v30 = vsel %vm1255_vm6, %v7782_v50, %v17085_v49  ;;  %v17086_v29 = vld [vmem:[#allocation21_spill] sm:$0xff]  ;;  %v8333_v39 = vsel %vm1261_vm10, %v8331_v40, %v16300_v15  ;;  %v17094_v40 = vld [vmem:[#allocation27_spill] sm:$0xff] }
 0xb27   : > { %v8059_v35 = vsel %vm1264_vm12, %v8057_v12, %v8009_v56  ;;  %v7773_v23 = vsel %vm1261_vm10, %v7771_v43, %v17086_v29  ;;  %v7786_v7 = vsel %vm1258_vm7, %v7784_v30, %v17087_v11  ;;  %v8068_v56 = vsel %vm1255_vm6, %v8066_v41, %v16307_v55  ;;  %v17090_v53 = vld [vmem:[#allocation33_spill] sm:$0xff] }
 0xb28   : > { %v8285_v13 = vpop.permute.xlu0 %8284  ;;  %v8310_v22 = vpop.permute.xlu1 %8309  ;;  %v10101_v59 = vrot.slane %v8059_v35, 6 }
 0xb2a   : > { %10057 = vrot.lane.b32.xlu0 %v10727_v37, %s11006_s12  ;;  %10027 = vrot.lane.b32.xlu1 %v10907_v14, %s11007_s15  ;;  %v7775_v37 = vsel %vm1264_vm12, %v7773_v23, %v17088_v24 }
 0xb2b   : > { %v10124_v47 = vsel %vm7099_vm0, %v7775_v37, %v10101_v59 }
 0xb2c   : > { %v8290_v18 = vpop.permute.xlu0 %8289  ;;  %v8320_v48 = vpop.permute.xlu1 %8319 }
 0xb2d   : > { %v8338_v19 = vsel %vm1246_vm2, %v17082_v46, %v8290_v18  ;;  %v10109_v46 = vrot.slane %v16256_v61, 2 }
 0xb2e   : > { %10062 = vrot.lane.b32.xlu0 %v10911_v16, %s11007_s15  ;;  %10032 = vrot.lane.b32.xlu1 %v10908_v44, %s11009_s17  ;;  %v8340_v5 = vsel %vm530_vm4, %v8338_v19, %v16294_v20  ;;  %s379_s15 = scalar_lea.vmem %s16573_s10, %s10736_s30 }
 0xb30   : > { %v8300_v4 = vpop.permute.xlu0 %8299  ;;  %v9732_v0 = vpop.permute.xlu1 %9731 }
 0xb31   : > { %v8342_v6 = vsel %vm1252_vm5, %v8340_v5, %v8300_v4 }
 0xb32   : > { %v8344_v20 = vsel %vm1255_vm6, %v8342_v6, %v16312_v10  ;;  %10067 = vrot.lane.b32.xlu0 %v10912_v3, %s11009_s17  ;;  %10155 = vperm.xlu1 %10988, %v10152_v63   ;;  %v8335_v10 = vsel %vm1264_vm12, %v8333_v39, %v8285_v13 }
 0xb33   : > { %v8346_v9 = vsel %vm1258_vm7, %v8344_v20, %v8310_v22  ;;  %v7788_v22 = vsel %vm1261_vm10, %v7786_v7, %v17089_v60  ;;  %v10105_v15 = vrot.slane %v8335_v10, 4  ;;  %v17095_v20 = vld [vmem:[#allocation28_spill] sm:$0xff] }
 0xb34   : > { %v8034_v2 = vpop.permute.xlu0 %8033  ;;  %v8348_v27 = vsel %vm1261_vm10, %v8346_v9, %v16317_v28  ;;  %v9742_v21 = vpop.permute.xlu1 %9741  ;;  %v8694_v28 = vsel %vm1264_vm12, %v16264_v45, %v16267_v1  ;;  %v7790_v18 = vsel %vm1264_vm12, %v7788_v22, %v17090_v53  ;;  %v17096_v22 = vld [vmem:[#allocation48_spill] sm:$0xff] }
 0xb35   : > { %v8070_v57 = vsel %vm1258_vm7, %v8068_v56, %v8034_v2  ;;  %v8350_v34 = vsel %vm1264_vm12, %v8348_v27, %v8320_v48  ;;  %v10110_v16 = vrot.slane %v8694_v28, 2  ;;  %v10128_v25 = vsel %vm4080_vm13, %v10124_v47, %v10105_v15 }
 0xb36   : > { %v8072_v55 = vsel %vm1261_vm10, %v8070_v57, %v16302_v62  ;;  %v10106_v51 = vrot.slane %v8350_v34, 4  ;;  %v10132_v44 = vsel %vm17093_vm8, %v10128_v25, %v10109_v46 }
 0xb38   : > { %v8044_v14 = vpop.permute.xlu0 %8043  ;;  %v9752_v36 = vpop.permute.xlu1 %9751 }
 0xb39   : > { %v8074_v13 = vsel %vm1264_vm12, %v8072_v55, %v8044_v14 }
 0xb3a   : > { %v10102_v42 = vrot.slane %v8074_v13, 6 }
 0xb3c   : > { %v9727_v38 = vpop.permute.xlu0 %9726  ;;  %v10126_v62 = vsel %vm7099_vm0, %v7790_v18, %v10102_v42  ;;  %v10008_v45 = vpop.permute.xlu1 %10007 }
 0xb3d   : > { %v9795_v33 = vsel %vm1246_vm2, %v17091_v58, %v9727_v38  ;;  %v10130_v1 = vsel %vm4080_vm13, %v10126_v62, %v10106_v51 }
 0xb3e   : > { %v10135_v19 = vsel %vm17092_vm3, %v10130_v1, %v10110_v16  ;;  %v9797_v48 = vsel %vm530_vm4, %v9795_v33, %v9732_v0 }
 0xb3f   : > { %10165 = vmatprep.subr.bf16.mxu0 %v10135_v19 }
 0xb40   : > { %v9777_v52 = vpop.permute.xlu0 %9776  ;;  %10166 = vmatpush1.bf16.msra.mxu0 %v10132_v44  ;;  %v10018_v50 = vpop.permute.xlu1 %10017  ;;  %v17098_v44 = vld [vmem:[#allocation67_spill] sm:$0xff] }
 0xb44   : > { %v9747_v17 = vpop.permute.xlu0 %9746  ;;  %v9767_v12 = vpop.permute.xlu1 %9766 }
 0xb48   : > { %v9757_v26 = vpop.permute.xlu0 %9756  ;;  %v9737_v43 = vpop.permute.xlu1 %9736 }
 0xb49   : > { %v9799_v8 = vsel %vm1252_vm5, %v9797_v48, %v9737_v43  ;;  %v17097_v48 = vld [vmem:[#allocation42_spill] sm:$0xff]  ;;  %v17100_v43 = vld [vmem:[#allocation29_spill] sm:$0xff] }
 0xb4a   : > { %v9801_v4 = vsel %vm1255_vm6, %v9799_v8, %v9742_v21 }
 0xb4b   : > { %v9803_v61 = vsel %vm1258_vm7, %v9801_v4, %v9747_v17 }
 0xb4c   : > { %v10043_v5 = vpop.permute.xlu0 %10042  ;;  %v9805_v3 = vsel %vm1261_vm10, %v9803_v61, %v9752_v36  ;;  %v9787_v63 = vpop.permute.xlu1 %9786 }
 0xb4d   : > { %v16443_v49 = vsel %vm1264_vm12, %v9805_v3, %v9757_v26  ;;  %v17102_v3 = vld [vmem:[#allocation22_spill] sm:$0xff] }
 0xb50   : > { %v10053_v30 = vpop.permute.xlu0 %10052  ;;  %v10003_v41 = vpop.permute.xlu1 %10002 }
 0xb51   : > { %v10071_v6 = vsel %vm1246_vm2, %v17094_v40, %v10003_v41  ;;  %v17103_v41 = vld [vmem:[#allocation46_spill] sm:$0xff] }
 0xb52   : > { %v10073_v0 = vsel %vm530_vm4, %v10071_v6, %v10008_v45 }
 0xb54   : > { %v9762_v35 = vpop.permute.xlu0 %9761  ;;  %v10013_v29 = vpop.permute.xlu1 %10012 }
 0xb55   : > { %v9810_v9 = vsel %vm1246_vm2, %v17095_v20, %v9762_v35  ;;  %v10075_v23 = vsel %vm1252_vm5, %v10073_v0, %v10013_v29  ;;  %v17104_v20 = vld [vmem:[#allocation35_spill] sm:$0xff] }
 0xb56   : > { %v9812_v11 = vsel %vm530_vm4, %v9810_v9, %v9767_v12  ;;  %v16453_v7 = vsel %vm1255_vm6, %v10075_v23, %v10018_v50  ;;  %v17099_v50 = vld [vmem:[#allocation18_spill] sm:$0xff]  ;;  %v17105_v23 = vld [vmem:[#allocation41_spill] sm:$0xff] }
 0xb58   : > { %v9772_v39 = vpop.permute.xlu0 %9771  ;;  %v8880_v56 = vpop.permute.xlu1 %8879 }
 0xb59   : > { %v9814_v2 = vsel %vm1252_vm5, %v9812_v11, %v9772_v39 }
 0xb5a   : > { %v9816_v59 = vsel %vm1255_vm6, %v9814_v2, %v9777_v52  ;;  %v9534_v52 = vsel %vm1246_vm2, %v17098_v44, %v17097_v48 }
 0xb5b   : > { %v9536_v8 = vsel %vm530_vm4, %v9534_v52, %v17100_v43 }
 0xb5c   : > { %v9782_v10 = vpop.permute.xlu0 %9781  ;;  %v9166_v57 = vpop.permute.xlu1 %9165  ;;  %v9538_v40 = vsel %vm1252_vm5, %v9536_v8, %v17103_v41 }
 0xb5d   : > { %v9818_v27 = vsel %vm1258_vm7, %v9816_v59, %v9782_v10 }
 0xb5e   : > { %v16459_v21 = vsel %vm1261_vm10, %v9818_v27, %v9787_v63 }
 0xb60   : > { %v16461_v24 = vpop.permute.xlu0 %9791  ;;  %v8890_v37 = vpop.permute.xlu1 %8889 }
 0xb64   : > { %v10038_v60 = vpop.permute.xlu0 %10037  ;;  %v9176_v14 = vpop.permute.xlu1 %9175 }
 0xb65   : > { %v10086_v15 = vsel %vm1246_vm2, %v17096_v22, %v10038_v60  ;;  %v17107_v22 = vld [vmem:[#allocation32_spill] sm:$0xff] }
 0xb66   : > { %v10088_v55 = vsel %vm530_vm4, %v10086_v15, %v10043_v5 }
 0xb68   : > { %v10048_v34 = vpop.permute.xlu0 %10047  ;;  %v9191_v13 = vpop.permute.xlu1 %9190 }
 0xb69   : > { %v10090_v28 = vsel %vm1252_vm5, %v10088_v55, %v10048_v34 }
 0xb6a   : > { %v16468_v36 = vsel %vm1255_vm6, %v10090_v28, %v10053_v30 }
 0xb6c   : > { %v9156_v47 = vpop.permute.xlu0 %9155  ;;  %v8915_v42 = vpop.permute.xlu1 %8914 }
 0xb70   : > { %v8900_v53 = vpop.permute.xlu0 %8899  ;;  %v9201_v18 = vpop.permute.xlu1 %9200 }
 0xb74   : > { %v8925_v51 = vpop.permute.xlu0 %8924  ;;  %v8885_v16 = vpop.permute.xlu1 %8884 }
 0xb78   : > { %v9211_v38 = vpop.permute.xlu0 %9210  ;;  %v9171_v62 = vpop.permute.xlu1 %9170 }
 0xb7c   : > { %v8935_v25 = vpop.permute.xlu0 %8934  ;;  %v8895_v58 = vpop.permute.xlu1 %8894 }
 0xb80   : > { %v9151_v33 = vpop.permute.xlu0 %9150  ;;  %v9181_v45 = vpop.permute.xlu1 %9180 }
 0xb81   : > { %v9219_v46 = vsel %vm1246_vm2, %v16213_v31, %v9151_v33  ;;  %v17101_v31 = vld [vmem:[#allocation23_spill] sm:$0xff] }
 0xb82   : > { %v9221_v12 = vsel %vm530_vm4, %v9219_v46, %v9156_v47  ;;  %v9519_v63 = vsel %vm1246_vm2, %v17102_v3, %v17101_v31 }
 0xb83   : > { %v9521_v9 = vsel %vm530_vm4, %v9519_v63, %v17104_v20 }
 0xb84   : > { %v8875_v1 = vpop.permute.xlu0 %8874  ;;  %v8905_v19 = vpop.permute.xlu1 %8904  ;;  %v9523_v11 = vsel %vm1252_vm5, %v9521_v9, %v17105_v23 }
 0xb85   : > { %v8943_v17 = vsel %vm1246_vm2, %v17099_v50, %v8875_v1  ;;  %v9525_v15 = vsel %vm1255_vm6, %v9523_v11, %v17107_v22  ;;  %v17110_v1 = vld [vmem:[#allocation40_spill] sm:$0xff] }
 0xb86   : > { %v8945_v4 = vsel %vm530_vm4, %v8943_v17, %v8880_v56  ;;  %v17106_v56 = vld [vmem:[#allocation39_spill] sm:$0xff]  ;;  %v17112_v17 = vld [vmem:[#allocation38_spill] sm:$0xff] }
 0xb87   : > { %v8947_v6 = vsel %vm1252_vm5, %v8945_v4, %v8885_v16  ;;  %v9540_v59 = vsel %vm1255_vm6, %v9538_v40, %v17106_v56  ;;  %v17109_v16 = vld [vmem:[#allocation49_spill] sm:$0xff] }
 0xb88   : > { %v9161_v26 = vpop.permute.xlu0 %9160  ;;  %v9186_v5 = vpop.permute.xlu1 %9185  ;;  %v8949_v10 = vsel %vm1255_vm6, %v8947_v6, %v8890_v37 }
 0xb89   : > { %v9223_v61 = vsel %vm1252_vm5, %v9221_v12, %v9161_v26  ;;  %v9234_v39 = vsel %vm1246_vm2, %v16203_v54, %v9186_v5  ;;  %v17108_v54 = vld [vmem:[#allocation54_spill] sm:$0xff]  ;;  %v17113_v26 = vld [vmem:[#allocation47_spill] sm:$0xff] }
 0xb8a   : > { %v9225_v30 = vsel %vm1255_vm6, %v9223_v61, %v9166_v57  ;;  %v9236_v55 = vsel %vm530_vm4, %v9234_v39, %v9191_v13  ;;  %v9542_v28 = vsel %vm1258_vm7, %v9540_v59, %v17108_v54  ;;  %v9822_v61 = vsel %vm1264_vm12, %v16459_v21, %v16461_v24 }
 0xb8b   : > { %v9227_v0 = vsel %vm1258_vm7, %v9225_v30, %v9171_v62  ;;  %v9544_v13 = vsel %vm1261_vm10, %v9542_v28, %v17110_v1  ;;  %v10121_v24 = vrot.slane %v16443_v49, 2 }
 0xb8c   : > { %v8920_v35 = vpop.permute.xlu0 %8919  ;;  %v8910_v29 = vpop.permute.xlu1 %8909  ;;  %v9229_v27 = vsel %vm1261_vm10, %v9227_v0, %v9176_v14  ;;  %v9527_v14 = vsel %vm1258_vm7, %v9525_v15, %v17109_v16  ;;  %v9546_v43 = vsel %vm1264_vm12, %v9544_v13, %v17113_v26 }
 0xb8d   : > { %v8958_v2 = vsel %vm1246_vm2, %v16221_v32, %v8910_v29  ;;  %v8951_v32 = vsel %vm1258_vm7, %v8949_v10, %v8895_v58  ;;  %v9231_v47 = vsel %vm1264_vm12, %v9229_v27, %v9181_v45  ;;  %v17111_v45 = vld [vmem:[#allocation45_spill] sm:$0xff]  ;;  %v10118_v41 = vrot.slane %v9546_v43, 4 }
 0xb8e   : > { %v8960_v57 = vsel %vm530_vm4, %v8958_v2, %v8915_v42  ;;  %v8953_v46 = vsel %vm1261_vm10, %v8951_v32, %v8900_v53  ;;  %v10113_v48 = vrot.slane %v9231_v47, 6  ;;  %v9529_v52 = vsel %vm1261_vm10, %v9527_v14, %v17111_v45  ;;  %vm17114_vm4 = vmmov %vm17092_vm3 }
 0xb8f   : > { %v8962_v62 = vsel %vm1252_vm5, %v8960_v57, %v8920_v35  ;;  %v8955_v8 = vsel %vm1264_vm12, %v8953_v46, %v8905_v19  ;;  %v10122_v19 = vrot.slane %v9822_v61, 2 }
 0xb90   : > { %v9206_v60 = vpop.permute.xlu0 %9205  ;;  %v9196_v34 = vpop.permute.xlu1 %9195  ;;  %v8964_v50 = vsel %vm1255_vm6, %v8962_v62, %v8925_v51  ;;  %v10138_v31 = vsel %vm7099_vm0, %v8955_v8, %v10113_v48 }
 0xb91   : > { %v9238_v37 = vsel %vm1252_vm5, %v9236_v55, %v9196_v34 }
 0xb92   : > { %v9240_v42 = vsel %vm1255_vm6, %v9238_v37, %v9201_v18  ;;  %v9531_v18 = vsel %vm1264_vm12, %v9529_v52, %v17112_v17 }
 0xb93   : > { %v9242_v58 = vsel %vm1258_vm7, %v9240_v42, %v9206_v60  ;;  %v10117_v3 = vrot.slane %v9531_v18, 4 }
 0xb94   : > { %v8930_v33 = vpop.permute.xlu0 %8929  ;;  %v10023_v44 = vpop.permute.xlu1 %10022  ;;  %v9244_v4 = vsel %vm1261_vm10, %v9242_v58, %v9211_v38 }
 0xb95   : > { %v8966_v12 = vsel %vm1258_vm7, %v8964_v50, %v8930_v33  ;;  %v10142_v0 = vsel %vm4080_vm13, %v10138_v31, %v10117_v3  ;;  %v10079_v29 = vsel %vm1258_vm7, %v16453_v7, %v10023_v44  ;;  %v10151_v7 = vld [vmem:[%s16571_s8] sm:$0xf] }
 0xb96   : > { %v8968_v30 = vsel %vm1261_vm10, %v8966_v12, %v8935_v25  ;;  %v10146_v9 = vsel %vm17115_vm9, %v10142_v0, %v10121_v24 }
 0xb98   : > { %v9216_v53 = vpop.permute.xlu0 %9215  ;;  %v8940_v51 = vpop.permute.xlu1 %8939 }
 0xb99   : > { %v9246_v5 = vsel %vm1264_vm12, %v9244_v4, %v9216_v53  ;;  %v8970_v40 = vsel %vm1264_vm12, %v8968_v30, %v8940_v51 }
 0xb9a   : > { %v10114_v63 = vrot.slane %v9246_v5, 6 }
 0xb9c   : > { %v10140_v6 = vsel %vm7099_vm0, %v8970_v40, %v10114_v63  ;;  %v10058_v38 = vpop.permute.xlu0 %10057  ;;  %v10028_v35 = vpop.permute.xlu1 %10027 }
 0xb9d   : > { %v10144_v21 = vsel %vm4080_vm13, %v10140_v6, %v10118_v41  ;;  %v10081_v11 = vsel %vm1261_vm10, %v10079_v29, %v10028_v35  ;;  %v10094_v39 = vsel %vm1258_vm7, %v16468_v36, %v10058_v38 }
 0xb9e   : > { %v10149_v20 = vsel %vm17114_vm4, %v10144_v21, %v10122_v19 }
 0xb9f   : > { %10167 = vmatprep.subr.bf16.mxu0 %v10149_v20 }
 0xba0   : > { %v10063_v25 = vpop.permute.xlu0 %10062  ;;  %10168 = vmatpush1.bf16.msra.mxu0 %v10146_v9  ;;  %v10033_v23 = vpop.permute.xlu1 %10032 }
 0xba1   : > { %v10083_v2 = vsel %vm1264_vm12, %v10081_v11, %v10033_v23  ;;  %v10096_v49 = vsel %vm1261_vm10, %v10094_v39, %v10063_v25 }
 0xba2   : > { %v10161_v10 = vsel %vm7099_vm0, %v10083_v2, 0 }
 0xba4   : > { %v10068_v56 = vpop.permute.xlu0 %10067 }
 0xba5   : > { %v10098_v59 = vsel %vm1264_vm12, %v10096_v49, %v10068_v56 }
 0xba6   : > { %10730 = vmatprep.subr.msk.bf16.mxu0 %vm7099_vm0, %v10098_v59 }
 0xba7   : > { %10170 = vmatpush1.bf16.msra.mxu0 %v10161_v10 }
 0xbaa   : > { %10731 = vmatmul.mubr.msk.bf16.vlgmr.msra.gmra.mrb[4].mxu0 %vm7136_vm15, %v10151_v7 }
 0xbb1   : > { %v10156_v27 = vpop.permute.xlu1 %10155 }
 0xc7d   : > { %v10199_v36 = vpop.f32.mrb[4].mxu0 }
 0xc7e   : > { %v10201_v57 = vpop.f32.mrb[5].mxu0  ;;  %v10200_v60 = vadd.f32 %v10199_v36, %v10156_v27 }
 0xc7f   : > { %v10203_v22 = vpop.f32.mrb[6].mxu0  ;;  %v10202_v15 = vadd.f32 %v10201_v57, %v10156_v27 }
 0xc80   : > { %v10206_v55 = vmax.f32 %v10200_v60, 0.0  ;;  %v10204_v34 = vpop.f32.mrb[7].mxu0 }
 0xc81   : > { %v10207_v54 = vmax.f32 %v10202_v15, 0.0 }
 0xc82   : > { %10208 = vst [vmem:[%s379_s15] sm:$0xff] %v10206_v55 }
 0xc83   : > { %10209 = vst [vmem:[%s379_s15 + $0x8] sm:$0xff] %v10207_v54 }
 0xc84 PF: > { %s20_s13 = sadd.s32 1, %s10995_s13  }
 0xc85   : > { %p17_p4 = scmp.ge.s32.totalorder %s20_s13, 4  }
 0xc87   :  { %19 = sbr.rel (!%p17_p4) target bundleno = 1 (0x1), region = 94 }

</bundles_post_ra>
